<compile_context>
chip_gen: v6e
topology: v6e:2x2x1
jax: 0.10.0
libtpu: 0.0.40
codegen_flags: <defaults>
</compile_context>

<pallas_src>
import numpy as np
import jax
import jax.numpy as jnp
from jax.experimental import pallas as pl
from jax.experimental.pallas import tpu as pltpu

_C1PACK = 8     # conv1 channels padded 6 -> 8   (pool1 lanes: 16 * 8  = 128)
_PW1PAD = 16    # pool1 width padded 14 -> 16
_C2PACK = 16    # conv2 channels                 (pool2 lanes:  8 * 16 = 128)
_PW2PAD = 8     # pool2 width padded 5 -> 8
_LANES = 128


def _sigmoid(x):
    return 1.0 / (1.0 + jnp.exp(-x))


# ------------------------------- the kernel --------------------------------

def _make_lenet_kernel(batch, num_classes):
    B = batch

    def kernel(x_ref, t1_ref, b1_ref, t2_ref, b2_ref,
               wf1_ref, bf1_ref, wf2_ref, bf2_ref, wf3_ref, bf3_ref,
               out_ref, p1_ref, p2_ref):
        # ---- conv1 (5x5, 1->6) + sigmoid + maxpool2x2, fully fused --------
        # Output-row parity dh comes from stride-2 sublane reads of the
        # input; output-column parity dw is baked into the Toeplitz weights.
        for b in range(B):
            pooled = None
            for dh in range(2):
                for dw in range(2):
                    acc = None
                    for ki in range(5):
                        xk = x_ref[pl.ds(b * 32 + dh + ki, 14, stride=2), :]
                        term = jnp.dot(xk, t1_ref[dw * 5 + ki],
                                       preferred_element_type=jnp.float32)
                        acc = term if acc is None else acc + term
                    act = _sigmoid(acc + b1_ref[...])
                    pooled = act if pooled is None else jnp.maximum(pooled, act)
            # rows b*16 .. b*16+13 hold image b (lane = pw1*8 + c), 128 lanes.
            p1_ref[pl.ds(b * 16, 14), :] = pooled

        # ---- conv2 (5x5, 6->16) + sigmoid + maxpool2x2, fully fused -------
        for b in range(B):
            pooled = None
            for dh in range(2):
                for dw in range(2):
                    acc = None
                    for ki in range(5):
                        pk = p1_ref[pl.ds(b * 16 + dh + ki, 5, stride=2), :]
                        term = jnp.dot(pk, t2_ref[dw * 5 + ki],
                                       preferred_element_type=jnp.float32)
                        acc = term if acc is None else acc + term
                    act = _sigmoid(acc + b2_ref[...])
                    pooled = act if pooled is None else jnp.maximum(pooled, act)
            # rows b*8 .. b*8+4 hold image b (lane = pw2*16 + o2), 128 lanes.
            p2_ref[pl.ds(b * 8, 5), :] = pooled

        # ---- fc head (NCHW-flatten folded into wf1), batched over images --
        acc = None
        for h in range(5):
            feat_h = p2_ref[pl.ds(h, B, stride=8), :]            # (B, 128)
            term = jnp.dot(feat_h, wf1_ref[h],
                           preferred_element_type=jnp.float32)
            acc = term if acc is None else acc + term
        h1 = _sigmoid(acc + bf1_ref[...])
        h2 = _sigmoid(jnp.dot(h1, wf2_ref[...],
                              preferred_element_type=jnp.float32) + bf2_ref[...])
        logits = jnp.dot(h2, wf3_ref[...],
                         preferred_element_type=jnp.float32) + bf3_ref[...]
        out_ref[...] = logits[:, :num_classes]

    return kernel


# --------------------- one-time host-side weight prep ----------------------

def prepare_params(params, num_classes):
    w1 = np.asarray(params["conv1_w"], np.float32)    # (6, 1, 5, 5)
    b1 = np.asarray(params["conv1_b"], np.float32)
    w2 = np.asarray(params["conv2_w"], np.float32)    # (16, 6, 5, 5)
    b2 = np.asarray(params["conv2_b"], np.float32)
    f1w = np.asarray(params["fc1_w"], np.float32)     # (400, 120) (in, out)
    f1b = np.asarray(params["fc1_b"], np.float32)
    f2w = np.asarray(params["fc2_w"], np.float32)     # (120, 84)
    f2b = np.asarray(params["fc2_b"], np.float32)
    f3w = np.asarray(params["fc3_w"], np.float32)     # (84, NC)
    f3b = np.asarray(params["fc3_b"], np.float32)

    # conv1 Toeplitz-along-W weights, parity-split by output column.
    # t1[dw, ki] : (32, 128); col lane = pw1*8 + oc ; row = input W index.
    t1 = np.zeros((2, 5, 32, _LANES), np.float32)
    for dw in range(2):
        for ki in range(5):
            for pw in range(14):
                for kj in range(5):
                    win = 2 * pw + dw + kj
                    t1[dw, ki, win, pw * _C1PACK:pw * _C1PACK + 6] = w1[:, 0, ki, kj]
    b1row = np.zeros((1, _LANES), np.float32)
    for pw in range(14):
        b1row[0, pw * _C1PACK:pw * _C1PACK + 6] = b1

    # conv2 Toeplitz weights: t2[dw, ki] : (128, 128);
    # row = ow1*8 + c  (pool1 lane layout), col = pw2*16 + o2.
    t2 = np.zeros((2, 5, _LANES, _LANES), np.float32)
    for dw in range(2):
        for ki in range(5):
            for pw2 in range(5):
                for kj in range(5):
                    ow1 = 2 * pw2 + dw + kj
                    for c in range(6):
                        t2[dw, ki, ow1 * _C1PACK + c,
                           pw2 * _C2PACK:pw2 * _C2PACK + 16] = w2[:, c, ki, kj]
    b2row = np.zeros((1, _LANES), np.float32)
    for pw2 in range(5):
        b2row[0, pw2 * _C2PACK:pw2 * _C2PACK + 16] = b2

    # fc1 with the PyTorch NCHW flatten folded in:
    # feature (c, h, w) lives at p2 row h, lane w*16 + c; torch idx c*25+h*5+w.
    wf1 = np.zeros((5, _LANES, _LANES), np.float32)
    for h in range(5):
        for w in range(5):
            for c in range(16):
                wf1[h, w * _C2PACK + c, :120] = f1w[c * 25 + h * 5 + w, :]
    bf1 = np.zeros((1, _LANES), np.float32)
    bf1[0, :120] = f1b

    wf2 = np.zeros((_LANES, _LANES), np.float32)
    wf2[:120, :84] = f2w
    bf2 = np.zeros((1, _LANES), np.float32)
    bf2[0, :84] = f2b

    wf3 = np.zeros((_LANES, _LANES), np.float32)
    wf3[:84, :num_classes] = f3w
    bf3 = np.zeros((1, _LANES), np.float32)
    bf3[0, :num_classes] = f3b

    return {
        "t1": jnp.asarray(t1.reshape(10, 32, _LANES)),
        "b1": jnp.asarray(b1row),
        "t2": jnp.asarray(t2.reshape(10, _LANES, _LANES)),
        "b2": jnp.asarray(b2row),
        "wf1": jnp.asarray(wf1), "bf1": jnp.asarray(bf1),
        "wf2": jnp.asarray(wf2), "bf2": jnp.asarray(bf2),
        "wf3": jnp.asarray(wf3), "bf3": jnp.asarray(bf3),
        "num_classes": int(num_classes),
    }


# ------------------------------- wrapper ------------------------------------

def lenet_forward(img_nchw, prepped):
    B = int(img_nchw.shape[0])
    num_classes = int(prepped["num_classes"])
    assert img_nchw.shape[1:] == (1, 32, 32), "LeNet_32 expects 1x32x32 input"

    # (B,1,32,32) -> (B*32, 32): a free contiguous reinterpretation.
    x2d = img_nchw.reshape(B * 32, 32).astype(jnp.float32)

    arrays = [x2d, prepped["t1"], prepped["b1"], prepped["t2"], prepped["b2"],
              prepped["wf1"], prepped["bf1"], prepped["wf2"], prepped["bf2"],
              prepped["wf3"], prepped["bf3"]]

    def _full_spec(a):
        nd = a.ndim
        return pl.BlockSpec(a.shape, lambda i, _nd=nd: (0,) * _nd)

    flops = 2 * B * (28 * 28 * 6 * 25
                     + 10 * 10 * 16 * 25 * 6
                     + 400 * 120 + 120 * 84 + 84 * num_classes)
    transcendentals = B * (4 * 14 * 14 * 6 + 4 * 5 * 5 * 16 + 120 + 84)
    bytes_accessed = sum(int(np.prod(a.shape)) * 4 for a in arrays) \
        + B * num_classes * 4

    kernel = _make_lenet_kernel(B, num_classes)
    return pl.pallas_call(
        kernel,
        out_shape=jax.ShapeDtypeStruct((B, num_classes), jnp.float32),
        grid=(1,),
        in_specs=[_full_spec(a) for a in arrays],
        out_specs=pl.BlockSpec((B, num_classes), lambda i: (0, 0)),
        scratch_shapes=[
            pltpu.VMEM((B * 16, _LANES), jnp.float32),   # pool1 activations
            pltpu.VMEM((B * 8, _LANES), jnp.float32),    # pool2 activations
        ],
        compiler_params=pltpu.CompilerParams(
            dimension_semantics=("arbitrary",)),
        cost_estimate=pl.CostEstimate(flops=flops,
                                      transcendentals=transcendentals,
                                      bytes_accessed=bytes_accessed),
    )(*arrays)


# --------------------------- params & reference -----------------------------

def init_params(key, num_classes):
    def uniform(k, shape, fan_in):
        bound = 1.0 / np.sqrt(fan_in)
        return jax.random.uniform(k, shape, jnp.float32, -bound, bound)

    keys = jax.random.split(key, 10)
    return {
        "conv1_w": uniform(keys[0], (6, 1, 5, 5), 1 * 25),
        "conv1_b": uniform(keys[1], (6,), 1 * 25),
        "conv2_w": uniform(keys[2], (16, 6, 5, 5), 6 * 25),
        "conv2_b": uniform(keys[3], (16,), 6 * 25),
        "fc1_w": uniform(keys[4], (400, 120), 400),   # stored (in, out)
        "fc1_b": uniform(keys[5], (120,), 400),
        "fc2_w": uniform(keys[6], (120, 84), 120),
        "fc2_b": uniform(keys[7], (84,), 120),
        "fc3_w": uniform(keys[8], (84, num_classes), 84),
        "fc3_b": uniform(keys[9], (84,), 84)[:0].reshape(0) if False else
                 uniform(keys[9], (num_classes,), 84),
    }


def lenet_reference(img, params):
    # Pure-JAX reference mirroring the PyTorch forward (NCHW).
    dn = ("NCHW", "OIHW", "NCHW")
    x = jax.lax.conv_general_dilated(img, params["conv1_w"], (1, 1), "VALID",
                                     dimension_numbers=dn)
    x = _sigmoid(x + params["conv1_b"][None, :, None, None])
    x = jax.lax.reduce_window(x, -jnp.inf, jax.lax.max,
                              (1, 1, 2, 2), (1, 1, 2, 2), "VALID")
    x = jax.lax.conv_general_dilated(x, params["conv2_w"], (1, 1), "VALID",
                                     dimension_numbers=dn)
    x = _sigmoid(x + params["conv2_b"][None, :, None, None])
    x = jax.lax.reduce_window(x, -jnp.inf, jax.lax.max,
                              (1, 1, 2, 2), (1, 1, 2, 2), "VALID")
    feat = x.reshape(x.shape[0], -1)
    h1 = _sigmoid(feat @ params["fc1_w"] + params["fc1_b"])
    h2 = _sigmoid(h1 @ params["fc2_w"] + params["fc2_b"])
    return h2 @ params["fc3_w"] + params["fc3_b"]


if __name__ == "__main__":
    key = jax.random.PRNGKey(0)
    pkey, xkey = jax.random.split(key)
    num_classes = 10
    params = init_params(pkey, num_classes)
    prepped = prepare_params(params, num_classes)   # one-time weight prep

    # LeNet_32 requires 1x32x32 inputs (fc expects 16*5*5 features).
    x = jax.random.normal(xkey, (2, 1, 32, 32), jnp.float32)

    out = lenet_forward(x, prepped)
    out = jax.block_until_ready(out)
    assert out.shape == (2, num_classes)

    ref = lenet_reference(x, params)
    np.testing.assert_allclose(np.asarray(out), np.asarray(ref),
                               rtol=2e-2, atol=2e-2)
    print("KERNEL_OK")
</pallas_src>

<mosaic_0001>
module attributes {stable_mosaic.version = 11 : i64} {
  func.func @kernel(%arg0: i32, %arg1: memref<64x32xf32, #tpu.memory_space<vmem>>, %arg2: memref<10x32x128xf32, #tpu.memory_space<vmem>>, %arg3: memref<1x128xf32, #tpu.memory_space<vmem>>, %arg4: memref<10x128x128xf32, #tpu.memory_space<vmem>>, %arg5: memref<1x128xf32, #tpu.memory_space<vmem>>, %arg6: memref<5x128x128xf32, #tpu.memory_space<vmem>>, %arg7: memref<1x128xf32, #tpu.memory_space<vmem>>, %arg8: memref<128x128xf32, #tpu.memory_space<vmem>>, %arg9: memref<1x128xf32, #tpu.memory_space<vmem>>, %arg10: memref<128x128xf32, #tpu.memory_space<vmem>>, %arg11: memref<1x128xf32, #tpu.memory_space<vmem>>, %arg12: memref<2x10xf32, #tpu.memory_space<vmem>>, %arg13: memref<32x128xf32, #tpu.memory_space<vmem>>, %arg14: memref<16x128xf32, #tpu.memory_space<vmem>>) attributes {dimension_semantics = [#tpu.dimension_semantics<arbitrary>], iteration_bounds = array<i64: 1>, scalar_prefetch = 0 : i64, scratch_operands = 2 : i64, tpu.core_type = #tpu.core_type<tc>, window_params = [{pipeline_mode = #tpu.pipeline_mode<synchronous>, transform_indices = @transform_0, window_bounds = array<i64: 64, 32>}, {pipeline_mode = #tpu.pipeline_mode<synchronous>, transform_indices = @transform_1, window_bounds = array<i64: 10, 32, 128>}, {pipeline_mode = #tpu.pipeline_mode<synchronous>, transform_indices = @transform_2, window_bounds = array<i64: 1, 128>}, {pipeline_mode = #tpu.pipeline_mode<synchronous>, transform_indices = @transform_3, window_bounds = array<i64: 10, 128, 128>}, {pipeline_mode = #tpu.pipeline_mode<synchronous>, transform_indices = @transform_4, window_bounds = array<i64: 1, 128>}, {pipeline_mode = #tpu.pipeline_mode<synchronous>, transform_indices = @transform_5, window_bounds = array<i64: 5, 128, 128>}, {pipeline_mode = #tpu.pipeline_mode<synchronous>, transform_indices = @transform_6, window_bounds = array<i64: 1, 128>}, {pipeline_mode = #tpu.pipeline_mode<synchronous>, transform_indices = @transform_7, window_bounds = array<i64: 128, 128>}, {pipeline_mode = #tpu.pipeline_mode<synchronous>, transform_indices = @transform_8, window_bounds = array<i64: 1, 128>}, {pipeline_mode = #tpu.pipeline_mode<synchronous>, transform_indices = @transform_9, window_bounds = array<i64: 128, 128>}, {pipeline_mode = #tpu.pipeline_mode<synchronous>, transform_indices = @transform_10, window_bounds = array<i64: 1, 128>}, {pipeline_mode = #tpu.pipeline_mode<synchronous>, transform_indices = @transform_11, window_bounds = array<i64: 2, 10>}]} {
    %c0 = arith.constant 0 : index
    %c0_0 = arith.constant 0 : index
    %0 = tpu.strided_load %arg1[%c0, %c0_0] {strides = array<i32: 2, 1>} : memref<64x32xf32, #tpu.memory_space<vmem>>, vector<14x32xf32>
    %c0_1 = arith.constant 0 : index
    %c0_2 = arith.constant 0 : index
    %c0_3 = arith.constant 0 : index
    %1 = vector.load %arg2[%c0_1, %c0_2, %c0_3] : memref<10x32x128xf32, #tpu.memory_space<vmem>>, vector<1x32x128xf32>
    %2 = vector.shape_cast %1 : vector<1x32x128xf32> to vector<32x128xf32>
    %cst = arith.constant dense<0.000000e+00> : vector<14x128xf32>
    %3 = tpu.matmul %0, %2, %cst {dimension_numbers = #tpu.dot_dimension_numbers<[1], [0], [0], [1], [0, 0, 1, 1], [], []>} : vector<14x32xf32>, vector<32x128xf32>, vector<14x128xf32> -> vector<14x128xf32>
    %c1 = arith.constant 1 : index
    %c0_4 = arith.constant 0 : index
    %4 = tpu.strided_load %arg1[%c1, %c0_4] {strides = array<i32: 2, 1>} : memref<64x32xf32, #tpu.memory_space<vmem>>, vector<14x32xf32>
    %c1_5 = arith.constant 1 : index
    %c0_6 = arith.constant 0 : index
    %c0_7 = arith.constant 0 : index
    %5 = vector.load %arg2[%c1_5, %c0_6, %c0_7] : memref<10x32x128xf32, #tpu.memory_space<vmem>>, vector<1x32x128xf32>
    %6 = vector.shape_cast %5 : vector<1x32x128xf32> to vector<32x128xf32>
    %cst_8 = arith.constant dense<0.000000e+00> : vector<14x128xf32>
    %7 = tpu.matmul %4, %6, %cst_8 {dimension_numbers = #tpu.dot_dimension_numbers<[1], [0], [0], [1], [0, 0, 1, 1], [], []>} : vector<14x32xf32>, vector<32x128xf32>, vector<14x128xf32> -> vector<14x128xf32>
    %8 = arith.addf %3, %7 : vector<14x128xf32>
    %c2 = arith.constant 2 : index
    %c0_9 = arith.constant 0 : index
    %9 = tpu.strided_load %arg1[%c2, %c0_9] {strides = array<i32: 2, 1>} : memref<64x32xf32, #tpu.memory_space<vmem>>, vector<14x32xf32>
    %c2_10 = arith.constant 2 : index
    %c0_11 = arith.constant 0 : index
    %c0_12 = arith.constant 0 : index
    %10 = vector.load %arg2[%c2_10, %c0_11, %c0_12] : memref<10x32x128xf32, #tpu.memory_space<vmem>>, vector<1x32x128xf32>
    %11 = vector.shape_cast %10 : vector<1x32x128xf32> to vector<32x128xf32>
    %cst_13 = arith.constant dense<0.000000e+00> : vector<14x128xf32>
    %12 = tpu.matmul %9, %11, %cst_13 {dimension_numbers = #tpu.dot_dimension_numbers<[1], [0], [0], [1], [0, 0, 1, 1], [], []>} : vector<14x32xf32>, vector<32x128xf32>, vector<14x128xf32> -> vector<14x128xf32>
    %13 = arith.addf %8, %12 : vector<14x128xf32>
    %c3 = arith.constant 3 : index
    %c0_14 = arith.constant 0 : index
    %14 = tpu.strided_load %arg1[%c3, %c0_14] {strides = array<i32: 2, 1>} : memref<64x32xf32, #tpu.memory_space<vmem>>, vector<14x32xf32>
    %c3_15 = arith.constant 3 : index
    %c0_16 = arith.constant 0 : index
    %c0_17 = arith.constant 0 : index
    %15 = vector.load %arg2[%c3_15, %c0_16, %c0_17] : memref<10x32x128xf32, #tpu.memory_space<vmem>>, vector<1x32x128xf32>
    %16 = vector.shape_cast %15 : vector<1x32x128xf32> to vector<32x128xf32>
    %cst_18 = arith.constant dense<0.000000e+00> : vector<14x128xf32>
    %17 = tpu.matmul %14, %16, %cst_18 {dimension_numbers = #tpu.dot_dimension_numbers<[1], [0], [0], [1], [0, 0, 1, 1], [], []>} : vector<14x32xf32>, vector<32x128xf32>, vector<14x128xf32> -> vector<14x128xf32>
    %18 = arith.addf %13, %17 : vector<14x128xf32>
    %c4 = arith.constant 4 : index
    %c0_19 = arith.constant 0 : index
    %19 = tpu.strided_load %arg1[%c4, %c0_19] {strides = array<i32: 2, 1>} : memref<64x32xf32, #tpu.memory_space<vmem>>, vector<14x32xf32>
    %c4_20 = arith.constant 4 : index
    %c0_21 = arith.constant 0 : index
    %c0_22 = arith.constant 0 : index
    %20 = vector.load %arg2[%c4_20, %c0_21, %c0_22] : memref<10x32x128xf32, #tpu.memory_space<vmem>>, vector<1x32x128xf32>
    %21 = vector.shape_cast %20 : vector<1x32x128xf32> to vector<32x128xf32>
    %cst_23 = arith.constant dense<0.000000e+00> : vector<14x128xf32>
    %22 = tpu.matmul %19, %21, %cst_23 {dimension_numbers = #tpu.dot_dimension_numbers<[1], [0], [0], [1], [0, 0, 1, 1], [], []>} : vector<14x32xf32>, vector<32x128xf32>, vector<14x128xf32> -> vector<14x128xf32>
    %23 = arith.addf %18, %22 : vector<14x128xf32>
    %c0_24 = arith.constant 0 : index
    %c0_25 = arith.constant 0 : index
    %24 = vector.load %arg3[%c0_24, %c0_25] : memref<1x128xf32, #tpu.memory_space<vmem>>, vector<1x128xf32>
    %25 = vector.broadcast %24 : vector<1x128xf32> to vector<14x128xf32>
    %26 = arith.addf %23, %25 : vector<14x128xf32>
    %cst_26 = arith.constant 0.000000e+00 : f32
    %27 = vector.broadcast %cst_26 : f32 to vector<14x128xf32>
    %28 = arith.subf %27, %26 : vector<14x128xf32>
    %29 = math.exp %28 : vector<14x128xf32>
    %cst_27 = arith.constant 1.000000e+00 : f32
    %30 = vector.broadcast %cst_27 : f32 to vector<14x128xf32>
    %31 = arith.addf %30, %29 : vector<14x128xf32>
    %cst_28 = arith.constant 1.000000e+00 : f32
    %32 = vector.broadcast %cst_28 : f32 to vector<14x128xf32>
    %33 = arith.divf %32, %31 : vector<14x128xf32>
    %c0_29 = arith.constant 0 : index
    %c0_30 = arith.constant 0 : index
    %34 = tpu.strided_load %arg1[%c0_29, %c0_30] {strides = array<i32: 2, 1>} : memref<64x32xf32, #tpu.memory_space<vmem>>, vector<14x32xf32>
    %c5 = arith.constant 5 : index
    %c0_31 = arith.constant 0 : index
    %c0_32 = arith.constant 0 : index
    %35 = vector.load %arg2[%c5, %c0_31, %c0_32] : memref<10x32x128xf32, #tpu.memory_space<vmem>>, vector<1x32x128xf32>
    %36 = vector.shape_cast %35 : vector<1x32x128xf32> to vector<32x128xf32>
    %cst_33 = arith.constant dense<0.000000e+00> : vector<14x128xf32>
    %37 = tpu.matmul %34, %36, %cst_33 {dimension_numbers = #tpu.dot_dimension_numbers<[1], [0], [0], [1], [0, 0, 1, 1], [], []>} : vector<14x32xf32>, vector<32x128xf32>, vector<14x128xf32> -> vector<14x128xf32>
    %c1_34 = arith.constant 1 : index
    %c0_35 = arith.constant 0 : index
    %38 = tpu.strided_load %arg1[%c1_34, %c0_35] {strides = array<i32: 2, 1>} : memref<64x32xf32, #tpu.memory_space<vmem>>, vector<14x32xf32>
    %c6 = arith.constant 6 : index
    %c0_36 = arith.constant 0 : index
    %c0_37 = arith.constant 0 : index
    %39 = vector.load %arg2[%c6, %c0_36, %c0_37] : memref<10x32x128xf32, #tpu.memory_space<vmem>>, vector<1x32x128xf32>
    %40 = vector.shape_cast %39 : vector<1x32x128xf32> to vector<32x128xf32>
    %cst_38 = arith.constant dense<0.000000e+00> : vector<14x128xf32>
    %41 = tpu.matmul %38, %40, %cst_38 {dimension_numbers = #tpu.dot_dimension_numbers<[1], [0], [0], [1], [0, 0, 1, 1], [], []>} : vector<14x32xf32>, vector<32x128xf32>, vector<14x128xf32> -> vector<14x128xf32>
    %42 = arith.addf %37, %41 : vector<14x128xf32>
    %c2_39 = arith.constant 2 : index
    %c0_40 = arith.constant 0 : index
    %43 = tpu.strided_load %arg1[%c2_39, %c0_40] {strides = array<i32: 2, 1>} : memref<64x32xf32, #tpu.memory_space<vmem>>, vector<14x32xf32>
    %c7 = arith.constant 7 : index
    %c0_41 = arith.constant 0 : index
    %c0_42 = arith.constant 0 : index
    %44 = vector.load %arg2[%c7, %c0_41, %c0_42] : memref<10x32x128xf32, #tpu.memory_space<vmem>>, vector<1x32x128xf32>
    %45 = vector.shape_cast %44 : vector<1x32x128xf32> to vector<32x128xf32>
    %cst_43 = arith.constant dense<0.000000e+00> : vector<14x128xf32>
    %46 = tpu.matmul %43, %45, %cst_43 {dimension_numbers = #tpu.dot_dimension_numbers<[1], [0], [0], [1], [0, 0, 1, 1], [], []>} : vector<14x32xf32>, vector<32x128xf32>, vector<14x128xf32> -> vector<14x128xf32>
    %47 = arith.addf %42, %46 : vector<14x128xf32>
    %c3_44 = arith.constant 3 : index
    %c0_45 = arith.constant 0 : index
    %48 = tpu.strided_load %arg1[%c3_44, %c0_45] {strides = array<i32: 2, 1>} : memref<64x32xf32, #tpu.memory_space<vmem>>, vector<14x32xf32>
    %c8 = arith.constant 8 : index
    %c0_46 = arith.constant 0 : index
    %c0_47 = arith.constant 0 : index
    %49 = vector.load %arg2[%c8, %c0_46, %c0_47] : memref<10x32x128xf32, #tpu.memory_space<vmem>>, vector<1x32x128xf32>
    %50 = vector.shape_cast %49 : vector<1x32x128xf32> to vector<32x128xf32>
    %cst_48 = arith.constant dense<0.000000e+00> : vector<14x128xf32>
    %51 = tpu.matmul %48, %50, %cst_48 {dimension_numbers = #tpu.dot_dimension_numbers<[1], [0], [0], [1], [0, 0, 1, 1], [], []>} : vector<14x32xf32>, vector<32x128xf32>, vector<14x128xf32> -> vector<14x128xf32>
    %52 = arith.addf %47, %51 : vector<14x128xf32>
    %c4_49 = arith.constant 4 : index
    %c0_50 = arith.constant 0 : index
    %53 = tpu.strided_load %arg1[%c4_49, %c0_50] {strides = array<i32: 2, 1>} : memref<64x32xf32, #tpu.memory_space<vmem>>, vector<14x32xf32>
    %c9 = arith.constant 9 : index
    %c0_51 = arith.constant 0 : index
    %c0_52 = arith.constant 0 : index
    %54 = vector.load %arg2[%c9, %c0_51, %c0_52] : memref<10x32x128xf32, #tpu.memory_space<vmem>>, vector<1x32x128xf32>
    %55 = vector.shape_cast %54 : vector<1x32x128xf32> to vector<32x128xf32>
    %cst_53 = arith.constant dense<0.000000e+00> : vector<14x128xf32>
    %56 = tpu.matmul %53, %55, %cst_53 {dimension_numbers = #tpu.dot_dimension_numbers<[1], [0], [0], [1], [0, 0, 1, 1], [], []>} : vector<14x32xf32>, vector<32x128xf32>, vector<14x128xf32> -> vector<14x128xf32>
    %57 = arith.addf %52, %56 : vector<14x128xf32>
    %c0_54 = arith.constant 0 : index
    %c0_55 = arith.constant 0 : index
    %58 = vector.load %arg3[%c0_54, %c0_55] : memref<1x128xf32, #tpu.memory_space<vmem>>, vector<1x128xf32>
    %59 = vector.broadcast %58 : vector<1x128xf32> to vector<14x128xf32>
    %60 = arith.addf %57, %59 : vector<14x128xf32>
    %cst_56 = arith.constant 0.000000e+00 : f32
    %61 = vector.broadcast %cst_56 : f32 to vector<14x128xf32>
    %62 = arith.subf %61, %60 : vector<14x128xf32>
    %63 = math.exp %62 : vector<14x128xf32>
    %cst_57 = arith.constant 1.000000e+00 : f32
    %64 = vector.broadcast %cst_57 : f32 to vector<14x128xf32>
    %65 = arith.addf %64, %63 : vector<14x128xf32>
    %cst_58 = arith.constant 1.000000e+00 : f32
    %66 = vector.broadcast %cst_58 : f32 to vector<14x128xf32>
    %67 = arith.divf %66, %65 : vector<14x128xf32>
    %68 = arith.maximumf %33, %67 : vector<14x128xf32>
    %c1_59 = arith.constant 1 : index
    %c0_60 = arith.constant 0 : index
    %69 = tpu.strided_load %arg1[%c1_59, %c0_60] {strides = array<i32: 2, 1>} : memref<64x32xf32, #tpu.memory_space<vmem>>, vector<14x32xf32>
    %c0_61 = arith.constant 0 : index
    %c0_62 = arith.constant 0 : index
    %c0_63 = arith.constant 0 : index
    %70 = vector.load %arg2[%c0_61, %c0_62, %c0_63] : memref<10x32x128xf32, #tpu.memory_space<vmem>>, vector<1x32x128xf32>
    %71 = vector.shape_cast %70 : vector<1x32x128xf32> to vector<32x128xf32>
    %cst_64 = arith.constant dense<0.000000e+00> : vector<14x128xf32>
    %72 = tpu.matmul %69, %71, %cst_64 {dimension_numbers = #tpu.dot_dimension_numbers<[1], [0], [0], [1], [0, 0, 1, 1], [], []>} : vector<14x32xf32>, vector<32x128xf32>, vector<14x128xf32> -> vector<14x128xf32>
    %c2_65 = arith.constant 2 : index
    %c0_66 = arith.constant 0 : index
    %73 = tpu.strided_load %arg1[%c2_65, %c0_66] {strides = array<i32: 2, 1>} : memref<64x32xf32, #tpu.memory_space<vmem>>, vector<14x32xf32>
    %c1_67 = arith.constant 1 : index
    %c0_68 = arith.constant 0 : index
    %c0_69 = arith.constant 0 : index
    %74 = vector.load %arg2[%c1_67, %c0_68, %c0_69] : memref<10x32x128xf32, #tpu.memory_space<vmem>>, vector<1x32x128xf32>
    %75 = vector.shape_cast %74 : vector<1x32x128xf32> to vector<32x128xf32>
    %cst_70 = arith.constant dense<0.000000e+00> : vector<14x128xf32>
    %76 = tpu.matmul %73, %75, %cst_70 {dimension_numbers = #tpu.dot_dimension_numbers<[1], [0], [0], [1], [0, 0, 1, 1], [], []>} : vector<14x32xf32>, vector<32x128xf32>, vector<14x128xf32> -> vector<14x128xf32>
    %77 = arith.addf %72, %76 : vector<14x128xf32>
    %c3_71 = arith.constant 3 : index
    %c0_72 = arith.constant 0 : index
    %78 = tpu.strided_load %arg1[%c3_71, %c0_72] {strides = array<i32: 2, 1>} : memref<64x32xf32, #tpu.memory_space<vmem>>, vector<14x32xf32>
    %c2_73 = arith.constant 2 : index
    %c0_74 = arith.constant 0 : index
    %c0_75 = arith.constant 0 : index
    %79 = vector.load %arg2[%c2_73, %c0_74, %c0_75] : memref<10x32x128xf32, #tpu.memory_space<vmem>>, vector<1x32x128xf32>
    %80 = vector.shape_cast %79 : vector<1x32x128xf32> to vector<32x128xf32>
    %cst_76 = arith.constant dense<0.000000e+00> : vector<14x128xf32>
    %81 = tpu.matmul %78, %80, %cst_76 {dimension_numbers = #tpu.dot_dimension_numbers<[1], [0], [0], [1], [0, 0, 1, 1], [], []>} : vector<14x32xf32>, vector<32x128xf32>, vector<14x128xf32> -> vector<14x128xf32>
    %82 = arith.addf %77, %81 : vector<14x128xf32>
    %c4_77 = arith.constant 4 : index
    %c0_78 = arith.constant 0 : index
    %83 = tpu.strided_load %arg1[%c4_77, %c0_78] {strides = array<i32: 2, 1>} : memref<64x32xf32, #tpu.memory_space<vmem>>, vector<14x32xf32>
    %c3_79 = arith.constant 3 : index
    %c0_80 = arith.constant 0 : index
    %c0_81 = arith.constant 0 : index
    %84 = vector.load %arg2[%c3_79, %c0_80, %c0_81] : memref<10x32x128xf32, #tpu.memory_space<vmem>>, vector<1x32x128xf32>
    %85 = vector.shape_cast %84 : vector<1x32x128xf32> to vector<32x128xf32>
    %cst_82 = arith.constant dense<0.000000e+00> : vector<14x128xf32>
    %86 = tpu.matmul %83, %85, %cst_82 {dimension_numbers = #tpu.dot_dimension_numbers<[1], [0], [0], [1], [0, 0, 1, 1], [], []>} : vector<14x32xf32>, vector<32x128xf32>, vector<14x128xf32> -> vector<14x128xf32>
    %87 = arith.addf %82, %86 : vector<14x128xf32>
    %c5_83 = arith.constant 5 : index
    %c0_84 = arith.constant 0 : index
    %88 = tpu.strided_load %arg1[%c5_83, %c0_84] {strides = array<i32: 2, 1>} : memref<64x32xf32, #tpu.memory_space<vmem>>, vector<14x32xf32>
    %c4_85 = arith.constant 4 : index
    %c0_86 = arith.constant 0 : index
    %c0_87 = arith.constant 0 : index
    %89 = vector.load %arg2[%c4_85, %c0_86, %c0_87] : memref<10x32x128xf32, #tpu.memory_space<vmem>>, vector<1x32x128xf32>
    %90 = vector.shape_cast %89 : vector<1x32x128xf32> to vector<32x128xf32>
    %cst_88 = arith.constant dense<0.000000e+00> : vector<14x128xf32>
    %91 = tpu.matmul %88, %90, %cst_88 {dimension_numbers = #tpu.dot_dimension_numbers<[1], [0], [0], [1], [0, 0, 1, 1], [], []>} : vector<14x32xf32>, vector<32x128xf32>, vector<14x128xf32> -> vector<14x128xf32>
    %92 = arith.addf %87, %91 : vector<14x128xf32>
    %c0_89 = arith.constant 0 : index
    %c0_90 = arith.constant 0 : index
    %93 = vector.load %arg3[%c0_89, %c0_90] : memref<1x128xf32, #tpu.memory_space<vmem>>, vector<1x128xf32>
    %94 = vector.broadcast %93 : vector<1x128xf32> to vector<14x128xf32>
    %95 = arith.addf %92, %94 : vector<14x128xf32>
    %cst_91 = arith.constant 0.000000e+00 : f32
    %96 = vector.broadcast %cst_91 : f32 to vector<14x128xf32>
    %97 = arith.subf %96, %95 : vector<14x128xf32>
    %98 = math.exp %97 : vector<14x128xf32>
    %cst_92 = arith.constant 1.000000e+00 : f32
    %99 = vector.broadcast %cst_92 : f32 to vector<14x128xf32>
    %100 = arith.addf %99, %98 : vector<14x128xf32>
    %cst_93 = arith.constant 1.000000e+00 : f32
    %101 = vector.broadcast %cst_93 : f32 to vector<14x128xf32>
    %102 = arith.divf %101, %100 : vector<14x128xf32>
    %103 = arith.maximumf %68, %102 : vector<14x128xf32>
    %c1_94 = arith.constant 1 : index
    %c0_95 = arith.constant 0 : index
    %104 = tpu.strided_load %arg1[%c1_94, %c0_95] {strides = array<i32: 2, 1>} : memref<64x32xf32, #tpu.memory_space<vmem>>, vector<14x32xf32>
    %c5_96 = arith.constant 5 : index
    %c0_97 = arith.constant 0 : index
    %c0_98 = arith.constant 0 : index
    %105 = vector.load %arg2[%c5_96, %c0_97, %c0_98] : memref<10x32x128xf32, #tpu.memory_space<vmem>>, vector<1x32x128xf32>
    %106 = vector.shape_cast %105 : vector<1x32x128xf32> to vector<32x128xf32>
    %cst_99 = arith.constant dense<0.000000e+00> : vector<14x128xf32>
    %107 = tpu.matmul %104, %106, %cst_99 {dimension_numbers = #tpu.dot_dimension_numbers<[1], [0], [0], [1], [0, 0, 1, 1], [], []>} : vector<14x32xf32>, vector<32x128xf32>, vector<14x128xf32> -> vector<14x128xf32>
    %c2_100 = arith.constant 2 : index
    %c0_101 = arith.constant 0 : index
    %108 = tpu.strided_load %arg1[%c2_100, %c0_101] {strides = array<i32: 2, 1>} : memref<64x32xf32, #tpu.memory_space<vmem>>, vector<14x32xf32>
    %c6_102 = arith.constant 6 : index
    %c0_103 = arith.constant 0 : index
    %c0_104 = arith.constant 0 : index
    %109 = vector.load %arg2[%c6_102, %c0_103, %c0_104] : memref<10x32x128xf32, #tpu.memory_space<vmem>>, vector<1x32x128xf32>
    %110 = vector.shape_cast %109 : vector<1x32x128xf32> to vector<32x128xf32>
    %cst_105 = arith.constant dense<0.000000e+00> : vector<14x128xf32>
    %111 = tpu.matmul %108, %110, %cst_105 {dimension_numbers = #tpu.dot_dimension_numbers<[1], [0], [0], [1], [0, 0, 1, 1], [], []>} : vector<14x32xf32>, vector<32x128xf32>, vector<14x128xf32> -> vector<14x128xf32>
    %112 = arith.addf %107, %111 : vector<14x128xf32>
    %c3_106 = arith.constant 3 : index
    %c0_107 = arith.constant 0 : index
    %113 = tpu.strided_load %arg1[%c3_106, %c0_107] {strides = array<i32: 2, 1>} : memref<64x32xf32, #tpu.memory_space<vmem>>, vector<14x32xf32>
    %c7_108 = arith.constant 7 : index
    %c0_109 = arith.constant 0 : index
    %c0_110 = arith.constant 0 : index
    %114 = vector.load %arg2[%c7_108, %c0_109, %c0_110] : memref<10x32x128xf32, #tpu.memory_space<vmem>>, vector<1x32x128xf32>
    %115 = vector.shape_cast %114 : vector<1x32x128xf32> to vector<32x128xf32>
    %cst_111 = arith.constant dense<0.000000e+00> : vector<14x128xf32>
    %116 = tpu.matmul %113, %115, %cst_111 {dimension_numbers = #tpu.dot_dimension_numbers<[1], [0], [0], [1], [0, 0, 1, 1], [], []>} : vector<14x32xf32>, vector<32x128xf32>, vector<14x128xf32> -> vector<14x128xf32>
    %117 = arith.addf %112, %116 : vector<14x128xf32>
    %c4_112 = arith.constant 4 : index
    %c0_113 = arith.constant 0 : index
    %118 = tpu.strided_load %arg1[%c4_112, %c0_113] {strides = array<i32: 2, 1>} : memref<64x32xf32, #tpu.memory_space<vmem>>, vector<14x32xf32>
    %c8_114 = arith.constant 8 : index
    %c0_115 = arith.constant 0 : index
    %c0_116 = arith.constant 0 : index
    %119 = vector.load %arg2[%c8_114, %c0_115, %c0_116] : memref<10x32x128xf32, #tpu.memory_space<vmem>>, vector<1x32x128xf32>
    %120 = vector.shape_cast %119 : vector<1x32x128xf32> to vector<32x128xf32>
    %cst_117 = arith.constant dense<0.000000e+00> : vector<14x128xf32>
    %121 = tpu.matmul %118, %120, %cst_117 {dimension_numbers = #tpu.dot_dimension_numbers<[1], [0], [0], [1], [0, 0, 1, 1], [], []>} : vector<14x32xf32>, vector<32x128xf32>, vector<14x128xf32> -> vector<14x128xf32>
    %122 = arith.addf %117, %121 : vector<14x128xf32>
    %c5_118 = arith.constant 5 : index
    %c0_119 = arith.constant 0 : index
    %123 = tpu.strided_load %arg1[%c5_118, %c0_119] {strides = array<i32: 2, 1>} : memref<64x32xf32, #tpu.memory_space<vmem>>, vector<14x32xf32>
    %c9_120 = arith.constant 9 : index
    %c0_121 = arith.constant 0 : index
    %c0_122 = arith.constant 0 : index
    %124 = vector.load %arg2[%c9_120, %c0_121, %c0_122] : memref<10x32x128xf32, #tpu.memory_space<vmem>>, vector<1x32x128xf32>
    %125 = vector.shape_cast %124 : vector<1x32x128xf32> to vector<32x128xf32>
    %cst_123 = arith.constant dense<0.000000e+00> : vector<14x128xf32>
    %126 = tpu.matmul %123, %125, %cst_123 {dimension_numbers = #tpu.dot_dimension_numbers<[1], [0], [0], [1], [0, 0, 1, 1], [], []>} : vector<14x32xf32>, vector<32x128xf32>, vector<14x128xf32> -> vector<14x128xf32>
    %127 = arith.addf %122, %126 : vector<14x128xf32>
    %c0_124 = arith.constant 0 : index
    %c0_125 = arith.constant 0 : index
    %128 = vector.load %arg3[%c0_124, %c0_125] : memref<1x128xf32, #tpu.memory_space<vmem>>, vector<1x128xf32>
    %129 = vector.broadcast %128 : vector<1x128xf32> to vector<14x128xf32>
    %130 = arith.addf %127, %129 : vector<14x128xf32>
    %cst_126 = arith.constant 0.000000e+00 : f32
    %131 = vector.broadcast %cst_126 : f32 to vector<14x128xf32>
    %132 = arith.subf %131, %130 : vector<14x128xf32>
    %133 = math.exp %132 : vector<14x128xf32>
    %cst_127 = arith.constant 1.000000e+00 : f32
    %134 = vector.broadcast %cst_127 : f32 to vector<14x128xf32>
    %135 = arith.addf %134, %133 : vector<14x128xf32>
    %cst_128 = arith.constant 1.000000e+00 : f32
    %136 = vector.broadcast %cst_128 : f32 to vector<14x128xf32>
    %137 = arith.divf %136, %135 : vector<14x128xf32>
    %138 = arith.maximumf %103, %137 : vector<14x128xf32>
    %c0_129 = arith.constant 0 : index
    %c0_130 = arith.constant 0 : index
    %139 = vector.load %arg13[%c0_129, %c0_130] : memref<32x128xf32, #tpu.memory_space<vmem>>, vector<14x128xf32>
    tpu.vector_store %arg13[%c0_129, %c0_130], %138 {strides = array<i32>} : memref<32x128xf32, #tpu.memory_space<vmem>>, vector<14x128xf32>,
    %c32 = arith.constant 32 : index
    %c0_131 = arith.constant 0 : index
    %140 = tpu.strided_load %arg1[%c32, %c0_131] {strides = array<i32: 2, 1>} : memref<64x32xf32, #tpu.memory_space<vmem>>, vector<14x32xf32>
    %c0_132 = arith.constant 0 : index
    %c0_133 = arith.constant 0 : index
    %c0_134 = arith.constant 0 : index
    %141 = vector.load %arg2[%c0_132, %c0_133, %c0_134] : memref<10x32x128xf32, #tpu.memory_space<vmem>>, vector<1x32x128xf32>
    %142 = vector.shape_cast %141 : vector<1x32x128xf32> to vector<32x128xf32>
    %cst_135 = arith.constant dense<0.000000e+00> : vector<14x128xf32>
    %143 = tpu.matmul %140, %142, %cst_135 {dimension_numbers = #tpu.dot_dimension_numbers<[1], [0], [0], [1], [0, 0, 1, 1], [], []>} : vector<14x32xf32>, vector<32x128xf32>, vector<14x128xf32> -> vector<14x128xf32>
    %c33 = arith.constant 33 : index
    %c0_136 = arith.constant 0 : index
    %144 = tpu.strided_load %arg1[%c33, %c0_136] {strides = array<i32: 2, 1>} : memref<64x32xf32, #tpu.memory_space<vmem>>, vector<14x32xf32>
    %c1_137 = arith.constant 1 : index
    %c0_138 = arith.constant 0 : index
    %c0_139 = arith.constant 0 : index
    %145 = vector.load %arg2[%c1_137, %c0_138, %c0_139] : memref<10x32x128xf32, #tpu.memory_space<vmem>>, vector<1x32x128xf32>
    %146 = vector.shape_cast %145 : vector<1x32x128xf32> to vector<32x128xf32>
    %cst_140 = arith.constant dense<0.000000e+00> : vector<14x128xf32>
    %147 = tpu.matmul %144, %146, %cst_140 {dimension_numbers = #tpu.dot_dimension_numbers<[1], [0], [0], [1], [0, 0, 1, 1], [], []>} : vector<14x32xf32>, vector<32x128xf32>, vector<14x128xf32> -> vector<14x128xf32>
    %148 = arith.addf %143, %147 : vector<14x128xf32>
    %c34 = arith.constant 34 : index
    %c0_141 = arith.constant 0 : index
    %149 = tpu.strided_load %arg1[%c34, %c0_141] {strides = array<i32: 2, 1>} : memref<64x32xf32, #tpu.memory_space<vmem>>, vector<14x32xf32>
    %c2_142 = arith.constant 2 : index
    %c0_143 = arith.constant 0 : index
    %c0_144 = arith.constant 0 : index
    %150 = vector.load %arg2[%c2_142, %c0_143, %c0_144] : memref<10x32x128xf32, #tpu.memory_space<vmem>>, vector<1x32x128xf32>
    %151 = vector.shape_cast %150 : vector<1x32x128xf32> to vector<32x128xf32>
    %cst_145 = arith.constant dense<0.000000e+00> : vector<14x128xf32>
    %152 = tpu.matmul %149, %151, %cst_145 {dimension_numbers = #tpu.dot_dimension_numbers<[1], [0], [0], [1], [0, 0, 1, 1], [], []>} : vector<14x32xf32>, vector<32x128xf32>, vector<14x128xf32> -> vector<14x128xf32>
    %153 = arith.addf %148, %152 : vector<14x128xf32>
    %c35 = arith.constant 35 : index
    %c0_146 = arith.constant 0 : index
    %154 = tpu.strided_load %arg1[%c35, %c0_146] {strides = array<i32: 2, 1>} : memref<64x32xf32, #tpu.memory_space<vmem>>, vector<14x32xf32>
    %c3_147 = arith.constant 3 : index
    %c0_148 = arith.constant 0 : index
    %c0_149 = arith.constant 0 : index
    %155 = vector.load %arg2[%c3_147, %c0_148, %c0_149] : memref<10x32x128xf32, #tpu.memory_space<vmem>>, vector<1x32x128xf32>
    %156 = vector.shape_cast %155 : vector<1x32x128xf32> to vector<32x128xf32>
    %cst_150 = arith.constant dense<0.000000e+00> : vector<14x128xf32>
    %157 = tpu.matmul %154, %156, %cst_150 {dimension_numbers = #tpu.dot_dimension_numbers<[1], [0], [0], [1], [0, 0, 1, 1], [], []>} : vector<14x32xf32>, vector<32x128xf32>, vector<14x128xf32> -> vector<14x128xf32>
    %158 = arith.addf %153, %157 : vector<14x128xf32>
    %c36 = arith.constant 36 : index
    %c0_151 = arith.constant 0 : index
    %159 = tpu.strided_load %arg1[%c36, %c0_151] {strides = array<i32: 2, 1>} : memref<64x32xf32, #tpu.memory_space<vmem>>, vector<14x32xf32>
    %c4_152 = arith.constant 4 : index
    %c0_153 = arith.constant 0 : index
    %c0_154 = arith.constant 0 : index
    %160 = vector.load %arg2[%c4_152, %c0_153, %c0_154] : memref<10x32x128xf32, #tpu.memory_space<vmem>>, vector<1x32x128xf32>
    %161 = vector.shape_cast %160 : vector<1x32x128xf32> to vector<32x128xf32>
    %cst_155 = arith.constant dense<0.000000e+00> : vector<14x128xf32>
    %162 = tpu.matmul %159, %161, %cst_155 {dimension_numbers = #tpu.dot_dimension_numbers<[1], [0], [0], [1], [0, 0, 1, 1], [], []>} : vector<14x32xf32>, vector<32x128xf32>, vector<14x128xf32> -> vector<14x128xf32>
    %163 = arith.addf %158, %162 : vector<14x128xf32>
    %c0_156 = arith.constant 0 : index
    %c0_157 = arith.constant 0 : index
    %164 = vector.load %arg3[%c0_156, %c0_157] : memref<1x128xf32, #tpu.memory_space<vmem>>, vector<1x128xf32>
    %165 = vector.broadcast %164 : vector<1x128xf32> to vector<14x128xf32>
    %166 = arith.addf %163, %165 : vector<14x128xf32>
    %cst_158 = arith.constant 0.000000e+00 : f32
    %167 = vector.broadcast %cst_158 : f32 to vector<14x128xf32>
    %168 = arith.subf %167, %166 : vector<14x128xf32>
    %169 = math.exp %168 : vector<14x128xf32>
    %cst_159 = arith.constant 1.000000e+00 : f32
    %170 = vector.broadcast %cst_159 : f32 to vector<14x128xf32>
    %171 = arith.addf %170, %169 : vector<14x128xf32>
    %cst_160 = arith.constant 1.000000e+00 : f32
    %172 = vector.broadcast %cst_160 : f32 to vector<14x128xf32>
    %173 = arith.divf %172, %171 : vector<14x128xf32>
    %c32_161 = arith.constant 32 : index
    %c0_162 = arith.constant 0 : index
    %174 = tpu.strided_load %arg1[%c32_161, %c0_162] {strides = array<i32: 2, 1>} : memref<64x32xf32, #tpu.memory_space<vmem>>, vector<14x32xf32>
    %c5_163 = arith.constant 5 : index
    %c0_164 = arith.constant 0 : index
    %c0_165 = arith.constant 0 : index
    %175 = vector.load %arg2[%c5_163, %c0_164, %c0_165] : memref<10x32x128xf32, #tpu.memory_space<vmem>>, vector<1x32x128xf32>
    %176 = vector.shape_cast %175 : vector<1x32x128xf32> to vector<32x128xf32>
    %cst_166 = arith.constant dense<0.000000e+00> : vector<14x128xf32>
    %177 = tpu.matmul %174, %176, %cst_166 {dimension_numbers = #tpu.dot_dimension_numbers<[1], [0], [0], [1], [0, 0, 1, 1], [], []>} : vector<14x32xf32>, vector<32x128xf32>, vector<14x128xf32> -> vector<14x128xf32>
    %c33_167 = arith.constant 33 : index
    %c0_168 = arith.constant 0 : index
    %178 = tpu.strided_load %arg1[%c33_167, %c0_168] {strides = array<i32: 2, 1>} : memref<64x32xf32, #tpu.memory_space<vmem>>, vector<14x32xf32>
    %c6_169 = arith.constant 6 : index
    %c0_170 = arith.constant 0 : index
    %c0_171 = arith.constant 0 : index
    %179 = vector.load %arg2[%c6_169, %c0_170, %c0_171] : memref<10x32x128xf32, #tpu.memory_space<vmem>>, vector<1x32x128xf32>
    %180 = vector.shape_cast %179 : vector<1x32x128xf32> to vector<32x128xf32>
    %cst_172 = arith.constant dense<0.000000e+00> : vector<14x128xf32>
    %181 = tpu.matmul %178, %180, %cst_172 {dimension_numbers = #tpu.dot_dimension_numbers<[1], [0], [0], [1], [0, 0, 1, 1], [], []>} : vector<14x32xf32>, vector<32x128xf32>, vector<14x128xf32> -> vector<14x128xf32>
    %182 = arith.addf %177, %181 : vector<14x128xf32>
    %c34_173 = arith.constant 34 : index
    %c0_174 = arith.constant 0 : index
    %183 = tpu.strided_load %arg1[%c34_173, %c0_174] {strides = array<i32: 2, 1>} : memref<64x32xf32, #tpu.memory_space<vmem>>, vector<14x32xf32>
    %c7_175 = arith.constant 7 : index
    %c0_176 = arith.constant 0 : index
    %c0_177 = arith.constant 0 : index
    %184 = vector.load %arg2[%c7_175, %c0_176, %c0_177] : memref<10x32x128xf32, #tpu.memory_space<vmem>>, vector<1x32x128xf32>
    %185 = vector.shape_cast %184 : vector<1x32x128xf32> to vector<32x128xf32>
    %cst_178 = arith.constant dense<0.000000e+00> : vector<14x128xf32>
    %186 = tpu.matmul %183, %185, %cst_178 {dimension_numbers = #tpu.dot_dimension_numbers<[1], [0], [0], [1], [0, 0, 1, 1], [], []>} : vector<14x32xf32>, vector<32x128xf32>, vector<14x128xf32> -> vector<14x128xf32>
    %187 = arith.addf %182, %186 : vector<14x128xf32>
    %c35_179 = arith.constant 35 : index
    %c0_180 = arith.constant 0 : index
    %188 = tpu.strided_load %arg1[%c35_179, %c0_180] {strides = array<i32: 2, 1>} : memref<64x32xf32, #tpu.memory_space<vmem>>, vector<14x32xf32>
    %c8_181 = arith.constant 8 : index
    %c0_182 = arith.constant 0 : index
    %c0_183 = arith.constant 0 : index
    %189 = vector.load %arg2[%c8_181, %c0_182, %c0_183] : memref<10x32x128xf32, #tpu.memory_space<vmem>>, vector<1x32x128xf32>
    %190 = vector.shape_cast %189 : vector<1x32x128xf32> to vector<32x128xf32>
    %cst_184 = arith.constant dense<0.000000e+00> : vector<14x128xf32>
    %191 = tpu.matmul %188, %190, %cst_184 {dimension_numbers = #tpu.dot_dimension_numbers<[1], [0], [0], [1], [0, 0, 1, 1], [], []>} : vector<14x32xf32>, vector<32x128xf32>, vector<14x128xf32> -> vector<14x128xf32>
    %192 = arith.addf %187, %191 : vector<14x128xf32>
    %c36_185 = arith.constant 36 : index
    %c0_186 = arith.constant 0 : index
    %193 = tpu.strided_load %arg1[%c36_185, %c0_186] {strides = array<i32: 2, 1>} : memref<64x32xf32, #tpu.memory_space<vmem>>, vector<14x32xf32>
    %c9_187 = arith.constant 9 : index
    %c0_188 = arith.constant 0 : index
    %c0_189 = arith.constant 0 : index
    %194 = vector.load %arg2[%c9_187, %c0_188, %c0_189] : memref<10x32x128xf32, #tpu.memory_space<vmem>>, vector<1x32x128xf32>
    %195 = vector.shape_cast %194 : vector<1x32x128xf32> to vector<32x128xf32>
    %cst_190 = arith.constant dense<0.000000e+00> : vector<14x128xf32>
    %196 = tpu.matmul %193, %195, %cst_190 {dimension_numbers = #tpu.dot_dimension_numbers<[1], [0], [0], [1], [0, 0, 1, 1], [], []>} : vector<14x32xf32>, vector<32x128xf32>, vector<14x128xf32> -> vector<14x128xf32>
    %197 = arith.addf %192, %196 : vector<14x128xf32>
    %c0_191 = arith.constant 0 : index
    %c0_192 = arith.constant 0 : index
    %198 = vector.load %arg3[%c0_191, %c0_192] : memref<1x128xf32, #tpu.memory_space<vmem>>, vector<1x128xf32>
    %199 = vector.broadcast %198 : vector<1x128xf32> to vector<14x128xf32>
    %200 = arith.addf %197, %199 : vector<14x128xf32>
    %cst_193 = arith.constant 0.000000e+00 : f32
    %201 = vector.broadcast %cst_193 : f32 to vector<14x128xf32>
    %202 = arith.subf %201, %200 : vector<14x128xf32>
    %203 = math.exp %202 : vector<14x128xf32>
    %cst_194 = arith.constant 1.000000e+00 : f32
    %204 = vector.broadcast %cst_194 : f32 to vector<14x128xf32>
    %205 = arith.addf %204, %203 : vector<14x128xf32>
    %cst_195 = arith.constant 1.000000e+00 : f32
    %206 = vector.broadcast %cst_195 : f32 to vector<14x128xf32>
    %207 = arith.divf %206, %205 : vector<14x128xf32>
    %208 = arith.maximumf %173, %207 : vector<14x128xf32>
    %c33_196 = arith.constant 33 : index
    %c0_197 = arith.constant 0 : index
    %209 = tpu.strided_load %arg1[%c33_196, %c0_197] {strides = array<i32: 2, 1>} : memref<64x32xf32, #tpu.memory_space<vmem>>, vector<14x32xf32>
    %c0_198 = arith.constant 0 : index
    %c0_199 = arith.constant 0 : index
    %c0_200 = arith.constant 0 : index
    %210 = vector.load %arg2[%c0_198, %c0_199, %c0_200] : memref<10x32x128xf32, #tpu.memory_space<vmem>>, vector<1x32x128xf32>
    %211 = vector.shape_cast %210 : vector<1x32x128xf32> to vector<32x128xf32>
    %cst_201 = arith.constant dense<0.000000e+00> : vector<14x128xf32>
    %212 = tpu.matmul %209, %211, %cst_201 {dimension_numbers = #tpu.dot_dimension_numbers<[1], [0], [0], [1], [0, 0, 1, 1], [], []>} : vector<14x32xf32>, vector<32x128xf32>, vector<14x128xf32> -> vector<14x128xf32>
    %c34_202 = arith.constant 34 : index
    %c0_203 = arith.constant 0 : index
    %213 = tpu.strided_load %arg1[%c34_202, %c0_203] {strides = array<i32: 2, 1>} : memref<64x32xf32, #tpu.memory_space<vmem>>, vector<14x32xf32>
    %c1_204 = arith.constant 1 : index
    %c0_205 = arith.constant 0 : index
    %c0_206 = arith.constant 0 : index
    %214 = vector.load %arg2[%c1_204, %c0_205, %c0_206] : memref<10x32x128xf32, #tpu.memory_space<vmem>>, vector<1x32x128xf32>
    %215 = vector.shape_cast %214 : vector<1x32x128xf32> to vector<32x128xf32>
    %cst_207 = arith.constant dense<0.000000e+00> : vector<14x128xf32>
    %216 = tpu.matmul %213, %215, %cst_207 {dimension_numbers = #tpu.dot_dimension_numbers<[1], [0], [0], [1], [0, 0, 1, 1], [], []>} : vector<14x32xf32>, vector<32x128xf32>, vector<14x128xf32> -> vector<14x128xf32>
    %217 = arith.addf %212, %216 : vector<14x128xf32>
    %c35_208 = arith.constant 35 : index
    %c0_209 = arith.constant 0 : index
    %218 = tpu.strided_load %arg1[%c35_208, %c0_209] {strides = array<i32: 2, 1>} : memref<64x32xf32, #tpu.memory_space<vmem>>, vector<14x32xf32>
    %c2_210 = arith.constant 2 : index
    %c0_211 = arith.constant 0 : index
    %c0_212 = arith.constant 0 : index
    %219 = vector.load %arg2[%c2_210, %c0_211, %c0_212] : memref<10x32x128xf32, #tpu.memory_space<vmem>>, vector<1x32x128xf32>
    %220 = vector.shape_cast %219 : vector<1x32x128xf32> to vector<32x128xf32>
    %cst_213 = arith.constant dense<0.000000e+00> : vector<14x128xf32>
    %221 = tpu.matmul %218, %220, %cst_213 {dimension_numbers = #tpu.dot_dimension_numbers<[1], [0], [0], [1], [0, 0, 1, 1], [], []>} : vector<14x32xf32>, vector<32x128xf32>, vector<14x128xf32> -> vector<14x128xf32>
    %222 = arith.addf %217, %221 : vector<14x128xf32>
    %c36_214 = arith.constant 36 : index
    %c0_215 = arith.constant 0 : index
    %223 = tpu.strided_load %arg1[%c36_214, %c0_215] {strides = array<i32: 2, 1>} : memref<64x32xf32, #tpu.memory_space<vmem>>, vector<14x32xf32>
    %c3_216 = arith.constant 3 : index
    %c0_217 = arith.constant 0 : index
    %c0_218 = arith.constant 0 : index
    %224 = vector.load %arg2[%c3_216, %c0_217, %c0_218] : memref<10x32x128xf32, #tpu.memory_space<vmem>>, vector<1x32x128xf32>
    %225 = vector.shape_cast %224 : vector<1x32x128xf32> to vector<32x128xf32>
    %cst_219 = arith.constant dense<0.000000e+00> : vector<14x128xf32>
    %226 = tpu.matmul %223, %225, %cst_219 {dimension_numbers = #tpu.dot_dimension_numbers<[1], [0], [0], [1], [0, 0, 1, 1], [], []>} : vector<14x32xf32>, vector<32x128xf32>, vector<14x128xf32> -> vector<14x128xf32>
    %227 = arith.addf %222, %226 : vector<14x128xf32>
    %c37 = arith.constant 37 : index
    %c0_220 = arith.constant 0 : index
    %228 = tpu.strided_load %arg1[%c37, %c0_220] {strides = array<i32: 2, 1>} : memref<64x32xf32, #tpu.memory_space<vmem>>, vector<14x32xf32>
    %c4_221 = arith.constant 4 : index
    %c0_222 = arith.constant 0 : index
    %c0_223 = arith.constant 0 : index
    %229 = vector.load %arg2[%c4_221, %c0_222, %c0_223] : memref<10x32x128xf32, #tpu.memory_space<vmem>>, vector<1x32x128xf32>
    %230 = vector.shape_cast %229 : vector<1x32x128xf32> to vector<32x128xf32>
    %cst_224 = arith.constant dense<0.000000e+00> : vector<14x128xf32>
    %231 = tpu.matmul %228, %230, %cst_224 {dimension_numbers = #tpu.dot_dimension_numbers<[1], [0], [0], [1], [0, 0, 1, 1], [], []>} : vector<14x32xf32>, vector<32x128xf32>, vector<14x128xf32> -> vector<14x128xf32>
    %232 = arith.addf %227, %231 : vector<14x128xf32>
    %c0_225 = arith.constant 0 : index
    %c0_226 = arith.constant 0 : index
    %233 = vector.load %arg3[%c0_225, %c0_226] : memref<1x128xf32, #tpu.memory_space<vmem>>, vector<1x128xf32>
    %234 = vector.broadcast %233 : vector<1x128xf32> to vector<14x128xf32>
    %235 = arith.addf %232, %234 : vector<14x128xf32>
    %cst_227 = arith.constant 0.000000e+00 : f32
    %236 = vector.broadcast %cst_227 : f32 to vector<14x128xf32>
    %237 = arith.subf %236, %235 : vector<14x128xf32>
    %238 = math.exp %237 : vector<14x128xf32>
    %cst_228 = arith.constant 1.000000e+00 : f32
    %239 = vector.broadcast %cst_228 : f32 to vector<14x128xf32>
    %240 = arith.addf %239, %238 : vector<14x128xf32>
    %cst_229 = arith.constant 1.000000e+00 : f32
    %241 = vector.broadcast %cst_229 : f32 to vector<14x128xf32>
    %242 = arith.divf %241, %240 : vector<14x128xf32>
    %243 = arith.maximumf %208, %242 : vector<14x128xf32>
    %c33_230 = arith.constant 33 : index
    %c0_231 = arith.constant 0 : index
    %244 = tpu.strided_load %arg1[%c33_230, %c0_231] {strides = array<i32: 2, 1>} : memref<64x32xf32, #tpu.memory_space<vmem>>, vector<14x32xf32>
    %c5_232 = arith.constant 5 : index
    %c0_233 = arith.constant 0 : index
    %c0_234 = arith.constant 0 : index
    %245 = vector.load %arg2[%c5_232, %c0_233, %c0_234] : memref<10x32x128xf32, #tpu.memory_space<vmem>>, vector<1x32x128xf32>
    %246 = vector.shape_cast %245 : vector<1x32x128xf32> to vector<32x128xf32>
    %cst_235 = arith.constant dense<0.000000e+00> : vector<14x128xf32>
    %247 = tpu.matmul %244, %246, %cst_235 {dimension_numbers = #tpu.dot_dimension_numbers<[1], [0], [0], [1], [0, 0, 1, 1], [], []>} : vector<14x32xf32>, vector<32x128xf32>, vector<14x128xf32> -> vector<14x128xf32>
    %c34_236 = arith.constant 34 : index
    %c0_237 = arith.constant 0 : index
    %248 = tpu.strided_load %arg1[%c34_236, %c0_237] {strides = array<i32: 2, 1>} : memref<64x32xf32, #tpu.memory_space<vmem>>, vector<14x32xf32>
    %c6_238 = arith.constant 6 : index
    %c0_239 = arith.constant 0 : index
    %c0_240 = arith.constant 0 : index
    %249 = vector.load %arg2[%c6_238, %c0_239, %c0_240] : memref<10x32x128xf32, #tpu.memory_space<vmem>>, vector<1x32x128xf32>
    %250 = vector.shape_cast %249 : vector<1x32x128xf32> to vector<32x128xf32>
    %cst_241 = arith.constant dense<0.000000e+00> : vector<14x128xf32>
    %251 = tpu.matmul %248, %250, %cst_241 {dimension_numbers = #tpu.dot_dimension_numbers<[1], [0], [0], [1], [0, 0, 1, 1], [], []>} : vector<14x32xf32>, vector<32x128xf32>, vector<14x128xf32> -> vector<14x128xf32>
    %252 = arith.addf %247, %251 : vector<14x128xf32>
    %c35_242 = arith.constant 35 : index
    %c0_243 = arith.constant 0 : index
    %253 = tpu.strided_load %arg1[%c35_242, %c0_243] {strides = array<i32: 2, 1>} : memref<64x32xf32, #tpu.memory_space<vmem>>, vector<14x32xf32>
    %c7_244 = arith.constant 7 : index
    %c0_245 = arith.constant 0 : index
    %c0_246 = arith.constant 0 : index
    %254 = vector.load %arg2[%c7_244, %c0_245, %c0_246] : memref<10x32x128xf32, #tpu.memory_space<vmem>>, vector<1x32x128xf32>
    %255 = vector.shape_cast %254 : vector<1x32x128xf32> to vector<32x128xf32>
    %cst_247 = arith.constant dense<0.000000e+00> : vector<14x128xf32>
    %256 = tpu.matmul %253, %255, %cst_247 {dimension_numbers = #tpu.dot_dimension_numbers<[1], [0], [0], [1], [0, 0, 1, 1], [], []>} : vector<14x32xf32>, vector<32x128xf32>, vector<14x128xf32> -> vector<14x128xf32>
    %257 = arith.addf %252, %256 : vector<14x128xf32>
    %c36_248 = arith.constant 36 : index
    %c0_249 = arith.constant 0 : index
    %258 = tpu.strided_load %arg1[%c36_248, %c0_249] {strides = array<i32: 2, 1>} : memref<64x32xf32, #tpu.memory_space<vmem>>, vector<14x32xf32>
    %c8_250 = arith.constant 8 : index
    %c0_251 = arith.constant 0 : index
    %c0_252 = arith.constant 0 : index
    %259 = vector.load %arg2[%c8_250, %c0_251, %c0_252] : memref<10x32x128xf32, #tpu.memory_space<vmem>>, vector<1x32x128xf32>
    %260 = vector.shape_cast %259 : vector<1x32x128xf32> to vector<32x128xf32>
    %cst_253 = arith.constant dense<0.000000e+00> : vector<14x128xf32>
    %261 = tpu.matmul %258, %260, %cst_253 {dimension_numbers = #tpu.dot_dimension_numbers<[1], [0], [0], [1], [0, 0, 1, 1], [], []>} : vector<14x32xf32>, vector<32x128xf32>, vector<14x128xf32> -> vector<14x128xf32>
    %262 = arith.addf %257, %261 : vector<14x128xf32>
    %c37_254 = arith.constant 37 : index
    %c0_255 = arith.constant 0 : index
    %263 = tpu.strided_load %arg1[%c37_254, %c0_255] {strides = array<i32: 2, 1>} : memref<64x32xf32, #tpu.memory_space<vmem>>, vector<14x32xf32>
    %c9_256 = arith.constant 9 : index
    %c0_257 = arith.constant 0 : index
    %c0_258 = arith.constant 0 : index
    %264 = vector.load %arg2[%c9_256, %c0_257, %c0_258] : memref<10x32x128xf32, #tpu.memory_space<vmem>>, vector<1x32x128xf32>
    %265 = vector.shape_cast %264 : vector<1x32x128xf32> to vector<32x128xf32>
    %cst_259 = arith.constant dense<0.000000e+00> : vector<14x128xf32>
    %266 = tpu.matmul %263, %265, %cst_259 {dimension_numbers = #tpu.dot_dimension_numbers<[1], [0], [0], [1], [0, 0, 1, 1], [], []>} : vector<14x32xf32>, vector<32x128xf32>, vector<14x128xf32> -> vector<14x128xf32>
    %267 = arith.addf %262, %266 : vector<14x128xf32>
    %c0_260 = arith.constant 0 : index
    %c0_261 = arith.constant 0 : index
    %268 = vector.load %arg3[%c0_260, %c0_261] : memref<1x128xf32, #tpu.memory_space<vmem>>, vector<1x128xf32>
    %269 = vector.broadcast %268 : vector<1x128xf32> to vector<14x128xf32>
    %270 = arith.addf %267, %269 : vector<14x128xf32>
    %cst_262 = arith.constant 0.000000e+00 : f32
    %271 = vector.broadcast %cst_262 : f32 to vector<14x128xf32>
    %272 = arith.subf %271, %270 : vector<14x128xf32>
    %273 = math.exp %272 : vector<14x128xf32>
    %cst_263 = arith.constant 1.000000e+00 : f32
    %274 = vector.broadcast %cst_263 : f32 to vector<14x128xf32>
    %275 = arith.addf %274, %273 : vector<14x128xf32>
    %cst_264 = arith.constant 1.000000e+00 : f32
    %276 = vector.broadcast %cst_264 : f32 to vector<14x128xf32>
    %277 = arith.divf %276, %275 : vector<14x128xf32>
    %278 = arith.maximumf %243, %277 : vector<14x128xf32>
    %c16 = arith.constant 16 : index
    %c0_265 = arith.constant 0 : index
    %279 = vector.load %arg13[%c16, %c0_265] : memref<32x128xf32, #tpu.memory_space<vmem>>, vector<14x128xf32>
    tpu.vector_store %arg13[%c16, %c0_265], %278 {strides = array<i32>} : memref<32x128xf32, #tpu.memory_space<vmem>>, vector<14x128xf32>,
    %c0_266 = arith.constant 0 : index
    %c0_267 = arith.constant 0 : index
    %280 = tpu.strided_load %arg13[%c0_266, %c0_267] {strides = array<i32: 2, 1>} : memref<32x128xf32, #tpu.memory_space<vmem>>, vector<5x128xf32>
    %c0_268 = arith.constant 0 : index
    %c0_269 = arith.constant 0 : index
    %c0_270 = arith.constant 0 : index
    %281 = vector.load %arg4[%c0_268, %c0_269, %c0_270] : memref<10x128x128xf32, #tpu.memory_space<vmem>>, vector<1x128x128xf32>
    %282 = vector.shape_cast %281 : vector<1x128x128xf32> to vector<128x128xf32>
    %cst_271 = arith.constant dense<0.000000e+00> : vector<5x128xf32>
    %283 = tpu.matmul %280, %282, %cst_271 {dimension_numbers = #tpu.dot_dimension_numbers<[1], [0], [0], [1], [0, 0, 1, 1], [], []>} : vector<5x128xf32>, vector<128x128xf32>, vector<5x128xf32> -> vector<5x128xf32>
    %c1_272 = arith.constant 1 : index
    %c0_273 = arith.constant 0 : index
    %284 = tpu.strided_load %arg13[%c1_272, %c0_273] {strides = array<i32: 2, 1>} : memref<32x128xf32, #tpu.memory_space<vmem>>, vector<5x128xf32>
    %c1_274 = arith.constant 1 : index
    %c0_275 = arith.constant 0 : index
    %c0_276 = arith.constant 0 : index
    %285 = vector.load %arg4[%c1_274, %c0_275, %c0_276] : memref<10x128x128xf32, #tpu.memory_space<vmem>>, vector<1x128x128xf32>
    %286 = vector.shape_cast %285 : vector<1x128x128xf32> to vector<128x128xf32>
    %cst_277 = arith.constant dense<0.000000e+00> : vector<5x128xf32>
    %287 = tpu.matmul %284, %286, %cst_277 {dimension_numbers = #tpu.dot_dimension_numbers<[1], [0], [0], [1], [0, 0, 1, 1], [], []>} : vector<5x128xf32>, vector<128x128xf32>, vector<5x128xf32> -> vector<5x128xf32>
    %288 = arith.addf %283, %287 : vector<5x128xf32>
    %c2_278 = arith.constant 2 : index
    %c0_279 = arith.constant 0 : index
    %289 = tpu.strided_load %arg13[%c2_278, %c0_279] {strides = array<i32: 2, 1>} : memref<32x128xf32, #tpu.memory_space<vmem>>, vector<5x128xf32>
    %c2_280 = arith.constant 2 : index
    %c0_281 = arith.constant 0 : index
    %c0_282 = arith.constant 0 : index
    %290 = vector.load %arg4[%c2_280, %c0_281, %c0_282] : memref<10x128x128xf32, #tpu.memory_space<vmem>>, vector<1x128x128xf32>
    %291 = vector.shape_cast %290 : vector<1x128x128xf32> to vector<128x128xf32>
    %cst_283 = arith.constant dense<0.000000e+00> : vector<5x128xf32>
    %292 = tpu.matmul %289, %291, %cst_283 {dimension_numbers = #tpu.dot_dimension_numbers<[1], [0], [0], [1], [0, 0, 1, 1], [], []>} : vector<5x128xf32>, vector<128x128xf32>, vector<5x128xf32> -> vector<5x128xf32>
    %293 = arith.addf %288, %292 : vector<5x128xf32>
    %c3_284 = arith.constant 3 : index
    %c0_285 = arith.constant 0 : index
    %294 = tpu.strided_load %arg13[%c3_284, %c0_285] {strides = array<i32: 2, 1>} : memref<32x128xf32, #tpu.memory_space<vmem>>, vector<5x128xf32>
    %c3_286 = arith.constant 3 : index
    %c0_287 = arith.constant 0 : index
    %c0_288 = arith.constant 0 : index
    %295 = vector.load %arg4[%c3_286, %c0_287, %c0_288] : memref<10x128x128xf32, #tpu.memory_space<vmem>>, vector<1x128x128xf32>
    %296 = vector.shape_cast %295 : vector<1x128x128xf32> to vector<128x128xf32>
    %cst_289 = arith.constant dense<0.000000e+00> : vector<5x128xf32>
    %297 = tpu.matmul %294, %296, %cst_289 {dimension_numbers = #tpu.dot_dimension_numbers<[1], [0], [0], [1], [0, 0, 1, 1], [], []>} : vector<5x128xf32>, vector<128x128xf32>, vector<5x128xf32> -> vector<5x128xf32>
    %298 = arith.addf %293, %297 : vector<5x128xf32>
    %c4_290 = arith.constant 4 : index
    %c0_291 = arith.constant 0 : index
    %299 = tpu.strided_load %arg13[%c4_290, %c0_291] {strides = array<i32: 2, 1>} : memref<32x128xf32, #tpu.memory_space<vmem>>, vector<5x128xf32>
    %c4_292 = arith.constant 4 : index
    %c0_293 = arith.constant 0 : index
    %c0_294 = arith.constant 0 : index
    %300 = vector.load %arg4[%c4_292, %c0_293, %c0_294] : memref<10x128x128xf32, #tpu.memory_space<vmem>>, vector<1x128x128xf32>
    %301 = vector.shape_cast %300 : vector<1x128x128xf32> to vector<128x128xf32>
    %cst_295 = arith.constant dense<0.000000e+00> : vector<5x128xf32>
    %302 = tpu.matmul %299, %301, %cst_295 {dimension_numbers = #tpu.dot_dimension_numbers<[1], [0], [0], [1], [0, 0, 1, 1], [], []>} : vector<5x128xf32>, vector<128x128xf32>, vector<5x128xf32> -> vector<5x128xf32>
    %303 = arith.addf %298, %302 : vector<5x128xf32>
    %c0_296 = arith.constant 0 : index
    %c0_297 = arith.constant 0 : index
    %304 = vector.load %arg5[%c0_296, %c0_297] : memref<1x128xf32, #tpu.memory_space<vmem>>, vector<1x128xf32>
    %305 = vector.broadcast %304 : vector<1x128xf32> to vector<5x128xf32>
    %306 = arith.addf %303, %305 : vector<5x128xf32>
    %cst_298 = arith.constant 0.000000e+00 : f32
    %307 = vector.broadcast %cst_298 : f32 to vector<5x128xf32>
    %308 = arith.subf %307, %306 : vector<5x128xf32>
    %309 = math.exp %308 : vector<5x128xf32>
    %cst_299 = arith.constant 1.000000e+00 : f32
    %310 = vector.broadcast %cst_299 : f32 to vector<5x128xf32>
    %311 = arith.addf %310, %309 : vector<5x128xf32>
    %cst_300 = arith.constant 1.000000e+00 : f32
    %312 = vector.broadcast %cst_300 : f32 to vector<5x128xf32>
    %313 = arith.divf %312, %311 : vector<5x128xf32>
    %c0_301 = arith.constant 0 : index
    %c0_302 = arith.constant 0 : index
    %314 = tpu.strided_load %arg13[%c0_301, %c0_302] {strides = array<i32: 2, 1>} : memref<32x128xf32, #tpu.memory_space<vmem>>, vector<5x128xf32>
    %c5_303 = arith.constant 5 : index
    %c0_304 = arith.constant 0 : index
    %c0_305 = arith.constant 0 : index
    %315 = vector.load %arg4[%c5_303, %c0_304, %c0_305] : memref<10x128x128xf32, #tpu.memory_space<vmem>>, vector<1x128x128xf32>
    %316 = vector.shape_cast %315 : vector<1x128x128xf32> to vector<128x128xf32>
    %cst_306 = arith.constant dense<0.000000e+00> : vector<5x128xf32>
    %317 = tpu.matmul %314, %316, %cst_306 {dimension_numbers = #tpu.dot_dimension_numbers<[1], [0], [0], [1], [0, 0, 1, 1], [], []>} : vector<5x128xf32>, vector<128x128xf32>, vector<5x128xf32> -> vector<5x128xf32>
    %c1_307 = arith.constant 1 : index
    %c0_308 = arith.constant 0 : index
    %318 = tpu.strided_load %arg13[%c1_307, %c0_308] {strides = array<i32: 2, 1>} : memref<32x128xf32, #tpu.memory_space<vmem>>, vector<5x128xf32>
    %c6_309 = arith.constant 6 : index
    %c0_310 = arith.constant 0 : index
    %c0_311 = arith.constant 0 : index
    %319 = vector.load %arg4[%c6_309, %c0_310, %c0_311] : memref<10x128x128xf32, #tpu.memory_space<vmem>>, vector<1x128x128xf32>
    %320 = vector.shape_cast %319 : vector<1x128x128xf32> to vector<128x128xf32>
    %cst_312 = arith.constant dense<0.000000e+00> : vector<5x128xf32>
    %321 = tpu.matmul %318, %320, %cst_312 {dimension_numbers = #tpu.dot_dimension_numbers<[1], [0], [0], [1], [0, 0, 1, 1], [], []>} : vector<5x128xf32>, vector<128x128xf32>, vector<5x128xf32> -> vector<5x128xf32>
    %322 = arith.addf %317, %321 : vector<5x128xf32>
    %c2_313 = arith.constant 2 : index
    %c0_314 = arith.constant 0 : index
    %323 = tpu.strided_load %arg13[%c2_313, %c0_314] {strides = array<i32: 2, 1>} : memref<32x128xf32, #tpu.memory_space<vmem>>, vector<5x128xf32>
    %c7_315 = arith.constant 7 : index
    %c0_316 = arith.constant 0 : index
    %c0_317 = arith.constant 0 : index
    %324 = vector.load %arg4[%c7_315, %c0_316, %c0_317] : memref<10x128x128xf32, #tpu.memory_space<vmem>>, vector<1x128x128xf32>
    %325 = vector.shape_cast %324 : vector<1x128x128xf32> to vector<128x128xf32>
    %cst_318 = arith.constant dense<0.000000e+00> : vector<5x128xf32>
    %326 = tpu.matmul %323, %325, %cst_318 {dimension_numbers = #tpu.dot_dimension_numbers<[1], [0], [0], [1], [0, 0, 1, 1], [], []>} : vector<5x128xf32>, vector<128x128xf32>, vector<5x128xf32> -> vector<5x128xf32>
    %327 = arith.addf %322, %326 : vector<5x128xf32>
    %c3_319 = arith.constant 3 : index
    %c0_320 = arith.constant 0 : index
    %328 = tpu.strided_load %arg13[%c3_319, %c0_320] {strides = array<i32: 2, 1>} : memref<32x128xf32, #tpu.memory_space<vmem>>, vector<5x128xf32>
    %c8_321 = arith.constant 8 : index
    %c0_322 = arith.constant 0 : index
    %c0_323 = arith.constant 0 : index
    %329 = vector.load %arg4[%c8_321, %c0_322, %c0_323] : memref<10x128x128xf32, #tpu.memory_space<vmem>>, vector<1x128x128xf32>
    %330 = vector.shape_cast %329 : vector<1x128x128xf32> to vector<128x128xf32>
    %cst_324 = arith.constant dense<0.000000e+00> : vector<5x128xf32>
    %331 = tpu.matmul %328, %330, %cst_324 {dimension_numbers = #tpu.dot_dimension_numbers<[1], [0], [0], [1], [0, 0, 1, 1], [], []>} : vector<5x128xf32>, vector<128x128xf32>, vector<5x128xf32> -> vector<5x128xf32>
    %332 = arith.addf %327, %331 : vector<5x128xf32>
    %c4_325 = arith.constant 4 : index
    %c0_326 = arith.constant 0 : index
    %333 = tpu.strided_load %arg13[%c4_325, %c0_326] {strides = array<i32: 2, 1>} : memref<32x128xf32, #tpu.memory_space<vmem>>, vector<5x128xf32>
    %c9_327 = arith.constant 9 : index
    %c0_328 = arith.constant 0 : index
    %c0_329 = arith.constant 0 : index
    %334 = vector.load %arg4[%c9_327, %c0_328, %c0_329] : memref<10x128x128xf32, #tpu.memory_space<vmem>>, vector<1x128x128xf32>
    %335 = vector.shape_cast %334 : vector<1x128x128xf32> to vector<128x128xf32>
    %cst_330 = arith.constant dense<0.000000e+00> : vector<5x128xf32>
    %336 = tpu.matmul %333, %335, %cst_330 {dimension_numbers = #tpu.dot_dimension_numbers<[1], [0], [0], [1], [0, 0, 1, 1], [], []>} : vector<5x128xf32>, vector<128x128xf32>, vector<5x128xf32> -> vector<5x128xf32>
    %337 = arith.addf %332, %336 : vector<5x128xf32>
    %c0_331 = arith.constant 0 : index
    %c0_332 = arith.constant 0 : index
    %338 = vector.load %arg5[%c0_331, %c0_332] : memref<1x128xf32, #tpu.memory_space<vmem>>, vector<1x128xf32>
    %339 = vector.broadcast %338 : vector<1x128xf32> to vector<5x128xf32>
    %340 = arith.addf %337, %339 : vector<5x128xf32>
    %cst_333 = arith.constant 0.000000e+00 : f32
    %341 = vector.broadcast %cst_333 : f32 to vector<5x128xf32>
    %342 = arith.subf %341, %340 : vector<5x128xf32>
    %343 = math.exp %342 : vector<5x128xf32>
    %cst_334 = arith.constant 1.000000e+00 : f32
    %344 = vector.broadcast %cst_334 : f32 to vector<5x128xf32>
    %345 = arith.addf %344, %343 : vector<5x128xf32>
    %cst_335 = arith.constant 1.000000e+00 : f32
    %346 = vector.broadcast %cst_335 : f32 to vector<5x128xf32>
    %347 = arith.divf %346, %345 : vector<5x128xf32>
    %348 = arith.maximumf %313, %347 : vector<5x128xf32>
    %c1_336 = arith.constant 1 : index
    %c0_337 = arith.constant 0 : index
    %349 = tpu.strided_load %arg13[%c1_336, %c0_337] {strides = array<i32: 2, 1>} : memref<32x128xf32, #tpu.memory_space<vmem>>, vector<5x128xf32>
    %c0_338 = arith.constant 0 : index
    %c0_339 = arith.constant 0 : index
    %c0_340 = arith.constant 0 : index
    %350 = vector.load %arg4[%c0_338, %c0_339, %c0_340] : memref<10x128x128xf32, #tpu.memory_space<vmem>>, vector<1x128x128xf32>
    %351 = vector.shape_cast %350 : vector<1x128x128xf32> to vector<128x128xf32>
    %cst_341 = arith.constant dense<0.000000e+00> : vector<5x128xf32>
    %352 = tpu.matmul %349, %351, %cst_341 {dimension_numbers = #tpu.dot_dimension_numbers<[1], [0], [0], [1], [0, 0, 1, 1], [], []>} : vector<5x128xf32>, vector<128x128xf32>, vector<5x128xf32> -> vector<5x128xf32>
    %c2_342 = arith.constant 2 : index
    %c0_343 = arith.constant 0 : index
    %353 = tpu.strided_load %arg13[%c2_342, %c0_343] {strides = array<i32: 2, 1>} : memref<32x128xf32, #tpu.memory_space<vmem>>, vector<5x128xf32>
    %c1_344 = arith.constant 1 : index
    %c0_345 = arith.constant 0 : index
    %c0_346 = arith.constant 0 : index
    %354 = vector.load %arg4[%c1_344, %c0_345, %c0_346] : memref<10x128x128xf32, #tpu.memory_space<vmem>>, vector<1x128x128xf32>
    %355 = vector.shape_cast %354 : vector<1x128x128xf32> to vector<128x128xf32>
    %cst_347 = arith.constant dense<0.000000e+00> : vector<5x128xf32>
    %356 = tpu.matmul %353, %355, %cst_347 {dimension_numbers = #tpu.dot_dimension_numbers<[1], [0], [0], [1], [0, 0, 1, 1], [], []>} : vector<5x128xf32>, vector<128x128xf32>, vector<5x128xf32> -> vector<5x128xf32>
    %357 = arith.addf %352, %356 : vector<5x128xf32>
    %c3_348 = arith.constant 3 : index
    %c0_349 = arith.constant 0 : index
    %358 = tpu.strided_load %arg13[%c3_348, %c0_349] {strides = array<i32: 2, 1>} : memref<32x128xf32, #tpu.memory_space<vmem>>, vector<5x128xf32>
    %c2_350 = arith.constant 2 : index
    %c0_351 = arith.constant 0 : index
    %c0_352 = arith.constant 0 : index
    %359 = vector.load %arg4[%c2_350, %c0_351, %c0_352] : memref<10x128x128xf32, #tpu.memory_space<vmem>>, vector<1x128x128xf32>
    %360 = vector.shape_cast %359 : vector<1x128x128xf32> to vector<128x128xf32>
    %cst_353 = arith.constant dense<0.000000e+00> : vector<5x128xf32>
    %361 = tpu.matmul %358, %360, %cst_353 {dimension_numbers = #tpu.dot_dimension_numbers<[1], [0], [0], [1], [0, 0, 1, 1], [], []>} : vector<5x128xf32>, vector<128x128xf32>, vector<5x128xf32> -> vector<5x128xf32>
    %362 = arith.addf %357, %361 : vector<5x128xf32>
    %c4_354 = arith.constant 4 : index
    %c0_355 = arith.constant 0 : index
    %363 = tpu.strided_load %arg13[%c4_354, %c0_355] {strides = array<i32: 2, 1>} : memref<32x128xf32, #tpu.memory_space<vmem>>, vector<5x128xf32>
    %c3_356 = arith.constant 3 : index
    %c0_357 = arith.constant 0 : index
    %c0_358 = arith.constant 0 : index
    %364 = vector.load %arg4[%c3_356, %c0_357, %c0_358] : memref<10x128x128xf32, #tpu.memory_space<vmem>>, vector<1x128x128xf32>
    %365 = vector.shape_cast %364 : vector<1x128x128xf32> to vector<128x128xf32>
    %cst_359 = arith.constant dense<0.000000e+00> : vector<5x128xf32>
    %366 = tpu.matmul %363, %365, %cst_359 {dimension_numbers = #tpu.dot_dimension_numbers<[1], [0], [0], [1], [0, 0, 1, 1], [], []>} : vector<5x128xf32>, vector<128x128xf32>, vector<5x128xf32> -> vector<5x128xf32>
    %367 = arith.addf %362, %366 : vector<5x128xf32>
    %c5_360 = arith.constant 5 : index
    %c0_361 = arith.constant 0 : index
    %368 = tpu.strided_load %arg13[%c5_360, %c0_361] {strides = array<i32: 2, 1>} : memref<32x128xf32, #tpu.memory_space<vmem>>, vector<5x128xf32>
    %c4_362 = arith.constant 4 : index
    %c0_363 = arith.constant 0 : index
    %c0_364 = arith.constant 0 : index
    %369 = vector.load %arg4[%c4_362, %c0_363, %c0_364] : memref<10x128x128xf32, #tpu.memory_space<vmem>>, vector<1x128x128xf32>
    %370 = vector.shape_cast %369 : vector<1x128x128xf32> to vector<128x128xf32>
    %cst_365 = arith.constant dense<0.000000e+00> : vector<5x128xf32>
    %371 = tpu.matmul %368, %370, %cst_365 {dimension_numbers = #tpu.dot_dimension_numbers<[1], [0], [0], [1], [0, 0, 1, 1], [], []>} : vector<5x128xf32>, vector<128x128xf32>, vector<5x128xf32> -> vector<5x128xf32>
    %372 = arith.addf %367, %371 : vector<5x128xf32>
    %c0_366 = arith.constant 0 : index
    %c0_367 = arith.constant 0 : index
    %373 = vector.load %arg5[%c0_366, %c0_367] : memref<1x128xf32, #tpu.memory_space<vmem>>, vector<1x128xf32>
    %374 = vector.broadcast %373 : vector<1x128xf32> to vector<5x128xf32>
    %375 = arith.addf %372, %374 : vector<5x128xf32>
    %cst_368 = arith.constant 0.000000e+00 : f32
    %376 = vector.broadcast %cst_368 : f32 to vector<5x128xf32>
    %377 = arith.subf %376, %375 : vector<5x128xf32>
    %378 = math.exp %377 : vector<5x128xf32>
    %cst_369 = arith.constant 1.000000e+00 : f32
    %379 = vector.broadcast %cst_369 : f32 to vector<5x128xf32>
    %380 = arith.addf %379, %378 : vector<5x128xf32>
    %cst_370 = arith.constant 1.000000e+00 : f32
    %381 = vector.broadcast %cst_370 : f32 to vector<5x128xf32>
    %382 = arith.divf %381, %380 : vector<5x128xf32>
    %383 = arith.maximumf %348, %382 : vector<5x128xf32>
    %c1_371 = arith.constant 1 : index
    %c0_372 = arith.constant 0 : index
    %384 = tpu.strided_load %arg13[%c1_371, %c0_372] {strides = array<i32: 2, 1>} : memref<32x128xf32, #tpu.memory_space<vmem>>, vector<5x128xf32>
    %c5_373 = arith.constant 5 : index
    %c0_374 = arith.constant 0 : index
    %c0_375 = arith.constant 0 : index
    %385 = vector.load %arg4[%c5_373, %c0_374, %c0_375] : memref<10x128x128xf32, #tpu.memory_space<vmem>>, vector<1x128x128xf32>
    %386 = vector.shape_cast %385 : vector<1x128x128xf32> to vector<128x128xf32>
    %cst_376 = arith.constant dense<0.000000e+00> : vector<5x128xf32>
    %387 = tpu.matmul %384, %386, %cst_376 {dimension_numbers = #tpu.dot_dimension_numbers<[1], [0], [0], [1], [0, 0, 1, 1], [], []>} : vector<5x128xf32>, vector<128x128xf32>, vector<5x128xf32> -> vector<5x128xf32>
    %c2_377 = arith.constant 2 : index
    %c0_378 = arith.constant 0 : index
    %388 = tpu.strided_load %arg13[%c2_377, %c0_378] {strides = array<i32: 2, 1>} : memref<32x128xf32, #tpu.memory_space<vmem>>, vector<5x128xf32>
    %c6_379 = arith.constant 6 : index
    %c0_380 = arith.constant 0 : index
    %c0_381 = arith.constant 0 : index
    %389 = vector.load %arg4[%c6_379, %c0_380, %c0_381] : memref<10x128x128xf32, #tpu.memory_space<vmem>>, vector<1x128x128xf32>
    %390 = vector.shape_cast %389 : vector<1x128x128xf32> to vector<128x128xf32>
    %cst_382 = arith.constant dense<0.000000e+00> : vector<5x128xf32>
    %391 = tpu.matmul %388, %390, %cst_382 {dimension_numbers = #tpu.dot_dimension_numbers<[1], [0], [0], [1], [0, 0, 1, 1], [], []>} : vector<5x128xf32>, vector<128x128xf32>, vector<5x128xf32> -> vector<5x128xf32>
    %392 = arith.addf %387, %391 : vector<5x128xf32>
    %c3_383 = arith.constant 3 : index
    %c0_384 = arith.constant 0 : index
    %393 = tpu.strided_load %arg13[%c3_383, %c0_384] {strides = array<i32: 2, 1>} : memref<32x128xf32, #tpu.memory_space<vmem>>, vector<5x128xf32>
    %c7_385 = arith.constant 7 : index
    %c0_386 = arith.constant 0 : index
    %c0_387 = arith.constant 0 : index
    %394 = vector.load %arg4[%c7_385, %c0_386, %c0_387] : memref<10x128x128xf32, #tpu.memory_space<vmem>>, vector<1x128x128xf32>
    %395 = vector.shape_cast %394 : vector<1x128x128xf32> to vector<128x128xf32>
    %cst_388 = arith.constant dense<0.000000e+00> : vector<5x128xf32>
    %396 = tpu.matmul %393, %395, %cst_388 {dimension_numbers = #tpu.dot_dimension_numbers<[1], [0], [0], [1], [0, 0, 1, 1], [], []>} : vector<5x128xf32>, vector<128x128xf32>, vector<5x128xf32> -> vector<5x128xf32>
    %397 = arith.addf %392, %396 : vector<5x128xf32>
    %c4_389 = arith.constant 4 : index
    %c0_390 = arith.constant 0 : index
    %398 = tpu.strided_load %arg13[%c4_389, %c0_390] {strides = array<i32: 2, 1>} : memref<32x128xf32, #tpu.memory_space<vmem>>, vector<5x128xf32>
    %c8_391 = arith.constant 8 : index
    %c0_392 = arith.constant 0 : index
    %c0_393 = arith.constant 0 : index
    %399 = vector.load %arg4[%c8_391, %c0_392, %c0_393] : memref<10x128x128xf32, #tpu.memory_space<vmem>>, vector<1x128x128xf32>
    %400 = vector.shape_cast %399 : vector<1x128x128xf32> to vector<128x128xf32>
    %cst_394 = arith.constant dense<0.000000e+00> : vector<5x128xf32>
    %401 = tpu.matmul %398, %400, %cst_394 {dimension_numbers = #tpu.dot_dimension_numbers<[1], [0], [0], [1], [0, 0, 1, 1], [], []>} : vector<5x128xf32>, vector<128x128xf32>, vector<5x128xf32> -> vector<5x128xf32>
    %402 = arith.addf %397, %401 : vector<5x128xf32>
    %c5_395 = arith.constant 5 : index
    %c0_396 = arith.constant 0 : index
    %403 = tpu.strided_load %arg13[%c5_395, %c0_396] {strides = array<i32: 2, 1>} : memref<32x128xf32, #tpu.memory_space<vmem>>, vector<5x128xf32>
    %c9_397 = arith.constant 9 : index
    %c0_398 = arith.constant 0 : index
    %c0_399 = arith.constant 0 : index
    %404 = vector.load %arg4[%c9_397, %c0_398, %c0_399] : memref<10x128x128xf32, #tpu.memory_space<vmem>>, vector<1x128x128xf32>
    %405 = vector.shape_cast %404 : vector<1x128x128xf32> to vector<128x128xf32>
    %cst_400 = arith.constant dense<0.000000e+00> : vector<5x128xf32>
    %406 = tpu.matmul %403, %405, %cst_400 {dimension_numbers = #tpu.dot_dimension_numbers<[1], [0], [0], [1], [0, 0, 1, 1], [], []>} : vector<5x128xf32>, vector<128x128xf32>, vector<5x128xf32> -> vector<5x128xf32>
    %407 = arith.addf %402, %406 : vector<5x128xf32>
    %c0_401 = arith.constant 0 : index
    %c0_402 = arith.constant 0 : index
    %408 = vector.load %arg5[%c0_401, %c0_402] : memref<1x128xf32, #tpu.memory_space<vmem>>, vector<1x128xf32>
    %409 = vector.broadcast %408 : vector<1x128xf32> to vector<5x128xf32>
    %410 = arith.addf %407, %409 : vector<5x128xf32>
    %cst_403 = arith.constant 0.000000e+00 : f32
    %411 = vector.broadcast %cst_403 : f32 to vector<5x128xf32>
    %412 = arith.subf %411, %410 : vector<5x128xf32>
    %413 = math.exp %412 : vector<5x128xf32>
    %cst_404 = arith.constant 1.000000e+00 : f32
    %414 = vector.broadcast %cst_404 : f32 to vector<5x128xf32>
    %415 = arith.addf %414, %413 : vector<5x128xf32>
    %cst_405 = arith.constant 1.000000e+00 : f32
    %416 = vector.broadcast %cst_405 : f32 to vector<5x128xf32>
    %417 = arith.divf %416, %415 : vector<5x128xf32>
    %418 = arith.maximumf %383, %417 : vector<5x128xf32>
    %c0_406 = arith.constant 0 : index
    %c0_407 = arith.constant 0 : index
    %419 = vector.load %arg14[%c0_406, %c0_407] : memref<16x128xf32, #tpu.memory_space<vmem>>, vector<5x128xf32>
    tpu.vector_store %arg14[%c0_406, %c0_407], %418 {strides = array<i32>} : memref<16x128xf32, #tpu.memory_space<vmem>>, vector<5x128xf32>,
    %c16_408 = arith.constant 16 : index
    %c0_409 = arith.constant 0 : index
    %420 = tpu.strided_load %arg13[%c16_408, %c0_409] {strides = array<i32: 2, 1>} : memref<32x128xf32, #tpu.memory_space<vmem>>, vector<5x128xf32>
    %c0_410 = arith.constant 0 : index
    %c0_411 = arith.constant 0 : index
    %c0_412 = arith.constant 0 : index
    %421 = vector.load %arg4[%c0_410, %c0_411, %c0_412] : memref<10x128x128xf32, #tpu.memory_space<vmem>>, vector<1x128x128xf32>
    %422 = vector.shape_cast %421 : vector<1x128x128xf32> to vector<128x128xf32>
    %cst_413 = arith.constant dense<0.000000e+00> : vector<5x128xf32>
    %423 = tpu.matmul %420, %422, %cst_413 {dimension_numbers = #tpu.dot_dimension_numbers<[1], [0], [0], [1], [0, 0, 1, 1], [], []>} : vector<5x128xf32>, vector<128x128xf32>, vector<5x128xf32> -> vector<5x128xf32>
    %c17 = arith.constant 17 : index
    %c0_414 = arith.constant 0 : index
    %424 = tpu.strided_load %arg13[%c17, %c0_414] {strides = array<i32: 2, 1>} : memref<32x128xf32, #tpu.memory_space<vmem>>, vector<5x128xf32>
    %c1_415 = arith.constant 1 : index
    %c0_416 = arith.constant 0 : index
    %c0_417 = arith.constant 0 : index
    %425 = vector.load %arg4[%c1_415, %c0_416, %c0_417] : memref<10x128x128xf32, #tpu.memory_space<vmem>>, vector<1x128x128xf32>
    %426 = vector.shape_cast %425 : vector<1x128x128xf32> to vector<128x128xf32>
    %cst_418 = arith.constant dense<0.000000e+00> : vector<5x128xf32>
    %427 = tpu.matmul %424, %426, %cst_418 {dimension_numbers = #tpu.dot_dimension_numbers<[1], [0], [0], [1], [0, 0, 1, 1], [], []>} : vector<5x128xf32>, vector<128x128xf32>, vector<5x128xf32> -> vector<5x128xf32>
    %428 = arith.addf %423, %427 : vector<5x128xf32>
    %c18 = arith.constant 18 : index
    %c0_419 = arith.constant 0 : index
    %429 = tpu.strided_load %arg13[%c18, %c0_419] {strides = array<i32: 2, 1>} : memref<32x128xf32, #tpu.memory_space<vmem>>, vector<5x128xf32>
    %c2_420 = arith.constant 2 : index
    %c0_421 = arith.constant 0 : index
    %c0_422 = arith.constant 0 : index
    %430 = vector.load %arg4[%c2_420, %c0_421, %c0_422] : memref<10x128x128xf32, #tpu.memory_space<vmem>>, vector<1x128x128xf32>
    %431 = vector.shape_cast %430 : vector<1x128x128xf32> to vector<128x128xf32>
    %cst_423 = arith.constant dense<0.000000e+00> : vector<5x128xf32>
    %432 = tpu.matmul %429, %431, %cst_423 {dimension_numbers = #tpu.dot_dimension_numbers<[1], [0], [0], [1], [0, 0, 1, 1], [], []>} : vector<5x128xf32>, vector<128x128xf32>, vector<5x128xf32> -> vector<5x128xf32>
    %433 = arith.addf %428, %432 : vector<5x128xf32>
    %c19 = arith.constant 19 : index
    %c0_424 = arith.constant 0 : index
    %434 = tpu.strided_load %arg13[%c19, %c0_424] {strides = array<i32: 2, 1>} : memref<32x128xf32, #tpu.memory_space<vmem>>, vector<5x128xf32>
    %c3_425 = arith.constant 3 : index
    %c0_426 = arith.constant 0 : index
    %c0_427 = arith.constant 0 : index
    %435 = vector.load %arg4[%c3_425, %c0_426, %c0_427] : memref<10x128x128xf32, #tpu.memory_space<vmem>>, vector<1x128x128xf32>
    %436 = vector.shape_cast %435 : vector<1x128x128xf32> to vector<128x128xf32>
    %cst_428 = arith.constant dense<0.000000e+00> : vector<5x128xf32>
    %437 = tpu.matmul %434, %436, %cst_428 {dimension_numbers = #tpu.dot_dimension_numbers<[1], [0], [0], [1], [0, 0, 1, 1], [], []>} : vector<5x128xf32>, vector<128x128xf32>, vector<5x128xf32> -> vector<5x128xf32>
    %438 = arith.addf %433, %437 : vector<5x128xf32>
    %c20 = arith.constant 20 : index
    %c0_429 = arith.constant 0 : index
    %439 = tpu.strided_load %arg13[%c20, %c0_429] {strides = array<i32: 2, 1>} : memref<32x128xf32, #tpu.memory_space<vmem>>, vector<5x128xf32>
    %c4_430 = arith.constant 4 : index
    %c0_431 = arith.constant 0 : index
    %c0_432 = arith.constant 0 : index
    %440 = vector.load %arg4[%c4_430, %c0_431, %c0_432] : memref<10x128x128xf32, #tpu.memory_space<vmem>>, vector<1x128x128xf32>
    %441 = vector.shape_cast %440 : vector<1x128x128xf32> to vector<128x128xf32>
    %cst_433 = arith.constant dense<0.000000e+00> : vector<5x128xf32>
    %442 = tpu.matmul %439, %441, %cst_433 {dimension_numbers = #tpu.dot_dimension_numbers<[1], [0], [0], [1], [0, 0, 1, 1], [], []>} : vector<5x128xf32>, vector<128x128xf32>, vector<5x128xf32> -> vector<5x128xf32>
    %443 = arith.addf %438, %442 : vector<5x128xf32>
    %c0_434 = arith.constant 0 : index
    %c0_435 = arith.constant 0 : index
    %444 = vector.load %arg5[%c0_434, %c0_435] : memref<1x128xf32, #tpu.memory_space<vmem>>, vector<1x128xf32>
    %445 = vector.broadcast %444 : vector<1x128xf32> to vector<5x128xf32>
    %446 = arith.addf %443, %445 : vector<5x128xf32>
    %cst_436 = arith.constant 0.000000e+00 : f32
    %447 = vector.broadcast %cst_436 : f32 to vector<5x128xf32>
    %448 = arith.subf %447, %446 : vector<5x128xf32>
    %449 = math.exp %448 : vector<5x128xf32>
    %cst_437 = arith.constant 1.000000e+00 : f32
    %450 = vector.broadcast %cst_437 : f32 to vector<5x128xf32>
    %451 = arith.addf %450, %449 : vector<5x128xf32>
    %cst_438 = arith.constant 1.000000e+00 : f32
    %452 = vector.broadcast %cst_438 : f32 to vector<5x128xf32>
    %453 = arith.divf %452, %451 : vector<5x128xf32>
    %c16_439 = arith.constant 16 : index
    %c0_440 = arith.constant 0 : index
    %454 = tpu.strided_load %arg13[%c16_439, %c0_440] {strides = array<i32: 2, 1>} : memref<32x128xf32, #tpu.memory_space<vmem>>, vector<5x128xf32>
    %c5_441 = arith.constant 5 : index
    %c0_442 = arith.constant 0 : index
    %c0_443 = arith.constant 0 : index
    %455 = vector.load %arg4[%c5_441, %c0_442, %c0_443] : memref<10x128x128xf32, #tpu.memory_space<vmem>>, vector<1x128x128xf32>
    %456 = vector.shape_cast %455 : vector<1x128x128xf32> to vector<128x128xf32>
    %cst_444 = arith.constant dense<0.000000e+00> : vector<5x128xf32>
    %457 = tpu.matmul %454, %456, %cst_444 {dimension_numbers = #tpu.dot_dimension_numbers<[1], [0], [0], [1], [0, 0, 1, 1], [], []>} : vector<5x128xf32>, vector<128x128xf32>, vector<5x128xf32> -> vector<5x128xf32>
    %c17_445 = arith.constant 17 : index
    %c0_446 = arith.constant 0 : index
    %458 = tpu.strided_load %arg13[%c17_445, %c0_446] {strides = array<i32: 2, 1>} : memref<32x128xf32, #tpu.memory_space<vmem>>, vector<5x128xf32>
    %c6_447 = arith.constant 6 : index
    %c0_448 = arith.constant 0 : index
    %c0_449 = arith.constant 0 : index
    %459 = vector.load %arg4[%c6_447, %c0_448, %c0_449] : memref<10x128x128xf32, #tpu.memory_space<vmem>>, vector<1x128x128xf32>
    %460 = vector.shape_cast %459 : vector<1x128x128xf32> to vector<128x128xf32>
    %cst_450 = arith.constant dense<0.000000e+00> : vector<5x128xf32>
    %461 = tpu.matmul %458, %460, %cst_450 {dimension_numbers = #tpu.dot_dimension_numbers<[1], [0], [0], [1], [0, 0, 1, 1], [], []>} : vector<5x128xf32>, vector<128x128xf32>, vector<5x128xf32> -> vector<5x128xf32>
    %462 = arith.addf %457, %461 : vector<5x128xf32>
    %c18_451 = arith.constant 18 : index
    %c0_452 = arith.constant 0 : index
    %463 = tpu.strided_load %arg13[%c18_451, %c0_452] {strides = array<i32: 2, 1>} : memref<32x128xf32, #tpu.memory_space<vmem>>, vector<5x128xf32>
    %c7_453 = arith.constant 7 : index
    %c0_454 = arith.constant 0 : index
    %c0_455 = arith.constant 0 : index
    %464 = vector.load %arg4[%c7_453, %c0_454, %c0_455] : memref<10x128x128xf32, #tpu.memory_space<vmem>>, vector<1x128x128xf32>
    %465 = vector.shape_cast %464 : vector<1x128x128xf32> to vector<128x128xf32>
    %cst_456 = arith.constant dense<0.000000e+00> : vector<5x128xf32>
    %466 = tpu.matmul %463, %465, %cst_456 {dimension_numbers = #tpu.dot_dimension_numbers<[1], [0], [0], [1], [0, 0, 1, 1], [], []>} : vector<5x128xf32>, vector<128x128xf32>, vector<5x128xf32> -> vector<5x128xf32>
    %467 = arith.addf %462, %466 : vector<5x128xf32>
    %c19_457 = arith.constant 19 : index
    %c0_458 = arith.constant 0 : index
    %468 = tpu.strided_load %arg13[%c19_457, %c0_458] {strides = array<i32: 2, 1>} : memref<32x128xf32, #tpu.memory_space<vmem>>, vector<5x128xf32>
    %c8_459 = arith.constant 8 : index
    %c0_460 = arith.constant 0 : index
    %c0_461 = arith.constant 0 : index
    %469 = vector.load %arg4[%c8_459, %c0_460, %c0_461] : memref<10x128x128xf32, #tpu.memory_space<vmem>>, vector<1x128x128xf32>
    %470 = vector.shape_cast %469 : vector<1x128x128xf32> to vector<128x128xf32>
    %cst_462 = arith.constant dense<0.000000e+00> : vector<5x128xf32>
    %471 = tpu.matmul %468, %470, %cst_462 {dimension_numbers = #tpu.dot_dimension_numbers<[1], [0], [0], [1], [0, 0, 1, 1], [], []>} : vector<5x128xf32>, vector<128x128xf32>, vector<5x128xf32> -> vector<5x128xf32>
    %472 = arith.addf %467, %471 : vector<5x128xf32>
    %c20_463 = arith.constant 20 : index
    %c0_464 = arith.constant 0 : index
    %473 = tpu.strided_load %arg13[%c20_463, %c0_464] {strides = array<i32: 2, 1>} : memref<32x128xf32, #tpu.memory_space<vmem>>, vector<5x128xf32>
    %c9_465 = arith.constant 9 : index
    %c0_466 = arith.constant 0 : index
    %c0_467 = arith.constant 0 : index
    %474 = vector.load %arg4[%c9_465, %c0_466, %c0_467] : memref<10x128x128xf32, #tpu.memory_space<vmem>>, vector<1x128x128xf32>
    %475 = vector.shape_cast %474 : vector<1x128x128xf32> to vector<128x128xf32>
    %cst_468 = arith.constant dense<0.000000e+00> : vector<5x128xf32>
    %476 = tpu.matmul %473, %475, %cst_468 {dimension_numbers = #tpu.dot_dimension_numbers<[1], [0], [0], [1], [0, 0, 1, 1], [], []>} : vector<5x128xf32>, vector<128x128xf32>, vector<5x128xf32> -> vector<5x128xf32>
    %477 = arith.addf %472, %476 : vector<5x128xf32>
    %c0_469 = arith.constant 0 : index
    %c0_470 = arith.constant 0 : index
    %478 = vector.load %arg5[%c0_469, %c0_470] : memref<1x128xf32, #tpu.memory_space<vmem>>, vector<1x128xf32>
    %479 = vector.broadcast %478 : vector<1x128xf32> to vector<5x128xf32>
    %480 = arith.addf %477, %479 : vector<5x128xf32>
    %cst_471 = arith.constant 0.000000e+00 : f32
    %481 = vector.broadcast %cst_471 : f32 to vector<5x128xf32>
    %482 = arith.subf %481, %480 : vector<5x128xf32>
    %483 = math.exp %482 : vector<5x128xf32>
    %cst_472 = arith.constant 1.000000e+00 : f32
    %484 = vector.broadcast %cst_472 : f32 to vector<5x128xf32>
    %485 = arith.addf %484, %483 : vector<5x128xf32>
    %cst_473 = arith.constant 1.000000e+00 : f32
    %486 = vector.broadcast %cst_473 : f32 to vector<5x128xf32>
    %487 = arith.divf %486, %485 : vector<5x128xf32>
    %488 = arith.maximumf %453, %487 : vector<5x128xf32>
    %c17_474 = arith.constant 17 : index
    %c0_475 = arith.constant 0 : index
    %489 = tpu.strided_load %arg13[%c17_474, %c0_475] {strides = array<i32: 2, 1>} : memref<32x128xf32, #tpu.memory_space<vmem>>, vector<5x128xf32>
    %c0_476 = arith.constant 0 : index
    %c0_477 = arith.constant 0 : index
    %c0_478 = arith.constant 0 : index
    %490 = vector.load %arg4[%c0_476, %c0_477, %c0_478] : memref<10x128x128xf32, #tpu.memory_space<vmem>>, vector<1x128x128xf32>
    %491 = vector.shape_cast %490 : vector<1x128x128xf32> to vector<128x128xf32>
    %cst_479 = arith.constant dense<0.000000e+00> : vector<5x128xf32>
    %492 = tpu.matmul %489, %491, %cst_479 {dimension_numbers = #tpu.dot_dimension_numbers<[1], [0], [0], [1], [0, 0, 1, 1], [], []>} : vector<5x128xf32>, vector<128x128xf32>, vector<5x128xf32> -> vector<5x128xf32>
    %c18_480 = arith.constant 18 : index
    %c0_481 = arith.constant 0 : index
    %493 = tpu.strided_load %arg13[%c18_480, %c0_481] {strides = array<i32: 2, 1>} : memref<32x128xf32, #tpu.memory_space<vmem>>, vector<5x128xf32>
    %c1_482 = arith.constant 1 : index
    %c0_483 = arith.constant 0 : index
    %c0_484 = arith.constant 0 : index
    %494 = vector.load %arg4[%c1_482, %c0_483, %c0_484] : memref<10x128x128xf32, #tpu.memory_space<vmem>>, vector<1x128x128xf32>
    %495 = vector.shape_cast %494 : vector<1x128x128xf32> to vector<128x128xf32>
    %cst_485 = arith.constant dense<0.000000e+00> : vector<5x128xf32>
    %496 = tpu.matmul %493, %495, %cst_485 {dimension_numbers = #tpu.dot_dimension_numbers<[1], [0], [0], [1], [0, 0, 1, 1], [], []>} : vector<5x128xf32>, vector<128x128xf32>, vector<5x128xf32> -> vector<5x128xf32>
    %497 = arith.addf %492, %496 : vector<5x128xf32>
    %c19_486 = arith.constant 19 : index
    %c0_487 = arith.constant 0 : index
    %498 = tpu.strided_load %arg13[%c19_486, %c0_487] {strides = array<i32: 2, 1>} : memref<32x128xf32, #tpu.memory_space<vmem>>, vector<5x128xf32>
    %c2_488 = arith.constant 2 : index
    %c0_489 = arith.constant 0 : index
    %c0_490 = arith.constant 0 : index
    %499 = vector.load %arg4[%c2_488, %c0_489, %c0_490] : memref<10x128x128xf32, #tpu.memory_space<vmem>>, vector<1x128x128xf32>
    %500 = vector.shape_cast %499 : vector<1x128x128xf32> to vector<128x128xf32>
    %cst_491 = arith.constant dense<0.000000e+00> : vector<5x128xf32>
    %501 = tpu.matmul %498, %500, %cst_491 {dimension_numbers = #tpu.dot_dimension_numbers<[1], [0], [0], [1], [0, 0, 1, 1], [], []>} : vector<5x128xf32>, vector<128x128xf32>, vector<5x128xf32> -> vector<5x128xf32>
    %502 = arith.addf %497, %501 : vector<5x128xf32>
    %c20_492 = arith.constant 20 : index
    %c0_493 = arith.constant 0 : index
    %503 = tpu.strided_load %arg13[%c20_492, %c0_493] {strides = array<i32: 2, 1>} : memref<32x128xf32, #tpu.memory_space<vmem>>, vector<5x128xf32>
    %c3_494 = arith.constant 3 : index
    %c0_495 = arith.constant 0 : index
    %c0_496 = arith.constant 0 : index
    %504 = vector.load %arg4[%c3_494, %c0_495, %c0_496] : memref<10x128x128xf32, #tpu.memory_space<vmem>>, vector<1x128x128xf32>
    %505 = vector.shape_cast %504 : vector<1x128x128xf32> to vector<128x128xf32>
    %cst_497 = arith.constant dense<0.000000e+00> : vector<5x128xf32>
    %506 = tpu.matmul %503, %505, %cst_497 {dimension_numbers = #tpu.dot_dimension_numbers<[1], [0], [0], [1], [0, 0, 1, 1], [], []>} : vector<5x128xf32>, vector<128x128xf32>, vector<5x128xf32> -> vector<5x128xf32>
    %507 = arith.addf %502, %506 : vector<5x128xf32>
    %c21 = arith.constant 21 : index
    %c0_498 = arith.constant 0 : index
    %508 = tpu.strided_load %arg13[%c21, %c0_498] {strides = array<i32: 2, 1>} : memref<32x128xf32, #tpu.memory_space<vmem>>, vector<5x128xf32>
    %c4_499 = arith.constant 4 : index
    %c0_500 = arith.constant 0 : index
    %c0_501 = arith.constant 0 : index
    %509 = vector.load %arg4[%c4_499, %c0_500, %c0_501] : memref<10x128x128xf32, #tpu.memory_space<vmem>>, vector<1x128x128xf32>
    %510 = vector.shape_cast %509 : vector<1x128x128xf32> to vector<128x128xf32>
    %cst_502 = arith.constant dense<0.000000e+00> : vector<5x128xf32>
    %511 = tpu.matmul %508, %510, %cst_502 {dimension_numbers = #tpu.dot_dimension_numbers<[1], [0], [0], [1], [0, 0, 1, 1], [], []>} : vector<5x128xf32>, vector<128x128xf32>, vector<5x128xf32> -> vector<5x128xf32>
    %512 = arith.addf %507, %511 : vector<5x128xf32>
    %c0_503 = arith.constant 0 : index
    %c0_504 = arith.constant 0 : index
    %513 = vector.load %arg5[%c0_503, %c0_504] : memref<1x128xf32, #tpu.memory_space<vmem>>, vector<1x128xf32>
    %514 = vector.broadcast %513 : vector<1x128xf32> to vector<5x128xf32>
    %515 = arith.addf %512, %514 : vector<5x128xf32>
    %cst_505 = arith.constant 0.000000e+00 : f32
    %516 = vector.broadcast %cst_505 : f32 to vector<5x128xf32>
    %517 = arith.subf %516, %515 : vector<5x128xf32>
    %518 = math.exp %517 : vector<5x128xf32>
    %cst_506 = arith.constant 1.000000e+00 : f32
    %519 = vector.broadcast %cst_506 : f32 to vector<5x128xf32>
    %520 = arith.addf %519, %518 : vector<5x128xf32>
    %cst_507 = arith.constant 1.000000e+00 : f32
    %521 = vector.broadcast %cst_507 : f32 to vector<5x128xf32>
    %522 = arith.divf %521, %520 : vector<5x128xf32>
    %523 = arith.maximumf %488, %522 : vector<5x128xf32>
    %c17_508 = arith.constant 17 : index
    %c0_509 = arith.constant 0 : index
    %524 = tpu.strided_load %arg13[%c17_508, %c0_509] {strides = array<i32: 2, 1>} : memref<32x128xf32, #tpu.memory_space<vmem>>, vector<5x128xf32>
    %c5_510 = arith.constant 5 : index
    %c0_511 = arith.constant 0 : index
    %c0_512 = arith.constant 0 : index
    %525 = vector.load %arg4[%c5_510, %c0_511, %c0_512] : memref<10x128x128xf32, #tpu.memory_space<vmem>>, vector<1x128x128xf32>
    %526 = vector.shape_cast %525 : vector<1x128x128xf32> to vector<128x128xf32>
    %cst_513 = arith.constant dense<0.000000e+00> : vector<5x128xf32>
    %527 = tpu.matmul %524, %526, %cst_513 {dimension_numbers = #tpu.dot_dimension_numbers<[1], [0], [0], [1], [0, 0, 1, 1], [], []>} : vector<5x128xf32>, vector<128x128xf32>, vector<5x128xf32> -> vector<5x128xf32>
    %c18_514 = arith.constant 18 : index
    %c0_515 = arith.constant 0 : index
    %528 = tpu.strided_load %arg13[%c18_514, %c0_515] {strides = array<i32: 2, 1>} : memref<32x128xf32, #tpu.memory_space<vmem>>, vector<5x128xf32>
    %c6_516 = arith.constant 6 : index
    %c0_517 = arith.constant 0 : index
    %c0_518 = arith.constant 0 : index
    %529 = vector.load %arg4[%c6_516, %c0_517, %c0_518] : memref<10x128x128xf32, #tpu.memory_space<vmem>>, vector<1x128x128xf32>
    %530 = vector.shape_cast %529 : vector<1x128x128xf32> to vector<128x128xf32>
    %cst_519 = arith.constant dense<0.000000e+00> : vector<5x128xf32>
    %531 = tpu.matmul %528, %530, %cst_519 {dimension_numbers = #tpu.dot_dimension_numbers<[1], [0], [0], [1], [0, 0, 1, 1], [], []>} : vector<5x128xf32>, vector<128x128xf32>, vector<5x128xf32> -> vector<5x128xf32>
    %532 = arith.addf %527, %531 : vector<5x128xf32>
    %c19_520 = arith.constant 19 : index
    %c0_521 = arith.constant 0 : index
    %533 = tpu.strided_load %arg13[%c19_520, %c0_521] {strides = array<i32: 2, 1>} : memref<32x128xf32, #tpu.memory_space<vmem>>, vector<5x128xf32>
    %c7_522 = arith.constant 7 : index
    %c0_523 = arith.constant 0 : index
    %c0_524 = arith.constant 0 : index
    %534 = vector.load %arg4[%c7_522, %c0_523, %c0_524] : memref<10x128x128xf32, #tpu.memory_space<vmem>>, vector<1x128x128xf32>
    %535 = vector.shape_cast %534 : vector<1x128x128xf32> to vector<128x128xf32>
    %cst_525 = arith.constant dense<0.000000e+00> : vector<5x128xf32>
    %536 = tpu.matmul %533, %535, %cst_525 {dimension_numbers = #tpu.dot_dimension_numbers<[1], [0], [0], [1], [0, 0, 1, 1], [], []>} : vector<5x128xf32>, vector<128x128xf32>, vector<5x128xf32> -> vector<5x128xf32>
    %537 = arith.addf %532, %536 : vector<5x128xf32>
    %c20_526 = arith.constant 20 : index
    %c0_527 = arith.constant 0 : index
    %538 = tpu.strided_load %arg13[%c20_526, %c0_527] {strides = array<i32: 2, 1>} : memref<32x128xf32, #tpu.memory_space<vmem>>, vector<5x128xf32>
    %c8_528 = arith.constant 8 : index
    %c0_529 = arith.constant 0 : index
    %c0_530 = arith.constant 0 : index
    %539 = vector.load %arg4[%c8_528, %c0_529, %c0_530] : memref<10x128x128xf32, #tpu.memory_space<vmem>>, vector<1x128x128xf32>
    %540 = vector.shape_cast %539 : vector<1x128x128xf32> to vector<128x128xf32>
    %cst_531 = arith.constant dense<0.000000e+00> : vector<5x128xf32>
    %541 = tpu.matmul %538, %540, %cst_531 {dimension_numbers = #tpu.dot_dimension_numbers<[1], [0], [0], [1], [0, 0, 1, 1], [], []>} : vector<5x128xf32>, vector<128x128xf32>, vector<5x128xf32> -> vector<5x128xf32>
    %542 = arith.addf %537, %541 : vector<5x128xf32>
    %c21_532 = arith.constant 21 : index
    %c0_533 = arith.constant 0 : index
    %543 = tpu.strided_load %arg13[%c21_532, %c0_533] {strides = array<i32: 2, 1>} : memref<32x128xf32, #tpu.memory_space<vmem>>, vector<5x128xf32>
    %c9_534 = arith.constant 9 : index
    %c0_535 = arith.constant 0 : index
    %c0_536 = arith.constant 0 : index
    %544 = vector.load %arg4[%c9_534, %c0_535, %c0_536] : memref<10x128x128xf32, #tpu.memory_space<vmem>>, vector<1x128x128xf32>
    %545 = vector.shape_cast %544 : vector<1x128x128xf32> to vector<128x128xf32>
    %cst_537 = arith.constant dense<0.000000e+00> : vector<5x128xf32>
    %546 = tpu.matmul %543, %545, %cst_537 {dimension_numbers = #tpu.dot_dimension_numbers<[1], [0], [0], [1], [0, 0, 1, 1], [], []>} : vector<5x128xf32>, vector<128x128xf32>, vector<5x128xf32> -> vector<5x128xf32>
    %547 = arith.addf %542, %546 : vector<5x128xf32>
    %c0_538 = arith.constant 0 : index
    %c0_539 = arith.constant 0 : index
    %548 = vector.load %arg5[%c0_538, %c0_539] : memref<1x128xf32, #tpu.memory_space<vmem>>, vector<1x128xf32>
    %549 = vector.broadcast %548 : vector<1x128xf32> to vector<5x128xf32>
    %550 = arith.addf %547, %549 : vector<5x128xf32>
    %cst_540 = arith.constant 0.000000e+00 : f32
    %551 = vector.broadcast %cst_540 : f32 to vector<5x128xf32>
    %552 = arith.subf %551, %550 : vector<5x128xf32>
    %553 = math.exp %552 : vector<5x128xf32>
    %cst_541 = arith.constant 1.000000e+00 : f32
    %554 = vector.broadcast %cst_541 : f32 to vector<5x128xf32>
    %555 = arith.addf %554, %553 : vector<5x128xf32>
    %cst_542 = arith.constant 1.000000e+00 : f32
    %556 = vector.broadcast %cst_542 : f32 to vector<5x128xf32>
    %557 = arith.divf %556, %555 : vector<5x128xf32>
    %558 = arith.maximumf %523, %557 : vector<5x128xf32>
    %c8_543 = arith.constant 8 : index
    %c0_544 = arith.constant 0 : index
    %559 = vector.load %arg14[%c8_543, %c0_544] : memref<16x128xf32, #tpu.memory_space<vmem>>, vector<5x128xf32>
    tpu.vector_store %arg14[%c8_543, %c0_544], %558 {strides = array<i32>} : memref<16x128xf32, #tpu.memory_space<vmem>>, vector<5x128xf32>,
    %c0_545 = arith.constant 0 : index
    %c0_546 = arith.constant 0 : index
    %560 = tpu.strided_load %arg14[%c0_545, %c0_546] {strides = array<i32: 8, 1>} : memref<16x128xf32, #tpu.memory_space<vmem>>, vector<2x128xf32>
    %c0_547 = arith.constant 0 : index
    %c0_548 = arith.constant 0 : index
    %c0_549 = arith.constant 0 : index
    %561 = vector.load %arg6[%c0_547, %c0_548, %c0_549] : memref<5x128x128xf32, #tpu.memory_space<vmem>>, vector<1x128x128xf32>
    %562 = vector.shape_cast %561 : vector<1x128x128xf32> to vector<128x128xf32>
    %cst_550 = arith.constant dense<0.000000e+00> : vector<2x128xf32>
    %563 = tpu.matmul %560, %562, %cst_550 {dimension_numbers = #tpu.dot_dimension_numbers<[1], [0], [0], [1], [0, 0, 1, 1], [], []>} : vector<2x128xf32>, vector<128x128xf32>, vector<2x128xf32> -> vector<2x128xf32>
    %c1_551 = arith.constant 1 : index
    %c0_552 = arith.constant 0 : index
    %564 = tpu.strided_load %arg14[%c1_551, %c0_552] {strides = array<i32: 8, 1>} : memref<16x128xf32, #tpu.memory_space<vmem>>, vector<2x128xf32>
    %c1_553 = arith.constant 1 : index
    %c0_554 = arith.constant 0 : index
    %c0_555 = arith.constant 0 : index
    %565 = vector.load %arg6[%c1_553, %c0_554, %c0_555] : memref<5x128x128xf32, #tpu.memory_space<vmem>>, vector<1x128x128xf32>
    %566 = vector.shape_cast %565 : vector<1x128x128xf32> to vector<128x128xf32>
    %cst_556 = arith.constant dense<0.000000e+00> : vector<2x128xf32>
    %567 = tpu.matmul %564, %566, %cst_556 {dimension_numbers = #tpu.dot_dimension_numbers<[1], [0], [0], [1], [0, 0, 1, 1], [], []>} : vector<2x128xf32>, vector<128x128xf32>, vector<2x128xf32> -> vector<2x128xf32>
    %568 = arith.addf %563, %567 : vector<2x128xf32>
    %c2_557 = arith.constant 2 : index
    %c0_558 = arith.constant 0 : index
    %569 = tpu.strided_load %arg14[%c2_557, %c0_558] {strides = array<i32: 8, 1>} : memref<16x128xf32, #tpu.memory_space<vmem>>, vector<2x128xf32>
    %c2_559 = arith.constant 2 : index
    %c0_560 = arith.constant 0 : index
    %c0_561 = arith.constant 0 : index
    %570 = vector.load %arg6[%c2_559, %c0_560, %c0_561] : memref<5x128x128xf32, #tpu.memory_space<vmem>>, vector<1x128x128xf32>
    %571 = vector.shape_cast %570 : vector<1x128x128xf32> to vector<128x128xf32>
    %cst_562 = arith.constant dense<0.000000e+00> : vector<2x128xf32>
    %572 = tpu.matmul %569, %571, %cst_562 {dimension_numbers = #tpu.dot_dimension_numbers<[1], [0], [0], [1], [0, 0, 1, 1], [], []>} : vector<2x128xf32>, vector<128x128xf32>, vector<2x128xf32> -> vector<2x128xf32>
    %573 = arith.addf %568, %572 : vector<2x128xf32>
    %c3_563 = arith.constant 3 : index
    %c0_564 = arith.constant 0 : index
    %574 = tpu.strided_load %arg14[%c3_563, %c0_564] {strides = array<i32: 8, 1>} : memref<16x128xf32, #tpu.memory_space<vmem>>, vector<2x128xf32>
    %c3_565 = arith.constant 3 : index
    %c0_566 = arith.constant 0 : index
    %c0_567 = arith.constant 0 : index
    %575 = vector.load %arg6[%c3_565, %c0_566, %c0_567] : memref<5x128x128xf32, #tpu.memory_space<vmem>>, vector<1x128x128xf32>
    %576 = vector.shape_cast %575 : vector<1x128x128xf32> to vector<128x128xf32>
    %cst_568 = arith.constant dense<0.000000e+00> : vector<2x128xf32>
    %577 = tpu.matmul %574, %576, %cst_568 {dimension_numbers = #tpu.dot_dimension_numbers<[1], [0], [0], [1], [0, 0, 1, 1], [], []>} : vector<2x128xf32>, vector<128x128xf32>, vector<2x128xf32> -> vector<2x128xf32>
    %578 = arith.addf %573, %577 : vector<2x128xf32>
    %c4_569 = arith.constant 4 : index
    %c0_570 = arith.constant 0 : index
    %579 = tpu.strided_load %arg14[%c4_569, %c0_570] {strides = array<i32: 8, 1>} : memref<16x128xf32, #tpu.memory_space<vmem>>, vector<2x128xf32>
    %c4_571 = arith.constant 4 : index
    %c0_572 = arith.constant 0 : index
    %c0_573 = arith.constant 0 : index
    %580 = vector.load %arg6[%c4_571, %c0_572, %c0_573] : memref<5x128x128xf32, #tpu.memory_space<vmem>>, vector<1x128x128xf32>
    %581 = vector.shape_cast %580 : vector<1x128x128xf32> to vector<128x128xf32>
    %cst_574 = arith.constant dense<0.000000e+00> : vector<2x128xf32>
    %582 = tpu.matmul %579, %581, %cst_574 {dimension_numbers = #tpu.dot_dimension_numbers<[1], [0], [0], [1], [0, 0, 1, 1], [], []>} : vector<2x128xf32>, vector<128x128xf32>, vector<2x128xf32> -> vector<2x128xf32>
    %583 = arith.addf %578, %582 : vector<2x128xf32>
    %c0_575 = arith.constant 0 : index
    %c0_576 = arith.constant 0 : index
    %584 = vector.load %arg7[%c0_575, %c0_576] : memref<1x128xf32, #tpu.memory_space<vmem>>, vector<1x128xf32>
    %585 = vector.broadcast %584 : vector<1x128xf32> to vector<2x128xf32>
    %586 = arith.addf %583, %585 : vector<2x128xf32>
    %cst_577 = arith.constant 0.000000e+00 : f32
    %587 = vector.broadcast %cst_577 : f32 to vector<2x128xf32>
    %588 = arith.subf %587, %586 : vector<2x128xf32>
    %589 = math.exp %588 : vector<2x128xf32>
    %cst_578 = arith.constant 1.000000e+00 : f32
    %590 = vector.broadcast %cst_578 : f32 to vector<2x128xf32>
    %591 = arith.addf %590, %589 : vector<2x128xf32>
    %cst_579 = arith.constant 1.000000e+00 : f32
    %592 = vector.broadcast %cst_579 : f32 to vector<2x128xf32>
    %593 = arith.divf %592, %591 : vector<2x128xf32>
    %c0_580 = arith.constant 0 : index
    %c0_581 = arith.constant 0 : index
    %594 = vector.load %arg8[%c0_580, %c0_581] : memref<128x128xf32, #tpu.memory_space<vmem>>, vector<128x128xf32>
    %cst_582 = arith.constant dense<0.000000e+00> : vector<2x128xf32>
    %595 = tpu.matmul %593, %594, %cst_582 {dimension_numbers = #tpu.dot_dimension_numbers<[1], [0], [0], [1], [0, 0, 1, 1], [], []>} : vector<2x128xf32>, vector<128x128xf32>, vector<2x128xf32> -> vector<2x128xf32>
    %c0_583 = arith.constant 0 : index
    %c0_584 = arith.constant 0 : index
    %596 = vector.load %arg9[%c0_583, %c0_584] : memref<1x128xf32, #tpu.memory_space<vmem>>, vector<1x128xf32>
    %597 = vector.broadcast %596 : vector<1x128xf32> to vector<2x128xf32>
    %598 = arith.addf %595, %597 : vector<2x128xf32>
    %cst_585 = arith.constant 0.000000e+00 : f32
    %599 = vector.broadcast %cst_585 : f32 to vector<2x128xf32>
    %600 = arith.subf %599, %598 : vector<2x128xf32>
    %601 = math.exp %600 : vector<2x128xf32>
    %cst_586 = arith.constant 1.000000e+00 : f32
    %602 = vector.broadcast %cst_586 : f32 to vector<2x128xf32>
    %603 = arith.addf %602, %601 : vector<2x128xf32>
    %cst_587 = arith.constant 1.000000e+00 : f32
    %604 = vector.broadcast %cst_587 : f32 to vector<2x128xf32>
    %605 = arith.divf %604, %603 : vector<2x128xf32>
    %c0_588 = arith.constant 0 : index
    %c0_589 = arith.constant 0 : index
    %606 = vector.load %arg10[%c0_588, %c0_589] : memref<128x128xf32, #tpu.memory_space<vmem>>, vector<128x128xf32>
    %cst_590 = arith.constant dense<0.000000e+00> : vector<2x128xf32>
    %607 = tpu.matmul %605, %606, %cst_590 {dimension_numbers = #tpu.dot_dimension_numbers<[1], [0], [0], [1], [0, 0, 1, 1], [], []>} : vector<2x128xf32>, vector<128x128xf32>, vector<2x128xf32> -> vector<2x128xf32>
    %c0_591 = arith.constant 0 : index
    %c0_592 = arith.constant 0 : index
    %608 = vector.load %arg11[%c0_591, %c0_592] : memref<1x128xf32, #tpu.memory_space<vmem>>, vector<1x128xf32>
    %609 = vector.broadcast %608 : vector<1x128xf32> to vector<2x128xf32>
    %610 = arith.addf %607, %609 : vector<2x128xf32>
    %611 = vector.extract_strided_slice %610 {offsets = [0, 0], sizes = [2, 10], strides = [1, 1]} : vector<2x128xf32> to vector<2x10xf32>
    %c0_593 = arith.constant 0 : index
    %c0_594 = arith.constant 0 : index
    %612 = vector.load %arg12[%c0_593, %c0_594] : memref<2x10xf32, #tpu.memory_space<vmem>>, vector<2x10xf32>
    tpu.vector_store %arg12[%c0_593, %c0_594], %611 {strides = array<i32>} : memref<2x10xf32, #tpu.memory_space<vmem>>, vector<2x10xf32>,
    return
  }
  func.func @transform_0(%arg0: i32) -> (i32, i32) {
    %c0_i32 = arith.constant 0 : i32
    %c0_i32_0 = arith.constant 0 : i32
    %c0_i32_1 = arith.constant 0 : i32
    return %c0_i32, %c0_i32_0 : i32, i32
  }
  func.func @transform_1(%arg0: i32) -> (i32, i32, i32) {
    %c0_i32 = arith.constant 0 : i32
    %c0_i32_0 = arith.constant 0 : i32
    %c0_i32_1 = arith.constant 0 : i32
    %c0_i32_2 = arith.constant 0 : i32
    return %c0_i32, %c0_i32_0, %c0_i32_1 : i32, i32, i32
  }
  func.func @transform_2(%arg0: i32) -> (i32, i32) {
    %c0_i32 = arith.constant 0 : i32
    %c0_i32_0 = arith.constant 0 : i32
    %c0_i32_1 = arith.constant 0 : i32
    return %c0_i32, %c0_i32_0 : i32, i32
  }
  func.func @transform_3(%arg0: i32) -> (i32, i32, i32) {
    %c0_i32 = arith.constant 0 : i32
    %c0_i32_0 = arith.constant 0 : i32
    %c0_i32_1 = arith.constant 0 : i32
    %c0_i32_2 = arith.constant 0 : i32
    return %c0_i32, %c0_i32_0, %c0_i32_1 : i32, i32, i32
  }
  func.func @transform_4(%arg0: i32) -> (i32, i32) {
    %c0_i32 = arith.constant 0 : i32
    %c0_i32_0 = arith.constant 0 : i32
    %c0_i32_1 = arith.constant 0 : i32
    return %c0_i32, %c0_i32_0 : i32, i32
  }
  func.func @transform_5(%arg0: i32) -> (i32, i32, i32) {
    %c0_i32 = arith.constant 0 : i32
    %c0_i32_0 = arith.constant 0 : i32
    %c0_i32_1 = arith.constant 0 : i32
    %c0_i32_2 = arith.constant 0 : i32
    return %c0_i32, %c0_i32_0, %c0_i32_1 : i32, i32, i32
  }
  func.func @transform_6(%arg0: i32) -> (i32, i32) {
    %c0_i32 = arith.constant 0 : i32
    %c0_i32_0 = arith.constant 0 : i32
    %c0_i32_1 = arith.constant 0 : i32
    return %c0_i32, %c0_i32_0 : i32, i32
  }
  func.func @transform_7(%arg0: i32) -> (i32, i32) {
    %c0_i32 = arith.constant 0 : i32
    %c0_i32_0 = arith.constant 0 : i32
    %c0_i32_1 = arith.constant 0 : i32
    return %c0_i32, %c0_i32_0 : i32, i32
  }
  func.func @transform_8(%arg0: i32) -> (i32, i32) {
    %c0_i32 = arith.constant 0 : i32
    %c0_i32_0 = arith.constant 0 : i32
    %c0_i32_1 = arith.constant 0 : i32
    return %c0_i32, %c0_i32_0 : i32, i32
  }
  func.func @transform_9(%arg0: i32) -> (i32, i32) {
    %c0_i32 = arith.constant 0 : i32
    %c0_i32_0 = arith.constant 0 : i32
    %c0_i32_1 = arith.constant 0 : i32
    return %c0_i32, %c0_i32_0 : i32, i32
  }
  func.func @transform_10(%arg0: i32) -> (i32, i32) {
    %c0_i32 = arith.constant 0 : i32
    %c0_i32_0 = arith.constant 0 : i32
    %c0_i32_1 = arith.constant 0 : i32
    return %c0_i32, %c0_i32_0 : i32, i32
  }
  func.func @transform_11(%arg0: i32) -> (i32, i32) {
    %c0_i32 = arith.constant 0 : i32
    %c0_i32_0 = arith.constant 0 : i32
    %c0_i32_1 = arith.constant 0 : i32
    return %c0_i32, %c0_i32_0 : i32, i32
  }
}

</mosaic_0001>

<bundles_post_ra>
// kernel: tpu_custom_call.1
= control target key start
LH: loop header
LB: loop body
LE: loop exit
PB: predicated region body
PF: predicated region fallthrough
CT: control target
= control target key end

     0   :  { %16 = vsyncpa [#allocation5], 0  ;;  %s13689_s0 = inlined_call_operand.vmem [shape: f32[64,32], index: 0, kind: input, shape index: {}]   ;;  %s13690_s1 = inlined_call_operand.hbm [shape: f32[10,32,128], index: 1, kind: input, shape index: {}]   ;;  %s13691_s2 = inlined_call_operand.vmem [shape: f32[1,128], index: 2, kind: input, shape index: {}]   ;;  %s13692_s3 = inlined_call_operand.hbm [shape: f32[10,128,128], index: 3, kind: input, shape index: {}]   ;;  %s13693_s4 = inlined_call_operand.vmem [shape: f32[1,128], index: 4, kind: input, shape index: {}]   ;;  %s13694_s5 = inlined_call_operand.hbm [shape: f32[5,128,128], index: 5, kind: input, shape index: {}]   ;;  %s13695_s6 = inlined_call_operand.vmem [shape: f32[1,128], index: 6, kind: input, shape index: {}]   ;;  %s13696_s7 = inlined_call_operand.hbm [shape: f32[128,128], index: 7, kind: input, shape index: {}]   ;;  %s13697_s8 = inlined_call_operand.vmem [shape: f32[1,128], index: 8, kind: input, shape index: {}]   ;;  %s13698_s9 = inlined_call_operand.hbm [shape: f32[128,128], index: 9, kind: input, shape index: {}]   ;;  %s13699_s10 = inlined_call_operand.vmem [shape: f32[1,128], index: 10, kind: input, shape index: {}]   ;;  %s13700_s11 = inlined_call_operand.hbm [shape: f32[2,10], index: 11, kind: output, shape index: {}]  }
   0x1   :  { %17 = vsyncpa [#allocation8], 0 }
   0x2   :  { %18 = vsyncpa [#allocation11], 0 }
   0x3   :  { %19 = vsyncpa [#allocation6], 0  ;;  %s11034_s17 = smov [#allocation7]   ;;  %s11035_s19 = smov [#allocation10]  }
   0x4   :  { %s41_s18 = sshll.u32 %s11034_s17, 4  ;;  %s69_s20 = sshll.u32 %s11035_s19, 4  ;;  %s42_s18 = int_to_ptr.vmem [resolvable:$true] %s41_s18  ;;  %s70_s20 = int_to_ptr.vmem [resolvable:$true] %s69_s20 }
   0x5   :  { %s10914_s21 = scalar_lea.vmem %s42_s18, 20480  ;;  %p10919_p1 = scmp.lt.s32.totalorder %s42_s18, %s42_s18 }
   0x6   :  { %p10915_p0 = scmp.ne.s32.totalorder %s42_s18, %s10914_s21  ;;  %p10920_p2 = scmp.lt.s32.totalorder %s10914_s21, %s10914_s21 }
   0x8   :  { %p10921_p3 = por %p10920_p2, %p10919_p1 }
   0xa   :  { %p10922_p4 = pnand %p10921_p3, %p10915_p0 }
   0xc   :  { %10925 = shalt.err (!%p10922_p4)
}
   0xd   :  { %s11036_s22 = smov 128   ;;  %s11037_s23 = smov 8  }
   0xe   :  { %47 = dma.hbm_to_vmem [thread:$0]  %s13692_s3, 20480, %s42_s18, [#allocation8], %s11036_s22, %s11036_s22, %s11037_s23  }
   0xf   :  { %s10934_s26 = scalar_lea.vmem %s70_s20, 2048  ;;  %p10939_p6 = scmp.lt.s32.totalorder %s70_s20, %s70_s20 }
  0x10   :  { %p10935_p5 = scmp.ne.s32.totalorder %s70_s20, %s10934_s26  ;;  %p10940_p7 = scmp.lt.s32.totalorder %s10934_s26, %s10934_s26 }
  0x12   :  { %p10941_p8 = por %p10940_p7, %p10939_p6 }
  0x14   :  { %p10942_p9 = pnand %p10941_p8, %p10935_p5 }
  0x16   :  { %10945 = shalt.err (!%p10942_p9)
}
  0x17   :  { %75 = dma.hbm_to_vmem [thread:$0]  %s13696_s7, 2048, %s70_s20, [#allocation11], %s11036_s22, %s11036_s22, %s11037_s23  }
  0x18   :  { %s11038_s29 = smov [#allocation4]   ;;  %s11039_s12 = smov [#allocation9]  }
  0x19   :  { %s27_s30 = sshll.u32 %s11038_s29, 4  ;;  %s55_s13 = sshll.u32 %s11039_s12, 4  ;;  %s28_s30 = int_to_ptr.vmem [resolvable:$true] %s27_s30  ;;  %s56_s13 = int_to_ptr.vmem [resolvable:$true] %s55_s13 }
  0x1a   :  { %s10954_s3 = scalar_lea.vmem %s28_s30, 5120  ;;  %p10959_p11 = scmp.lt.s32.totalorder %s28_s30, %s28_s30 }
  0x1b   :  { %p10955_p10 = scmp.ne.s32.totalorder %s28_s30, %s10954_s3  ;;  %p10960_p12 = scmp.lt.s32.totalorder %s10954_s3, %s10954_s3 }
  0x1d   :  { %p10961_p13 = por %p10960_p12, %p10959_p11 }
  0x1f   :  { %p10962_p0 = pnand %p10961_p13, %p10955_p10 }
  0x21   :  { %10965 = shalt.err (!%p10962_p0)
}
  0x22   :  { %33 = dma.hbm_to_vmem [thread:$0]  %s13690_s1, 5120, %s28_s30, [#allocation5], %s11036_s22, %s11036_s22, %s11037_s23  }
  0x23   :  { %s10974_s7 = scalar_lea.vmem %s56_s13, 10240  ;;  %p10979_p2 = scmp.lt.s32.totalorder %s56_s13, %s56_s13 }
  0x24   :  { %p10975_p1 = scmp.ne.s32.totalorder %s56_s13, %s10974_s7  ;;  %p10980_p3 = scmp.lt.s32.totalorder %s10974_s7, %s10974_s7 }
  0x26   :  { %p10981_p4 = por %p10980_p3, %p10979_p2 }
  0x28   :  { %p10982_p5 = pnand %p10981_p4, %p10975_p1 }
  0x2a   :  { %10985 = shalt.err (!%p10982_p5)
}
  0x2b   :  { %61 = dma.hbm_to_vmem [thread:$0]  %s13694_s5, 10240, %s56_s13, [#allocation8], %s11036_s22, %s11036_s22, %s11037_s23  }
  0x2c   :  { %s11040_s18 = smov [#allocation12]  }
  0x2d   :  { %s83_s19 = sshll.u32 %s11040_s18, 4  ;;  %s84_s19 = int_to_ptr.vmem [resolvable:$true] %s83_s19 }
  0x2e   :  { %s10994_s20 = scalar_lea.vmem %s84_s19, 2048  ;;  %p10999_p7 = scmp.lt.s32.totalorder %s84_s19, %s84_s19 }
  0x2f   :  { %p10995_p6 = scmp.ne.s32.totalorder %s84_s19, %s10994_s20  ;;  %p11000_p8 = scmp.lt.s32.totalorder %s10994_s20, %s10994_s20 }
  0x31   :  { %p11001_p9 = por %p11000_p8, %p10999_p7 }
  0x33   :  { %p11002_p10 = pnand %p11001_p9, %p10995_p6 }
  0x35   :  { %11005 = shalt.err (!%p11002_p10)
}
  0x36   :  { %89 = dma.hbm_to_vmem [thread:$0]  %s13698_s9, 2048, %s84_s19, [#allocation11], %s11036_s22, %s11036_s22, %s11037_s23  }
  0x37   :  { %11026 = dma.done.wait [#allocation5], 5120  }
  0x38   :  { %11027 = vsyncadd [#allocation5], 4294962176 }
  0x39   :  { %11028 = dma.done.wait [#allocation8], 30720  }
  0x3a   :  { %11029 = vsyncadd [#allocation8], 4294936576 }
  0x3b   :  { %11030 = dma.done.wait [#allocation11], 4096  }
  0x3c   :  { %11031 = vsyncadd [#allocation11], 4294963200  ;;  %vm123_vm0 = vcmask 261120   ;;  %v11134_v0 = vld [vmem:[#allocation4 + $0x38] sm:$0xff]  ;;  %v11136_v1 = vld [vmem:[#allocation4 + $0x30] sm:$0xff]  ;;  %vm11042_vm1 = vmmov 0  }
  0x3d   :  { %8580 = vmatprep.subr.mxu1 %v11134_v0  ;;  %v11142_v2 = vld [vmem:[%s13689_s0 + $0x1] ss:$2 sm:$0xff]  ;;  %v11145_v3 = vld [vmem:[#allocation4 + $0x28] sm:$0xff]  ;;  %v11151_v4 = vld [vmem:[#allocation4 + $0x20] sm:$0xff]  ;;  %s11043_s30 = smov [#allocation13]   ;;  %vm7412_vm2 = vcmask 74752  }
  0x3e   :  { %8581 = vmatpush3.msra.mxu1 %v11134_v0  ;;  %8588 = vmatprep.mubr.msk.f32.mxu1 %vm123_vm0, %v11142_v2  ;;  %v11158_v5 = vld [vmem:[%s13689_s0 + $0x11] ss:$2 sm:$0x3f]  ;;  %v11160_v6 = vld [vmem:[#allocation4 + $0x18] sm:$0xff]  ;;  %v11172_v9 = vld [vmem:[#allocation4 + $0x10] sm:$0xff]  ;;  %s7420_s12 = sshll.u32 %s11043_s30, 4  ;;  %s7421_s12 = int_to_ptr.vmem [resolvable:$true] %s7420_s12 }
  0x3f   :  { %8582 = vmatprep.subr.mxu1 %v11136_v1  ;;  %v11162_v7 = vld [vmem:[#allocation4 + $0x98] sm:$0xff]  ;;  %v11175_v10 = vld [vmem:[#allocation4 + $0x90] sm:$0xff]  ;;  %v11181_v11 = vld [vmem:[#allocation4 + $0x8] sm:$0xff]  ;;  %p11011_p12 = scmp.lt.s32.totalorder %s7421_s12, %s7421_s12 }
  0x40   :  { %8583 = vmatpush3.msra.mxu1 %v11136_v1  ;;  %v11168_v8 = vld [vmem:[%s13689_s0] ss:$2 sm:$0xff]  ;;  %8624 = vmatprep.subr.mxu0 %v11162_v7  ;;  %v11185_v12 = vld [vmem:[#allocation4 + $0x88] sm:$0xff]  ;;  %v11190_v13 = vld [vmem:[#allocation4] sm:$0xff] }
  0x41   :  { %8584 = vmatprep.subr.mxu1 %v11145_v3  ;;  %8625 = vmatpush3.msra.mxu0 %v11162_v7  ;;  %v11193_v14 = vld [vmem:[#allocation4 + $0x80] sm:$0xff]  ;;  %v11201_v16 = vld [vmem:[#allocation4 + $0x58] sm:$0xff]  ;;  %v11212_v18 = vld [vmem:[#allocation4 + $0x50] sm:$0xff] }
  0x42   :  { %8585 = vmatpush3.msra.mxu1 %v11145_v3  ;;  %8626 = vmatprep.subr.mxu0 %v11175_v10  ;;  %v7431_v15 = vld [vmem:[%s13689_s0 + $0x10] ss:$2 sm:$0x3f]  ;;  %v11222_v20 = vld [vmem:[#allocation4 + $0xb8] sm:$0xff]  ;;  %v11241_v24 = vld [vmem:[#allocation4 + $0xb0] sm:$0xff] }
  0x43   :  { %8586 = vmatprep.subr.mxu1 %v11151_v4  ;;  %8627 = vmatpush3.msra.mxu0 %v11175_v10  ;;  %v11208_v17 = vld [vmem:[%s13689_s0 + $0x2] ss:$2 sm:$0xff]  ;;  %v11225_v21 = vld [vmem:[#allocation4 + $0x48] sm:$0xff]  ;;  %v11259_v27 = vld [vmem:[%s13689_s0 + $0x3] ss:$2 sm:$0xff] }
  0x44   :  { %8587 = vmatpush3.msra.mxu1 %v11151_v4  ;;  %8628 = vmatprep.subr.mxu0 %v11185_v12  ;;  %v11218_v19 = vld [vmem:[%s13689_s0 + $0x4] ss:$2 sm:$0xff]  ;;  %v11232_v22 = vld [vmem:[%s13689_s0 + $0x14] ss:$2 sm:$0x3f] }
  0x45   :  { %8589 = vmatmul.mubr.msk.f32.vlgmr.msra.gmra.mxu1 %vm123_vm0, %v11158_v5  ;;  %8591 = vmatprep.subr.mxu1 %v11160_v6  ;;  %v11238_v23 = vld [vmem:[#allocation4 + $0x40] sm:$0xff]  ;;  %v11252_v26 = vld [vmem:[#allocation4 + $0x78] sm:$0xff]  ;;  %v11263_v28 = vld [vmem:[#allocation4 + $0x70] sm:$0xff] }
  0x46   :  { %8592 = vmatpush3.msra.mxu1 %v11160_v6  ;;  %8599 = vmatprep.mubr.msk.f32.mxu1 %vm123_vm0, %v11168_v8  ;;  %v11250_v25 = vld [vmem:[%s13689_s0 + $0x12] ss:$2 sm:$0x3f]  ;;  %v11290_v33 = vld [vmem:[%s13689_s0 + $0x13] ss:$2 sm:$0x3f] }
  0x47   :  { %8593 = vmatprep.subr.mxu1 %v11172_v9  ;;  %8629 = vmatpush3.msra.mxu0 %v11185_v12  ;;  %v11266_v29 = vld [vmem:[#allocation4 + $0xa8] sm:$0xff]  ;;  %v11276_v31 = vld [vmem:[#allocation4 + $0xa0] sm:$0xff]  ;;  %v11292_v34 = vld [vmem:[#allocation4 + $0xd8] sm:$0xff] }
  0x48   :  { %8594 = vmatpush3.msra.mxu1 %v11172_v9  ;;  %8630 = vmatprep.subr.mxu0 %v11193_v14  ;;  %v11272_v30 = vld [vmem:[#allocation4 + $0x68] sm:$0xff]  ;;  %v11281_v32 = vld [vmem:[#allocation4 + $0x60] sm:$0xff]  ;;  %v11299_v35 = vld [vmem:[#allocation4 + $0xd0] sm:$0xff] }
  0x49   :  { %8595 = vmatprep.subr.mxu1 %v11181_v11  ;;  %8631 = vmatpush3.msra.mxu0 %v11193_v14  ;;  %v11302_v36 = vld [vmem:[#allocation4 + $0x118] sm:$0xff]  ;;  %v11308_v37 = vld [vmem:[#allocation4 + $0xc8] sm:$0xff]  ;;  %v11312_v38 = vld [vmem:[#allocation4 + $0x110] sm:$0xff] }
  0x4a   :  { %8596 = vmatpush3.msra.mxu1 %v11181_v11  ;;  %8632 = vmatprep.mubr.msk.f32.mxu0 %vm123_vm0, %v11218_v19  ;;  %v11317_v39 = vld [vmem:[#allocation4 + $0xc0] sm:$0xff]  ;;  %v11320_v40 = vld [vmem:[#allocation4 + $0x108] sm:$0xff]  ;;  %v11325_v41 = vld [vmem:[#allocation4 + $0xf8] sm:$0xff] }
  0x4b   :  { %8597 = vmatprep.subr.mxu1 %v11190_v13  ;;  %8646 = vmatprep.subr.mxu0 %v11222_v20  ;;  %v11330_v42 = vld [vmem:[#allocation4 + $0x100] sm:$0xff]  ;;  %v11333_v43 = vld [vmem:[#allocation4 + $0xf0] sm:$0xff]  ;;  %v11340_v44 = vld [vmem:[#allocation4 + $0xe8] sm:$0xff] }
  0x4c   :  { %8598 = vmatpush3.msra.mxu1 %v11190_v13  ;;  %8633 = vmatmul.mubr.msk.f32.vlgmr.msra.gmra.mxu0 %vm123_vm0, %v11232_v22  ;;  %v11347_v45 = vld [vmem:[#allocation4 + $0xe0] sm:$0xff]  ;;  %v11354_v46 = vld [vmem:[#allocation4 + $0x138] sm:$0xff]  ;;  %v11362_v47 = vld [vmem:[#allocation4 + $0x130] sm:$0xff] }
  0x4d   :  { %8600 = vmatmul.mubr.msk.f32.vlgmr.msra.gmra.mxu1 %vm123_vm0, %v7431_v15  ;;  %8602 = vmatprep.subr.mxu1 %v11201_v16  ;;  %v11369_v48 = vld [vmem:[#allocation4 + $0x128] sm:$0xff]  ;;  %v11375_v49 = vld [vmem:[#allocation4 + $0x120] sm:$0xff]  ;;  %v11514_v52 = vld [vmem:[%s13689_s0 + $0x21] ss:$2 sm:$0xff] }
  0x4e   :  { %8603 = vmatpush3.msra.mxu1 %v11201_v16  ;;  %8610 = vmatprep.mubr.msk.f32.mxu1 %vm123_vm0, %v11208_v17  ;;  %v7469_v50 = vld [vmem:[%s13689_s0 + $0x5] ss:$2 sm:$0xff]  ;;  %v7470_v51 = vld [vmem:[%s13689_s0 + $0x15] ss:$2 sm:$0x3f] }
  0x4f   :  { %8604 = vmatprep.subr.mxu1 %v11212_v18  ;;  %8647 = vmatpush3.msra.mxu0 %v11222_v20  ;;  %v11523_v53 = vld [vmem:[%s13689_s0 + $0x31] ss:$2 sm:$0x3f]  ;;  %v11531_v54 = vld [vmem:[%s13689_s0 + $0x20] ss:$2 sm:$0xff] }
  0x50   :  { %8605 = vmatpush3.msra.mxu1 %v11212_v18  ;;  %8648 = vmatprep.subr.mxu0 %v11241_v24  ;;  %v11541_v55 = vld [vmem:[%s13689_s0 + $0x30] ss:$2 sm:$0x3f]  ;;  %v11575_v58 = vld [vmem:[%s13689_s0 + $0x23] ss:$2 sm:$0xff] }
  0x51   :  { %8606 = vmatprep.subr.mxu1 %v11225_v21  ;;  %8649 = vmatpush3.msra.mxu0 %v11241_v24  ;;  %v11558_v56 = vld [vmem:[%s13689_s0 + $0x22] ss:$2 sm:$0xff]  ;;  %v11567_v57 = vld [vmem:[%s13689_s0 + $0x32] ss:$2 sm:$0x3f] }
  0x52   :  { %8607 = vmatpush3.msra.mxu1 %v11225_v21  ;;  %8650 = vmatprep.subr.mxu0 %v11266_v29  ;;  %v11585_v59 = vld [vmem:[%s13689_s0 + $0x33] ss:$2 sm:$0x3f]  ;;  %v11602_v60 = vld [vmem:[%s13689_s0 + $0x24] ss:$2 sm:$0xff] }
  0x53   :  { %8608 = vmatprep.subr.mxu1 %v11238_v23  ;;  %8651 = vmatpush3.msra.mxu0 %v11266_v29  ;;  %v11611_v61 = vld [vmem:[%s13689_s0 + $0x34] ss:$2 sm:$0x3f]  ;;  %v7522_v62 = vld [vmem:[%s13689_s0 + $0x25] ss:$2 sm:$0xff] }
  0x54   :  { %8609 = vmatpush3.msra.mxu1 %v11238_v23  ;;  %8652 = vmatprep.subr.mxu0 %v11276_v31  ;;  %v7523_v63 = vld [vmem:[%s13689_s0 + $0x35] ss:$2 sm:$0x3f] }
  0x55   :  { %8611 = vmatmul.mubr.msk.f32.vlgmr.msra.gmra.mxu1 %vm123_vm0, %v11250_v25  ;;  %8613 = vmatprep.subr.mxu1 %v11252_v26 }
  0x56   :  { %8614 = vmatpush3.msra.mxu1 %v11252_v26  ;;  %8621 = vmatprep.mubr.msk.f32.mxu1 %vm123_vm0, %v11259_v27 }
  0x57   :  { %8615 = vmatprep.subr.mxu1 %v11263_v28  ;;  %8653 = vmatpush3.msra.mxu0 %v11276_v31 }
  0x58   :  { %8616 = vmatpush3.msra.mxu1 %v11263_v28  ;;  %8654 = vmatprep.mubr.msk.f32.mxu0 %vm123_vm0, %v11168_v8  ;;  %v3519_v8 = vld [vmem:[#allocation7 + $0x60] sm:$0xff] }
  0x59   :  { %8617 = vmatprep.subr.mxu1 %v11272_v30  ;;  %8655 = vmatmul.mubr.msk.f32.vlgmr.msra.gmra.mxu0 %vm123_vm0, %v7431_v15  ;;  %v3534_v15 = vld [vmem:[#allocation7 + $0xc0] sm:$0xff] }
  0x5a   :  { %8618 = vmatpush3.msra.mxu1 %v11272_v30  ;;  %8668 = vmatprep.subr.mxu0 %v11302_v36 }
  0x5b   :  { %8619 = vmatprep.subr.mxu1 %v11281_v32  ;;  %8669 = vmatpush3.msra.mxu0 %v11302_v36 }
  0x5c   :  { %8620 = vmatpush3.msra.mxu1 %v11281_v32  ;;  %8670 = vmatprep.subr.mxu0 %v11312_v38 }
  0x5d   :  { %8622 = vmatmul.mubr.msk.f32.vlgmr.msra.gmra.mxu1 %vm123_vm0, %v11290_v33  ;;  %8635 = vmatprep.subr.mxu1 %v11292_v34 }
  0x5e   :  { %8636 = vmatpush3.msra.mxu1 %v11292_v34  ;;  %8643 = vmatprep.mubr.msk.f32.mxu1 %vm123_vm0, %v11142_v2 }
  0x5f   :  { %8637 = vmatprep.subr.mxu1 %v11299_v35  ;;  %8671 = vmatpush3.msra.mxu0 %v11312_v38 }
  0x60   :  { %8638 = vmatpush3.msra.mxu1 %v11299_v35  ;;  %8672 = vmatprep.subr.mxu0 %v11320_v40 }
  0x61   :  { %8639 = vmatprep.subr.mxu1 %v11308_v37  ;;  %8673 = vmatpush3.msra.mxu0 %v11320_v40 }
  0x62   :  { %8640 = vmatpush3.msra.mxu1 %v11308_v37  ;;  %8674 = vmatprep.subr.mxu0 %v11330_v42 }
  0x63   :  { %8641 = vmatprep.subr.mxu1 %v11317_v39  ;;  %8675 = vmatpush3.msra.mxu0 %v11330_v42 }
  0x64   :  { %8642 = vmatpush3.msra.mxu1 %v11317_v39  ;;  %8676 = vmatprep.mubr.msk.f32.mxu0 %vm123_vm0, %v11259_v27 }
  0x65   :  { %8644 = vmatmul.mubr.msk.f32.vlgmr.msra.gmra.mxu1 %vm123_vm0, %v11158_v5  ;;  %8657 = vmatprep.subr.mxu1 %v11325_v41 }
  0x66   :  { %8658 = vmatpush3.msra.mxu1 %v11325_v41  ;;  %8665 = vmatprep.mubr.msk.f32.mxu1 %vm123_vm0, %v11208_v17 }
  0x67   :  { %8659 = vmatprep.subr.mxu1 %v11333_v43  ;;  %8690 = vmatprep.subr.mxu0 %v11134_v0 }
  0x68   :  { %8660 = vmatpush3.msra.mxu1 %v11333_v43  ;;  %8677 = vmatmul.mubr.msk.f32.vlgmr.msra.gmra.mxu0 %vm123_vm0, %v11290_v33 }
  0x69   :  { %8661 = vmatprep.subr.mxu1 %v11340_v44  ;;  %8691 = vmatpush3.msra.mxu0 %v11134_v0 }
  0x6a   :  { %8662 = vmatpush3.msra.mxu1 %v11340_v44  ;;  %8692 = vmatprep.subr.mxu0 %v11136_v1 }
  0x6b   :  { %8663 = vmatprep.subr.mxu1 %v11347_v45  ;;  %8693 = vmatpush3.msra.mxu0 %v11136_v1 }
  0x6c   :  { %8664 = vmatpush3.msra.mxu1 %v11347_v45  ;;  %8694 = vmatprep.subr.mxu0 %v11145_v3 }
  0x6d   :  { %8666 = vmatmul.mubr.msk.f32.vlgmr.msra.gmra.mxu1 %vm123_vm0, %v11250_v25  ;;  %8679 = vmatprep.subr.mxu1 %v11354_v46 }
  0x6e   :  { %8680 = vmatpush3.msra.mxu1 %v11354_v46  ;;  %8695 = vmatpush3.msra.mxu0 %v11145_v3 }
  0x6f   :  { %8681 = vmatprep.subr.mxu1 %v11362_v47  ;;  %8696 = vmatprep.subr.mxu0 %v11151_v4 }
  0x70   :  { %8682 = vmatpush3.msra.mxu1 %v11362_v47  ;;  %8687 = vmatprep.mubr.msk.f32.mxu1 %vm123_vm0, %v11218_v19 }
  0x71   :  { %8683 = vmatprep.subr.mxu1 %v11369_v48  ;;  %8697 = vmatpush3.msra.mxu0 %v11151_v4 }
  0x72   :  { %8684 = vmatpush3.msra.mxu1 %v11369_v48  ;;  %8698 = vmatprep.mubr.msk.f32.mxu0 %vm123_vm0, %v11208_v17 }
  0x73   :  { %8685 = vmatprep.subr.mxu1 %v11375_v49  ;;  %8712 = vmatprep.subr.mxu0 %v11201_v16 }
  0x74   :  { %8686 = vmatpush3.msra.mxu1 %v11375_v49  ;;  %8699 = vmatmul.mubr.msk.f32.vlgmr.msra.gmra.mxu0 %vm123_vm0, %v11250_v25 }
  0x75   :  { %8688 = vmatmul.mubr.msk.f32.vlgmr.msra.gmra.mxu1 %vm123_vm0, %v11232_v22  ;;  %8701 = vmatprep.subr.mxu1 %v11160_v6 }
  0x76   :  { %8702 = vmatpush3.msra.mxu1 %v11160_v6  ;;  %8713 = vmatpush3.msra.mxu0 %v11201_v16 }
  0x77   :  { %8703 = vmatprep.subr.mxu1 %v11172_v9  ;;  %8714 = vmatprep.subr.mxu0 %v11212_v18 }
  0x78   :  { %8704 = vmatpush3.msra.mxu1 %v11172_v9  ;;  %8715 = vmatpush3.msra.mxu0 %v11212_v18 }
  0x79   :  { %8705 = vmatprep.subr.mxu1 %v11181_v11  ;;  %8716 = vmatprep.subr.mxu0 %v11225_v21 }
  0x7a   :  { %8706 = vmatpush3.msra.mxu1 %v11181_v11  ;;  %8717 = vmatpush3.msra.mxu0 %v11225_v21 }
  0x7b   :  { %8707 = vmatprep.subr.mxu1 %v11190_v13  ;;  %8718 = vmatprep.subr.mxu0 %v11238_v23 }
  0x7c   :  { %8708 = vmatpush3.msra.mxu1 %v11190_v13  ;;  %8709 = vmatprep.mubr.msk.f32.mxu1 %vm123_vm0, %v11142_v2 }
  0x7d   :  { %8719 = vmatpush3.msra.mxu0 %v11238_v23  ;;  %8710 = vmatmul.mubr.msk.f32.vlgmr.msra.gmra.mxu1 %vm123_vm0, %v11158_v5 }
  0x7e   :  { %8720 = vmatprep.mubr.msk.f32.mxu0 %vm123_vm0, %v11259_v27  ;;  %8723 = vmatprep.subr.mxu1 %v11252_v26 }
  0x7f   :  { %8734 = vmatprep.subr.mxu0 %v11162_v7  ;;  %8721 = vmatmul.mubr.msk.f32.vlgmr.msra.gmra.mxu0 %vm123_vm0, %v11290_v33 }
  0x80   :  { %8724 = vmatpush3.msra.mxu1 %v11252_v26  ;;  %8735 = vmatpush3.msra.mxu0 %v11162_v7 }
  0x81   :  { %8725 = vmatprep.subr.mxu1 %v11263_v28  ;;  %8736 = vmatprep.subr.mxu0 %v11175_v10 }
  0x82   :  { %8726 = vmatpush3.msra.mxu1 %v11263_v28  ;;  %8737 = vmatpush3.msra.mxu0 %v11175_v10 }
  0x83   :  { %8727 = vmatprep.subr.mxu1 %v11272_v30  ;;  %8738 = vmatprep.subr.mxu0 %v11185_v12 }
  0x84   :  { %8728 = vmatpush3.msra.mxu1 %v11272_v30  ;;  %8739 = vmatpush3.msra.mxu0 %v11185_v12 }
  0x85   :  { %8729 = vmatprep.subr.mxu1 %v11281_v32  ;;  %8740 = vmatprep.subr.mxu0 %v11193_v14 }
  0x86   :  { %8730 = vmatpush3.msra.mxu1 %v11281_v32  ;;  %8731 = vmatprep.mubr.msk.f32.mxu1 %vm123_vm0, %v11218_v19 }
  0x87   :  { %8741 = vmatpush3.msra.mxu0 %v11193_v14  ;;  %8732 = vmatmul.mubr.msk.f32.vlgmr.msra.gmra.mxu1 %vm123_vm0, %v11232_v22 }
  0x88   :  { %8742 = vmatprep.mubr.msk.f32.mxu0 %vm123_vm0, %v7469_v50  ;;  %8745 = vmatprep.subr.mxu1 %v11292_v34 }
  0x89   :  { %8756 = vmatprep.subr.mxu0 %v11222_v20  ;;  %8743 = vmatmul.mubr.msk.f32.vlgmr.msra.gmra.mxu0 %vm123_vm0, %v7470_v51 }
  0x8a   :  { %8746 = vmatpush3.msra.mxu1 %v11292_v34  ;;  %8757 = vmatpush3.msra.mxu0 %v11222_v20 }
  0x8b   :  { %8747 = vmatprep.subr.mxu1 %v11299_v35  ;;  %8758 = vmatprep.subr.mxu0 %v11241_v24 }
  0x8c   :  { %8748 = vmatpush3.msra.mxu1 %v11299_v35  ;;  %8759 = vmatpush3.msra.mxu0 %v11241_v24 }
  0x8d   :  { %8749 = vmatprep.subr.mxu1 %v11308_v37  ;;  %8760 = vmatprep.subr.mxu0 %v11266_v29 }
  0x8e   :  { %8750 = vmatpush3.msra.mxu1 %v11308_v37  ;;  %8761 = vmatpush3.msra.mxu0 %v11266_v29 }
  0x8f   :  { %8751 = vmatprep.subr.mxu1 %v11317_v39  ;;  %8762 = vmatprep.subr.mxu0 %v11276_v31 }
  0x90   :  { %8752 = vmatpush3.msra.mxu1 %v11317_v39  ;;  %8753 = vmatprep.mubr.msk.f32.mxu1 %vm123_vm0, %v11208_v17  ;;  %v3533_v17 = vld [vmem:[#allocation7 + $0xb8] sm:$0xff] }
  0x91   :  { %8763 = vmatpush3.msra.mxu0 %v11276_v31  ;;  %8764 = vmatprep.mubr.msk.f32.mxu0 %vm123_vm0, %v11142_v2  ;;  %v11041_v2 = vmov 0.0  }
  0x92   :  { %8754 = vmatmul.mubr.msk.f32.vlgmr.msra.gmra.mxu1 %vm123_vm0, %v11250_v25  ;;  %8765 = vmatmul.mubr.msk.f32.vlgmr.msra.gmra.mxu0 %vm123_vm0, %v11158_v5  ;;  %v3539_v5 = vld [vmem:[#allocation7 + $0xe8] sm:$0xff] }
  0x93   :  { %8767 = vmatprep.subr.mxu1 %v11325_v41  ;;  %8778 = vmatprep.subr.mxu0 %v11302_v36 }
  0x94   :  { %8768 = vmatpush3.msra.mxu1 %v11325_v41  ;;  %8779 = vmatpush3.msra.mxu0 %v11302_v36 }
  0x95   :  { %8769 = vmatprep.subr.mxu1 %v11333_v43  ;;  %8780 = vmatprep.subr.mxu0 %v11312_v38 }
  0x96   :  { %8770 = vmatpush3.msra.mxu1 %v11333_v43  ;;  %8781 = vmatpush3.msra.mxu0 %v11312_v38 }
  0x97   :  { %8771 = vmatprep.subr.mxu1 %v11340_v44  ;;  %8782 = vmatprep.subr.mxu0 %v11320_v40 }
  0x98   :  { %8772 = vmatpush3.msra.mxu1 %v11340_v44  ;;  %8775 = vmatprep.mubr.msk.f32.mxu1 %vm123_vm0, %v11259_v27  ;;  %v3510_v27 = vld [vmem:[#allocation7 + $0x18] sm:$0xff] }
  0x99   :  { %8773 = vmatprep.subr.mxu1 %v11347_v45  ;;  %8783 = vmatpush3.msra.mxu0 %v11320_v40 }
  0x9a   :  { %8774 = vmatpush3.msra.mxu1 %v11347_v45  ;;  %8784 = vmatprep.subr.mxu0 %v11330_v42 }
  0x9b   :  { %8776 = vmatmul.mubr.msk.f32.vlgmr.msra.gmra.mxu1 %vm123_vm0, %v11290_v33  ;;  %8789 = vmatprep.subr.mxu1 %v11354_v46 }
  0x9c   :  { %8785 = vmatpush3.msra.mxu0 %v11330_v42  ;;  %8786 = vmatprep.mubr.msk.f32.mxu0 %vm123_vm0, %v11218_v19  ;;  %v3532_v19 = vld [vmem:[#allocation7 + $0xb0] sm:$0xff] }
  0x9d   :  { %8790 = vmatpush3.msra.mxu1 %v11354_v46  ;;  %8787 = vmatmul.mubr.msk.f32.vlgmr.msra.gmra.mxu0 %vm123_vm0, %v11232_v22  ;;  %v3512_v22 = vld [vmem:[#allocation7 + $0x28] sm:$0xff] }
  0x9e   :  { %8791 = vmatprep.subr.mxu1 %v11362_v47  ;;  %8797 = vmatprep.mubr.msk.f32.mxu1 %vm123_vm0, %v7469_v50 }
  0x9f   :  { %8792 = vmatpush3.msra.mxu1 %v11362_v47  ;;  %8800 = vmatprep.subr.mxu0 %v11134_v0 }
  0xa0   :  { %8793 = vmatprep.subr.mxu1 %v11369_v48  ;;  %8801 = vmatpush3.msra.mxu0 %v11134_v0 }
  0xa1   :  { %8794 = vmatpush3.msra.mxu1 %v11369_v48  ;;  %8802 = vmatprep.subr.mxu0 %v11136_v1 }
  0xa2   :  { %8795 = vmatprep.subr.mxu1 %v11375_v49  ;;  %8803 = vmatpush3.msra.mxu0 %v11136_v1 }
  0xa3   :  { %8796 = vmatpush3.msra.mxu1 %v11375_v49  ;;  %8804 = vmatprep.subr.mxu0 %v11145_v3 }
  0xa4   :  { %8798 = vmatmul.mubr.msk.f32.vlgmr.msra.gmra.mxu1 %vm123_vm0, %v7470_v51  ;;  %8811 = vmatprep.subr.mxu1 %v11160_v6 }
  0xa5   :  { %8812 = vmatpush3.msra.mxu1 %v11160_v6  ;;  %8805 = vmatpush3.msra.mxu0 %v11145_v3 }
  0xa6   :  { %8813 = vmatprep.subr.mxu1 %v11172_v9  ;;  %8806 = vmatprep.subr.mxu0 %v11151_v4 }
  0xa7   :  { %8814 = vmatpush3.msra.mxu1 %v11172_v9  ;;  %8807 = vmatpush3.msra.mxu0 %v11151_v4 }
  0xa8   :  { %8815 = vmatprep.subr.mxu1 %v11181_v11  ;;  %8808 = vmatprep.mubr.msk.f32.mxu0 %vm123_vm0, %v11514_v52 }
  0xa9   :  { %8816 = vmatpush3.msra.mxu1 %v11181_v11  ;;  %8822 = vmatprep.subr.mxu0 %v11201_v16 }
  0xaa   :  { %8817 = vmatprep.subr.mxu1 %v11190_v13  ;;  %8809 = vmatmul.mubr.msk.f32.vlgmr.msra.gmra.mxu0 %vm123_vm0, %v11523_v53 }
  0xab   :  { %8818 = vmatpush3.msra.mxu1 %v11190_v13  ;;  %8823 = vmatpush3.msra.mxu0 %v11201_v16 }
  0xac   :  { %8819 = vmatprep.mubr.msk.f32.mxu1 %vm123_vm0, %v11531_v54  ;;  %8824 = vmatprep.subr.mxu0 %v11212_v18 }
  0xad   :  { %8833 = vmatprep.subr.mxu1 %v11252_v26  ;;  %8820 = vmatmul.mubr.msk.f32.vlgmr.msra.gmra.mxu1 %vm123_vm0, %v11541_v55 }
  0xae   :  { %8825 = vmatpush3.msra.mxu0 %v11212_v18  ;;  %8834 = vmatpush3.msra.mxu1 %v11252_v26 }
  0xaf   :  { %8826 = vmatprep.subr.mxu0 %v11225_v21  ;;  %8835 = vmatprep.subr.mxu1 %v11263_v28 }
  0xb0   :  { %8827 = vmatpush3.msra.mxu0 %v11225_v21  ;;  %8836 = vmatpush3.msra.mxu1 %v11263_v28 }
  0xb1   :  { %8828 = vmatprep.subr.mxu0 %v11238_v23  ;;  %8837 = vmatprep.subr.mxu1 %v11272_v30 }
  0xb2   :  { %8829 = vmatpush3.msra.mxu0 %v11238_v23  ;;  %8838 = vmatpush3.msra.mxu1 %v11272_v30 }
  0xb3   :  { %8830 = vmatprep.mubr.msk.f32.mxu0 %vm123_vm0, %v11558_v56  ;;  %8839 = vmatprep.subr.mxu1 %v11281_v32 }
  0xb4   :  { %8844 = vmatprep.subr.mxu0 %v11162_v7  ;;  %8831 = vmatmul.mubr.msk.f32.vlgmr.msra.gmra.mxu0 %vm123_vm0, %v11567_v57 }
  0xb5   :  { %8840 = vmatpush3.msra.mxu1 %v11281_v32  ;;  %8845 = vmatpush3.msra.mxu0 %v11162_v7 }
  0xb6   :  { %8841 = vmatprep.mubr.msk.f32.mxu1 %vm123_vm0, %v11575_v58  ;;  %8846 = vmatprep.subr.mxu0 %v11175_v10 }
  0xb7   :  { %8855 = vmatprep.subr.mxu1 %v11292_v34  ;;  %8842 = vmatmul.mubr.msk.f32.vlgmr.msra.gmra.mxu1 %vm123_vm0, %v11585_v59 }
  0xb8   :  { %8847 = vmatpush3.msra.mxu0 %v11175_v10  ;;  %8856 = vmatpush3.msra.mxu1 %v11292_v34 }
  0xb9   :  { %8848 = vmatprep.subr.mxu0 %v11185_v12  ;;  %8857 = vmatprep.subr.mxu1 %v11299_v35 }
  0xba   :  { %8849 = vmatpush3.msra.mxu0 %v11185_v12  ;;  %8858 = vmatpush3.msra.mxu1 %v11299_v35 }
  0xbb   :  { %8850 = vmatprep.subr.mxu0 %v11193_v14  ;;  %8859 = vmatprep.subr.mxu1 %v11308_v37 }
  0xbc   :  { %8851 = vmatpush3.msra.mxu0 %v11193_v14  ;;  %8860 = vmatpush3.msra.mxu1 %v11308_v37 }
  0xbd   :  { %8852 = vmatprep.mubr.msk.f32.mxu0 %vm123_vm0, %v11602_v60  ;;  %8861 = vmatprep.subr.mxu1 %v11317_v39 }
  0xbe   :  { %8866 = vmatprep.subr.mxu0 %v11222_v20  ;;  %8853 = vmatmul.mubr.msk.f32.vlgmr.msra.gmra.mxu0 %vm123_vm0, %v11611_v61 }
  0xbf   :  { %8862 = vmatpush3.msra.mxu1 %v11317_v39  ;;  %8867 = vmatpush3.msra.mxu0 %v11222_v20 }
  0xc0   :  { %8863 = vmatprep.mubr.msk.f32.mxu1 %vm123_vm0, %v11514_v52  ;;  %8868 = vmatprep.subr.mxu0 %v11241_v24 }
  0xc1   :  { %8877 = vmatprep.subr.mxu1 %v11325_v41  ;;  %8864 = vmatmul.mubr.msk.f32.vlgmr.msra.gmra.mxu1 %vm123_vm0, %v11523_v53 }
  0xc2   :  { %8869 = vmatpush3.msra.mxu0 %v11241_v24  ;;  %8878 = vmatpush3.msra.mxu1 %v11325_v41 }
  0xc3   :  { %8870 = vmatprep.subr.mxu0 %v11266_v29  ;;  %8879 = vmatprep.subr.mxu1 %v11333_v43 }
  0xc4   :  { %8871 = vmatpush3.msra.mxu0 %v11266_v29  ;;  %8880 = vmatpush3.msra.mxu1 %v11333_v43 }
  0xc5   :  { %8872 = vmatprep.subr.mxu0 %v11276_v31  ;;  %8881 = vmatprep.subr.mxu1 %v11340_v44 }
  0xc6   :  { %8873 = vmatpush3.msra.mxu0 %v11276_v31  ;;  %8882 = vmatpush3.msra.mxu1 %v11340_v44 }
  0xc7   :  { %8874 = vmatprep.mubr.msk.f32.mxu0 %vm123_vm0, %v11531_v54  ;;  %8883 = vmatprep.subr.mxu1 %v11347_v45 }
  0xc8   :  { %8888 = vmatprep.subr.mxu0 %v11302_v36  ;;  %8875 = vmatmul.mubr.msk.f32.vlgmr.msra.gmra.mxu0 %vm123_vm0, %v11541_v55 }
  0xc9   :  { %8884 = vmatpush3.msra.mxu1 %v11347_v45  ;;  %8889 = vmatpush3.msra.mxu0 %v11302_v36 }
  0xca   :  { %8885 = vmatprep.mubr.msk.f32.mxu1 %vm123_vm0, %v11558_v56  ;;  %8890 = vmatprep.subr.mxu0 %v11312_v38 }
  0xcb   :  { %8899 = vmatprep.subr.mxu1 %v11354_v46  ;;  %8886 = vmatmul.mubr.msk.f32.vlgmr.msra.gmra.mxu1 %vm123_vm0, %v11567_v57 }
  0xcc   :  { %8891 = vmatpush3.msra.mxu0 %v11312_v38  ;;  %8900 = vmatpush3.msra.mxu1 %v11354_v46 }
  0xcd   :  { %8892 = vmatprep.subr.mxu0 %v11320_v40  ;;  %8901 = vmatprep.subr.mxu1 %v11362_v47 }
  0xce   :  { %8893 = vmatpush3.msra.mxu0 %v11320_v40  ;;  %8902 = vmatpush3.msra.mxu1 %v11362_v47 }
  0xcf   :  { %8894 = vmatprep.subr.mxu0 %v11330_v42  ;;  %8903 = vmatprep.subr.mxu1 %v11369_v48 }
  0xd0   :  { %8895 = vmatpush3.msra.mxu0 %v11330_v42  ;;  %8904 = vmatpush3.msra.mxu1 %v11369_v48 }
  0xd1   :  { %8896 = vmatprep.mubr.msk.f32.mxu0 %vm123_vm0, %v11575_v58  ;;  %8905 = vmatprep.subr.mxu1 %v11375_v49 }
  0xd2   :  { %8910 = vmatprep.subr.mxu0 %v11134_v0  ;;  %8897 = vmatmul.mubr.msk.f32.vlgmr.msra.gmra.mxu0 %vm123_vm0, %v11585_v59 }
  0xd3   :  { %8906 = vmatpush3.msra.mxu1 %v11375_v49  ;;  %8911 = vmatpush3.msra.mxu0 %v11134_v0  ;;  %v3541_v0 = vld [vmem:[#allocation7 + $0xf8] sm:$0xff] }
  0xd4   :  { %8907 = vmatprep.mubr.msk.f32.mxu1 %vm123_vm0, %v11602_v60  ;;  %8912 = vmatprep.subr.mxu0 %v11136_v1 }
  0xd5   :  { %8921 = vmatprep.subr.mxu1 %v11160_v6  ;;  %8908 = vmatmul.mubr.msk.f32.vlgmr.msra.gmra.mxu1 %vm123_vm0, %v11611_v61 }
  0xd6   :  { %8913 = vmatpush3.msra.mxu0 %v11136_v1  ;;  %8922 = vmatpush3.msra.mxu1 %v11160_v6  ;;  %v3522_v1 = vld [vmem:[#allocation7 + $0x78] sm:$0xff]  ;;  %v3520_v6 = vld [vmem:[#allocation7 + $0x68] sm:$0xff] }
  0xd7   :  { %8914 = vmatprep.subr.mxu0 %v11145_v3  ;;  %8923 = vmatprep.subr.mxu1 %v11172_v9 }
  0xd8   :  { %8915 = vmatpush3.msra.mxu0 %v11145_v3  ;;  %8924 = vmatpush3.msra.mxu1 %v11172_v9  ;;  %v3540_v3 = vld [vmem:[#allocation7 + $0xf0] sm:$0xff]  ;;  %v3537_v9 = vld [vmem:[#allocation7 + $0xd8] sm:$0xff] }
  0xd9   :  { %8916 = vmatprep.subr.mxu0 %v11151_v4  ;;  %8925 = vmatprep.subr.mxu1 %v11181_v11 }
  0xda   :  { %8917 = vmatpush3.msra.mxu0 %v11151_v4  ;;  %8926 = vmatpush3.msra.mxu1 %v11181_v11  ;;  %v3521_v4 = vld [vmem:[#allocation7 + $0x70] sm:$0xff] }
  0xdb   :  { %8918 = vmatprep.mubr.msk.f32.mxu0 %vm123_vm0, %v11558_v56  ;;  %8927 = vmatprep.subr.mxu1 %v11190_v13  ;;  %v3536_v11 = vld [vmem:[#allocation7 + $0xd0] sm:$0xff] }
  0xdc   :  { %8932 = vmatprep.subr.mxu0 %v11201_v16  ;;  %8919 = vmatmul.mubr.msk.f32.vlgmr.msra.gmra.mxu0 %vm123_vm0, %v11567_v57 }
  0xdd   :  { %8928 = vmatpush3.msra.mxu1 %v11190_v13  ;;  %8933 = vmatpush3.msra.mxu0 %v11201_v16  ;;  %v3535_v13 = vld [vmem:[#allocation7 + $0xc8] sm:$0xff]  ;;  %v3515_v16 = vld [vmem:[#allocation7 + $0x40] sm:$0xff] }
  0xde   :  { %8929 = vmatprep.mubr.msk.f32.mxu1 %vm123_vm0, %v11514_v52  ;;  %8934 = vmatprep.subr.mxu0 %v11212_v18 }
  0xdf   :  { %8943 = vmatprep.subr.mxu1 %v11252_v26  ;;  %8930 = vmatmul.mubr.msk.f32.vlgmr.msra.gmra.mxu1 %vm123_vm0, %v11523_v53 }
  0xe0   :  { %8935 = vmatpush3.msra.mxu0 %v11212_v18  ;;  %8944 = vmatpush3.msra.mxu1 %v11252_v26  ;;  %v3514_v18 = vld [vmem:[#allocation7 + $0x38] sm:$0xff] }
  0xe1   :  { %8936 = vmatprep.subr.mxu0 %v11225_v21  ;;  %8945 = vmatprep.subr.mxu1 %v11263_v28  ;;  %v3529_v26 = vld [vmem:[#allocation7 + $0x98] sm:$0xff] }
  0xe2   :  { %8937 = vmatpush3.msra.mxu0 %v11225_v21  ;;  %8946 = vmatpush3.msra.mxu1 %v11263_v28  ;;  %v3531_v21 = vld [vmem:[#allocation7 + $0xa8] sm:$0xff]  ;;  %v3528_v28 = vld [vmem:[#allocation7 + $0x90] sm:$0xff] }
  0xe3   :  { %8938 = vmatprep.subr.mxu0 %v11238_v23  ;;  %8947 = vmatprep.subr.mxu1 %v11272_v30 }
  0xe4   :  { %8939 = vmatpush3.msra.mxu0 %v11238_v23  ;;  %8948 = vmatpush3.msra.mxu1 %v11272_v30  ;;  %v3530_v23 = vld [vmem:[#allocation7 + $0xa0] sm:$0xff] }
  0xe5   :  { %8940 = vmatprep.mubr.msk.f32.mxu0 %vm123_vm0, %v11575_v58  ;;  %8949 = vmatprep.subr.mxu1 %v11281_v32 }
  0xe6   :  { %8954 = vmatprep.subr.mxu0 %v11162_v7  ;;  %8941 = vmatmul.mubr.msk.f32.vlgmr.msra.gmra.mxu0 %vm123_vm0, %v11585_v59 }
  0xe7   :  { %8950 = vmatpush3.msra.mxu1 %v11281_v32  ;;  %8955 = vmatpush3.msra.mxu0 %v11162_v7  ;;  %v3538_v7 = vld [vmem:[#allocation7 + $0xe0] sm:$0xff]  ;;  %v3508_v32 = vld [vmem:[#allocation7 + $0x8] sm:$0xff] }
  0xe8   :  { %8951 = vmatprep.mubr.msk.f32.mxu1 %vm123_vm0, %v11602_v60  ;;  %8956 = vmatprep.subr.mxu0 %v11175_v10 }
  0xe9   :  { %8965 = vmatprep.subr.mxu1 %v11292_v34  ;;  %8952 = vmatmul.mubr.msk.f32.vlgmr.msra.gmra.mxu1 %vm123_vm0, %v11611_v61 }
  0xea   :  { %8957 = vmatpush3.msra.mxu0 %v11175_v10  ;;  %8966 = vmatpush3.msra.mxu1 %v11292_v34  ;;  %v3518_v10 = vld [vmem:[#allocation7 + $0x58] sm:$0xff]  ;;  %v3526_v34 = vld [vmem:[#allocation7 + $0x80] sm:$0xff] }
  0xeb   :  { %8958 = vmatprep.subr.mxu0 %v11185_v12  ;;  %8967 = vmatprep.subr.mxu1 %v11299_v35 }
  0xec   :  { %8959 = vmatpush3.msra.mxu0 %v11185_v12  ;;  %8968 = vmatpush3.msra.mxu1 %v11299_v35  ;;  %v3517_v12 = vld [vmem:[#allocation7 + $0x50] sm:$0xff]  ;;  %v3507_v35 = vld [vmem:[#allocation7] sm:$0xff] }
  0xed   :  { %8960 = vmatprep.subr.mxu0 %v11193_v14  ;;  %8969 = vmatprep.subr.mxu1 %v11308_v37 }
  0xee   :  { %8961 = vmatpush3.msra.mxu0 %v11193_v14  ;;  %8970 = vmatpush3.msra.mxu1 %v11308_v37  ;;  %v3516_v14 = vld [vmem:[#allocation7 + $0x48] sm:$0xff] }
  0xef   :  { %8962 = vmatprep.mubr.msk.f32.mxu0 %vm123_vm0, %v7522_v62  ;;  %8971 = vmatprep.subr.mxu1 %v11317_v39 }
  0xf0   :  { %8976 = vmatprep.subr.mxu0 %v11222_v20  ;;  %8963 = vmatmul.mubr.msk.f32.vlgmr.msra.gmra.mxu0 %vm123_vm0, %v7523_v63 }
  0xf1   :  { %8972 = vmatpush3.msra.mxu1 %v11317_v39  ;;  %8977 = vmatpush3.msra.mxu0 %v11222_v20  ;;  %v3513_v20 = vld [vmem:[#allocation7 + $0x30] sm:$0xff] }
  0xf2   :  { %8973 = vmatprep.mubr.msk.f32.mxu1 %vm123_vm0, %v11558_v56  ;;  %8978 = vmatprep.subr.mxu0 %v11241_v24 }
  0xf3   :  { %8987 = vmatprep.subr.mxu1 %v11325_v41  ;;  %8974 = vmatmul.mubr.msk.f32.vlgmr.msra.gmra.mxu1 %vm123_vm0, %v11567_v57 }
  0xf4   :  { %8979 = vmatpush3.msra.mxu0 %v11241_v24  ;;  %8988 = vmatpush3.msra.mxu1 %v11325_v41  ;;  %v3511_v24 = vld [vmem:[#allocation7 + $0x20] sm:$0xff] }
  0xf5   :  { %8980 = vmatprep.subr.mxu0 %v11266_v29  ;;  %8989 = vmatprep.subr.mxu1 %v11333_v43 }
  0xf6   :  { %8981 = vmatpush3.msra.mxu0 %v11266_v29  ;;  %8990 = vmatpush3.msra.mxu1 %v11333_v43  ;;  %v3509_v29 = vld [vmem:[#allocation7 + $0x10] sm:$0xff] }
  0xf7   :  { %8982 = vmatprep.subr.mxu0 %v11276_v31  ;;  %8991 = vmatprep.subr.mxu1 %v11340_v44 }
  0xf8   :  { %8983 = vmatpush3.msra.mxu0 %v11276_v31  ;;  %8992 = vmatpush3.msra.mxu1 %v11340_v44  ;;  %v3527_v31 = vld [vmem:[#allocation7 + $0x88] sm:$0xff] }
  0xf9   :  { %8984 = vmatprep.mubr.msk.f32.mxu0 %vm123_vm0, %v11514_v52  ;;  %8993 = vmatprep.subr.mxu1 %v11347_v45 }
  0xfa   :  { %8998 = vmatprep.subr.mxu0 %v11302_v36  ;;  %8985 = vmatmul.mubr.msk.f32.vlgmr.msra.gmra.mxu0 %vm123_vm0, %v11523_v53 }
  0xfb   :  { %8994 = vmatpush3.msra.mxu1 %v11347_v45  ;;  %8999 = vmatpush3.msra.mxu0 %v11302_v36 }
  0xfc   :  { %8995 = vmatprep.mubr.msk.f32.mxu1 %vm123_vm0, %v11575_v58  ;;  %9000 = vmatprep.subr.mxu0 %v11312_v38 }
  0xfd   :  { %9009 = vmatprep.subr.mxu1 %v11354_v46  ;;  %8996 = vmatmul.mubr.msk.f32.vlgmr.msra.gmra.mxu1 %vm123_vm0, %v11585_v59 }
  0xfe   :  { %9001 = vmatpush3.msra.mxu0 %v11312_v38  ;;  %9010 = vmatpush3.msra.mxu1 %v11354_v46 }
  0xff   :  { %9002 = vmatprep.subr.mxu0 %v11320_v40  ;;  %9011 = vmatprep.subr.mxu1 %v11362_v47 }
 0x100   :  { %9003 = vmatpush3.msra.mxu0 %v11320_v40  ;;  %9012 = vmatpush3.msra.mxu1 %v11362_v47 }
 0x101   :  { %9004 = vmatprep.subr.mxu0 %v11330_v42  ;;  %9013 = vmatprep.subr.mxu1 %v11369_v48 }
 0x102   :  { %9005 = vmatpush3.msra.mxu0 %v11330_v42  ;;  %9006 = vmatprep.mubr.msk.f32.mxu0 %vm123_vm0, %v11602_v60 }
 0x103   :  { %9014 = vmatpush3.msra.mxu1 %v11369_v48  ;;  %9007 = vmatmul.mubr.msk.f32.vlgmr.msra.gmra.mxu0 %vm123_vm0, %v11611_v61 }
 0x104   :  { %9015 = vmatprep.subr.mxu1 %v11375_v49  ;;  %9017 = vmatprep.mubr.msk.f32.mxu1 %vm123_vm0, %v7522_v62 }
 0x105   :  { %9016 = vmatpush3.msra.mxu1 %v11375_v49  ;;  %9020 = vmatprep.subr.mxu0 %v11041_v2  ;;  %v8590_v25 = vpop.f32.mrf.mxu1 }
 0x106   :  { %9018 = vmatmul.mubr.msk.f32.vlgmr.msra.gmra.mxu1 %vm123_vm0, %v7523_v63  ;;  %9055 = vmatprep.subr.mxu1 %v11041_v2 }
 0x107   :  { %9021 = vmatpush3.msra.mxu0 %v3541_v0  ;;  %9056 = vmatpush3.msra.mxu1 %v3522_v1  ;;  %v196_v30 = vpop.f32.mrf.mxu1 }
 0x108   :  { %9022 = vmatprep.subr.mxu0 %v11041_v2  ;;  %9057 = vmatprep.subr.mxu1 %v11041_v2 }
 0x109   :  { %9023 = vmatpush3.msra.mxu0 %v3540_v3  ;;  %9058 = vmatpush3.msra.mxu1 %v3521_v4 }
 0x10a   :  { %9024 = vmatprep.subr.mxu0 %v11041_v2  ;;  %9059 = vmatprep.subr.mxu1 %v11041_v2 }
 0x10b   :  { %9025 = vmatpush3.msra.mxu0 %v3539_v5  ;;  %9060 = vmatpush3.msra.mxu1 %v3520_v6 }
 0x10c   :  { %9026 = vmatprep.subr.mxu0 %v11041_v2  ;;  %9061 = vmatprep.subr.mxu1 %v11041_v2  ;;  %v8634_v40 = vpop.f32.mrf.mxu0 }
 0x10d   :  { %9027 = vmatpush3.msra.mxu0 %v3538_v7  ;;  %9062 = vmatpush3.msra.mxu1 %v3519_v8  ;;  %v8601_v33 = vpop.f32.mrf.mxu1 }
 0x10e   :  { %9028 = vmatprep.subr.mxu0 %v11041_v2  ;;  %9063 = vmatprep.subr.mxu1 %v11041_v2  ;;  %v551_v42 = vpop.f32.mrf.mxu0  ;;  %v283_v56 = vadd.f32 %v8601_v33, %v8590_v25 }
 0x10f   :  { %9029 = vmatpush3.msra.mxu0 %v3537_v9  ;;  %9064 = vmatpush3.msra.mxu1 %v3518_v10  ;;  %v277_v36 = vpop.f32.mrf.mxu1 }
 0x110   :  { %9030 = vmatprep.subr.mxu0 %v11041_v2  ;;  %9065 = vmatprep.subr.mxu1 %v11041_v2  ;;  %v278_v3 = vadd.f32 %v277_v36, %v196_v30 }
 0x111   :  { %9031 = vmatpush3.msra.mxu0 %v3536_v11  ;;  %9066 = vmatpush3.msra.mxu1 %v3517_v12 }
 0x112   :  { %9032 = vmatprep.subr.mxu0 %v11041_v2  ;;  %9067 = vmatprep.subr.mxu1 %v11041_v2 }
 0x113   :  { %9033 = vmatpush3.msra.mxu0 %v3535_v13  ;;  %9068 = vmatpush3.msra.mxu1 %v3516_v14 }
 0x114   :  { %9034 = vmatprep.subr.mxu0 %v11041_v2  ;;  %9069 = vmatprep.subr.mxu1 %v11041_v2 }
 0x115   :  { %9035 = vmatpush3.msra.mxu0 %v3534_v15  ;;  %9070 = vmatpush3.msra.mxu1 %v3515_v16  ;;  %v8612_v37 = vpop.f32.mrf.mxu1 }
 0x116   :  { %9036 = vmatprep.subr.mxu0 %v11041_v2  ;;  %9071 = vmatprep.subr.mxu1 %v11041_v2  ;;  %v377_v61 = vadd.f32 %v8612_v37, %v283_v56 }
 0x117   :  { %9037 = vmatpush3.msra.mxu0 %v3533_v17  ;;  %9072 = vmatpush3.msra.mxu1 %v3514_v18  ;;  %v367_v38 = vpop.f32.mrf.mxu1  ;;  %v11835_v17 = vld [vmem:[%s13691_s2] ss:$0 sm:$0xff] }
 0x118   :  { %9038 = vmatprep.subr.mxu0 %v11041_v2  ;;  %9073 = vmatprep.subr.mxu1 %v11041_v2  ;;  %v376_v8 = vadd.f32 %v367_v38, %v278_v3 }
 0x119   :  { %9039 = vmatpush3.msra.mxu0 %v3532_v19  ;;  %9074 = vmatpush3.msra.mxu1 %v3513_v20  ;;  %v8656_v44 = vpop.f32.mrf.mxu0 }
 0x11a   :  { %9040 = vmatprep.subr.mxu0 %v11041_v2  ;;  %9075 = vmatprep.subr.mxu1 %v11041_v2 }
 0x11b   :  { %9041 = vmatpush3.msra.mxu0 %v3531_v21  ;;  %9076 = vmatpush3.msra.mxu1 %v3512_v22  ;;  %v734_v46 = vpop.f32.mrf.mxu0 }
 0x11c   :  { %9042 = vmatprep.subr.mxu0 %v11041_v2  ;;  %9077 = vmatprep.subr.mxu1 %v11041_v2 }
 0x11d   :  { %9043 = vmatpush3.msra.mxu0 %v3530_v23  ;;  %9078 = vmatpush3.msra.mxu1 %v3511_v24  ;;  %v8623_v39 = vpop.f32.mrf.mxu1 }
 0x11e   :  { %9044 = vmatprep.subr.mxu0 %v11041_v2  ;;  %9079 = vmatprep.subr.mxu1 %v11041_v2  ;;  %v469_v4 = vadd.f32 %v8623_v39, %v377_v61 }
 0x11f   :  { %9045 = vmatpush3.msra.mxu0 %v3529_v26  ;;  %9080 = vmatpush3.msra.mxu1 %v3510_v27  ;;  %v459_v41 = vpop.f32.mrf.mxu1 }
 0x120   :  { %9046 = vmatprep.subr.mxu0 %v11041_v2  ;;  %9081 = vmatprep.subr.mxu1 %v11041_v2  ;;  %v468_v14 = vadd.f32 %v459_v41, %v376_v8  ;;  %v561_v15 = vadd.f32 %v8634_v40, %v469_v4 }
 0x121   :  { %9047 = vmatpush3.msra.mxu0 %v3528_v28  ;;  %9082 = vmatpush3.msra.mxu1 %v3509_v29 }
 0x122   :  { %9048 = vmatprep.subr.mxu0 %v11041_v2  ;;  %9083 = vmatprep.subr.mxu1 %v11041_v2  ;;  %v570_v24 = vadd.f32 %v11835_v17, %v561_v15  ;;  %v560_v25 = vadd.f32 %v551_v42, %v468_v14 }
 0x123   :  { %9049 = vmatpush3.msra.mxu0 %v3527_v31  ;;  %9084 = vmatpush3.msra.mxu1 %v3508_v32 }
 0x124   :  { %9050 = vmatprep.subr.mxu0 %v11041_v2  ;;  %9085 = vmatprep.subr.mxu1 %v11041_v2  ;;  %v572_v32 = vsub.f32 0.0, %v570_v24  ;;  %v569_v33 = vadd.f32 %v11835_v17, %v560_v25 }
 0x125   :  { %9051 = vmatpush3.msra.mxu0 %v3526_v34  ;;  %9086 = vmatpush3.msra.mxu1 %v3507_v35  ;;  %v8645_v43 = vpop.f32.mrf.mxu1 }
 0x126   :  { %9052 = vmatprep.mubr.msk.f32.mxu0 %vm11042_vm1, %v11041_v2  ;;  %9087 = vmatprep.mubr.msk.f32.mxu1 %vm11042_vm1, %v11041_v2  ;;  %v740_v59 = vadd.f32 %v8656_v44, %v8645_v43  ;;  %v575_v41 = vmul.f32 1.442695, %v572_v32  ;;  %v571_v42 = vsub.f32 0.0, %v569_v33 }
 0x127   :  { %9090 = vmatprep.subr.mxu0 %v11041_v2  ;;  %9125 = vmatprep.subr.mxu1 %v11041_v2  ;;  %v659_v45 = vpop.f32.mrf.mxu1 }
 0x128   :  { %v8678_v48 = vpop.f32.mrf.mxu0  ;;  %v735_v62 = vadd.f32 %v734_v46, %v659_v45  ;;  %10675 = vpow2.f32 %v575_v41 }
 0x12a   :  { %v896_v50 = vpop.f32.mrf.mxu0 }
 0x12d   :  { %v8667_v47 = vpop.f32.mrf.mxu1 }
 0x12e   :  { %v824_v0 = vadd.f32 %v8667_v47, %v740_v59 }
 0x12f   :  { %v814_v49 = vpop.f32.mrf.mxu1 }
 0x130   :  { %v823_v5 = vadd.f32 %v814_v49, %v735_v62  ;;  %v906_v11 = vadd.f32 %v8678_v48, %v824_v0 }
 0x132   :  { %v905_v16 = vadd.f32 %v896_v50, %v823_v5 }
 0x134   :  { %v8700_v52 = vpop.f32.mrf.mxu0 }
 0x135   :  { %v8689_v51 = vpop.f32.mrf.mxu1  ;;  %v10676_v4 = vpop.eup %10675 }
 0x136   :  { %v1071_v54 = vpop.f32.mrf.mxu0  ;;  %v988_v18 = vadd.f32 %v8689_v51, %v906_v11  ;;  %v578_v8 = vadd.f32 1.0, %v10676_v4  ;;  %v3785_v4 = vld [vmem:[#allocation7 + $0x1d0] sm:$0xff] }
 0x137   :  { %v978_v53 = vpop.f32.mrf.mxu1 }
 0x138   :  { %v987_v20 = vadd.f32 %v978_v53, %v905_v16  ;;  %v990_v26 = vadd.f32 %v11835_v17, %v988_v18 }
 0x13a   :  { %v989_v28 = vadd.f32 %v11835_v17, %v987_v20  ;;  %v992_v34 = vsub.f32 0.0, %v990_v26 }
 0x13c   :  { %v991_v37 = vsub.f32 0.0, %v989_v28  ;;  %v995_v45 = vmul.f32 1.442695, %v992_v34 }
 0x13d   :  { %v8711_v55 = vpop.f32.mrf.mxu1 }
 0x13e   :  { %v1152_v60 = vadd.f32 %v8711_v55, %v8700_v52  ;;  %v993_v49 = vmul.f32 1.442695, %v991_v37  ;;  %v573_v52 = vmul.f32 1.442695, %v571_v42  ;;  %10677 = vpow2.f32 %v995_v45 }
 0x13f   :  { %v1146_v57 = vpop.f32.mrf.mxu1  ;;  %v8722_v58 = vpop.f32.mrf.mxu0 }
 0x140   :  { %v1147_v1 = vadd.f32 %v1146_v57, %v1071_v54  ;;  %v1231_v7 = vadd.f32 %v8722_v58, %v1152_v60  ;;  %10679 = vpow2.f32 %v993_v49  ;;  %v3790_v49 = vld [vmem:[#allocation7 + $0x1f8] sm:$0xff] }
 0x141   :  { %v1221_v6 = vpop.f32.mrf.mxu0 }
 0x142   :  { %v1230_v12 = vadd.f32 %v1221_v6, %v1147_v1 }
 0x147   :  { %v8733_v63 = vpop.f32.mrf.mxu1 }
 0x148   :  { %v1308_v13 = vadd.f32 %v8733_v63, %v1231_v7 }
 0x149   :  { %v1298_v9 = vpop.f32.mrf.mxu1  ;;  %v8744_v10 = vpop.f32.mrf.mxu0 }
 0x14a   :  { %v1307_v19 = vadd.f32 %v1298_v9, %v1230_v12  ;;  %v1395_v22 = vadd.f32 %v8744_v10, %v1308_v13 }
 0x14b   :  { %v1385_v21 = vpop.f32.mrf.mxu0  ;;  %v10678_v5 = vpop.eup %10677 }
 0x14c   :  { %v1394_v27 = vadd.f32 %v1385_v21, %v1307_v19  ;;  %v1397_v30 = vadd.f32 %v11835_v17, %v1395_v22  ;;  %v998_v10 = vadd.f32 1.0, %v10678_v5  ;;  %v3694_v5 = vld [vmem:[#allocation7 + $0x148] sm:$0xff] }
 0x14d   :  { %v10680_v6 = vpop.eup %10679 }
 0x14e   :  { %v1396_v35 = vadd.f32 %v11835_v17, %v1394_v27  ;;  %v1399_v39 = vsub.f32 0.0, %v1397_v30  ;;  %v997_v12 = vadd.f32 1.0, %v10680_v6  ;;  %v3784_v6 = vld [vmem:[#allocation7 + $0x1c8] sm:$0xff] }
 0x150   :  { %v1398_v46 = vsub.f32 0.0, %v1396_v35  ;;  %v1402_v50 = vmul.f32 1.442695, %v1399_v39 }
 0x152   :  { %v8755_v23 = vpop.f32.mrf.mxu1  ;;  %v8766_v29 = vpop.f32.mrf.mxu0  ;;  %v1400_v54 = vmul.f32 1.442695, %v1398_v46  ;;  %10681 = vpow2.f32 %v1402_v50 }
 0x153   :  { %v1559_v40 = vadd.f32 %v8766_v29, %v8755_v23  ;;  %10683 = vpow2.f32 %v573_v52 }
 0x154   :  { %v1478_v31 = vpop.f32.mrf.mxu1  ;;  %v1553_v38 = vpop.f32.mrf.mxu0  ;;  %10685 = vpow2.f32 %v1400_v54  ;;  %v3699_v54 = vld [vmem:[#allocation7 + $0x170] sm:$0xff] }
 0x155   :  { %v1554_v47 = vadd.f32 %v1553_v38, %v1478_v31 }
 0x15b   :  { %v8777_v36 = vpop.f32.mrf.mxu1 }
 0x15c   :  { %v1638_v48 = vadd.f32 %v8777_v36, %v1559_v40 }
 0x15d   :  { %v1628_v43 = vpop.f32.mrf.mxu1  ;;  %v8788_v44 = vpop.f32.mrf.mxu0 }
 0x15e   :  { %v1637_v51 = vadd.f32 %v1628_v43, %v1554_v47  ;;  %v1715_v55 = vadd.f32 %v8788_v44, %v1638_v48  ;;  %v3700_v48 = vld [vmem:[#allocation7 + $0x178] sm:$0xff] }
 0x15f   :  { %v1705_v53 = vpop.f32.mrf.mxu0  ;;  %v10682_v7 = vpop.eup %10681 }
 0x160   :  { %v1714_v57 = vadd.f32 %v1705_v53, %v1637_v51  ;;  %v10684_v9 = vpop.eup %10683  ;;  %v1405_v13 = vadd.f32 1.0, %v10682_v7 }
 0x161   :  { %v10686_v11 = vpop.eup %10685  ;;  %v577_v14 = vadd.f32 1.0, %v10684_v9  ;;  %v3693_v9 = vld [vmem:[#allocation7 + $0x140] sm:$0xff] }
 0x162   :  { %v1404_v15 = vadd.f32 1.0, %v10686_v11 }
 0x164   :  { %v8799_v56 = vpop.f32.mrf.mxu1 }
 0x165   :  { %v1792_v58 = vadd.f32 %v8799_v56, %v1715_v55  ;;  %v3789_v55 = vld [vmem:[#allocation7 + $0x1f0] sm:$0xff]  ;;  %v3698_v56 = vld [vmem:[#allocation7 + $0x168] sm:$0xff] }
 0x166   :  { %v1782_v59 = vpop.f32.mrf.mxu1 }
 0x167   :  { %v1794_v60 = vadd.f32 %v11835_v17, %v1792_v58  ;;  %v1791_v61 = vadd.f32 %v1782_v59, %v1714_v57  ;;  %v3788_v57 = vld [vmem:[#allocation7 + $0x1e8] sm:$0xff] }
 0x169   :  { %v1796_v62 = vsub.f32 0.0, %v1794_v60  ;;  %v1793_v63 = vadd.f32 %v11835_v17, %v1791_v61  ;;  %v3697_v60 = vld [vmem:[#allocation7 + $0x160] sm:$0xff] }
 0x16a   :  { %v11845_v18 = vpop.f32.mrf.mxu0  ;;  %v3787_v61 = vld [vmem:[#allocation7 + $0x1e0] sm:$0xff] }
 0x16b   :  { %v1799_v0 = vmul.f32 1.442695, %v1796_v62  ;;  %v1795_v1 = vsub.f32 0.0, %v1793_v63  ;;  %v3696_v62 = vld [vmem:[#allocation7 + $0x158] sm:$0xff] }
 0x16c   :  { %v11847_v22 = vpop.f32.mrf.mxu0  ;;  %v3786_v63 = vld [vmem:[#allocation7 + $0x1d8] sm:$0xff] }
 0x16d   :  { %10687 = vpow2.f32 %v1799_v0  ;;  %v1797_v3 = vmul.f32 1.442695, %v1795_v1  ;;  %v11849_v23 = vpop.f32.mrf.mxu1 }
 0x16e   :  { %v1986_v11 = vadd.f32 %v11849_v23, %v11845_v18  ;;  %v3691_v18 = vld [vmem:[#allocation7 + $0x130] sm:$0xff] }
 0x16f   :  { %10689 = vpow2.f32 %v1797_v3  ;;  %v11851_v24 = vpop.f32.mrf.mxu1  ;;  %v3695_v3 = vld [vmem:[#allocation7 + $0x150] sm:$0xff] }
 0x170   :  { %10691 = vrcp.f32 %v578_v8 }
 0x171   :  { %10693 = vrcp.f32 %v998_v10  ;;  %v3783_v10 = vld [vmem:[#allocation7 + $0x1c0] sm:$0xff] }
 0x172   :  { %10695 = vrcp.f32 %v997_v12  ;;  %v3692_v12 = vld [vmem:[#allocation7 + $0x138] sm:$0xff] }
 0x173   :  { %10697 = vrcp.f32 %v1405_v13  ;;  %v3782_v13 = vld [vmem:[#allocation7 + $0x1b8] sm:$0xff] }
 0x174   :  { %10699 = vrcp.f32 %v577_v14  ;;  %v11853_v25 = vpop.f32.mrf.mxu0 }
 0x175   :  { %10701 = vrcp.f32 %v1404_v15  ;;  %v1981_v15 = vadd.f32 %v11851_v24, %v11847_v22  ;;  %v2079_v23 = vadd.f32 %v11853_v25, %v1986_v11  ;;  %v3690_v22 = vld [vmem:[#allocation7 + $0x128] sm:$0xff]  ;;  %v3689_v25 = vld [vmem:[#allocation7 + $0x120] sm:$0xff]  ;;  %v3998_v11 = vld [vmem:[#allocation7 + $0x370] sm:$0xff] }
 0x176   :  { %v11855_v30 = vpop.f32.mrf.mxu0  ;;  %v3780_v24 = vld [vmem:[#allocation7 + $0x1a8] sm:$0xff] }
 0x177   :  { %v11857_v31 = vpop.f32.mrf.mxu1 }
 0x179   :  { %v11859_v38 = vpop.f32.mrf.mxu1 }
 0x17a   :  { %v10688_v16 = vpop.eup %10687 }
 0x17b   :  { %v1802_v19 = vadd.f32 1.0, %v10688_v16 }
 0x17c   :  { %v10690_v20 = vpop.eup %10689 }
 0x17d   :  { %10703 = vrcp.f32 %v1802_v19  ;;  %v1801_v21 = vadd.f32 1.0, %v10690_v20  ;;  %v10692_v26 = vpop.eup %10691  ;;  %v3781_v20 = vld [vmem:[#allocation7 + $0x1b0] sm:$0xff] }
 0x17e   :  { %v10694_v27 = vpop.eup %10693  ;;  %v11861_v39 = vpop.f32.mrf.mxu0 }
 0x17f   :  { %10705 = vrcp.f32 %v1801_v21  ;;  %v10696_v28 = vpop.eup %10695  ;;  %v1004_v33 = vmax.f32 %v10692_v26, %v10694_v27 }
 0x180   :  { %v10698_v29 = vpop.eup %10697  ;;  %v11863_v44 = vpop.f32.mrf.mxu0 }
 0x181   :  { %v10700_v32 = vpop.eup %10699  ;;  %v1411_v36 = vmax.f32 %v1004_v33, %v10698_v29  ;;  %v11865_v45 = vpop.f32.mrf.mxu1  ;;  %v3779_v33 = vld [vmem:[#allocation7 + $0x1a0] sm:$0xff] }
 0x182   :  { %v10702_v34 = vpop.eup %10701  ;;  %v1003_v35 = vmax.f32 %v10700_v32, %v10696_v28  ;;  %v2078_v28 = vadd.f32 %v11855_v30, %v1981_v15  ;;  %v3688_v30 = vld [vmem:[#allocation7 + $0x118] sm:$0xff] }
 0x183   :  { %v11867_v46 = vpop.f32.mrf.mxu1 }
 0x184   :  { %v1410_v40 = vmax.f32 %v1003_v35, %v10702_v34 }
 0x188   :  { %v8876_v47 = vpop.f32.mrf.mxu0 }
 0x189   :  { %v2438_v14 = vadd.f32 %v8876_v47, %v11865_v45 }
 0x18a   :  { %v10704_v37 = vpop.eup %10703  ;;  %v11873_v52 = vpop.f32.mrf.mxu0 }
 0x18b   :  { %v1808_v41 = vmax.f32 %v1411_v36, %v10704_v37  ;;  %v11875_v53 = vpop.f32.mrf.mxu1  ;;  %v2433_v21 = vadd.f32 %v11873_v52, %v11867_v46  ;;  %v2170_v36 = vadd.f32 %v11857_v31, %v2079_v23  ;;  %v3778_v37 = vld [vmem:[#allocation7 + $0x198] sm:$0xff]  ;;  %v3687_v31 = vld [vmem:[#allocation7 + $0x110] sm:$0xff]  ;;  %v3776_v52 = vld [vmem:[#allocation7 + $0x188] sm:$0xff] }
 0x18c   :  { %v10706_v42 = vpop.eup %10705  ;;  %v2521_v26 = vadd.f32 %v11875_v53, %v2438_v14  ;;  %v3777_v46 = vld [vmem:[#allocation7 + $0x190] sm:$0xff] }
 0x18d   :  { %1810 = vst [vmem:[#allocation2 + $0x8] sm:$0x3f] %v1808_v41  ;;  %v1807_v43 = vmax.f32 %v1410_v40, %v10706_v42  ;;  %v11881_v58 = vpop.f32.mrf.mxu1  ;;  %v2169_v42 = vadd.f32 %v11859_v38, %v2078_v28  ;;  %v3686_v38 = vld [vmem:[#allocation7 + $0x108] sm:$0xff] }
 0x18e   :  { %v2520_v34 = vadd.f32 %v11881_v58, %v2433_v21 }
 0x18f   :  { %1809 = vst [vmem:[#allocation2] sm:$0xff] %v1807_v43 }
 0x192   :  { %v11883_v59 = vpop.f32.mrf.mxu0 }
 0x193   :  { %v2602_v40 = vadd.f32 %v11883_v59, %v2521_v26 }
 0x194   :  { %v11889_v0 = vpop.f32.mrf.mxu0 }
 0x195   :  { %v11891_v1 = vpop.f32.mrf.mxu1  ;;  %v2601_v47 = vadd.f32 %v11889_v0, %v2520_v34  ;;  %v3999_v0 = vld [vmem:[#allocation7 + $0x378] sm:$0xff] }
 0x196   :  { %v11869_v50 = vld [vmem:[#allocation2 + $0x1] ss:$2 sm:$0x1f]  ;;  %v11871_v51 = vld [vmem:[#allocation2] ss:$2 sm:$0x1f]  ;;  %v2683_v53 = vadd.f32 %v11891_v1, %v2602_v40 }
 0x197   :  { %9053 = vmatmul.mubr.f32.vlgmr.msra.gmra.mxu0 %v11869_v50  ;;  %9088 = vmatmul.mubr.f32.vlgmr.msra.gmra.mxu1 %v11871_v51  ;;  %v11897_v7 = vpop.f32.mrf.mxu1  ;;  %v11964_v34 = vld [vmem:[#allocation7 + $0x358] sm:$0xff]  ;;  %v11968_v40 = vld [vmem:[#allocation7 + $0x250] sm:$0xff] }
 0x198   :  { %9091 = vmatpush3.msra.mxu0 %v3700_v48  ;;  %9126 = vmatpush3.msra.mxu1 %v3790_v49  ;;  %v2261_v49 = vadd.f32 %v11861_v39, %v2170_v36  ;;  %v3685_v39 = vld [vmem:[#allocation7 + $0x100] sm:$0xff]  ;;  %v2682_v58 = vadd.f32 %v11897_v7, %v2601_v47 }
 0x199   :  { %9092 = vmatprep.subr.mxu0 %v11041_v2  ;;  %9127 = vmatprep.subr.mxu1 %v11041_v2 }
 0x19a   :  { %9093 = vmatpush3.msra.mxu0 %v3699_v54  ;;  %9128 = vmatpush3.msra.mxu1 %v3789_v55  ;;  %v2260_v55 = vadd.f32 %v11863_v44, %v2169_v42  ;;  %v2685_v44 = vadd.f32 %v11835_v17, %v2683_v53  ;;  %v2684_v7 = vadd.f32 %v11835_v17, %v2682_v58 }
 0x19b   :  { %9094 = vmatprep.subr.mxu0 %v11041_v2  ;;  %9129 = vmatprep.subr.mxu1 %v11041_v2 }
 0x19c   :  { %9095 = vmatpush3.msra.mxu0 %v3698_v56  ;;  %9130 = vmatpush3.msra.mxu1 %v3788_v57  ;;  %v8920_v8 = vpop.f32.mrf.mxu0  ;;  %v2269_v1 = vadd.f32 %v11835_v17, %v2260_v55  ;;  %v11992_v55 = vld [vmem:[#allocation7 + $0x238] sm:$0xff] }
 0x19d   :  { %9096 = vmatprep.subr.mxu0 %v11041_v2  ;;  %9131 = vmatprep.subr.mxu1 %v11041_v2 }
 0x19e   :  { %9097 = vmatpush3.msra.mxu0 %v3697_v60  ;;  %9132 = vmatpush3.msra.mxu1 %v3787_v61  ;;  %v2766_v16 = vpop.f32.mrf.mxu0  ;;  %v3775_v60 = vld [vmem:[#allocation7 + $0x180] sm:$0xff]  ;;  %v2270_v61 = vadd.f32 %v11835_v17, %v2261_v49  ;;  %v2271_v14 = vsub.f32 0.0, %v2269_v1 }
 0x19f   :  { %9098 = vmatprep.subr.mxu0 %v11041_v2  ;;  %9133 = vmatprep.subr.mxu1 %v11041_v2  ;;  %v8931_v19 = vpop.f32.mrf.mxu1  ;;  %v11984_v49 = vld [vmem:[#allocation7 + $0x240] sm:$0xff] }
 0x1a0   :  { %9099 = vmatpush3.msra.mxu0 %v3696_v62  ;;  %9134 = vmatpush3.msra.mxu1 %v3786_v63  ;;  %v2847_v27 = vadd.f32 %v8931_v19, %v8920_v8  ;;  %v3880_v63 = vld [vmem:[#allocation7 + $0x278] sm:$0xff]  ;;  %v3997_v19 = vld [vmem:[#allocation7 + $0x368] sm:$0xff] }
 0x1a1   :  { %9100 = vmatprep.subr.mxu0 %v11041_v2  ;;  %9135 = vmatprep.subr.mxu1 %v11041_v2  ;;  %v2841_v29 = vpop.f32.mrf.mxu1 }
 0x1a2   :  { %9101 = vmatpush3.msra.mxu0 %v3695_v3  ;;  %9136 = vmatpush3.msra.mxu1 %v3785_v4  ;;  %v2842_v35 = vadd.f32 %v2841_v29, %v2766_v16  ;;  %v3878_v16 = vld [vmem:[#allocation7 + $0x268] sm:$0xff] }
 0x1a3   :  { %9102 = vmatprep.subr.mxu0 %v11041_v2  ;;  %9137 = vmatprep.subr.mxu1 %v11041_v2 }
 0x1a4   :  { %9103 = vmatpush3.msra.mxu0 %v3694_v5  ;;  %9138 = vmatpush3.msra.mxu1 %v3784_v6  ;;  %v11945_v5 = vld [vmem:[#allocation2 + $0x2] ss:$2 sm:$0x1f]  ;;  %v11947_v6 = vld [vmem:[#allocation2 + $0x3] ss:$2 sm:$0x1f] }
 0x1a5   :  { %9104 = vmatprep.subr.mxu0 %v11041_v2  ;;  %9139 = vmatprep.subr.mxu1 %v11041_v2 }
 0x1a6   :  { %9105 = vmatpush3.msra.mxu0 %v3693_v9  ;;  %9140 = vmatpush3.msra.mxu1 %v3783_v10  ;;  %v8942_v32 = vpop.f32.mrf.mxu0  ;;  %v2272_v9 = vsub.f32 0.0, %v2270_v61  ;;  %v3879_v10 = vld [vmem:[#allocation7 + $0x270] sm:$0xff] }
 0x1a7   :  { %9106 = vmatprep.subr.mxu0 %v11041_v2  ;;  %9141 = vmatprep.subr.mxu1 %v11041_v2  ;;  %v2926_v41 = vadd.f32 %v8942_v32, %v2847_v27  ;;  %v2273_v32 = vmul.f32 1.442695, %v2271_v14 }
 0x1a8   :  { %9107 = vmatpush3.msra.mxu0 %v3692_v12  ;;  %9142 = vmatpush3.msra.mxu1 %v3782_v13  ;;  %v2916_v43 = vpop.f32.mrf.mxu0  ;;  %v2687_v12 = vsub.f32 0.0, %v2685_v44  ;;  %v2275_v23 = vmul.f32 1.442695, %v2272_v9 }
 0x1a9   :  { %9108 = vmatprep.subr.mxu0 %v11041_v2  ;;  %9143 = vmatprep.subr.mxu1 %v11041_v2  ;;  %v8953_v45 = vpop.f32.mrf.mxu1  ;;  %v2925_v48 = vadd.f32 %v2916_v43, %v2842_v35 }
 0x1aa   :  { %9109 = vmatpush3.msra.mxu0 %v3691_v18  ;;  %9144 = vmatpush3.msra.mxu1 %v3781_v20  ;;  %v3003_v54 = vadd.f32 %v8953_v45, %v2926_v41  ;;  %v2686_v18 = vsub.f32 0.0, %v2684_v7  ;;  %v2690_v26 = vmul.f32 1.442695, %v2687_v12  ;;  %10707 = vpow2.f32 %v2275_v23  ;;  %v11970_v41 = vld [vmem:[#allocation7 + $0x350] sm:$0xff]  ;;  %v11976_v45 = vld [vmem:[#allocation7 + $0x248] sm:$0xff]  ;;  %v12020_v7 = vld [vmem:[#allocation7 + $0x320] sm:$0xff] }
 0x1ab   :  { %9110 = vmatprep.subr.mxu0 %v11041_v2  ;;  %9145 = vmatprep.subr.mxu1 %v11041_v2  ;;  %v2993_v56 = vpop.f32.mrf.mxu1  ;;  %v12028_v12 = vld [vmem:[#allocation7 + $0x318] sm:$0xff]  ;;  %v12042_v23 = vld [vmem:[#allocation7 + $0x208] sm:$0xff] }
 0x1ac   :  { %9111 = vmatpush3.msra.mxu0 %v3690_v22  ;;  %9146 = vmatpush3.msra.mxu1 %v3780_v24  ;;  %v3002_v59 = vadd.f32 %v2993_v56, %v2925_v48  ;;  %v3877_v22 = vld [vmem:[#allocation7 + $0x260] sm:$0xff]  ;;  %v2688_v35 = vmul.f32 1.442695, %v2686_v18  ;;  %10709 = vpow2.f32 %v2690_v26  ;;  %v11994_v56 = vld [vmem:[#allocation7 + $0x338] sm:$0xff] }
 0x1ad   :  { %9112 = vmatprep.subr.mxu0 %v11041_v2  ;;  %9147 = vmatprep.subr.mxu1 %v11041_v2  ;;  %v3996_v24 = vld [vmem:[#allocation7 + $0x360] sm:$0xff]  ;;  %10711 = vpow2.f32 %v2273_v32 }
 0x1ae   :  { %9113 = vmatpush3.msra.mxu0 %v3689_v25  ;;  %9148 = vmatpush3.msra.mxu1 %v3779_v33  ;;  %v11962_v33 = vld [vmem:[#allocation7 + $0x258] sm:$0xff]  ;;  %10713 = vpow2.f32 %v2688_v35 }
 0x1af   :  { %9114 = vmatprep.subr.mxu0 %v11041_v2  ;;  %9149 = vmatprep.subr.mxu1 %v11041_v2  ;;  %v12066_v35 = vld [vmem:[#allocation7 + $0x2f8] sm:$0xff] }
 0x1b0   :  { %9115 = vmatpush3.msra.mxu0 %v3688_v30  ;;  %9150 = vmatpush3.msra.mxu1 %v3778_v37  ;;  %v8964_v57 = vpop.f32.mrf.mxu0 }
 0x1b1   :  { %9116 = vmatprep.subr.mxu0 %v11041_v2  ;;  %9151 = vmatprep.subr.mxu1 %v11041_v2  ;;  %v3090_v62 = vadd.f32 %v8964_v57, %v3003_v54 }
 0x1b2   :  { %9117 = vmatpush3.msra.mxu0 %v3687_v31  ;;  %9152 = vmatpush3.msra.mxu1 %v3777_v46  ;;  %v3080_v3 = vpop.f32.mrf.mxu0  ;;  %v11978_v31 = vld [vmem:[#allocation7 + $0x348] sm:$0xff] }
 0x1b3   :  { %9118 = vmatprep.subr.mxu0 %v11041_v2  ;;  %9153 = vmatprep.subr.mxu1 %v11041_v2  ;;  %v8975_v4 = vpop.f32.mrf.mxu1  ;;  %v3089_v8 = vadd.f32 %v3080_v3, %v3002_v59  ;;  %v3092_v13 = vadd.f32 %v11835_v17, %v3090_v62  ;;  %v12000_v59 = vld [vmem:[#allocation7 + $0x230] sm:$0xff]  ;;  %v12009_v62 = vld [vmem:[#allocation7 + $0x228] sm:$0xff] }
 0x1b4   :  { %9119 = vmatpush3.msra.mxu0 %v3686_v38  ;;  %9154 = vmatpush3.msra.mxu1 %v3776_v52  ;;  %v11986_v38 = vld [vmem:[#allocation7 + $0x340] sm:$0xff] }
 0x1b5   :  { %9120 = vmatprep.subr.mxu0 %v11041_v2  ;;  %9155 = vmatprep.subr.mxu1 %v11041_v2  ;;  %v3173_v15 = vpop.f32.mrf.mxu1  ;;  %v3091_v20 = vadd.f32 %v11835_v17, %v3089_v8  ;;  %v3094_v27 = vsub.f32 0.0, %v3092_v13 }
 0x1b6   :  { %9121 = vmatpush3.msra.mxu0 %v3685_v39  ;;  %9122 = vmatprep.mubr.msk.f32.mxu0 %vm11042_vm1, %v11041_v2 }
 0x1b7   :  { %9156 = vmatpush3.msra.mxu1 %v3775_v60  ;;  %9157 = vmatprep.mubr.msk.f32.mxu1 %vm11042_vm1, %v11041_v2  ;;  %v3093_v36 = vsub.f32 0.0, %v3091_v20  ;;  %v3097_v42 = vmul.f32 1.442695, %v3094_v27  ;;  %v12002_v60 = vld [vmem:[#allocation7 + $0x330] sm:$0xff]  ;;  %v10708_v3 = vpop.eup %10707  ;;  %v12050_v27 = vld [vmem:[#allocation7 + $0x200] sm:$0xff] }
 0x1b8   :  { %9123 = vmatmul.mubr.f32.vlgmr.msra.gmra.mxu0 %v11945_v5  ;;  %9158 = vmatmul.mubr.f32.vlgmr.msra.gmra.mxu1 %v11947_v6 }
 0x1b9   :  { %9160 = vmatprep.subr.mxu0 %v11041_v2  ;;  %9195 = vmatprep.subr.mxu1 %v11041_v2  ;;  %v3095_v46 = vmul.f32 1.442695, %v3093_v36  ;;  %10715 = vpow2.f32 %v3097_v42  ;;  %v12068_v36 = vld [vmem:[#allocation7 + $0x3f8] sm:$0xff] }
 0x1ba   :  { %9161 = vmatpush3.msra.mxu0 %v3880_v63  ;;  %9196 = vmatpush3.msra.mxu1 %v3999_v0  ;;  %v8986_v21 = vpop.f32.mrf.mxu0  ;;  %v12011_v63 = vld [vmem:[#allocation7 + $0x328] sm:$0xff] }
 0x1bb   :  { %9162 = vmatprep.subr.mxu0 %v11041_v2  ;;  %9197 = vmatprep.subr.mxu1 %v11041_v2  ;;  %v3254_v28 = vadd.f32 %v8986_v21, %v8975_v4  ;;  %10717 = vpow2.f32 %v3095_v46  ;;  %v12018_v4 = vld [vmem:[#allocation7 + $0x220] sm:$0xff] }
 0x1bc   :  { %9163 = vmatpush3.msra.mxu0 %v3879_v10  ;;  %9198 = vmatpush3.msra.mxu1 %v3998_v11  ;;  %v3248_v29 = vpop.f32.mrf.mxu0  ;;  %v10710_v10 = vpop.eup %10709  ;;  %v12026_v11 = vld [vmem:[#allocation7 + $0x218] sm:$0xff] }
 0x1bd   :  { %9164 = vmatprep.subr.mxu0 %v11041_v2  ;;  %9199 = vmatprep.subr.mxu1 %v11041_v2  ;;  %v8997_v25 = vpop.f32.mrf.mxu1  ;;  %v3249_v30 = vadd.f32 %v3248_v29, %v3173_v15  ;;  %v2278_v15 = vadd.f32 1.0, %v10708_v3  ;;  %v2693_v18 = vadd.f32 1.0, %v10710_v10  ;;  %v12054_v29 = vld [vmem:[#allocation7 + $0x300] sm:$0xff] }
 0x1be   :  { %9165 = vmatpush3.msra.mxu0 %v3878_v16  ;;  %9200 = vmatpush3.msra.mxu1 %v3997_v19  ;;  %v3333_v43 = vadd.f32 %v8997_v25, %v3254_v28  ;;  %v12034_v16 = vld [vmem:[#allocation7 + $0x210] sm:$0xff] }
 0x1bf   :  { %9166 = vmatprep.subr.mxu0 %v11041_v2  ;;  %9201 = vmatprep.subr.mxu1 %v11041_v2  ;;  %v3323_v37 = vpop.f32.mrf.mxu1  ;;  %v12036_v19 = vld [vmem:[#allocation7 + $0x310] sm:$0xff] }
 0x1c0   :  { %9167 = vmatpush3.msra.mxu0 %v3877_v22  ;;  %9202 = vmatpush3.msra.mxu1 %v3996_v24  ;;  %v3332_v47 = vadd.f32 %v3323_v37, %v3249_v30  ;;  %v12044_v22 = vld [vmem:[#allocation7 + $0x308] sm:$0xff]  ;;  %v12064_v25 = vld [vmem:[#allocation2 + $0x4] ss:$2 sm:$0x1f] }
 0x1c1   :  { %9168 = vmatprep.subr.mxu0 %v11041_v2  ;;  %9203 = vmatprep.subr.mxu1 %v11041_v2  ;;  %v12074_v30 = vld [vmem:[#allocation7 + $0x2f0] sm:$0xff] }
 0x1c2   :  { %9169 = vmatpush3.msra.mxu0 %v11962_v33  ;;  %9204 = vmatpush3.msra.mxu1 %v11964_v34  ;;  %v12076_v37 = vld [vmem:[#allocation7 + $0x3f0] sm:$0xff] }
 0x1c3   :  { %9170 = vmatprep.subr.mxu0 %v11041_v2  ;;  %9205 = vmatprep.subr.mxu1 %v11041_v2  ;;  %v9008_v48 = vpop.f32.mrf.mxu0 }
 0x1c4   :  { %9171 = vmatpush3.msra.mxu0 %v11968_v40  ;;  %9206 = vmatpush3.msra.mxu1 %v11970_v41  ;;  %v3410_v52 = vadd.f32 %v9008_v48, %v3333_v43  ;;  %v12082_v43 = vld [vmem:[#allocation7 + $0x2e8] sm:$0xff]  ;;  %v12090_v48 = vld [vmem:[#allocation7 + $0x2e0] sm:$0xff] }
 0x1c5   :  { %9172 = vmatprep.subr.mxu0 %v11041_v2  ;;  %9207 = vmatprep.subr.mxu1 %v11041_v2  ;;  %v3400_v53 = vpop.f32.mrf.mxu0 }
 0x1c6   :  { %9173 = vmatpush3.msra.mxu0 %v11976_v45  ;;  %9208 = vmatpush3.msra.mxu1 %v11978_v31  ;;  %v9019_v54 = vpop.f32.mrf.mxu1  ;;  %v3409_v57 = vadd.f32 %v3400_v53, %v3332_v47 }
 0x1c7   :  { %9174 = vmatprep.subr.mxu0 %v11041_v2  ;;  %9209 = vmatprep.subr.mxu1 %v11041_v2  ;;  %v3487_v39 = vadd.f32 %v9019_v54, %v3410_v52  ;;  %v12092_v52 = vld [vmem:[#allocation7 + $0x3e0] sm:$0xff] }
 0x1c8   :  { %9175 = vmatpush3.msra.mxu0 %v11984_v49  ;;  %9210 = vmatpush3.msra.mxu1 %v11986_v38  ;;  %v3477_v58 = vpop.f32.mrf.mxu1 }
 0x1c9   :  { %9176 = vmatprep.subr.mxu0 %v11041_v2  ;;  %9211 = vmatprep.subr.mxu1 %v11041_v2  ;;  %v3489_v61 = vadd.f32 %v11835_v17, %v3487_v39  ;;  %v3486_v44 = vadd.f32 %v3477_v58, %v3409_v57  ;;  %v12098_v57 = vld [vmem:[#allocation7 + $0x2d8] sm:$0xff] }
 0x1ca   :  { %9177 = vmatpush3.msra.mxu0 %v11992_v55  ;;  %9212 = vmatpush3.msra.mxu1 %v11994_v56  ;;  %v12100_v39 = vld [vmem:[#allocation7 + $0x3d8] sm:$0xff] }
 0x1cb   :  { %9178 = vmatprep.subr.mxu0 %v11041_v2  ;;  %9213 = vmatprep.subr.mxu1 %v11041_v2  ;;  %v3491_v0 = vsub.f32 0.0, %v3489_v61  ;;  %v3488_v1 = vadd.f32 %v11835_v17, %v3486_v44  ;;  %v10712_v17 = vpop.eup %10711  ;;  %v12106_v44 = vld [vmem:[#allocation7 + $0x2d0] sm:$0xff] }
 0x1cc   :  { %9179 = vmatpush3.msra.mxu0 %v12000_v59  ;;  %9214 = vmatpush3.msra.mxu1 %v12002_v60  ;;  %v10714_v14 = vpop.eup %10713  ;;  %v2277_v21 = vadd.f32 1.0, %v10712_v17 }
 0x1cd   :  { %9180 = vmatprep.subr.mxu0 %v11041_v2  ;;  %9215 = vmatprep.subr.mxu1 %v11041_v2  ;;  %v3494_v8 = vmul.f32 1.442695, %v3491_v0  ;;  %v3490_v9 = vsub.f32 0.0, %v3488_v1  ;;  %v10716_v20 = vpop.eup %10715  ;;  %v2692_v24 = vadd.f32 1.0, %v10714_v14  ;;  %v12108_v0 = vld [vmem:[#allocation7 + $0x3d0] sm:$0xff]  ;;  %v12124_v14 = vld [vmem:[#allocation7 + $0x3c0] sm:$0xff] }
 0x1ce   :  { %9181 = vmatpush3.msra.mxu0 %v12009_v62  ;;  %9216 = vmatpush3.msra.mxu1 %v12011_v63  ;;  %v10718_v26 = vpop.eup %10717  ;;  %v3100_v28 = vadd.f32 1.0, %v10716_v20  ;;  %v12132_v20 = vld [vmem:[#allocation7 + $0x3b8] sm:$0xff] }
 0x1cf   :  { %9182 = vmatprep.subr.mxu0 %v11041_v2  ;;  %9217 = vmatprep.subr.mxu1 %v11041_v2  ;;  %10719 = vpow2.f32 %v3494_v8  ;;  %v3492_v13 = vmul.f32 1.442695, %v3490_v9  ;;  %v3099_v32 = vadd.f32 1.0, %v10718_v26  ;;  %v12114_v8 = vld [vmem:[#allocation7 + $0x2c8] sm:$0xff]  ;;  %v12140_v26 = vld [vmem:[#allocation7 + $0x3b0] sm:$0xff] }
 0x1d0   :  { %9183 = vmatpush3.msra.mxu0 %v12018_v4  ;;  %9218 = vmatpush3.msra.mxu1 %v12020_v7  ;;  %v12116_v9 = vld [vmem:[#allocation7 + $0x3c8] sm:$0xff] }
 0x1d1   :  { %9184 = vmatprep.subr.mxu0 %v11041_v2  ;;  %9219 = vmatprep.subr.mxu1 %v11041_v2  ;;  %10721 = vpow2.f32 %v3492_v13  ;;  %v12122_v13 = vld [vmem:[#allocation7 + $0x2c0] sm:$0xff] }
 0x1d2   :  { %9185 = vmatpush3.msra.mxu0 %v12026_v11  ;;  %9220 = vmatpush3.msra.mxu1 %v12028_v12  ;;  %10723 = vrcp.f32 %v2278_v15 }
 0x1d3   :  { %9186 = vmatprep.subr.mxu0 %v11041_v2  ;;  %9221 = vmatprep.subr.mxu1 %v11041_v2  ;;  %10725 = vrcp.f32 %v2693_v18  ;;  %v12130_v18 = vld [vmem:[#allocation7 + $0x2b8] sm:$0xff] }
 0x1d4   :  { %9187 = vmatpush3.msra.mxu0 %v12034_v16  ;;  %9222 = vmatpush3.msra.mxu1 %v12036_v19  ;;  %10727 = vrcp.f32 %v2277_v21 }
 0x1d5   :  { %9188 = vmatprep.subr.mxu0 %v11041_v2  ;;  %9223 = vmatprep.subr.mxu1 %v11041_v2  ;;  %10729 = vrcp.f32 %v2692_v24  ;;  %v12138_v24 = vld [vmem:[#allocation7 + $0x2b0] sm:$0xff] }
 0x1d6   :  { %9189 = vmatpush3.msra.mxu0 %v12042_v23  ;;  %9224 = vmatpush3.msra.mxu1 %v12044_v22  ;;  %10731 = vrcp.f32 %v3100_v28 }
 0x1d7   :  { %9190 = vmatprep.subr.mxu0 %v11041_v2  ;;  %9225 = vmatprep.subr.mxu1 %v11041_v2  ;;  %10733 = vrcp.f32 %v3099_v32 }
 0x1d8   :  { %9191 = vmatpush3.msra.mxu0 %v12050_v27  ;;  %9192 = vmatprep.mubr.msk.f32.mxu0 %vm11042_vm1, %v11041_v2 }
 0x1d9   :  { %9226 = vmatpush3.msra.mxu1 %v12054_v29  ;;  %9227 = vmatprep.mubr.msk.f32.mxu1 %vm11042_vm1, %v11041_v2 }
 0x1da   :  { %9193 = vmatmul.mubr.f32.vlgmr.msra.gmra.mxu0 %v12064_v25  ;;  %9228 = vmatmul.mubr.f32.vlgmr.msra.gmra.mxu1 %v11869_v50  ;;  %v12084_v50 = vld [vmem:[#allocation7 + $0x3e8] sm:$0xff] }
 0x1db   :  { %9230 = vmatprep.subr.mxu0 %v11041_v2  ;;  %9265 = vmatprep.subr.mxu1 %v11041_v2 }
 0x1dc   :  { %v10720_v42 = vpop.eup %10719  ;;  %9231 = vmatpush3.msra.mxu0 %v12066_v35  ;;  %9266 = vmatpush3.msra.mxu1 %v12068_v36 }
 0x1dd   :  { %9232 = vmatprep.subr.mxu0 %v11041_v2  ;;  %9267 = vmatprep.subr.mxu1 %v11041_v2  ;;  %v3497_v46 = vadd.f32 1.0, %v10720_v42  ;;  %v12146_v42 = vld [vmem:[#allocation7 + $0x2a8] sm:$0xff] }
 0x1de   :  { %v10722_v47 = vpop.eup %10721  ;;  %9233 = vmatpush3.msra.mxu0 %v12074_v30  ;;  %9268 = vmatpush3.msra.mxu1 %v12076_v37 }
 0x1df   :  { %9234 = vmatprep.subr.mxu0 %v11041_v2  ;;  %9269 = vmatprep.subr.mxu1 %v11041_v2  ;;  %10735 = vrcp.f32 %v3497_v46  ;;  %v3496_v53 = vadd.f32 1.0, %v10722_v47  ;;  %v10724_v54 = vpop.eup %10723  ;;  %v12148_v46 = vld [vmem:[#allocation7 + $0x3a8] sm:$0xff] }
 0x1e0   :  { %9235 = vmatpush3.msra.mxu0 %v12082_v43  ;;  %9270 = vmatpush3.msra.mxu1 %v12084_v50  ;;  %v10726_v58 = vpop.eup %10725 }
 0x1e1   :  { %9236 = vmatprep.subr.mxu0 %v11041_v2  ;;  %9271 = vmatprep.subr.mxu1 %v11041_v2  ;;  %10737 = vrcp.f32 %v3496_v53  ;;  %v10728_v61 = vpop.eup %10727  ;;  %v2699_v3 = vmax.f32 %v10724_v54, %v10726_v58  ;;  %v12154_v54 = vld [vmem:[#allocation7 + $0x2a0] sm:$0xff] }
 0x1e2   :  { %9237 = vmatpush3.msra.mxu0 %v12090_v48  ;;  %9272 = vmatpush3.msra.mxu1 %v12092_v52  ;;  %v10730_v1 = vpop.eup %10729  ;;  %v12156_v58 = vld [vmem:[#allocation7 + $0x3a0] sm:$0xff] }
 0x1e3   :  { %9238 = vmatprep.subr.mxu0 %v11041_v2  ;;  %9273 = vmatprep.subr.mxu1 %v11041_v2  ;;  %v10732_v10 = vpop.eup %10731  ;;  %v2698_v17 = vmax.f32 %v10728_v61, %v10730_v1  ;;  %v12162_v1 = vld [vmem:[#allocation7 + $0x298] sm:$0xff] }
 0x1e4   :  { %9239 = vmatpush3.msra.mxu0 %v12098_v57  ;;  %9274 = vmatpush3.msra.mxu1 %v12100_v39  ;;  %v10734_v15 = vpop.eup %10733  ;;  %v3106_v21 = vmax.f32 %v2699_v3, %v10732_v10  ;;  %v12164_v3 = vld [vmem:[#allocation7 + $0x398] sm:$0xff]  ;;  %v12170_v10 = vld [vmem:[#allocation7 + $0x290] sm:$0xff] }
 0x1e5   :  { %9240 = vmatprep.subr.mxu0 %v11041_v2  ;;  %9275 = vmatprep.subr.mxu1 %v11041_v2  ;;  %v3105_v28 = vmax.f32 %v2698_v17, %v10734_v15  ;;  %v12172_v17 = vld [vmem:[#allocation7 + $0x390] sm:$0xff]  ;;  %v12178_v15 = vld [vmem:[#allocation7 + $0x288] sm:$0xff] }
 0x1e6   :  { %9241 = vmatpush3.msra.mxu0 %v12106_v44  ;;  %9276 = vmatpush3.msra.mxu1 %v12108_v0  ;;  %13804 = vst [vmem:[#allocation18_spill] sm:$0xff] %v12178_v15 }
 0x1e7   :  { %9242 = vmatprep.subr.mxu0 %v11041_v2  ;;  %9277 = vmatprep.subr.mxu1 %v11041_v2 }
 0x1e8   :  { %9243 = vmatpush3.msra.mxu0 %v12114_v8  ;;  %9278 = vmatpush3.msra.mxu1 %v12116_v9 }
 0x1e9   :  { %9244 = vmatprep.subr.mxu0 %v11041_v2  ;;  %9279 = vmatprep.subr.mxu1 %v11041_v2 }
 0x1ea   :  { %9245 = vmatpush3.msra.mxu0 %v12122_v13  ;;  %9280 = vmatpush3.msra.mxu1 %v12124_v14 }
 0x1eb   :  { %9246 = vmatprep.subr.mxu0 %v11041_v2  ;;  %9281 = vmatprep.subr.mxu1 %v11041_v2 }
 0x1ec   :  { %v10736_v32 = vpop.eup %10735  ;;  %9247 = vmatpush3.msra.mxu0 %v12130_v18  ;;  %9282 = vmatpush3.msra.mxu1 %v12132_v20 }
 0x1ed   :  { %9248 = vmatprep.subr.mxu0 %v11041_v2  ;;  %9283 = vmatprep.subr.mxu1 %v11041_v2  ;;  %v3503_v47 = vmax.f32 %v3106_v21, %v10736_v32  ;;  %v12180_v21 = vld [vmem:[#allocation7 + $0x388] sm:$0xff]  ;;  %v12190_v32 = vld [vmem:[#allocation7 + $0x380] sm:$0xff] }
 0x1ee   :  { %v10738_v53 = vpop.eup %10737  ;;  %9249 = vmatpush3.msra.mxu0 %v12138_v24  ;;  %9284 = vmatpush3.msra.mxu1 %v12140_v26  ;;  %13805 = vst [vmem:[#allocation19_spill] sm:$0xff] %v12180_v21  ;;  %13807 = vst [vmem:[#allocation21_spill] sm:$0xff] %v12190_v32 }
 0x1ef   :  { %9250 = vmatprep.subr.mxu0 %v11041_v2  ;;  %9285 = vmatprep.subr.mxu1 %v11041_v2  ;;  %3505 = vst [vmem:[#allocation2 + $0x18] sm:$0x3f] %v3503_v47  ;;  %v3502_v61 = vmax.f32 %v3105_v28, %v10738_v53  ;;  %v12186_v28 = vld [vmem:[#allocation7 + $0x280] sm:$0xff]  ;;  %v12200_v47 = vld [vmem:[#allocation7 + $0x478] sm:$0xff] }
 0x1f0   :  { %9251 = vmatpush3.msra.mxu0 %v12146_v42  ;;  %9286 = vmatpush3.msra.mxu1 %v12148_v46  ;;  %13806 = vst [vmem:[#allocation20_spill] sm:$0xff] %v12186_v28  ;;  %13808 = vst [vmem:[#allocation22_spill] sm:$0xff] %v12200_v47  ;;  %v12202_v53 = vld [vmem:[#allocation7 + $0x4f8] sm:$0xff] }
 0x1f1   :  { %9252 = vmatprep.subr.mxu0 %v11041_v2  ;;  %9287 = vmatprep.subr.mxu1 %v11041_v2  ;;  %3504 = vst [vmem:[#allocation2 + $0x10] sm:$0xff] %v3502_v61  ;;  %13809 = vst [vmem:[#allocation23_spill] sm:$0xff] %v12202_v53  ;;  %v12208_v61 = vld [vmem:[#allocation7 + $0x470] sm:$0xff] }
 0x1f2   :  { %9253 = vmatpush3.msra.mxu0 %v12154_v54  ;;  %9288 = vmatpush3.msra.mxu1 %v12156_v58  ;;  %13810 = vst [vmem:[#allocation24_spill] sm:$0xff] %v12208_v61 }
 0x1f3   :  { %9254 = vmatprep.subr.mxu0 %v11041_v2  ;;  %9289 = vmatprep.subr.mxu1 %v11041_v2 }
 0x1f4   :  { %9255 = vmatpush3.msra.mxu0 %v12162_v1  ;;  %9290 = vmatpush3.msra.mxu1 %v12164_v3 }
 0x1f5   :  { %9256 = vmatprep.subr.mxu0 %v11041_v2  ;;  %9291 = vmatprep.subr.mxu1 %v11041_v2 }
 0x1f6   :  { %9257 = vmatpush3.msra.mxu0 %v12170_v10  ;;  %9292 = vmatpush3.msra.mxu1 %v12172_v17 }
 0x1f7   :  { %9258 = vmatprep.subr.mxu0 %v11041_v2  ;;  %9293 = vmatprep.subr.mxu1 %v11041_v2 }
 0x1f8   :  { %9259 = vmatpush3.msra.mxu0 %v12178_v15  ;;  %9294 = vmatpush3.msra.mxu1 %v12180_v21  ;;  %v12224_v21 = vld [vmem:[#allocation7 + $0x460] sm:$0xff]  ;;  %v10838_v15 = vld [vmem:[#allocation7 + $0x110] sm:$0xff] }
 0x1f9   :  { %9260 = vmatprep.subr.mxu0 %v11041_v2  ;;  %9295 = vmatprep.subr.mxu1 %v11041_v2  ;;  %13814 = vst [vmem:[#allocation28_spill] sm:$0xff] %v12224_v21 }
 0x1fa   :  { %9261 = vmatpush3.msra.mxu0 %v12186_v28  ;;  %9262 = vmatprep.mubr.msk.f32.mxu0 %vm11042_vm1, %v11041_v2  ;;  %v12210_v28 = vld [vmem:[#allocation7 + $0x4f0] sm:$0xff] }
 0x1fb   :  { %9296 = vmatpush3.msra.mxu1 %v12190_v32  ;;  %9297 = vmatprep.mubr.msk.f32.mxu1 %vm11042_vm1, %v11041_v2  ;;  %13811 = vst [vmem:[#allocation25_spill] sm:$0xff] %v12210_v28  ;;  %v12216_v32 = vld [vmem:[#allocation7 + $0x468] sm:$0xff] }
 0x1fc   :  { %9263 = vmatmul.mubr.f32.vlgmr.msra.gmra.mxu0 %v11871_v51  ;;  %9298 = vmatmul.mubr.f32.vlgmr.msra.gmra.mxu1 %v11945_v5  ;;  %13812 = vst [vmem:[#allocation26_spill] sm:$0xff] %v12216_v32  ;;  %v12218_v51 = vld [vmem:[#allocation7 + $0x4e8] sm:$0xff] }
 0x1fd   :  { %9300 = vmatprep.subr.mxu0 %v11041_v2  ;;  %9335 = vmatprep.subr.mxu1 %v11041_v2  ;;  %13813 = vst [vmem:[#allocation27_spill] sm:$0xff] %v12218_v51 }
 0x1fe   :  { %9301 = vmatpush3.msra.mxu0 %v12200_v47  ;;  %9336 = vmatpush3.msra.mxu1 %v12202_v53  ;;  %v12226_v47 = vld [vmem:[#allocation7 + $0x4e0] sm:$0xff]  ;;  %v12232_v53 = vld [vmem:[#allocation7 + $0x458] sm:$0xff] }
 0x1ff   :  { %9302 = vmatprep.subr.mxu0 %v11041_v2  ;;  %9337 = vmatprep.subr.mxu1 %v11041_v2  ;;  %13815 = vst [vmem:[#allocation29_spill] sm:$0xff] %v12226_v47  ;;  %13816 = vst [vmem:[#allocation30_spill] sm:$0xff] %v12232_v53 }
 0x200   :  { %9303 = vmatpush3.msra.mxu0 %v12208_v61  ;;  %9338 = vmatpush3.msra.mxu1 %v12210_v28  ;;  %v12234_v61 = vld [vmem:[#allocation7 + $0x4d8] sm:$0xff]  ;;  %v12240_v28 = vld [vmem:[#allocation7 + $0x450] sm:$0xff] }
 0x201   :  { %9304 = vmatprep.subr.mxu0 %v11041_v2  ;;  %9339 = vmatprep.subr.mxu1 %v11041_v2  ;;  %13817 = vst [vmem:[#allocation31_spill] sm:$0xff] %v12234_v61  ;;  %13818 = vst [vmem:[#allocation32_spill] sm:$0xff] %v12240_v28 }
 0x202   :  { %9305 = vmatpush3.msra.mxu0 %v12216_v32  ;;  %9340 = vmatpush3.msra.mxu1 %v12218_v51  ;;  %v12242_v32 = vld [vmem:[#allocation7 + $0x4d0] sm:$0xff]  ;;  %v12248_v51 = vld [vmem:[#allocation7 + $0x448] sm:$0xff] }
 0x203   :  { %9306 = vmatprep.subr.mxu0 %v11041_v2  ;;  %9341 = vmatprep.subr.mxu1 %v11041_v2  ;;  %13819 = vst [vmem:[#allocation33_spill] sm:$0xff] %v12242_v32  ;;  %13820 = vst [vmem:[#allocation34_spill] sm:$0xff] %v12248_v51 }
 0x204   :  { %9307 = vmatpush3.msra.mxu0 %v12224_v21  ;;  %9342 = vmatpush3.msra.mxu1 %v12226_v47  ;;  %v12250_v21 = vld [vmem:[#allocation7 + $0x4c8] sm:$0xff]  ;;  %v12256_v47 = vld [vmem:[#allocation7 + $0x440] sm:$0xff] }
 0x205   :  { %9308 = vmatprep.subr.mxu0 %v11041_v2  ;;  %9343 = vmatprep.subr.mxu1 %v11041_v2  ;;  %13821 = vst [vmem:[#allocation35_spill] sm:$0xff] %v12250_v21  ;;  %13822 = vst [vmem:[#allocation36_spill] sm:$0xff] %v12256_v47 }
 0x206   :  { %9309 = vmatpush3.msra.mxu0 %v12232_v53  ;;  %9344 = vmatpush3.msra.mxu1 %v12234_v61  ;;  %v12258_v53 = vld [vmem:[#allocation7 + $0x4c0] sm:$0xff]  ;;  %v12264_v61 = vld [vmem:[#allocation7 + $0x438] sm:$0xff] }
 0x207   :  { %9310 = vmatprep.subr.mxu0 %v11041_v2  ;;  %9345 = vmatprep.subr.mxu1 %v11041_v2  ;;  %13823 = vst [vmem:[#allocation37_spill] sm:$0xff] %v12258_v53  ;;  %13824 = vst [vmem:[#allocation38_spill] sm:$0xff] %v12264_v61 }
 0x208   :  { %9311 = vmatpush3.msra.mxu0 %v12240_v28  ;;  %9346 = vmatpush3.msra.mxu1 %v12242_v32  ;;  %v12266_v28 = vld [vmem:[#allocation7 + $0x4b8] sm:$0xff]  ;;  %v12272_v32 = vld [vmem:[#allocation7 + $0x430] sm:$0xff] }
 0x209   :  { %9312 = vmatprep.subr.mxu0 %v11041_v2  ;;  %9347 = vmatprep.subr.mxu1 %v11041_v2  ;;  %13825 = vst [vmem:[#allocation39_spill] sm:$0xff] %v12266_v28  ;;  %13826 = vst [vmem:[#allocation40_spill] sm:$0xff] %v12272_v32 }
 0x20a   :  { %9313 = vmatpush3.msra.mxu0 %v12248_v51  ;;  %9348 = vmatpush3.msra.mxu1 %v12250_v21  ;;  %v12274_v51 = vld [vmem:[#allocation7 + $0x4b0] sm:$0xff]  ;;  %v12280_v21 = vld [vmem:[#allocation7 + $0x428] sm:$0xff] }
 0x20b   :  { %9314 = vmatprep.subr.mxu0 %v11041_v2  ;;  %9349 = vmatprep.subr.mxu1 %v11041_v2  ;;  %13827 = vst [vmem:[#allocation41_spill] sm:$0xff] %v12274_v51  ;;  %13828 = vst [vmem:[#allocation42_spill] sm:$0xff] %v12280_v21 }
 0x20c   :  { %9315 = vmatpush3.msra.mxu0 %v12256_v47  ;;  %9350 = vmatpush3.msra.mxu1 %v12258_v53  ;;  %v12282_v47 = vld [vmem:[#allocation7 + $0x4a8] sm:$0xff]  ;;  %v12288_v53 = vld [vmem:[#allocation7 + $0x420] sm:$0xff] }
 0x20d   :  { %9316 = vmatprep.subr.mxu0 %v11041_v2  ;;  %9351 = vmatprep.subr.mxu1 %v11041_v2  ;;  %13829 = vst [vmem:[#allocation43_spill] sm:$0xff] %v12282_v47  ;;  %13830 = vst [vmem:[#allocation44_spill] sm:$0xff] %v12288_v53 }
 0x20e   :  { %9317 = vmatpush3.msra.mxu0 %v12264_v61  ;;  %9352 = vmatpush3.msra.mxu1 %v12266_v28  ;;  %v12290_v61 = vld [vmem:[#allocation7 + $0x4a0] sm:$0xff]  ;;  %v12296_v28 = vld [vmem:[#allocation7 + $0x418] sm:$0xff] }
 0x20f   :  { %9318 = vmatprep.subr.mxu0 %v11041_v2  ;;  %9353 = vmatprep.subr.mxu1 %v11041_v2  ;;  %13831 = vst [vmem:[#allocation45_spill] sm:$0xff] %v12290_v61  ;;  %13832 = vst [vmem:[#allocation46_spill] sm:$0xff] %v12296_v28 }
 0x210   :  { %9319 = vmatpush3.msra.mxu0 %v12272_v32  ;;  %9354 = vmatpush3.msra.mxu1 %v12274_v51  ;;  %v12298_v32 = vld [vmem:[#allocation7 + $0x498] sm:$0xff]  ;;  %v12304_v51 = vld [vmem:[#allocation7 + $0x410] sm:$0xff] }
 0x211   :  { %9320 = vmatprep.subr.mxu0 %v11041_v2  ;;  %9355 = vmatprep.subr.mxu1 %v11041_v2  ;;  %13833 = vst [vmem:[#allocation47_spill] sm:$0xff] %v12298_v32  ;;  %13834 = vst [vmem:[#allocation48_spill] sm:$0xff] %v12304_v51 }
 0x212   :  { %9321 = vmatpush3.msra.mxu0 %v12280_v21  ;;  %9356 = vmatpush3.msra.mxu1 %v12282_v47  ;;  %v12306_v21 = vld [vmem:[#allocation7 + $0x490] sm:$0xff]  ;;  %v12312_v47 = vld [vmem:[#allocation7 + $0x408] sm:$0xff] }
 0x213   :  { %9322 = vmatprep.subr.mxu0 %v11041_v2  ;;  %9357 = vmatprep.subr.mxu1 %v11041_v2  ;;  %13835 = vst [vmem:[#allocation49_spill] sm:$0xff] %v12306_v21  ;;  %13836 = vst [vmem:[#allocation50_spill] sm:$0xff] %v12312_v47 }
 0x214   :  { %9323 = vmatpush3.msra.mxu0 %v12288_v53  ;;  %9358 = vmatpush3.msra.mxu1 %v12290_v61  ;;  %v12314_v53 = vld [vmem:[#allocation7 + $0x488] sm:$0xff]  ;;  %v12320_v61 = vld [vmem:[#allocation7 + $0x400] sm:$0xff] }
 0x215   :  { %9324 = vmatprep.subr.mxu0 %v11041_v2  ;;  %9359 = vmatprep.subr.mxu1 %v11041_v2  ;;  %13837 = vst [vmem:[#allocation51_spill] sm:$0xff] %v12314_v53  ;;  %13838 = vst [vmem:[#allocation52_spill] sm:$0xff] %v12320_v61 }
 0x216   :  { %9325 = vmatpush3.msra.mxu0 %v12296_v28  ;;  %9360 = vmatpush3.msra.mxu1 %v12298_v32  ;;  %v12324_v32 = vld [vmem:[#allocation7 + $0x480] sm:$0xff] }
 0x217   :  { %9326 = vmatprep.subr.mxu0 %v11041_v2  ;;  %9361 = vmatprep.subr.mxu1 %v11041_v2  ;;  %13839 = vst [vmem:[#allocation53_spill] sm:$0xff] %v12324_v32  ;;  %v10835_v28 = vld [vmem:[#allocation7 + $0x1a0] sm:$0xff] }
 0x218   :  { %9327 = vmatpush3.msra.mxu0 %v12304_v51  ;;  %9362 = vmatpush3.msra.mxu1 %v12306_v21  ;;  %v10784_v21 = vld [vmem:[#allocation7 + $0x68] sm:$0xff]  ;;  %v10834_v51 = vld [vmem:[#allocation7 + $0x120] sm:$0xff] }
 0x219   :  { %9328 = vmatprep.subr.mxu0 %v11041_v2  ;;  %9363 = vmatprep.subr.mxu1 %v11041_v2 }
 0x21a   :  { %9329 = vmatpush3.msra.mxu0 %v12312_v47  ;;  %9364 = vmatpush3.msra.mxu1 %v12314_v53  ;;  %v10779_v53 = vld [vmem:[#allocation7 + $0xf8] sm:$0xff] }
 0x21b   :  { %9330 = vmatprep.subr.mxu0 %v11041_v2  ;;  %9365 = vmatprep.subr.mxu1 %v11041_v2  ;;  %v10780_v47 = vld [vmem:[#allocation7 + $0x78] sm:$0xff] }
 0x21c   :  { %9331 = vmatpush3.msra.mxu0 %v12320_v61  ;;  %9332 = vmatprep.mubr.msk.f32.mxu0 %vm11042_vm1, %v11041_v2  ;;  %v10782_v61 = vld [vmem:[#allocation7 + $0x70] sm:$0xff] }
 0x21d   :  { %9366 = vmatpush3.msra.mxu1 %v12324_v32  ;;  %9367 = vmatprep.mubr.msk.f32.mxu1 %vm11042_vm1, %v11041_v2  ;;  %v10781_v32 = vld [vmem:[#allocation7 + $0xf0] sm:$0xff] }
 0x21e   :  { %9333 = vmatmul.mubr.f32.vlgmr.msra.gmra.mxu0 %v11947_v6  ;;  %9368 = vmatmul.mubr.f32.vlgmr.msra.gmra.mxu1 %v12064_v25  ;;  %v10783_v6 = vld [vmem:[#allocation7 + $0xe8] sm:$0xff] }
 0x21f   :  { %9370 = vmatprep.subr.mxu0 %v11041_v2  ;;  %9405 = vmatprep.subr.mxu1 %v11041_v2 }
 0x220   :  { %9371 = vmatpush3.msra.mxu0 %v10779_v53  ;;  %9406 = vmatpush3.msra.mxu1 %v10780_v47  ;;  %v10785_v47 = vld [vmem:[#allocation7 + $0xe0] sm:$0xff] }
 0x221   :  { %9372 = vmatprep.subr.mxu0 %v11041_v2  ;;  %9407 = vmatprep.subr.mxu1 %v11041_v2  ;;  %v10786_v53 = vld [vmem:[#allocation7 + $0x60] sm:$0xff] }
 0x222   :  { %9373 = vmatpush3.msra.mxu0 %v10781_v32  ;;  %9408 = vmatpush3.msra.mxu1 %v10782_v61  ;;  %v10787_v32 = vld [vmem:[#allocation7 + $0xd8] sm:$0xff] }
 0x223   :  { %9374 = vmatprep.subr.mxu0 %v11041_v2  ;;  %9409 = vmatprep.subr.mxu1 %v11041_v2  ;;  %v10788_v61 = vld [vmem:[#allocation7 + $0x58] sm:$0xff] }
 0x224   :  { %9375 = vmatpush3.msra.mxu0 %v10783_v6  ;;  %9410 = vmatpush3.msra.mxu1 %v10784_v21  ;;  %v10789_v21 = vld [vmem:[#allocation7 + $0xd0] sm:$0xff] }
 0x225   :  { %9376 = vmatprep.subr.mxu0 %v11041_v2  ;;  %9411 = vmatprep.subr.mxu1 %v11041_v2  ;;  %v10790_v6 = vld [vmem:[#allocation7 + $0x50] sm:$0xff] }
 0x226   :  { %9377 = vmatpush3.msra.mxu0 %v10785_v47  ;;  %9412 = vmatpush3.msra.mxu1 %v10786_v53  ;;  %v10791_v47 = vld [vmem:[#allocation7 + $0xc8] sm:$0xff] }
 0x227   :  { %9378 = vmatprep.subr.mxu0 %v11041_v2  ;;  %9413 = vmatprep.subr.mxu1 %v11041_v2  ;;  %v10792_v53 = vld [vmem:[#allocation7 + $0x48] sm:$0xff] }
 0x228   :  { %9379 = vmatpush3.msra.mxu0 %v10787_v32  ;;  %9414 = vmatpush3.msra.mxu1 %v10788_v61  ;;  %v10793_v32 = vld [vmem:[#allocation7 + $0xc0] sm:$0xff] }
 0x229   :  { %9380 = vmatprep.subr.mxu0 %v11041_v2  ;;  %9415 = vmatprep.subr.mxu1 %v11041_v2  ;;  %v10794_v61 = vld [vmem:[#allocation7 + $0x40] sm:$0xff] }
 0x22a   :  { %9381 = vmatpush3.msra.mxu0 %v10789_v21  ;;  %9416 = vmatpush3.msra.mxu1 %v10790_v6  ;;  %v10795_v21 = vld [vmem:[#allocation7 + $0xb8] sm:$0xff] }
 0x22b   :  { %9382 = vmatprep.subr.mxu0 %v11041_v2  ;;  %9417 = vmatprep.subr.mxu1 %v11041_v2  ;;  %v10796_v6 = vld [vmem:[#allocation7 + $0x38] sm:$0xff] }
 0x22c   :  { %9383 = vmatpush3.msra.mxu0 %v10791_v47  ;;  %9418 = vmatpush3.msra.mxu1 %v10792_v53  ;;  %v10797_v47 = vld [vmem:[#allocation7 + $0xb0] sm:$0xff] }
 0x22d   :  { %9384 = vmatprep.subr.mxu0 %v11041_v2  ;;  %9419 = vmatprep.subr.mxu1 %v11041_v2  ;;  %v10798_v53 = vld [vmem:[#allocation7 + $0x30] sm:$0xff] }
 0x22e   :  { %9385 = vmatpush3.msra.mxu0 %v10793_v32  ;;  %9420 = vmatpush3.msra.mxu1 %v10794_v61  ;;  %v10799_v32 = vld [vmem:[#allocation7 + $0xa8] sm:$0xff] }
 0x22f   :  { %9386 = vmatprep.subr.mxu0 %v11041_v2  ;;  %9421 = vmatprep.subr.mxu1 %v11041_v2  ;;  %v10800_v61 = vld [vmem:[#allocation7 + $0x28] sm:$0xff] }
 0x230   :  { %9387 = vmatpush3.msra.mxu0 %v10795_v21  ;;  %9422 = vmatpush3.msra.mxu1 %v10796_v6  ;;  %v10801_v21 = vld [vmem:[#allocation7 + $0xa0] sm:$0xff] }
 0x231   :  { %9388 = vmatprep.subr.mxu0 %v11041_v2  ;;  %9423 = vmatprep.subr.mxu1 %v11041_v2  ;;  %v10802_v6 = vld [vmem:[#allocation7 + $0x20] sm:$0xff] }
 0x232   :  { %9389 = vmatpush3.msra.mxu0 %v10797_v47  ;;  %9424 = vmatpush3.msra.mxu1 %v10798_v53  ;;  %v10803_v47 = vld [vmem:[#allocation7 + $0x98] sm:$0xff] }
 0x233   :  { %9390 = vmatprep.subr.mxu0 %v11041_v2  ;;  %9425 = vmatprep.subr.mxu1 %v11041_v2  ;;  %v10804_v53 = vld [vmem:[#allocation7 + $0x18] sm:$0xff] }
 0x234   :  { %9391 = vmatpush3.msra.mxu0 %v10799_v32  ;;  %9426 = vmatpush3.msra.mxu1 %v10800_v61  ;;  %v10805_v32 = vld [vmem:[#allocation7 + $0x90] sm:$0xff] }
 0x235   :  { %9392 = vmatprep.subr.mxu0 %v11041_v2  ;;  %9427 = vmatprep.subr.mxu1 %v11041_v2  ;;  %v10806_v61 = vld [vmem:[#allocation7 + $0x10] sm:$0xff] }
 0x236   :  { %9393 = vmatpush3.msra.mxu0 %v10801_v21  ;;  %9428 = vmatpush3.msra.mxu1 %v10802_v6  ;;  %v10807_v21 = vld [vmem:[#allocation7 + $0x88] sm:$0xff] }
 0x237   :  { %9394 = vmatprep.subr.mxu0 %v11041_v2  ;;  %9429 = vmatprep.subr.mxu1 %v11041_v2  ;;  %v10808_v6 = vld [vmem:[#allocation7 + $0x8] sm:$0xff] }
 0x238   :  { %9395 = vmatpush3.msra.mxu0 %v10803_v47  ;;  %9430 = vmatpush3.msra.mxu1 %v10804_v53  ;;  %v10809_v47 = vld [vmem:[#allocation7 + $0x80] sm:$0xff] }
 0x239   :  { %9396 = vmatprep.subr.mxu0 %v11041_v2  ;;  %9431 = vmatprep.subr.mxu1 %v11041_v2  ;;  %v10810_v53 = vld [vmem:[#allocation7] sm:$0xff] }
 0x23a   :  { %9397 = vmatpush3.msra.mxu0 %v10805_v32  ;;  %9432 = vmatpush3.msra.mxu1 %v10806_v61  ;;  %v12373_v32 = vld [vmem:[#allocation2 + $0x1] ss:$2 sm:$0x1f] }
 0x23b   :  { %9398 = vmatprep.subr.mxu0 %v11041_v2  ;;  %9433 = vmatprep.subr.mxu1 %v11041_v2  ;;  %13840 = vst [vmem:[#allocation54_spill] sm:$0xff] %v12373_v32  ;;  %v10812_v61 = vld [vmem:[#allocation7 + $0x178] sm:$0xff] }
 0x23c   :  { %9399 = vmatpush3.msra.mxu0 %v10807_v21  ;;  %9434 = vmatpush3.msra.mxu1 %v10808_v6  ;;  %v10813_v21 = vld [vmem:[#allocation7 + $0x1f8] sm:$0xff]  ;;  %v10814_v6 = vld [vmem:[#allocation7 + $0x170] sm:$0xff] }
 0x23d   :  { %9400 = vmatprep.subr.mxu0 %v11041_v2  ;;  %9435 = vmatprep.subr.mxu1 %v11041_v2 }
 0x23e   :  { %9401 = vmatpush3.msra.mxu0 %v10809_v47  ;;  %9402 = vmatprep.mubr.msk.f32.mxu0 %vm11042_vm1, %v11041_v2  ;;  %v10815_v47 = vld [vmem:[#allocation7 + $0x1f0] sm:$0xff] }
 0x23f   :  { %9436 = vmatpush3.msra.mxu1 %v10810_v53  ;;  %9437 = vmatprep.mubr.msk.f32.mxu1 %vm11042_vm1, %v11041_v2  ;;  %v10817_v53 = vld [vmem:[#allocation7 + $0x1e8] sm:$0xff] }
 0x240   :  { %9403 = vmatmul.mubr.f32.vlgmr.msra.gmra.mxu0 %v11945_v5  ;;  %9438 = vmatmul.mubr.f32.vlgmr.msra.gmra.mxu1 %v12373_v32  ;;  %v10816_v5 = vld [vmem:[#allocation7 + $0x168] sm:$0xff]  ;;  %v10836_v32 = vld [vmem:[#allocation7 + $0x118] sm:$0xff] }
 0x241   :  { %9440 = vmatprep.subr.mxu0 %v11041_v2  ;;  %9475 = vmatprep.subr.mxu1 %v11041_v2 }
 0x242   :  { %9441 = vmatpush3.msra.mxu0 %v10812_v61  ;;  %9476 = vmatpush3.msra.mxu1 %v10813_v21  ;;  %v10818_v61 = vld [vmem:[#allocation7 + $0x160] sm:$0xff] }
 0x243   :  { %9442 = vmatprep.subr.mxu0 %v11041_v2  ;;  %9477 = vmatprep.subr.mxu1 %v11041_v2  ;;  %v10819_v21 = vld [vmem:[#allocation7 + $0x1e0] sm:$0xff] }
 0x244   :  { %9443 = vmatpush3.msra.mxu0 %v10814_v6  ;;  %9478 = vmatpush3.msra.mxu1 %v10815_v47  ;;  %v10820_v6 = vld [vmem:[#allocation7 + $0x158] sm:$0xff] }
 0x245   :  { %9444 = vmatprep.subr.mxu0 %v11041_v2  ;;  %9479 = vmatprep.subr.mxu1 %v11041_v2  ;;  %v10821_v47 = vld [vmem:[#allocation7 + $0x1d8] sm:$0xff] }
 0x246   :  { %9445 = vmatpush3.msra.mxu0 %v10816_v5  ;;  %9480 = vmatpush3.msra.mxu1 %v10817_v53  ;;  %v10822_v5 = vld [vmem:[#allocation7 + $0x150] sm:$0xff] }
 0x247   :  { %9446 = vmatprep.subr.mxu0 %v11041_v2  ;;  %9481 = vmatprep.subr.mxu1 %v11041_v2  ;;  %v10823_v53 = vld [vmem:[#allocation7 + $0x1d0] sm:$0xff] }
 0x248   :  { %9447 = vmatpush3.msra.mxu0 %v10818_v61  ;;  %9482 = vmatpush3.msra.mxu1 %v10819_v21  ;;  %v10824_v61 = vld [vmem:[#allocation7 + $0x148] sm:$0xff] }
 0x249   :  { %9448 = vmatprep.subr.mxu0 %v11041_v2  ;;  %9483 = vmatprep.subr.mxu1 %v11041_v2  ;;  %v10825_v21 = vld [vmem:[#allocation7 + $0x1c8] sm:$0xff] }
 0x24a   :  { %9449 = vmatpush3.msra.mxu0 %v10820_v6  ;;  %9484 = vmatpush3.msra.mxu1 %v10821_v47  ;;  %v10826_v6 = vld [vmem:[#allocation7 + $0x140] sm:$0xff] }
 0x24b   :  { %9450 = vmatprep.subr.mxu0 %v11041_v2  ;;  %9485 = vmatprep.subr.mxu1 %v11041_v2  ;;  %v10827_v47 = vld [vmem:[#allocation7 + $0x1c0] sm:$0xff] }
 0x24c   :  { %9451 = vmatpush3.msra.mxu0 %v10822_v5  ;;  %9486 = vmatpush3.msra.mxu1 %v10823_v53  ;;  %v10828_v5 = vld [vmem:[#allocation7 + $0x138] sm:$0xff] }
 0x24d   :  { %9452 = vmatprep.subr.mxu0 %v11041_v2  ;;  %9487 = vmatprep.subr.mxu1 %v11041_v2  ;;  %v10829_v53 = vld [vmem:[#allocation7 + $0x1b8] sm:$0xff] }
 0x24e   :  { %9453 = vmatpush3.msra.mxu0 %v10824_v61  ;;  %9488 = vmatpush3.msra.mxu1 %v10825_v21  ;;  %v10830_v61 = vld [vmem:[#allocation7 + $0x130] sm:$0xff] }
 0x24f   :  { %9454 = vmatprep.subr.mxu0 %v11041_v2  ;;  %9489 = vmatprep.subr.mxu1 %v11041_v2  ;;  %v10831_v21 = vld [vmem:[#allocation7 + $0x1b0] sm:$0xff] }
 0x250   :  { %9455 = vmatpush3.msra.mxu0 %v10826_v6  ;;  %9490 = vmatpush3.msra.mxu1 %v10827_v47  ;;  %v10832_v6 = vld [vmem:[#allocation7 + $0x128] sm:$0xff] }
 0x251   :  { %9456 = vmatprep.subr.mxu0 %v11041_v2  ;;  %9491 = vmatprep.subr.mxu1 %v11041_v2  ;;  %v10833_v47 = vld [vmem:[#allocation7 + $0x1a8] sm:$0xff] }
 0x252   :  { %9457 = vmatpush3.msra.mxu0 %v10828_v5  ;;  %9492 = vmatpush3.msra.mxu1 %v10829_v53 }
 0x253   :  { %9458 = vmatprep.subr.mxu0 %v11041_v2  ;;  %9493 = vmatprep.subr.mxu1 %v11041_v2 }
 0x254   :  { %9459 = vmatpush3.msra.mxu0 %v10830_v61  ;;  %9494 = vmatpush3.msra.mxu1 %v10831_v21 }
 0x255   :  { %9460 = vmatprep.subr.mxu0 %v11041_v2  ;;  %9495 = vmatprep.subr.mxu1 %v11041_v2 }
 0x256   :  { %9461 = vmatpush3.msra.mxu0 %v10832_v6  ;;  %9496 = vmatpush3.msra.mxu1 %v10833_v47  ;;  %v10837_v47 = vld [vmem:[#allocation7 + $0x198] sm:$0xff] }
 0x257   :  { %9462 = vmatprep.subr.mxu0 %v11041_v2  ;;  %9497 = vmatprep.subr.mxu1 %v11041_v2  ;;  %v3608_v5 = vpop.f32.mrf.mxu0  ;;  %v3678_v53 = vpop.f32.mrf.mxu1 }
 0x258   :  { %9463 = vmatpush3.msra.mxu0 %v10834_v51  ;;  %9498 = vmatpush3.msra.mxu1 %v10835_v28  ;;  %v12400_v61 = vadd.f32 %v3678_v53, %v3608_v5  ;;  %v10839_v51 = vld [vmem:[#allocation7 + $0x190] sm:$0xff]  ;;  %v10840_v28 = vld [vmem:[#allocation7 + $0x108] sm:$0xff] }
 0x259   :  { %9464 = vmatprep.subr.mxu0 %v11041_v2  ;;  %9499 = vmatprep.subr.mxu1 %v11041_v2  ;;  %v9054_v21 = vpop.f32.mrf.mxu0  ;;  %v9089_v6 = vpop.f32.mrf.mxu1  ;;  %v10841_v5 = vld [vmem:[#allocation7 + $0x188] sm:$0xff]  ;;  %v12414_v53 = vld [vmem:[#allocation2 + $0x3] ss:$2 sm:$0x1f] }
 0x25a   :  { %9465 = vmatpush3.msra.mxu0 %v10836_v32  ;;  %9500 = vmatpush3.msra.mxu1 %v10837_v47  ;;  %v10842_v32 = vld [vmem:[#allocation7 + $0x100] sm:$0xff]  ;;  %v10845_v21 = vld [vmem:[#allocation7 + $0x278] sm:$0xff]  ;;  %v10847_v47 = vld [vmem:[#allocation7 + $0x270] sm:$0xff] }
 0x25b   :  { %9466 = vmatprep.subr.mxu0 %v11041_v2  ;;  %9501 = vmatprep.subr.mxu1 %v11041_v2  ;;  %v10846_v6 = vld [vmem:[#allocation7 + $0x378] sm:$0xff] }
 0x25c   :  { %9467 = vmatpush3.msra.mxu0 %v10838_v15  ;;  %9502 = vmatpush3.msra.mxu1 %v10839_v51  ;;  %v10843_v15 = vld [vmem:[#allocation7 + $0x180] sm:$0xff]  ;;  %v10848_v51 = vld [vmem:[#allocation7 + $0x370] sm:$0xff] }
 0x25d   :  { %9468 = vmatprep.subr.mxu0 %v11041_v2  ;;  %9503 = vmatprep.subr.mxu1 %v11041_v2 }
 0x25e   :  { %9469 = vmatpush3.msra.mxu0 %v10840_v28  ;;  %9504 = vmatpush3.msra.mxu1 %v10841_v5  ;;  %v10850_v28 = vld [vmem:[#allocation7 + $0x368] sm:$0xff]  ;;  %v10851_v5 = vld [vmem:[#allocation7 + $0x260] sm:$0xff] }
 0x25f   :  { %9470 = vmatprep.subr.mxu0 %v11041_v2  ;;  %9505 = vmatprep.subr.mxu1 %v11041_v2 }
 0x260   :  { %9471 = vmatpush3.msra.mxu0 %v10842_v32  ;;  %9472 = vmatprep.mubr.msk.f32.mxu0 %vm11042_vm1, %v11041_v2  ;;  %v10852_v32 = vld [vmem:[#allocation7 + $0x360] sm:$0xff] }
 0x261   :  { %9506 = vmatpush3.msra.mxu1 %v10843_v15  ;;  %9507 = vmatprep.mubr.msk.f32.mxu1 %vm11042_vm1, %v11041_v2  ;;  %v13875_v15 = vld [vmem:[#allocation51_spill] sm:$0xff] }
 0x262   :  { %9473 = vmatmul.mubr.f32.vlgmr.msra.gmra.mxu0 %v12414_v53  ;;  %9508 = vmatmul.mubr.f32.vlgmr.msra.gmra.mxu1 %v12064_v25  ;;  %v10849_v25 = vld [vmem:[#allocation7 + $0x268] sm:$0xff] }
 0x263   :  { %9510 = vmatprep.subr.mxu0 %v11041_v2  ;;  %9545 = vmatprep.subr.mxu1 %v11041_v2 }
 0x264   :  { %9511 = vmatpush3.msra.mxu0 %v10845_v21  ;;  %9546 = vmatpush3.msra.mxu1 %v10846_v6  ;;  %v13877_v21 = vld [vmem:[#allocation53_spill] sm:$0xff] }
 0x265   :  { %9512 = vmatprep.subr.mxu0 %v11041_v2  ;;  %9547 = vmatprep.subr.mxu1 %v11041_v2  ;;  %v5172_v6 = vld [vmem:[#allocation7 + $0xf8] sm:$0xff] }
 0x266   :  { %9513 = vmatpush3.msra.mxu0 %v10847_v47  ;;  %9548 = vmatpush3.msra.mxu1 %v10848_v51  ;;  %v5154_v47 = vld [vmem:[#allocation7 + $0x78] sm:$0xff] }
 0x267   :  { %9514 = vmatprep.subr.mxu0 %v11041_v2  ;;  %9549 = vmatprep.subr.mxu1 %v11041_v2  ;;  %v10854_v51 = vld [vmem:[#allocation2 + $0x4] ss:$2 sm:$0x1f] }
 0x268   :  { %9515 = vmatpush3.msra.mxu0 %v10849_v25  ;;  %9550 = vmatpush3.msra.mxu1 %v10850_v28  ;;  %v5171_v25 = vld [vmem:[#allocation7 + $0xf0] sm:$0xff] }
 0x269   :  { %9516 = vmatprep.subr.mxu0 %v11041_v2  ;;  %9551 = vmatprep.subr.mxu1 %v11041_v2  ;;  %v5153_v28 = vld [vmem:[#allocation7 + $0x70] sm:$0xff] }
 0x26a   :  { %9517 = vmatpush3.msra.mxu0 %v10851_v5  ;;  %9552 = vmatpush3.msra.mxu1 %v10852_v32  ;;  %v5170_v5 = vld [vmem:[#allocation7 + $0xe8] sm:$0xff] }
 0x26b   :  { %9518 = vmatprep.subr.mxu0 %v11041_v2  ;;  %9553 = vmatprep.subr.mxu1 %v11041_v2  ;;  %v5152_v32 = vld [vmem:[#allocation7 + $0x68] sm:$0xff] }
 0x26c   :  { %9519 = vmatpush3.msra.mxu0 %v11962_v33  ;;  %9554 = vmatpush3.msra.mxu1 %v11964_v34 }
 0x26d   :  { %9520 = vmatprep.subr.mxu0 %v11041_v2  ;;  %9555 = vmatprep.subr.mxu1 %v11041_v2 }
 0x26e   :  { %9521 = vmatpush3.msra.mxu0 %v11968_v40  ;;  %9556 = vmatpush3.msra.mxu1 %v11970_v41 }
 0x26f   :  { %9522 = vmatprep.subr.mxu0 %v11041_v2  ;;  %9557 = vmatprep.subr.mxu1 %v11041_v2 }
 0x270   :  { %9523 = vmatpush3.msra.mxu0 %v11976_v45  ;;  %9558 = vmatpush3.msra.mxu1 %v11978_v31 }
 0x271   :  { %9524 = vmatprep.subr.mxu0 %v11041_v2  ;;  %9559 = vmatprep.subr.mxu1 %v11041_v2 }
 0x272   :  { %9525 = vmatpush3.msra.mxu0 %v11984_v49  ;;  %9560 = vmatpush3.msra.mxu1 %v11986_v38  ;;  %v12481_v49 = vld [vmem:[#allocation2 + $0x5] ss:$2 sm:$0x1f]  ;;  %v10853_v38 = vld [vmem:[#allocation2 + $0x2] ss:$2 sm:$0x1f] }
 0x273   :  { %9526 = vmatprep.subr.mxu0 %v11041_v2  ;;  %9561 = vmatprep.subr.mxu1 %v11041_v2 }
 0x274   :  { %9527 = vmatpush3.msra.mxu0 %v11992_v55  ;;  %9562 = vmatpush3.msra.mxu1 %v11994_v56 }
 0x275   :  { %9528 = vmatprep.subr.mxu0 %v11041_v2  ;;  %9563 = vmatprep.subr.mxu1 %v11041_v2 }
 0x276   :  { %9529 = vmatpush3.msra.mxu0 %v12000_v59  ;;  %9564 = vmatpush3.msra.mxu1 %v12002_v60 }
 0x277   :  { %9530 = vmatprep.subr.mxu0 %v11041_v2  ;;  %9565 = vmatprep.subr.mxu1 %v11041_v2 }
 0x278   :  { %9531 = vmatpush3.msra.mxu0 %v12009_v62  ;;  %9566 = vmatpush3.msra.mxu1 %v12011_v63  ;;  %v3767_v33 = vpop.f32.mrf.mxu0  ;;  %v3857_v34 = vpop.f32.mrf.mxu1  ;;  %v13841_v63 = vld [vmem:[#allocation18_spill] sm:$0xff] }
 0x279   :  { %9532 = vmatprep.subr.mxu0 %v11041_v2  ;;  %9567 = vmatprep.subr.mxu1 %v11041_v2  ;;  %v3771_v40 = vadd.f32 %v3767_v33, %v12400_v61  ;;  %v13874_v61 = vld [vmem:[#allocation50_spill] sm:$0xff] }
 0x27a   :  { %9533 = vmatpush3.msra.mxu0 %v12018_v4  ;;  %9568 = vmatpush3.msra.mxu1 %v12020_v7  ;;  %v9124_v41 = vpop.f32.mrf.mxu0  ;;  %v9159_v45 = vpop.f32.mrf.mxu1  ;;  %v13842_v4 = vld [vmem:[#allocation19_spill] sm:$0xff]  ;;  %v13843_v7 = vld [vmem:[#allocation20_spill] sm:$0xff]  ;;  %v5169_v33 = vld [vmem:[#allocation7 + $0xe0] sm:$0xff] }
 0x27b   :  { %9534 = vmatprep.subr.mxu0 %v11041_v2  ;;  %9569 = vmatprep.subr.mxu1 %v11041_v2  ;;  %v12461_v31 = vadd.f32 %v3857_v34, %v3771_v40  ;;  %v5151_v34 = vld [vmem:[#allocation7 + $0x60] sm:$0xff]  ;;  %v5168_v40 = vld [vmem:[#allocation7 + $0xd8] sm:$0xff]  ;;  %v5167_v45 = vld [vmem:[#allocation7 + $0xd0] sm:$0xff] }
 0x27c   :  { %9535 = vmatpush3.msra.mxu0 %v12026_v11  ;;  %9570 = vmatpush3.msra.mxu1 %v12028_v12  ;;  %v13844_v11 = vld [vmem:[#allocation21_spill] sm:$0xff]  ;;  %v13845_v12 = vld [vmem:[#allocation54_spill] sm:$0xff] }
 0x27d   :  { %9536 = vmatprep.subr.mxu0 %v11041_v2  ;;  %9571 = vmatprep.subr.mxu1 %v11041_v2  ;;  %v5150_v41 = vld [vmem:[#allocation7 + $0x58] sm:$0xff] }
 0x27e   :  { %9537 = vmatpush3.msra.mxu0 %v12034_v16  ;;  %9572 = vmatpush3.msra.mxu1 %v12036_v19  ;;  %v13846_v16 = vld [vmem:[#allocation22_spill] sm:$0xff]  ;;  %v13847_v19 = vld [vmem:[#allocation23_spill] sm:$0xff] }
 0x27f   :  { %9538 = vmatprep.subr.mxu0 %v11041_v2  ;;  %9573 = vmatprep.subr.mxu1 %v11041_v2 }
 0x280   :  { %9539 = vmatpush3.msra.mxu0 %v12042_v23  ;;  %9574 = vmatpush3.msra.mxu1 %v12044_v22  ;;  %v13848_v23 = vld [vmem:[#allocation24_spill] sm:$0xff]  ;;  %v13849_v22 = vld [vmem:[#allocation25_spill] sm:$0xff] }
 0x281   :  { %9540 = vmatprep.subr.mxu0 %v11041_v2  ;;  %9575 = vmatprep.subr.mxu1 %v11041_v2 }
 0x282   :  { %9541 = vmatpush3.msra.mxu0 %v12050_v27  ;;  %9542 = vmatprep.mubr.msk.f32.mxu0 %vm11042_vm1, %v11041_v2  ;;  %v13850_v27 = vld [vmem:[#allocation26_spill] sm:$0xff] }
 0x283   :  { %9576 = vmatpush3.msra.mxu1 %v12054_v29  ;;  %9577 = vmatprep.mubr.msk.f32.mxu1 %vm11042_vm1, %v11041_v2  ;;  %v13851_v29 = vld [vmem:[#allocation27_spill] sm:$0xff] }
 0x284   :  { %9543 = vmatmul.mubr.f32.vlgmr.msra.gmra.mxu0 %v12481_v49  ;;  %9578 = vmatmul.mubr.f32.vlgmr.msra.gmra.mxu1 %v10853_v38  ;;  %v5148_v38 = vld [vmem:[#allocation7 + $0x48] sm:$0xff] }
 0x285   :  { %9580 = vmatprep.subr.mxu0 %v11041_v2  ;;  %9615 = vmatprep.subr.mxu1 %v11041_v2 }
 0x286   :  { %9581 = vmatpush3.msra.mxu0 %v12066_v35  ;;  %9616 = vmatpush3.msra.mxu1 %v12068_v36  ;;  %v13852_v35 = vld [vmem:[#allocation28_spill] sm:$0xff]  ;;  %v13853_v36 = vld [vmem:[#allocation29_spill] sm:$0xff] }
 0x287   :  { %9582 = vmatprep.subr.mxu0 %v11041_v2  ;;  %9617 = vmatprep.subr.mxu1 %v11041_v2 }
 0x288   :  { %9583 = vmatpush3.msra.mxu0 %v12074_v30  ;;  %9618 = vmatpush3.msra.mxu1 %v12076_v37  ;;  %v13854_v30 = vld [vmem:[#allocation30_spill] sm:$0xff]  ;;  %v13855_v37 = vld [vmem:[#allocation31_spill] sm:$0xff] }
 0x289   :  { %9584 = vmatprep.subr.mxu0 %v11041_v2  ;;  %9619 = vmatprep.subr.mxu1 %v11041_v2 }
 0x28a   :  { %9585 = vmatpush3.msra.mxu0 %v12082_v43  ;;  %9620 = vmatpush3.msra.mxu1 %v12084_v50  ;;  %v13856_v43 = vld [vmem:[#allocation32_spill] sm:$0xff]  ;;  %v13857_v50 = vld [vmem:[#allocation33_spill] sm:$0xff] }
 0x28b   :  { %9586 = vmatprep.subr.mxu0 %v11041_v2  ;;  %9621 = vmatprep.subr.mxu1 %v11041_v2 }
 0x28c   :  { %9587 = vmatpush3.msra.mxu0 %v12090_v48  ;;  %9622 = vmatpush3.msra.mxu1 %v12092_v52  ;;  %v13858_v48 = vld [vmem:[#allocation34_spill] sm:$0xff]  ;;  %v13859_v52 = vld [vmem:[#allocation35_spill] sm:$0xff] }
 0x28d   :  { %9588 = vmatprep.subr.mxu0 %v11041_v2  ;;  %9623 = vmatprep.subr.mxu1 %v11041_v2 }
 0x28e   :  { %9589 = vmatpush3.msra.mxu0 %v12098_v57  ;;  %9624 = vmatpush3.msra.mxu1 %v12100_v39  ;;  %v13860_v57 = vld [vmem:[#allocation36_spill] sm:$0xff]  ;;  %v13861_v39 = vld [vmem:[#allocation37_spill] sm:$0xff] }
 0x28f   :  { %9590 = vmatprep.subr.mxu0 %v11041_v2  ;;  %9625 = vmatprep.subr.mxu1 %v11041_v2 }
 0x290   :  { %9591 = vmatpush3.msra.mxu0 %v12106_v44  ;;  %9626 = vmatpush3.msra.mxu1 %v12108_v0  ;;  %v13862_v44 = vld [vmem:[#allocation38_spill] sm:$0xff]  ;;  %v13863_v0 = vld [vmem:[#allocation39_spill] sm:$0xff] }
 0x291   :  { %9592 = vmatprep.subr.mxu0 %v11041_v2  ;;  %9627 = vmatprep.subr.mxu1 %v11041_v2 }
 0x292   :  { %9593 = vmatpush3.msra.mxu0 %v12114_v8  ;;  %9628 = vmatpush3.msra.mxu1 %v12116_v9  ;;  %v13864_v8 = vld [vmem:[#allocation40_spill] sm:$0xff]  ;;  %v13865_v9 = vld [vmem:[#allocation41_spill] sm:$0xff] }
 0x293   :  { %9594 = vmatprep.subr.mxu0 %v11041_v2  ;;  %9629 = vmatprep.subr.mxu1 %v11041_v2 }
 0x294   :  { %9595 = vmatpush3.msra.mxu0 %v12122_v13  ;;  %9630 = vmatpush3.msra.mxu1 %v12124_v14  ;;  %v13866_v13 = vld [vmem:[#allocation42_spill] sm:$0xff]  ;;  %v13867_v14 = vld [vmem:[#allocation43_spill] sm:$0xff] }
 0x295   :  { %9596 = vmatprep.subr.mxu0 %v11041_v2  ;;  %9631 = vmatprep.subr.mxu1 %v11041_v2 }
 0x296   :  { %9597 = vmatpush3.msra.mxu0 %v12130_v18  ;;  %9632 = vmatpush3.msra.mxu1 %v12132_v20 }
 0x297   :  { %9598 = vmatprep.subr.mxu0 %v11041_v2  ;;  %9633 = vmatprep.subr.mxu1 %v11041_v2 }
 0x298   :  { %9599 = vmatpush3.msra.mxu0 %v12138_v24  ;;  %9634 = vmatpush3.msra.mxu1 %v12140_v26  ;;  %v13868_v26 = vld [vmem:[#allocation44_spill] sm:$0xff] }
 0x299   :  { %9600 = vmatprep.subr.mxu0 %v11041_v2  ;;  %9635 = vmatprep.subr.mxu1 %v11041_v2 }
 0x29a   :  { %9601 = vmatpush3.msra.mxu0 %v12146_v42  ;;  %9636 = vmatpush3.msra.mxu1 %v12148_v46  ;;  %v3947_v55 = vpop.f32.mrf.mxu0  ;;  %v12528_v56 = vpop.f32.mrf.mxu1  ;;  %v13869_v42 = vld [vmem:[#allocation45_spill] sm:$0xff] }
 0x29b   :  { %9602 = vmatprep.subr.mxu0 %v11041_v2  ;;  %9637 = vmatprep.subr.mxu1 %v11041_v2  ;;  %v12533_v59 = vadd.f32 %v3947_v55, %v12461_v31  ;;  %v5149_v31 = vld [vmem:[#allocation7 + $0x50] sm:$0xff] }
 0x29c   :  { %9603 = vmatpush3.msra.mxu0 %v12154_v54  ;;  %9638 = vmatpush3.msra.mxu1 %v12156_v58  ;;  %v9194_v60 = vpop.f32.mrf.mxu0  ;;  %v9229_v62 = vpop.f32.mrf.mxu1  ;;  %v12646_v55 = vld [vmem:[%s13693_s4] ss:$0 sm:$0xff] }
 0x29d   :  { %9604 = vmatprep.subr.mxu0 %v11041_v2  ;;  %9639 = vmatprep.subr.mxu1 %v11041_v2  ;;  %v5147_v60 = vld [vmem:[#allocation7 + $0x40] sm:$0xff]  ;;  %v5164_v62 = vld [vmem:[#allocation7 + $0xb8] sm:$0xff] }
 0x29e   :  { %9605 = vmatpush3.msra.mxu0 %v12162_v1  ;;  %9640 = vmatpush3.msra.mxu1 %v12164_v3  ;;  %v13870_v1 = vld [vmem:[#allocation46_spill] sm:$0xff]  ;;  %v13871_v3 = vld [vmem:[#allocation47_spill] sm:$0xff] }
 0x29f   :  { %9606 = vmatprep.subr.mxu0 %v11041_v2  ;;  %9641 = vmatprep.subr.mxu1 %v11041_v2 }
 0x2a0   :  { %9607 = vmatpush3.msra.mxu0 %v12170_v10  ;;  %9642 = vmatpush3.msra.mxu1 %v12172_v17  ;;  %v13872_v10 = vld [vmem:[#allocation48_spill] sm:$0xff]  ;;  %v13873_v17 = vld [vmem:[#allocation49_spill] sm:$0xff] }
 0x2a1   :  { %9608 = vmatprep.subr.mxu0 %v11041_v2  ;;  %9643 = vmatprep.subr.mxu1 %v11041_v2 }
 0x2a2   :  { %9609 = vmatpush3.msra.mxu0 %v13841_v63  ;;  %9644 = vmatpush3.msra.mxu1 %v13842_v4  ;;  %v5146_v63 = vld [vmem:[#allocation7 + $0x38] sm:$0xff]  ;;  %v3959_v4 = vadd.f32 %v12646_v55, %v12533_v59  ;;  %v5161_v59 = vld [vmem:[#allocation7 + $0xa0] sm:$0xff] }
 0x2a3   :  { %9610 = vmatprep.subr.mxu0 %v11041_v2  ;;  %9645 = vmatprep.subr.mxu1 %v11041_v2 }
 0x2a4   :  { %9611 = vmatpush3.msra.mxu0 %v13843_v7  ;;  %9612 = vmatprep.mubr.msk.f32.mxu0 %vm11042_vm1, %v11041_v2  ;;  %v5163_v7 = vld [vmem:[#allocation7 + $0xb0] sm:$0xff] }
 0x2a5   :  { %9646 = vmatpush3.msra.mxu1 %v13844_v11  ;;  %9647 = vmatprep.mubr.msk.f32.mxu1 %vm11042_vm1, %v11041_v2  ;;  %v5145_v11 = vld [vmem:[#allocation7 + $0x30] sm:$0xff] }
 0x2a6   :  { %9613 = vmatmul.mubr.f32.vlgmr.msra.gmra.mxu0 %v13845_v12  ;;  %9648 = vmatmul.mubr.f32.vlgmr.msra.gmra.mxu1 %v12414_v53  ;;  %v13876_v53 = vld [vmem:[#allocation52_spill] sm:$0xff]  ;;  %v5162_v12 = vld [vmem:[#allocation7 + $0xa8] sm:$0xff] }
 0x2a7   :  { %9650 = vmatprep.subr.mxu0 %v11041_v2  ;;  %9685 = vmatprep.subr.mxu1 %v11041_v2 }
 0x2a8   :  { %9651 = vmatpush3.msra.mxu0 %v13846_v16  ;;  %9686 = vmatpush3.msra.mxu1 %v13847_v19  ;;  %v5144_v16 = vld [vmem:[#allocation7 + $0x28] sm:$0xff]  ;;  %v3960_v19 = vsub.f32 0.0, %v3959_v4 }
 0x2a9   :  { %9652 = vmatprep.subr.mxu0 %v11041_v2  ;;  %9687 = vmatprep.subr.mxu1 %v11041_v2 }
 0x2aa   :  { %9653 = vmatpush3.msra.mxu0 %v13848_v23  ;;  %9688 = vmatpush3.msra.mxu1 %v13849_v22  ;;  %v5143_v23 = vld [vmem:[#allocation7 + $0x20] sm:$0xff] }
 0x2ab   :  { %9654 = vmatprep.subr.mxu0 %v11041_v2  ;;  %9689 = vmatprep.subr.mxu1 %v11041_v2 }
 0x2ac   :  { %9655 = vmatpush3.msra.mxu0 %v13850_v27  ;;  %9690 = vmatpush3.msra.mxu1 %v13851_v29  ;;  %v5160_v29 = vld [vmem:[#allocation7 + $0x98] sm:$0xff] }
 0x2ad   :  { %9656 = vmatprep.subr.mxu0 %v11041_v2  ;;  %9691 = vmatprep.subr.mxu1 %v11041_v2 }
 0x2ae   :  { %9657 = vmatpush3.msra.mxu0 %v13852_v35  ;;  %9692 = vmatpush3.msra.mxu1 %v13853_v36  ;;  %v5142_v35 = vld [vmem:[#allocation7 + $0x18] sm:$0xff] }
 0x2af   :  { %9658 = vmatprep.subr.mxu0 %v11041_v2  ;;  %9693 = vmatprep.subr.mxu1 %v11041_v2 }
 0x2b0   :  { %9659 = vmatpush3.msra.mxu0 %v13854_v30  ;;  %9694 = vmatpush3.msra.mxu1 %v13855_v37  ;;  %v3961_v30 = vmul.f32 1.442695, %v3960_v19  ;;  %v12756_v19 = vld [vmem:[#allocation7 + $0x188] sm:$0xff] }
 0x2b1   :  { %9660 = vmatprep.subr.mxu0 %v11041_v2  ;;  %9695 = vmatprep.subr.mxu1 %v11041_v2 }
 0x2b2   :  { %9661 = vmatpush3.msra.mxu0 %v13856_v43  ;;  %9696 = vmatpush3.msra.mxu1 %v13857_v50  ;;  %v5159_v50 = vld [vmem:[#allocation7 + $0x90] sm:$0xff]  ;;  %10739 = vpow2.f32 %v3961_v30  ;;  %v12786_v30 = vld [vmem:[#allocation7 + $0x378] sm:$0xff] }
 0x2b3   :  { %9662 = vmatprep.subr.mxu0 %v11041_v2  ;;  %9697 = vmatprep.subr.mxu1 %v11041_v2 }
 0x2b4   :  { %9663 = vmatpush3.msra.mxu0 %v13858_v48  ;;  %9698 = vmatpush3.msra.mxu1 %v13859_v52  ;;  %v5141_v48 = vld [vmem:[#allocation7 + $0x10] sm:$0xff] }
 0x2b5   :  { %9664 = vmatprep.subr.mxu0 %v11041_v2  ;;  %9699 = vmatprep.subr.mxu1 %v11041_v2 }
 0x2b6   :  { %9665 = vmatpush3.msra.mxu0 %v13860_v57  ;;  %9700 = vmatpush3.msra.mxu1 %v13861_v39  ;;  %v5158_v57 = vld [vmem:[#allocation7 + $0x88] sm:$0xff] }
 0x2b7   :  { %9666 = vmatprep.subr.mxu0 %v11041_v2  ;;  %9701 = vmatprep.subr.mxu1 %v11041_v2  ;;  %v5140_v39 = vld [vmem:[#allocation7 + $0x8] sm:$0xff] }
 0x2b8   :  { %9667 = vmatpush3.msra.mxu0 %v13862_v44  ;;  %9702 = vmatpush3.msra.mxu1 %v13863_v0  ;;  %v5157_v0 = vld [vmem:[#allocation7 + $0x80] sm:$0xff] }
 0x2b9   :  { %9668 = vmatprep.subr.mxu0 %v11041_v2  ;;  %9703 = vmatprep.subr.mxu1 %v11041_v2 }
 0x2ba   :  { %9669 = vmatpush3.msra.mxu0 %v13864_v8  ;;  %9704 = vmatpush3.msra.mxu1 %v13865_v9  ;;  %v5139_v9 = vld [vmem:[#allocation7] sm:$0xff] }
 0x2bb   :  { %9670 = vmatprep.subr.mxu0 %v11041_v2  ;;  %9705 = vmatprep.subr.mxu1 %v11041_v2 }
 0x2bc   :  { %9671 = vmatpush3.msra.mxu0 %v13866_v13  ;;  %9706 = vmatpush3.msra.mxu1 %v13867_v14  ;;  %v4136_v18 = vpop.f32.mrf.mxu0  ;;  %v4223_v20 = vpop.f32.mrf.mxu1  ;;  %v12674_v14 = vld [vmem:[#allocation2 + $0x11] ss:$2 sm:$0x1f] }
 0x2bd   :  { %9672 = vmatprep.subr.mxu0 %v11041_v2  ;;  %9707 = vmatprep.subr.mxu1 %v11041_v2  ;;  %v4137_v24 = vadd.f32 %v4136_v18, %v12528_v56  ;;  %v5165_v56 = vld [vmem:[#allocation7 + $0xc0] sm:$0xff] }
 0x2be   :  { %9673 = vmatpush3.msra.mxu0 %v13868_v26  ;;  %9708 = vmatpush3.msra.mxu1 %v13869_v42  ;;  %v9264_v46 = vpop.f32.mrf.mxu0  ;;  %v9299_v54 = vpop.f32.mrf.mxu1  ;;  %v12678_v18 = vld [vmem:[#allocation2 + $0x10] ss:$2 sm:$0x1f]  ;;  %v5329_v26 = vld [vmem:[#allocation7 + $0x170] sm:$0xff] }
 0x2bf   :  { %9674 = vmatprep.subr.mxu0 %v11041_v2  ;;  %9709 = vmatprep.subr.mxu1 %v11041_v2  ;;  %v12610_v58 = vadd.f32 %v4223_v20, %v4137_v24  ;;  %v5330_v20 = vld [vmem:[#allocation7 + $0x178] sm:$0xff]  ;;  %v5418_v42 = vld [vmem:[#allocation7 + $0x1f0] sm:$0xff]  ;;  %v5328_v46 = vld [vmem:[#allocation7 + $0x168] sm:$0xff] }
 0x2c0   :  { %9675 = vmatpush3.msra.mxu0 %v13870_v1  ;;  %9710 = vmatpush3.msra.mxu1 %v13871_v3  ;;  %v5419_v24 = vld [vmem:[#allocation7 + $0x1f8] sm:$0xff]  ;;  %v5417_v54 = vld [vmem:[#allocation7 + $0x1e8] sm:$0xff]  ;;  %v5416_v1 = vld [vmem:[#allocation7 + $0x1e0] sm:$0xff]  ;;  %v10740_v3 = vpop.eup %10739 }
 0x2c1   :  { %9676 = vmatprep.subr.mxu0 %v11041_v2  ;;  %9711 = vmatprep.subr.mxu1 %v11041_v2 }
 0x2c2   :  { %9677 = vmatpush3.msra.mxu0 %v13872_v10  ;;  %9712 = vmatpush3.msra.mxu1 %v13873_v17  ;;  %v5326_v10 = vld [vmem:[#allocation7 + $0x158] sm:$0xff] }
 0x2c3   :  { %9678 = vmatprep.subr.mxu0 %v11041_v2  ;;  %9713 = vmatprep.subr.mxu1 %v11041_v2  ;;  %v5415_v17 = vld [vmem:[#allocation7 + $0x1d8] sm:$0xff] }
 0x2c4   :  { %9679 = vmatpush3.msra.mxu0 %v13874_v61  ;;  %9714 = vmatpush3.msra.mxu1 %v13875_v15  ;;  %v5325_v61 = vld [vmem:[#allocation7 + $0x150] sm:$0xff] }
 0x2c5   :  { %9680 = vmatprep.subr.mxu0 %v11041_v2  ;;  %9715 = vmatprep.subr.mxu1 %v11041_v2  ;;  %v5414_v15 = vld [vmem:[#allocation7 + $0x1d0] sm:$0xff] }
 0x2c6   :  { %9681 = vmatpush3.msra.mxu0 %v13876_v53  ;;  %9682 = vmatprep.mubr.msk.f32.mxu0 %vm11042_vm1, %v11041_v2  ;;  %v3963_v53 = vadd.f32 1.0, %v10740_v3  ;;  %v12872_v3 = vld [vmem:[#allocation7 + $0x220] sm:$0xff] }
 0x2c7   :  { %9716 = vmatpush3.msra.mxu1 %v13877_v21  ;;  %9717 = vmatprep.mubr.msk.f32.mxu1 %vm11042_vm1, %v11041_v2  ;;  %v5324_v21 = vld [vmem:[#allocation7 + $0x148] sm:$0xff] }
 0x2c8   :  { %9683 = vmatmul.mubr.f32.vlgmr.msra.gmra.mxu0 %v10854_v51  ;;  %9718 = vmatmul.mubr.f32.vlgmr.msra.gmra.mxu1 %v12481_v49  ;;  %v5166_v49 = vld [vmem:[#allocation7 + $0xc8] sm:$0xff] }
 0x2c9   :  { %9720 = vmatprep.subr.mxu0 %v11041_v2  ;;  %9755 = vmatprep.subr.mxu1 %v11041_v2 }
 0x2ca   :  { %9721 = vmatpush3.msra.mxu0 %v5172_v6  ;;  %9756 = vmatpush3.msra.mxu1 %v5154_v47  ;;  %v5413_v6 = vld [vmem:[#allocation7 + $0x1c8] sm:$0xff] }
 0x2cb   :  { %9722 = vmatprep.subr.mxu0 %v11041_v2  ;;  %9757 = vmatprep.subr.mxu1 %v11041_v2 }
 0x2cc   :  { %9723 = vmatpush3.msra.mxu0 %v5171_v25  ;;  %9758 = vmatpush3.msra.mxu1 %v5153_v28  ;;  %v12696_v25 = vld [vmem:[#allocation7 + $0x140] sm:$0xff] }
 0x2cd   :  { %9724 = vmatprep.subr.mxu0 %v11041_v2  ;;  %9759 = vmatprep.subr.mxu1 %v11041_v2  ;;  %v12698_v28 = vld [vmem:[#allocation7 + $0x1c0] sm:$0xff] }
 0x2ce   :  { %9725 = vmatpush3.msra.mxu0 %v5170_v5  ;;  %9760 = vmatpush3.msra.mxu1 %v5152_v32  ;;  %v12702_v5 = vld [vmem:[#allocation7 + $0x138] sm:$0xff] }
 0x2cf   :  { %9726 = vmatprep.subr.mxu0 %v11041_v2  ;;  %9761 = vmatprep.subr.mxu1 %v11041_v2  ;;  %v12704_v32 = vld [vmem:[#allocation7 + $0x1b8] sm:$0xff] }
 0x2d0   :  { %9727 = vmatpush3.msra.mxu0 %v5169_v33  ;;  %9762 = vmatpush3.msra.mxu1 %v5151_v34  ;;  %v12710_v33 = vld [vmem:[#allocation7 + $0x130] sm:$0xff] }
 0x2d1   :  { %9728 = vmatprep.subr.mxu0 %v11041_v2  ;;  %9763 = vmatprep.subr.mxu1 %v11041_v2  ;;  %v12712_v34 = vld [vmem:[#allocation7 + $0x1b0] sm:$0xff] }
 0x2d2   :  { %9729 = vmatpush3.msra.mxu0 %v5168_v40  ;;  %9764 = vmatpush3.msra.mxu1 %v5150_v41  ;;  %v12718_v40 = vld [vmem:[#allocation7 + $0x128] sm:$0xff] }
 0x2d3   :  { %9730 = vmatprep.subr.mxu0 %v11041_v2  ;;  %9765 = vmatprep.subr.mxu1 %v11041_v2  ;;  %v12720_v41 = vld [vmem:[#allocation7 + $0x1a8] sm:$0xff] }
 0x2d4   :  { %9731 = vmatpush3.msra.mxu0 %v5167_v45  ;;  %9766 = vmatpush3.msra.mxu1 %v5149_v31  ;;  %v12726_v45 = vld [vmem:[#allocation7 + $0x120] sm:$0xff] }
 0x2d5   :  { %9732 = vmatprep.subr.mxu0 %v11041_v2  ;;  %9767 = vmatprep.subr.mxu1 %v11041_v2  ;;  %v12728_v31 = vld [vmem:[#allocation7 + $0x1a0] sm:$0xff] }
 0x2d6   :  { %9733 = vmatpush3.msra.mxu0 %v5166_v49  ;;  %9768 = vmatpush3.msra.mxu1 %v5148_v38 }
 0x2d7   :  { %9734 = vmatprep.subr.mxu0 %v11041_v2  ;;  %9769 = vmatprep.subr.mxu1 %v11041_v2 }
 0x2d8   :  { %9735 = vmatpush3.msra.mxu0 %v5165_v56  ;;  %9770 = vmatpush3.msra.mxu1 %v5147_v60  ;;  %v12734_v56 = vld [vmem:[#allocation7 + $0x118] sm:$0xff] }
 0x2d9   :  { %9736 = vmatprep.subr.mxu0 %v11041_v2  ;;  %9771 = vmatprep.subr.mxu1 %v11041_v2  ;;  %v12736_v60 = vld [vmem:[#allocation7 + $0x198] sm:$0xff] }
 0x2da   :  { %9737 = vmatpush3.msra.mxu0 %v5164_v62  ;;  %9772 = vmatpush3.msra.mxu1 %v5146_v63 }
 0x2db   :  { %9738 = vmatprep.subr.mxu0 %v11041_v2  ;;  %9773 = vmatprep.subr.mxu1 %v11041_v2 }
 0x2dc   :  { %9739 = vmatpush3.msra.mxu0 %v5163_v7  ;;  %9774 = vmatpush3.msra.mxu1 %v5145_v11  ;;  %v12744_v7 = vld [vmem:[#allocation7 + $0x110] sm:$0xff] }
 0x2dd   :  { %9740 = vmatprep.subr.mxu0 %v11041_v2  ;;  %9775 = vmatprep.subr.mxu1 %v11041_v2  ;;  %v12746_v11 = vld [vmem:[#allocation7 + $0x190] sm:$0xff] }
 0x2de   :  { %9741 = vmatpush3.msra.mxu0 %v5162_v12  ;;  %9776 = vmatpush3.msra.mxu1 %v5144_v16  ;;  %v4311_v22 = vpop.f32.mrf.mxu0  ;;  %v4399_v27 = vpop.f32.mrf.mxu1  ;;  %v12754_v16 = vld [vmem:[#allocation7 + $0x108] sm:$0xff] }
 0x2df   :  { %9742 = vmatprep.subr.mxu0 %v11041_v2  ;;  %9777 = vmatprep.subr.mxu1 %v11041_v2  ;;  %v4315_v36 = vadd.f32 %v4311_v22, %v12610_v58  ;;  %v5327_v58 = vld [vmem:[#allocation7 + $0x160] sm:$0xff] }
 0x2e0   :  { %9743 = vmatpush3.msra.mxu0 %v5161_v59  ;;  %9778 = vmatpush3.msra.mxu1 %v5143_v23  ;;  %v9334_v37 = vpop.f32.mrf.mxu0  ;;  %v9369_v43 = vpop.f32.mrf.mxu1  ;;  %v12766_v22 = vld [vmem:[#allocation7 + $0x100] sm:$0xff]  ;;  %v12933_v23 = vld [vmem:[#allocation7 + $0x3f0] sm:$0xff] }
 0x2e1   :  { %9744 = vmatprep.subr.mxu0 %v11041_v2  ;;  %9779 = vmatprep.subr.mxu1 %v11041_v2  ;;  %v4403_v52 = vadd.f32 %v4399_v27, %v4315_v36  ;;  %v12770_v27 = vld [vmem:[#allocation7 + $0x180] sm:$0xff]  ;;  %v12784_v36 = vld [vmem:[#allocation7 + $0x278] sm:$0xff]  ;;  %v12792_v37 = vld [vmem:[#allocation7 + $0x270] sm:$0xff]  ;;  %13888 = vst [vmem:[#allocation27_spill] sm:$0xff] %v12933_v23 }
 0x2e2   :  { %9745 = vmatpush3.msra.mxu0 %v5160_v29  ;;  %9780 = vmatpush3.msra.mxu1 %v5142_v35  ;;  %v12777_v29 = vld [vmem:[#allocation2 + $0x12] ss:$2 sm:$0x1f]  ;;  %v12782_v35 = vld [vmem:[#allocation2 + $0x13] ss:$2 sm:$0x1f] }
 0x2e3   :  { %9746 = vmatprep.subr.mxu0 %v11041_v2  ;;  %9781 = vmatprep.subr.mxu1 %v11041_v2  ;;  %v4404_v44 = vadd.f32 %v12646_v55, %v4403_v52  ;;  %v12794_v43 = vld [vmem:[#allocation7 + $0x370] sm:$0xff]  ;;  %v12808_v52 = vld [vmem:[#allocation7 + $0x260] sm:$0xff] }
 0x2e4   :  { %9747 = vmatpush3.msra.mxu0 %v5159_v50  ;;  %9782 = vmatpush3.msra.mxu1 %v5141_v48  ;;  %v12800_v50 = vld [vmem:[#allocation7 + $0x268] sm:$0xff] }
 0x2e5   :  { %9748 = vmatprep.subr.mxu0 %v11041_v2  ;;  %9783 = vmatprep.subr.mxu1 %v11041_v2  ;;  %v4405_v8 = vsub.f32 0.0, %v4404_v44  ;;  %v12802_v48 = vld [vmem:[#allocation7 + $0x368] sm:$0xff]  ;;  %v12818_v44 = vld [vmem:[#allocation7 + $0x358] sm:$0xff] }
 0x2e6   :  { %9749 = vmatpush3.msra.mxu0 %v5158_v57  ;;  %9784 = vmatpush3.msra.mxu1 %v5140_v39  ;;  %v12810_v57 = vld [vmem:[#allocation7 + $0x360] sm:$0xff]  ;;  %v12816_v39 = vld [vmem:[#allocation7 + $0x258] sm:$0xff] }
 0x2e7   :  { %9750 = vmatprep.subr.mxu0 %v11041_v2  ;;  %9785 = vmatprep.subr.mxu1 %v11041_v2  ;;  %v4406_v13 = vmul.f32 1.442695, %v4405_v8  ;;  %v12826_v8 = vld [vmem:[#allocation7 + $0x350] sm:$0xff] }
 0x2e8   :  { %9751 = vmatpush3.msra.mxu0 %v5157_v0  ;;  %9752 = vmatprep.mubr.msk.f32.mxu0 %vm11042_vm1, %v11041_v2  ;;  %v12824_v0 = vld [vmem:[#allocation7 + $0x250] sm:$0xff] }
 0x2e9   :  { %9786 = vmatpush3.msra.mxu1 %v5139_v9  ;;  %9787 = vmatprep.mubr.msk.f32.mxu1 %vm11042_vm1, %v11041_v2  ;;  %10741 = vpow2.f32 %v4406_v13  ;;  %v12832_v9 = vld [vmem:[#allocation7 + $0x248] sm:$0xff] }
 0x2ea   :  { %9753 = vmatmul.mubr.f32.vlgmr.msra.gmra.mxu0 %v12674_v14  ;;  %9788 = vmatmul.mubr.f32.vlgmr.msra.gmra.mxu1 %v12678_v18  ;;  %10743 = vrcp.f32 %v3963_v53  ;;  %v12834_v13 = vld [vmem:[#allocation7 + $0x348] sm:$0xff]  ;;  %v12882_v53 = vld [vmem:[#allocation7 + $0x318] sm:$0xff] }
 0x2eb   :  { %9790 = vmatprep.subr.mxu0 %v11041_v2  ;;  %9825 = vmatprep.subr.mxu1 %v11041_v2  ;;  %13878 = vst [vmem:[#allocation18_spill] sm:$0xff] %v12882_v53 }
 0x2ec   :  { %9791 = vmatpush3.msra.mxu0 %v5330_v20  ;;  %9826 = vmatpush3.msra.mxu1 %v5419_v24  ;;  %v12840_v20 = vld [vmem:[#allocation7 + $0x240] sm:$0xff] }
 0x2ed   :  { %9792 = vmatprep.subr.mxu0 %v11041_v2  ;;  %9827 = vmatprep.subr.mxu1 %v11041_v2  ;;  %v12842_v24 = vld [vmem:[#allocation7 + $0x340] sm:$0xff] }
 0x2ee   :  { %9793 = vmatpush3.msra.mxu0 %v5329_v26  ;;  %9828 = vmatpush3.msra.mxu1 %v5418_v42  ;;  %v12848_v26 = vld [vmem:[#allocation7 + $0x238] sm:$0xff] }
 0x2ef   :  { %9794 = vmatprep.subr.mxu0 %v11041_v2  ;;  %9829 = vmatprep.subr.mxu1 %v11041_v2  ;;  %v12850_v42 = vld [vmem:[#allocation7 + $0x338] sm:$0xff] }
 0x2f0   :  { %9795 = vmatpush3.msra.mxu0 %v5328_v46  ;;  %9830 = vmatpush3.msra.mxu1 %v5417_v54  ;;  %v12856_v46 = vld [vmem:[#allocation7 + $0x230] sm:$0xff] }
 0x2f1   :  { %9796 = vmatprep.subr.mxu0 %v11041_v2  ;;  %9831 = vmatprep.subr.mxu1 %v11041_v2  ;;  %v12858_v54 = vld [vmem:[#allocation7 + $0x330] sm:$0xff] }
 0x2f2   :  { %9797 = vmatpush3.msra.mxu0 %v5327_v58  ;;  %9832 = vmatpush3.msra.mxu1 %v5416_v1  ;;  %v12864_v58 = vld [vmem:[#allocation7 + $0x228] sm:$0xff] }
 0x2f3   :  { %9798 = vmatprep.subr.mxu0 %v11041_v2  ;;  %9833 = vmatprep.subr.mxu1 %v11041_v2  ;;  %v12866_v1 = vld [vmem:[#allocation7 + $0x328] sm:$0xff] }
 0x2f4   :  { %9799 = vmatpush3.msra.mxu0 %v5326_v10  ;;  %9834 = vmatpush3.msra.mxu1 %v5415_v17  ;;  %v12874_v10 = vld [vmem:[#allocation7 + $0x320] sm:$0xff] }
 0x2f5   :  { %9800 = vmatprep.subr.mxu0 %v11041_v2  ;;  %9835 = vmatprep.subr.mxu1 %v11041_v2 }
 0x2f6   :  { %v10742_v47 = vpop.eup %10741  ;;  %9801 = vmatpush3.msra.mxu0 %v5325_v61  ;;  %9836 = vmatpush3.msra.mxu1 %v5414_v15  ;;  %v12880_v15 = vld [vmem:[#allocation7 + $0x218] sm:$0xff] }
 0x2f7   :  { %v4408_v51 = vadd.f32 1.0, %v10742_v47  ;;  %9802 = vmatprep.subr.mxu0 %v11041_v2  ;;  %9837 = vmatprep.subr.mxu1 %v11041_v2  ;;  %v12750_v12 = vpop.eup %10743 }
 0x2f8   :  { %9803 = vmatpush3.msra.mxu0 %v5324_v21  ;;  %9838 = vmatpush3.msra.mxu1 %v5413_v6 }
 0x2f9   :  { %10745 = vrcp.f32 %v4408_v51  ;;  %9804 = vmatprep.subr.mxu0 %v11041_v2  ;;  %9839 = vmatprep.subr.mxu1 %v11041_v2  ;;  %v12889_v51 = vld [vmem:[#allocation7 + $0x210] sm:$0xff] }
 0x2fa   :  { %9805 = vmatpush3.msra.mxu0 %v12696_v25  ;;  %9840 = vmatpush3.msra.mxu1 %v12698_v28  ;;  %13879 = vst [vmem:[#allocation19_spill] sm:$0xff] %v12889_v51 }
 0x2fb   :  { %9806 = vmatprep.subr.mxu0 %v11041_v2  ;;  %9841 = vmatprep.subr.mxu1 %v11041_v2 }
 0x2fc   :  { %9807 = vmatpush3.msra.mxu0 %v12702_v5  ;;  %9842 = vmatpush3.msra.mxu1 %v12704_v32 }
 0x2fd   :  { %9808 = vmatprep.subr.mxu0 %v11041_v2  ;;  %9843 = vmatprep.subr.mxu1 %v11041_v2 }
 0x2fe   :  { %9809 = vmatpush3.msra.mxu0 %v12710_v33  ;;  %9844 = vmatpush3.msra.mxu1 %v12712_v34 }
 0x2ff   :  { %9810 = vmatprep.subr.mxu0 %v11041_v2  ;;  %9845 = vmatprep.subr.mxu1 %v11041_v2 }
 0x300   :  { %9811 = vmatpush3.msra.mxu0 %v12718_v40  ;;  %9846 = vmatpush3.msra.mxu1 %v12720_v41  ;;  %v4478_v49 = vpop.f32.mrf.mxu0  ;;  %v4548_v38 = vpop.f32.mrf.mxu1 }
 0x301   :  { %9812 = vmatprep.subr.mxu0 %v11041_v2  ;;  %9847 = vmatprep.subr.mxu1 %v11041_v2  ;;  %v12738_v62 = vadd.f32 %v4548_v38, %v4478_v49  ;;  %v12891_v49 = vld [vmem:[#allocation7 + $0x310] sm:$0xff] }
 0x302   :  { %9813 = vmatpush3.msra.mxu0 %v12726_v45  ;;  %9848 = vmatpush3.msra.mxu1 %v12728_v31  ;;  %v9404_v63 = vpop.f32.mrf.mxu0  ;;  %v9439_v4 = vpop.f32.mrf.mxu1  ;;  %13880 = vst [vmem:[#allocation20_spill] sm:$0xff] %v12891_v49 }
 0x303   :  { %9814 = vmatprep.subr.mxu0 %v11041_v2  ;;  %9849 = vmatprep.subr.mxu1 %v11041_v2  ;;  %v12901_v63 = vld [vmem:[#allocation7 + $0x308] sm:$0xff]  ;;  %v12907_v4 = vld [vmem:[#allocation7 + $0x200] sm:$0xff] }
 0x304   :  { %9815 = vmatpush3.msra.mxu0 %v12734_v56  ;;  %9850 = vmatpush3.msra.mxu1 %v12736_v60  ;;  %13882 = vst [vmem:[#allocation54_spill] sm:$0xff] %v12901_v63  ;;  %13883 = vst [vmem:[#allocation22_spill] sm:$0xff] %v12907_v4 }
 0x305   :  { %9816 = vmatprep.subr.mxu0 %v11041_v2  ;;  %9851 = vmatprep.subr.mxu1 %v11041_v2 }
 0x306   :  { %v12758_v59 = vpop.eup %10745  ;;  %9817 = vmatpush3.msra.mxu0 %v12744_v7  ;;  %9852 = vmatpush3.msra.mxu1 %v12746_v11 }
 0x307   :  { %9818 = vmatprep.subr.mxu0 %v11041_v2  ;;  %9853 = vmatprep.subr.mxu1 %v11041_v2 }
 0x308   :  { %9819 = vmatpush3.msra.mxu0 %v12754_v16  ;;  %9854 = vmatpush3.msra.mxu1 %v12756_v19 }
 0x309   :  { %9820 = vmatprep.subr.mxu0 %v11041_v2  ;;  %9855 = vmatprep.subr.mxu1 %v11041_v2 }
 0x30a   :  { %9821 = vmatpush3.msra.mxu0 %v12766_v22  ;;  %9822 = vmatprep.mubr.msk.f32.mxu0 %vm11042_vm1, %v11041_v2 }
 0x30b   :  { %9856 = vmatpush3.msra.mxu1 %v12770_v27  ;;  %9857 = vmatprep.mubr.msk.f32.mxu1 %vm11042_vm1, %v11041_v2 }
 0x30c   :  { %9823 = vmatmul.mubr.f32.vlgmr.msra.gmra.mxu0 %v12777_v29  ;;  %9858 = vmatmul.mubr.f32.vlgmr.msra.gmra.mxu1 %v12782_v35 }
 0x30d   :  { %9860 = vmatprep.subr.mxu0 %v11041_v2  ;;  %9895 = vmatprep.subr.mxu1 %v11041_v2 }
 0x30e   :  { %9861 = vmatpush3.msra.mxu0 %v12784_v36  ;;  %9896 = vmatpush3.msra.mxu1 %v12786_v30 }
 0x30f   :  { %9862 = vmatprep.subr.mxu0 %v11041_v2  ;;  %9897 = vmatprep.subr.mxu1 %v11041_v2 }
 0x310   :  { %9863 = vmatpush3.msra.mxu0 %v12792_v37  ;;  %9898 = vmatpush3.msra.mxu1 %v12794_v43 }
 0x311   :  { %9864 = vmatprep.subr.mxu0 %v11041_v2  ;;  %9899 = vmatprep.subr.mxu1 %v11041_v2 }
 0x312   :  { %9865 = vmatpush3.msra.mxu0 %v12800_v50  ;;  %9900 = vmatpush3.msra.mxu1 %v12802_v48 }
 0x313   :  { %9866 = vmatprep.subr.mxu0 %v11041_v2  ;;  %9901 = vmatprep.subr.mxu1 %v11041_v2 }
 0x314   :  { %9867 = vmatpush3.msra.mxu0 %v12808_v52  ;;  %9902 = vmatpush3.msra.mxu1 %v12810_v57 }
 0x315   :  { %9868 = vmatprep.subr.mxu0 %v11041_v2  ;;  %9903 = vmatprep.subr.mxu1 %v11041_v2 }
 0x316   :  { %9869 = vmatpush3.msra.mxu0 %v12816_v39  ;;  %9904 = vmatpush3.msra.mxu1 %v12818_v44 }
 0x317   :  { %9870 = vmatprep.subr.mxu0 %v11041_v2  ;;  %9905 = vmatprep.subr.mxu1 %v11041_v2 }
 0x318   :  { %9871 = vmatpush3.msra.mxu0 %v12824_v0  ;;  %9906 = vmatpush3.msra.mxu1 %v12826_v8 }
 0x319   :  { %9872 = vmatprep.subr.mxu0 %v11041_v2  ;;  %9907 = vmatprep.subr.mxu1 %v11041_v2 }
 0x31a   :  { %9873 = vmatpush3.msra.mxu0 %v12832_v9  ;;  %9908 = vmatpush3.msra.mxu1 %v12834_v13 }
 0x31b   :  { %9874 = vmatprep.subr.mxu0 %v11041_v2  ;;  %9909 = vmatprep.subr.mxu1 %v11041_v2 }
 0x31c   :  { %9875 = vmatpush3.msra.mxu0 %v12840_v20  ;;  %9910 = vmatpush3.msra.mxu1 %v12842_v24 }
 0x31d   :  { %9876 = vmatprep.subr.mxu0 %v11041_v2  ;;  %9911 = vmatprep.subr.mxu1 %v11041_v2 }
 0x31e   :  { %9877 = vmatpush3.msra.mxu0 %v12848_v26  ;;  %9912 = vmatpush3.msra.mxu1 %v12850_v42 }
 0x31f   :  { %9878 = vmatprep.subr.mxu0 %v11041_v2  ;;  %9913 = vmatprep.subr.mxu1 %v11041_v2 }
 0x320   :  { %9879 = vmatpush3.msra.mxu0 %v12856_v46  ;;  %9914 = vmatpush3.msra.mxu1 %v12858_v54 }
 0x321   :  { %9880 = vmatprep.subr.mxu0 %v11041_v2  ;;  %9915 = vmatprep.subr.mxu1 %v11041_v2 }
 0x322   :  { %9881 = vmatpush3.msra.mxu0 %v12864_v58  ;;  %9916 = vmatpush3.msra.mxu1 %v12866_v1  ;;  %v4618_v17 = vpop.f32.mrf.mxu0  ;;  %v4689_v61 = vpop.f32.mrf.mxu1 }
 0x323   :  { %9882 = vmatprep.subr.mxu0 %v11041_v2  ;;  %9917 = vmatprep.subr.mxu1 %v11041_v2  ;;  %v4622_v21 = vadd.f32 %v4618_v17, %v12738_v62  ;;  %v12899_v62 = vld [vmem:[#allocation7 + $0x208] sm:$0xff]  ;;  %v12911_v17 = vld [vmem:[#allocation7 + $0x300] sm:$0xff] }
 0x324   :  { %9883 = vmatpush3.msra.mxu0 %v12872_v3  ;;  %9918 = vmatpush3.msra.mxu1 %v12874_v10  ;;  %v9474_v6 = vpop.f32.mrf.mxu0  ;;  %v9509_v47 = vpop.f32.mrf.mxu1  ;;  %13881 = vst [vmem:[#allocation21_spill] sm:$0xff] %v12899_v62  ;;  %13884 = vst [vmem:[#allocation23_spill] sm:$0xff] %v12911_v17 }
 0x325   :  { %9884 = vmatprep.subr.mxu0 %v11041_v2  ;;  %9919 = vmatprep.subr.mxu1 %v11041_v2  ;;  %v12893_v38 = vadd.f32 %v4689_v61, %v4622_v21  ;;  %v12921_v61 = vld [vmem:[#allocation2 + $0x14] ss:$2 sm:$0x1f]  ;;  %v12923_v21 = vld [vmem:[#allocation7 + $0x2f8] sm:$0xff]  ;;  %v12931_v47 = vld [vmem:[#allocation7 + $0x2f0] sm:$0xff] }
 0x326   :  { %9885 = vmatpush3.msra.mxu0 %v12880_v15  ;;  %9920 = vmatpush3.msra.mxu1 %v12882_v53  ;;  %13885 = vst [vmem:[#allocation24_spill] sm:$0xff] %v12923_v21  ;;  %v12925_v6 = vld [vmem:[#allocation7 + $0x3f8] sm:$0xff]  ;;  %13887 = vst [vmem:[#allocation26_spill] sm:$0xff] %v12931_v47 }
 0x327   :  { %9886 = vmatprep.subr.mxu0 %v11041_v2  ;;  %9921 = vmatprep.subr.mxu1 %v11041_v2  ;;  %13886 = vst [vmem:[#allocation25_spill] sm:$0xff] %v12925_v6 }
 0x328   :  { %9887 = vmatpush3.msra.mxu0 %v12889_v51  ;;  %9922 = vmatpush3.msra.mxu1 %v12891_v49  ;;  %v13032_v51 = vld [vmem:[#allocation7 + $0x390] sm:$0xff] }
 0x329   :  { %9888 = vmatprep.subr.mxu0 %v11041_v2  ;;  %9923 = vmatprep.subr.mxu1 %v11041_v2  ;;  %13910 = vst [vmem:[#allocation49_spill] sm:$0xff] %v13032_v51 }
 0x32a   :  { %9889 = vmatpush3.msra.mxu0 %v12899_v62  ;;  %9924 = vmatpush3.msra.mxu1 %v12901_v63 }
 0x32b   :  { %9890 = vmatprep.subr.mxu0 %v11041_v2  ;;  %9925 = vmatprep.subr.mxu1 %v11041_v2 }
 0x32c   :  { %9891 = vmatpush3.msra.mxu0 %v12907_v4  ;;  %9892 = vmatprep.mubr.msk.f32.mxu0 %vm11042_vm1, %v11041_v2  ;;  %v12941_v4 = vld [vmem:[#allocation7 + $0x3e8] sm:$0xff] }
 0x32d   :  { %9926 = vmatpush3.msra.mxu1 %v12911_v17  ;;  %9927 = vmatprep.mubr.msk.f32.mxu1 %vm11042_vm1, %v11041_v2  ;;  %v12939_v17 = vld [vmem:[#allocation7 + $0x2e8] sm:$0xff]  ;;  %13890 = vst [vmem:[#allocation29_spill] sm:$0xff] %v12941_v4 }
 0x32e   :  { %9893 = vmatmul.mubr.f32.vlgmr.msra.gmra.mxu0 %v12921_v61  ;;  %9928 = vmatmul.mubr.f32.vlgmr.msra.gmra.mxu1 %v12674_v14  ;;  %13889 = vst [vmem:[#allocation28_spill] sm:$0xff] %v12939_v17  ;;  %v12947_v14 = vld [vmem:[#allocation7 + $0x2e0] sm:$0xff] }
 0x32f   :  { %9930 = vmatprep.subr.mxu0 %v11041_v2  ;;  %9965 = vmatprep.subr.mxu1 %v11041_v2  ;;  %13891 = vst [vmem:[#allocation30_spill] sm:$0xff] %v12947_v14 }
 0x330   :  { %9931 = vmatpush3.msra.mxu0 %v12923_v21  ;;  %9966 = vmatpush3.msra.mxu1 %v12925_v6  ;;  %v12949_v21 = vld [vmem:[#allocation7 + $0x3e0] sm:$0xff]  ;;  %v12955_v6 = vld [vmem:[#allocation7 + $0x2d8] sm:$0xff] }
 0x331   :  { %9932 = vmatprep.subr.mxu0 %v11041_v2  ;;  %9967 = vmatprep.subr.mxu1 %v11041_v2  ;;  %13892 = vst [vmem:[#allocation31_spill] sm:$0xff] %v12949_v21  ;;  %13893 = vst [vmem:[#allocation32_spill] sm:$0xff] %v12955_v6 }
 0x332   :  { %9933 = vmatpush3.msra.mxu0 %v12931_v47  ;;  %9968 = vmatpush3.msra.mxu1 %v12933_v23  ;;  %v12957_v47 = vld [vmem:[#allocation7 + $0x3d8] sm:$0xff]  ;;  %v12963_v23 = vld [vmem:[#allocation7 + $0x2d0] sm:$0xff] }
 0x333   :  { %9934 = vmatprep.subr.mxu0 %v11041_v2  ;;  %9969 = vmatprep.subr.mxu1 %v11041_v2  ;;  %13894 = vst [vmem:[#allocation33_spill] sm:$0xff] %v12957_v47  ;;  %13895 = vst [vmem:[#allocation34_spill] sm:$0xff] %v12963_v23 }
 0x334   :  { %9935 = vmatpush3.msra.mxu0 %v12939_v17  ;;  %9970 = vmatpush3.msra.mxu1 %v12941_v4  ;;  %v12965_v17 = vld [vmem:[#allocation7 + $0x3d0] sm:$0xff]  ;;  %v12971_v4 = vld [vmem:[#allocation7 + $0x2c8] sm:$0xff] }
 0x335   :  { %9936 = vmatprep.subr.mxu0 %v11041_v2  ;;  %9971 = vmatprep.subr.mxu1 %v11041_v2  ;;  %13896 = vst [vmem:[#allocation35_spill] sm:$0xff] %v12965_v17  ;;  %13897 = vst [vmem:[#allocation36_spill] sm:$0xff] %v12971_v4 }
 0x336   :  { %9937 = vmatpush3.msra.mxu0 %v12947_v14  ;;  %9972 = vmatpush3.msra.mxu1 %v12949_v21  ;;  %v12973_v14 = vld [vmem:[#allocation7 + $0x3c8] sm:$0xff]  ;;  %v12979_v21 = vld [vmem:[#allocation7 + $0x2c0] sm:$0xff] }
 0x337   :  { %9938 = vmatprep.subr.mxu0 %v11041_v2  ;;  %9973 = vmatprep.subr.mxu1 %v11041_v2  ;;  %13898 = vst [vmem:[#allocation37_spill] sm:$0xff] %v12973_v14  ;;  %13899 = vst [vmem:[#allocation38_spill] sm:$0xff] %v12979_v21 }
 0x338   :  { %9939 = vmatpush3.msra.mxu0 %v12955_v6  ;;  %9974 = vmatpush3.msra.mxu1 %v12957_v47  ;;  %v12981_v6 = vld [vmem:[#allocation7 + $0x3c0] sm:$0xff]  ;;  %v12987_v47 = vld [vmem:[#allocation7 + $0x2b8] sm:$0xff] }
 0x339   :  { %9940 = vmatprep.subr.mxu0 %v11041_v2  ;;  %9975 = vmatprep.subr.mxu1 %v11041_v2  ;;  %13900 = vst [vmem:[#allocation39_spill] sm:$0xff] %v12981_v6  ;;  %13901 = vst [vmem:[#allocation40_spill] sm:$0xff] %v12987_v47 }
 0x33a   :  { %9941 = vmatpush3.msra.mxu0 %v12963_v23  ;;  %9976 = vmatpush3.msra.mxu1 %v12965_v17  ;;  %v12989_v23 = vld [vmem:[#allocation7 + $0x3b8] sm:$0xff]  ;;  %v12995_v17 = vld [vmem:[#allocation7 + $0x2b0] sm:$0xff] }
 0x33b   :  { %9942 = vmatprep.subr.mxu0 %v11041_v2  ;;  %9977 = vmatprep.subr.mxu1 %v11041_v2  ;;  %13902 = vst [vmem:[#allocation41_spill] sm:$0xff] %v12989_v23  ;;  %13903 = vst [vmem:[#allocation42_spill] sm:$0xff] %v12995_v17 }
 0x33c   :  { %9943 = vmatpush3.msra.mxu0 %v12971_v4  ;;  %9978 = vmatpush3.msra.mxu1 %v12973_v14  ;;  %v12997_v4 = vld [vmem:[#allocation7 + $0x3b0] sm:$0xff]  ;;  %v13003_v14 = vld [vmem:[#allocation7 + $0x2a8] sm:$0xff] }
 0x33d   :  { %9944 = vmatprep.subr.mxu0 %v11041_v2  ;;  %9979 = vmatprep.subr.mxu1 %v11041_v2  ;;  %13904 = vst [vmem:[#allocation43_spill] sm:$0xff] %v12997_v4  ;;  %13905 = vst [vmem:[#allocation44_spill] sm:$0xff] %v13003_v14 }
 0x33e   :  { %9945 = vmatpush3.msra.mxu0 %v12979_v21  ;;  %9980 = vmatpush3.msra.mxu1 %v12981_v6  ;;  %v13005_v21 = vld [vmem:[#allocation7 + $0x3a8] sm:$0xff]  ;;  %v13011_v6 = vld [vmem:[#allocation7 + $0x2a0] sm:$0xff] }
 0x33f   :  { %9946 = vmatprep.subr.mxu0 %v11041_v2  ;;  %9981 = vmatprep.subr.mxu1 %v11041_v2  ;;  %13906 = vst [vmem:[#allocation45_spill] sm:$0xff] %v13005_v21 }
 0x340   :  { %9947 = vmatpush3.msra.mxu0 %v12987_v47  ;;  %9982 = vmatpush3.msra.mxu1 %v12989_v23  ;;  %v13013_v47 = vld [vmem:[#allocation7 + $0x3a0] sm:$0xff] }
 0x341   :  { %9948 = vmatprep.subr.mxu0 %v11041_v2  ;;  %9983 = vmatprep.subr.mxu1 %v11041_v2 }
 0x342   :  { %9949 = vmatpush3.msra.mxu0 %v12995_v17  ;;  %9984 = vmatpush3.msra.mxu1 %v12997_v4  ;;  %v13021_v4 = vld [vmem:[#allocation7 + $0x298] sm:$0xff] }
 0x343   :  { %9950 = vmatprep.subr.mxu0 %v11041_v2  ;;  %9985 = vmatprep.subr.mxu1 %v11041_v2  ;;  %13907 = vst [vmem:[#allocation46_spill] sm:$0xff] %v13021_v4  ;;  %v13023_v17 = vld [vmem:[#allocation7 + $0x398] sm:$0xff] }
 0x344   :  { %9951 = vmatpush3.msra.mxu0 %v13003_v14  ;;  %9986 = vmatpush3.msra.mxu1 %v13005_v21  ;;  %v4762_v23 = vpop.f32.mrf.mxu0  ;;  %v13017_v63 = vpop.f32.mrf.mxu1  ;;  %13908 = vst [vmem:[#allocation47_spill] sm:$0xff] %v13023_v17  ;;  %v13030_v21 = vld [vmem:[#allocation7 + $0x290] sm:$0xff] }
 0x345   :  { %9952 = vmatprep.subr.mxu0 %v11041_v2  ;;  %9987 = vmatprep.subr.mxu1 %v11041_v2  ;;  %v4766_v62 = vadd.f32 %v4762_v23, %v12893_v38  ;;  %13909 = vst [vmem:[#allocation48_spill] sm:$0xff] %v13030_v21  ;;  %v13039_v23 = vld [vmem:[#allocation7 + $0x288] sm:$0xff] }
 0x346   :  { %9953 = vmatpush3.msra.mxu0 %v13011_v6  ;;  %9988 = vmatpush3.msra.mxu1 %v13013_v47  ;;  %v9544_v14 = vpop.f32.mrf.mxu0  ;;  %v9579_v49 = vpop.f32.mrf.mxu1  ;;  %13911 = vst [vmem:[#allocation50_spill] sm:$0xff] %v13039_v23 }
 0x347   :  { %9954 = vmatprep.subr.mxu0 %v11041_v2  ;;  %9989 = vmatprep.subr.mxu1 %v11041_v2  ;;  %v4767_v53 = vadd.f32 %v12646_v55, %v4766_v62  ;;  %v13041_v49 = vld [vmem:[#allocation7 + $0x388] sm:$0xff]  ;;  %v13047_v55 = vld [vmem:[#allocation7 + $0x280] sm:$0xff] }
 0x348   :  { %9955 = vmatpush3.msra.mxu0 %v13021_v4  ;;  %9990 = vmatpush3.msra.mxu1 %v13023_v17  ;;  %13912 = vst [vmem:[#allocation51_spill] sm:$0xff] %v13041_v49  ;;  %13913 = vst [vmem:[#allocation52_spill] sm:$0xff] %v13047_v55  ;;  %v13051_v14 = vld [vmem:[#allocation7 + $0x380] sm:$0xff] }
 0x349   :  { %9956 = vmatprep.subr.mxu0 %v11041_v2  ;;  %9991 = vmatprep.subr.mxu1 %v11041_v2  ;;  %v4768_v38 = vsub.f32 0.0, %v4767_v53  ;;  %13914 = vst [vmem:[#allocation53_spill] sm:$0xff] %v13051_v14  ;;  %v13061_v53 = vld [vmem:[#allocation7 + $0x478] sm:$0xff] }
 0x34a   :  { %9957 = vmatpush3.msra.mxu0 %v13030_v21  ;;  %9992 = vmatpush3.msra.mxu1 %v13032_v51  ;;  %13915 = vst [vmem:[#allocation55_spill] sm:$0xff] %v13061_v53  ;;  %v13171_v21 = vld [vmem:[#allocation7 + $0x490] sm:$0xff] }
 0x34b   :  { %9958 = vmatprep.subr.mxu0 %v11041_v2  ;;  %9993 = vmatprep.subr.mxu1 %v11041_v2  ;;  %v4769_v62 = vmul.f32 1.442695, %v4768_v38  ;;  %v13063_v38 = vld [vmem:[#allocation7 + $0x4f8] sm:$0xff]  ;;  %13939 = vst [vmem:[#allocation79_spill] sm:$0xff] %v13171_v21 }
 0x34c   :  { %9959 = vmatpush3.msra.mxu0 %v13039_v23  ;;  %9994 = vmatpush3.msra.mxu1 %v13041_v49  ;;  %13916 = vst [vmem:[#allocation56_spill] sm:$0xff] %v13063_v38  ;;  %v13085_v49 = vld [vmem:[#allocation7 + $0x460] sm:$0xff] }
 0x34d   :  { %9960 = vmatprep.subr.mxu0 %v11041_v2  ;;  %9995 = vmatprep.subr.mxu1 %v11041_v2  ;;  %10747 = vpow2.f32 %v4769_v62  ;;  %v13069_v62 = vld [vmem:[#allocation7 + $0x470] sm:$0xff]  ;;  %13921 = vst [vmem:[#allocation61_spill] sm:$0xff] %v13085_v49 }
 0x34e   :  { %9961 = vmatpush3.msra.mxu0 %v13047_v55  ;;  %9962 = vmatprep.mubr.msk.f32.mxu0 %vm11042_vm1, %v11041_v2  ;;  %13917 = vst [vmem:[#allocation57_spill] sm:$0xff] %v13069_v62  ;;  %v13071_v55 = vld [vmem:[#allocation7 + $0x4f0] sm:$0xff] }
 0x34f   :  { %9996 = vmatpush3.msra.mxu1 %v13051_v14  ;;  %9997 = vmatprep.mubr.msk.f32.mxu1 %vm11042_vm1, %v11041_v2  ;;  %13918 = vst [vmem:[#allocation58_spill] sm:$0xff] %v13071_v55  ;;  %v13077_v14 = vld [vmem:[#allocation7 + $0x468] sm:$0xff] }
 0x350   :  { %9963 = vmatmul.mubr.f32.vlgmr.msra.gmra.mxu0 %v12678_v18  ;;  %9998 = vmatmul.mubr.f32.vlgmr.msra.gmra.mxu1 %v12777_v29  ;;  %13919 = vst [vmem:[#allocation59_spill] sm:$0xff] %v13077_v14  ;;  %v13079_v18 = vld [vmem:[#allocation7 + $0x4e8] sm:$0xff] }
 0x351   :  { %10000 = vmatprep.subr.mxu0 %v11041_v2  ;;  %10035 = vmatprep.subr.mxu1 %v11041_v2  ;;  %13920 = vst [vmem:[#allocation60_spill] sm:$0xff] %v13079_v18 }
 0x352   :  { %10001 = vmatpush3.msra.mxu0 %v13061_v53  ;;  %10036 = vmatpush3.msra.mxu1 %v13063_v38  ;;  %v13087_v53 = vld [vmem:[#allocation7 + $0x4e0] sm:$0xff]  ;;  %v13093_v38 = vld [vmem:[#allocation7 + $0x458] sm:$0xff] }
 0x353   :  { %10002 = vmatprep.subr.mxu0 %v11041_v2  ;;  %10037 = vmatprep.subr.mxu1 %v11041_v2  ;;  %13922 = vst [vmem:[#allocation62_spill] sm:$0xff] %v13087_v53  ;;  %13923 = vst [vmem:[#allocation63_spill] sm:$0xff] %v13093_v38 }
 0x354   :  { %10003 = vmatpush3.msra.mxu0 %v13069_v62  ;;  %10038 = vmatpush3.msra.mxu1 %v13071_v55  ;;  %v13095_v62 = vld [vmem:[#allocation7 + $0x4d8] sm:$0xff]  ;;  %v13101_v55 = vld [vmem:[#allocation7 + $0x450] sm:$0xff] }
 0x355   :  { %10004 = vmatprep.subr.mxu0 %v11041_v2  ;;  %10039 = vmatprep.subr.mxu1 %v11041_v2  ;;  %13924 = vst [vmem:[#allocation64_spill] sm:$0xff] %v13095_v62  ;;  %13925 = vst [vmem:[#allocation65_spill] sm:$0xff] %v13101_v55 }
 0x356   :  { %10005 = vmatpush3.msra.mxu0 %v13077_v14  ;;  %10040 = vmatpush3.msra.mxu1 %v13079_v18  ;;  %v13103_v14 = vld [vmem:[#allocation7 + $0x4d0] sm:$0xff] }
 0x357   :  { %10006 = vmatprep.subr.mxu0 %v11041_v2  ;;  %10041 = vmatprep.subr.mxu1 %v11041_v2  ;;  %13926 = vst [vmem:[#allocation66_spill] sm:$0xff] %v13103_v14 }
 0x358   :  { %10007 = vmatpush3.msra.mxu0 %v13085_v49  ;;  %10042 = vmatpush3.msra.mxu1 %v13087_v53  ;;  %v13109_v49 = vld [vmem:[#allocation7 + $0x448] sm:$0xff] }
 0x359   :  { %10008 = vmatprep.subr.mxu0 %v11041_v2  ;;  %10043 = vmatprep.subr.mxu1 %v11041_v2  ;;  %13927 = vst [vmem:[#allocation67_spill] sm:$0xff] %v13109_v49  ;;  %v13111_v53 = vld [vmem:[#allocation7 + $0x4c8] sm:$0xff] }
 0x35a   :  { %v10748_v18 = vpop.eup %10747  ;;  %10009 = vmatpush3.msra.mxu0 %v13093_v38  ;;  %10044 = vmatpush3.msra.mxu1 %v13095_v62  ;;  %13928 = vst [vmem:[#allocation68_spill] sm:$0xff] %v13111_v53  ;;  %v13117_v38 = vld [vmem:[#allocation7 + $0x440] sm:$0xff] }
 0x35b   :  { %v4771_v23 = vadd.f32 1.0, %v10748_v18  ;;  %10010 = vmatprep.subr.mxu0 %v11041_v2  ;;  %10045 = vmatprep.subr.mxu1 %v11041_v2  ;;  %13929 = vst [vmem:[#allocation69_spill] sm:$0xff] %v13117_v38  ;;  %v13119_v18 = vld [vmem:[#allocation7 + $0x4c0] sm:$0xff] }
 0x35c   :  { %10011 = vmatpush3.msra.mxu0 %v13101_v55  ;;  %10046 = vmatpush3.msra.mxu1 %v13103_v14  ;;  %13930 = vst [vmem:[#allocation70_spill] sm:$0xff] %v13119_v18  ;;  %v13125_v55 = vld [vmem:[#allocation7 + $0x438] sm:$0xff] }
 0x35d   :  { %10749 = vrcp.f32 %v4771_v23  ;;  %10012 = vmatprep.subr.mxu0 %v11041_v2  ;;  %10047 = vmatprep.subr.mxu1 %v11041_v2  ;;  %13931 = vst [vmem:[#allocation71_spill] sm:$0xff] %v13125_v55  ;;  %v13127_v14 = vld [vmem:[#allocation7 + $0x4b8] sm:$0xff]  ;;  %v13133_v23 = vld [vmem:[#allocation7 + $0x430] sm:$0xff] }
 0x35e   :  { %10013 = vmatpush3.msra.mxu0 %v13109_v49  ;;  %10048 = vmatpush3.msra.mxu1 %v13111_v53  ;;  %13932 = vst [vmem:[#allocation72_spill] sm:$0xff] %v13127_v14  ;;  %13933 = vst [vmem:[#allocation73_spill] sm:$0xff] %v13133_v23  ;;  %v13135_v49 = vld [vmem:[#allocation7 + $0x4b0] sm:$0xff]  ;;  %v13141_v53 = vld [vmem:[#allocation7 + $0x428] sm:$0xff] }
 0x35f   :  { %10014 = vmatprep.subr.mxu0 %v11041_v2  ;;  %10049 = vmatprep.subr.mxu1 %v11041_v2  ;;  %13934 = vst [vmem:[#allocation74_spill] sm:$0xff] %v13135_v49  ;;  %13935 = vst [vmem:[#allocation75_spill] sm:$0xff] %v13141_v53 }
 0x360   :  { %10015 = vmatpush3.msra.mxu0 %v13117_v38  ;;  %10050 = vmatpush3.msra.mxu1 %v13119_v18  ;;  %v13143_v38 = vld [vmem:[#allocation7 + $0x4a8] sm:$0xff]  ;;  %v13149_v18 = vld [vmem:[#allocation7 + $0x420] sm:$0xff] }
 0x361   :  { %10016 = vmatprep.subr.mxu0 %v11041_v2  ;;  %10051 = vmatprep.subr.mxu1 %v11041_v2  ;;  %13936 = vst [vmem:[#allocation76_spill] sm:$0xff] %v13143_v38  ;;  %13937 = vst [vmem:[#allocation77_spill] sm:$0xff] %v13149_v18 }
 0x362   :  { %10017 = vmatpush3.msra.mxu0 %v13125_v55  ;;  %10052 = vmatpush3.msra.mxu1 %v13127_v14  ;;  %v13151_v55 = vld [vmem:[#allocation7 + $0x4a0] sm:$0xff] }
 0x363   :  { %10018 = vmatprep.subr.mxu0 %v11041_v2  ;;  %10053 = vmatprep.subr.mxu1 %v11041_v2 }
 0x364   :  { %10019 = vmatpush3.msra.mxu0 %v13133_v23  ;;  %10054 = vmatpush3.msra.mxu1 %v13135_v49  ;;  %v13161_v49 = vld [vmem:[#allocation7 + $0x418] sm:$0xff] }
 0x365   :  { %10020 = vmatprep.subr.mxu0 %v11041_v2  ;;  %10055 = vmatprep.subr.mxu1 %v11041_v2  ;;  %v13163_v23 = vld [vmem:[#allocation7 + $0x498] sm:$0xff] }
 0x366   :  { %10021 = vmatpush3.msra.mxu0 %v13141_v53  ;;  %10056 = vmatpush3.msra.mxu1 %v13143_v38  ;;  %v13155_v14 = vpop.f32.mrf.mxu0  ;;  %v13157_v62 = vpop.f32.mrf.mxu1  ;;  %13938 = vst [vmem:[#allocation78_spill] sm:$0xff] %v13163_v23  ;;  %v13169_v38 = vld [vmem:[#allocation7 + $0x410] sm:$0xff] }
 0x367   :  { %10022 = vmatprep.subr.mxu0 %v11041_v2  ;;  %10057 = vmatprep.subr.mxu1 %v11041_v2 }
 0x368   :  { %10023 = vmatpush3.msra.mxu0 %v13149_v18  ;;  %10058 = vmatpush3.msra.mxu1 %v13151_v55  ;;  %v9614_v51 = vpop.f32.mrf.mxu0  ;;  %v9649_v53 = vpop.f32.mrf.mxu1  ;;  %v13940_v18 = vmax.f32 %v12750_v12, %v12758_v59  ;;  %v13194_v12 = vld [vmem:[#allocation7 + $0x480] sm:$0xff]  ;;  %v10855_v59 = vld [vmem:[#allocation7 + $0xf8] sm:$0xff] }
 0x369   :  { %10024 = vmatprep.subr.mxu0 %v11041_v2  ;;  %10059 = vmatprep.subr.mxu1 %v11041_v2  ;;  %v13182_v51 = vld [vmem:[#allocation7 + $0x408] sm:$0xff]  ;;  %13944 = vst [vmem:[#allocation83_spill] sm:$0xff] %v13194_v12 }
 0x36a   :  { %v10750_v17 = vpop.eup %10749  ;;  %10025 = vmatpush3.msra.mxu0 %v13161_v49  ;;  %10060 = vmatpush3.msra.mxu1 %v13163_v23  ;;  %13941 = vst [vmem:[#allocation80_spill] sm:$0xff] %v13182_v51  ;;  %v13184_v53 = vld [vmem:[#allocation7 + $0x488] sm:$0xff]  ;;  %v13190_v23 = vld [vmem:[#allocation7 + $0x400] sm:$0xff] }
 0x36b   :  { %v13178_v4 = vmax.f32 %v13940_v18, %v10750_v17  ;;  %10026 = vmatprep.subr.mxu0 %v11041_v2  ;;  %10061 = vmatprep.subr.mxu1 %v11041_v2  ;;  %13942 = vst [vmem:[#allocation81_spill] sm:$0xff] %v13184_v53  ;;  %13943 = vst [vmem:[#allocation82_spill] sm:$0xff] %v13190_v23  ;;  %v10856_v17 = vld [vmem:[#allocation7 + $0x78] sm:$0xff]  ;;  %v10857_v18 = vld [vmem:[#allocation7 + $0xf0] sm:$0xff] }
 0x36c   :  { %10027 = vmatpush3.msra.mxu0 %v13169_v38  ;;  %10062 = vmatpush3.msra.mxu1 %v13171_v21  ;;  %v10879_v21 = vld [vmem:[#allocation7 + $0x98] sm:$0xff] }
 0x36d   :  { %10028 = vmatprep.subr.mxu0 %v11041_v2  ;;  %10063 = vmatprep.subr.mxu1 %v11041_v2 }
 0x36e   :  { %10029 = vmatpush3.msra.mxu0 %v13182_v51  ;;  %10064 = vmatpush3.msra.mxu1 %v13184_v53  ;;  %v10860_v53 = vld [vmem:[#allocation7 + $0x68] sm:$0xff] }
 0x36f   :  { %10030 = vmatprep.subr.mxu0 %v11041_v2  ;;  %10065 = vmatprep.subr.mxu1 %v11041_v2 }
 0x370   :  { %10031 = vmatpush3.msra.mxu0 %v13190_v23  ;;  %10032 = vmatprep.mubr.msk.f32.mxu0 %vm11042_vm1, %v11041_v2  ;;  %v10859_v23 = vld [vmem:[#allocation7 + $0xe8] sm:$0xff] }
 0x371   :  { %10066 = vmatpush3.msra.mxu1 %v13194_v12  ;;  %10067 = vmatprep.mubr.msk.f32.mxu1 %vm11042_vm1, %v11041_v2  ;;  %v10858_v12 = vld [vmem:[#allocation7 + $0x70] sm:$0xff] }
 0x372   :  { %10033 = vmatmul.mubr.f32.vlgmr.msra.gmra.mxu0 %v12782_v35  ;;  %10068 = vmatmul.mubr.f32.vlgmr.msra.gmra.mxu1 %v12921_v61 }
 0x373   :  { %10070 = vmatprep.subr.mxu0 %v11041_v2  ;;  %10105 = vmatprep.subr.mxu1 %v11041_v2 }
 0x374   :  { %10071 = vmatpush3.msra.mxu0 %v10855_v59  ;;  %10106 = vmatpush3.msra.mxu1 %v10856_v17  ;;  %v10861_v59 = vld [vmem:[#allocation7 + $0xe0] sm:$0xff] }
 0x375   :  { %10072 = vmatprep.subr.mxu0 %v11041_v2  ;;  %10107 = vmatprep.subr.mxu1 %v11041_v2  ;;  %v10862_v17 = vld [vmem:[#allocation7 + $0x60] sm:$0xff] }
 0x376   :  { %10073 = vmatpush3.msra.mxu0 %v10857_v18  ;;  %10108 = vmatpush3.msra.mxu1 %v10858_v12  ;;  %v10863_v12 = vld [vmem:[#allocation7 + $0xd8] sm:$0xff] }
 0x377   :  { %10074 = vmatprep.subr.mxu0 %v11041_v2  ;;  %10109 = vmatprep.subr.mxu1 %v11041_v2  ;;  %v10864_v18 = vld [vmem:[#allocation7 + $0x58] sm:$0xff] }
 0x378   :  { %10075 = vmatpush3.msra.mxu0 %v10859_v23  ;;  %10110 = vmatpush3.msra.mxu1 %v10860_v53  ;;  %v10865_v23 = vld [vmem:[#allocation7 + $0xd0] sm:$0xff] }
 0x379   :  { %10076 = vmatprep.subr.mxu0 %v11041_v2  ;;  %10111 = vmatprep.subr.mxu1 %v11041_v2  ;;  %v10866_v53 = vld [vmem:[#allocation7 + $0x50] sm:$0xff] }
 0x37a   :  { %10077 = vmatpush3.msra.mxu0 %v10861_v59  ;;  %10112 = vmatpush3.msra.mxu1 %v10862_v17  ;;  %v10867_v59 = vld [vmem:[#allocation7 + $0xc8] sm:$0xff] }
 0x37b   :  { %10078 = vmatprep.subr.mxu0 %v11041_v2  ;;  %10113 = vmatprep.subr.mxu1 %v11041_v2  ;;  %v10868_v17 = vld [vmem:[#allocation7 + $0x48] sm:$0xff] }
 0x37c   :  { %10079 = vmatpush3.msra.mxu0 %v10863_v12  ;;  %10114 = vmatpush3.msra.mxu1 %v10864_v18  ;;  %v10869_v12 = vld [vmem:[#allocation7 + $0xc0] sm:$0xff] }
 0x37d   :  { %10080 = vmatprep.subr.mxu0 %v11041_v2  ;;  %10115 = vmatprep.subr.mxu1 %v11041_v2  ;;  %v10870_v18 = vld [vmem:[#allocation7 + $0x40] sm:$0xff] }
 0x37e   :  { %10081 = vmatpush3.msra.mxu0 %v10865_v23  ;;  %10116 = vmatpush3.msra.mxu1 %v10866_v53  ;;  %v4912_v23 = vadd.f32 %v13155_v14, %v13017_v63  ;;  %v10871_v53 = vld [vmem:[#allocation7 + $0xb8] sm:$0xff]  ;;  %v10875_v63 = vld [vmem:[#allocation7 + $0xa8] sm:$0xff] }
 0x37f   :  { %10082 = vmatprep.subr.mxu0 %v11041_v2  ;;  %10117 = vmatprep.subr.mxu1 %v11041_v2  ;;  %v10876_v14 = vld [vmem:[#allocation7 + $0x28] sm:$0xff] }
 0x380   :  { %10083 = vmatpush3.msra.mxu0 %v10867_v59  ;;  %10118 = vmatpush3.msra.mxu1 %v10868_v17  ;;  %v10872_v59 = vld [vmem:[#allocation7 + $0x38] sm:$0xff]  ;;  %v10873_v17 = vld [vmem:[#allocation7 + $0xb0] sm:$0xff] }
 0x381   :  { %10084 = vmatprep.subr.mxu0 %v11041_v2  ;;  %10119 = vmatprep.subr.mxu1 %v11041_v2 }
 0x382   :  { %10085 = vmatpush3.msra.mxu0 %v10869_v12  ;;  %10120 = vmatpush3.msra.mxu1 %v10870_v18  ;;  %v10874_v12 = vld [vmem:[#allocation7 + $0x30] sm:$0xff]  ;;  %v4985_v18 = vadd.f32 %v13157_v62, %v4912_v23 }
 0x383   :  { %10086 = vmatprep.subr.mxu0 %v11041_v2  ;;  %10121 = vmatprep.subr.mxu1 %v11041_v2 }
 0x384   :  { %10087 = vmatpush3.msra.mxu0 %v10871_v53  ;;  %10122 = vmatpush3.msra.mxu1 %v10872_v59 }
 0x385   :  { %10088 = vmatprep.subr.mxu0 %v11041_v2  ;;  %10123 = vmatprep.subr.mxu1 %v11041_v2 }
 0x386   :  { %10089 = vmatpush3.msra.mxu0 %v10873_v17  ;;  %10124 = vmatpush3.msra.mxu1 %v10874_v12  ;;  %v10877_v17 = vld [vmem:[#allocation7 + $0xa0] sm:$0xff] }
 0x387   :  { %10090 = vmatprep.subr.mxu0 %v11041_v2  ;;  %10125 = vmatprep.subr.mxu1 %v11041_v2  ;;  %v10878_v12 = vld [vmem:[#allocation7 + $0x20] sm:$0xff] }
 0x388   :  { %10091 = vmatpush3.msra.mxu0 %v10875_v63  ;;  %10126 = vmatpush3.msra.mxu1 %v10876_v14  ;;  %v5052_v53 = vpop.f32.mrf.mxu0  ;;  %v5123_v59 = vpop.f32.mrf.mxu1  ;;  %v10880_v14 = vld [vmem:[#allocation7 + $0x18] sm:$0xff] }
 0x389   :  { %10092 = vmatprep.subr.mxu0 %v11041_v2  ;;  %10127 = vmatprep.subr.mxu1 %v11041_v2  ;;  %v5056_v51 = vadd.f32 %v5052_v53, %v4985_v18  ;;  %v10881_v18 = vld [vmem:[%s13693_s4] ss:$0 sm:$0xff] }
 0x38a   :  { %10093 = vmatpush3.msra.mxu0 %v10877_v17  ;;  %10128 = vmatpush3.msra.mxu1 %v10878_v12  ;;  %v9684_v62 = vpop.f32.mrf.mxu0  ;;  %v9719_v23 = vpop.f32.mrf.mxu1  ;;  %v10882_v17 = vld [vmem:[#allocation7 + $0x90] sm:$0xff] }
 0x38b   :  { %10094 = vmatprep.subr.mxu0 %v11041_v2  ;;  %10129 = vmatprep.subr.mxu1 %v11041_v2  ;;  %v5127_v63 = vadd.f32 %v5123_v59, %v5056_v51  ;;  %v10883_v12 = vld [vmem:[#allocation7 + $0x10] sm:$0xff]  ;;  %v10884_v51 = vld [vmem:[#allocation7 + $0x88] sm:$0xff]  ;;  %v10886_v23 = vld [vmem:[#allocation7 + $0x80] sm:$0xff] }
 0x38c   :  { %10095 = vmatpush3.msra.mxu0 %v10879_v21  ;;  %10130 = vmatpush3.msra.mxu1 %v10880_v14  ;;  %v10885_v59 = vld [vmem:[#allocation7 + $0x8] sm:$0xff] }
 0x38d   :  { %10096 = vmatprep.subr.mxu0 %v11041_v2  ;;  %10131 = vmatprep.subr.mxu1 %v11041_v2  ;;  %v5128_v53 = vadd.f32 %v10881_v18, %v5127_v63  ;;  %v10887_v63 = vld [vmem:[#allocation7] sm:$0xff]  ;;  %v10889_v18 = vld [vmem:[#allocation7 + $0x178] sm:$0xff] }
 0x38e   :  { %10097 = vmatpush3.msra.mxu0 %v10882_v17  ;;  %10132 = vmatpush3.msra.mxu1 %v10883_v12  ;;  %v13249_v14 = vld [vmem:[#allocation2 + $0x11] ss:$2 sm:$0x1f]  ;;  %v10891_v17 = vld [vmem:[#allocation7 + $0x170] sm:$0xff] }
 0x38f   :  { %10098 = vmatprep.subr.mxu0 %v11041_v2  ;;  %10133 = vmatprep.subr.mxu1 %v11041_v2  ;;  %v5129_v21 = vsub.f32 0.0, %v5128_v53  ;;  %v10890_v53 = vld [vmem:[#allocation7 + $0x1f8] sm:$0xff]  ;;  %v10892_v12 = vld [vmem:[#allocation7 + $0x1f0] sm:$0xff] }
 0x390   :  { %10099 = vmatpush3.msra.mxu0 %v10884_v51  ;;  %10134 = vmatpush3.msra.mxu1 %v10885_v59  ;;  %v10895_v51 = vld [vmem:[#allocation7 + $0x160] sm:$0xff] }
 0x391   :  { %10100 = vmatprep.subr.mxu0 %v11041_v2  ;;  %10135 = vmatprep.subr.mxu1 %v11041_v2  ;;  %v5130_v62 = vmul.f32 1.442695, %v5129_v21  ;;  %v10894_v21 = vld [vmem:[#allocation7 + $0x1e8] sm:$0xff]  ;;  %v10896_v59 = vld [vmem:[#allocation7 + $0x1e0] sm:$0xff] }
 0x392   :  { %10101 = vmatpush3.msra.mxu0 %v10886_v23  ;;  %10102 = vmatprep.mubr.msk.f32.mxu0 %vm11042_vm1, %v11041_v2  ;;  %v10898_v23 = vld [vmem:[#allocation7 + $0x1d8] sm:$0xff] }
 0x393   :  { %10136 = vmatpush3.msra.mxu1 %v10887_v63  ;;  %10137 = vmatprep.mubr.msk.f32.mxu1 %vm11042_vm1, %v11041_v2  ;;  %10751 = vpow2.f32 %v5130_v62  ;;  %v10897_v62 = vld [vmem:[#allocation7 + $0x158] sm:$0xff] }
 0x394   :  { %10103 = vmatmul.mubr.f32.vlgmr.msra.gmra.mxu0 %v12777_v29  ;;  %10138 = vmatmul.mubr.f32.vlgmr.msra.gmra.mxu1 %v13249_v14  ;;  %v10893_v29 = vld [vmem:[#allocation7 + $0x168] sm:$0xff] }
 0x395   :  { %10140 = vmatprep.subr.mxu0 %v11041_v2  ;;  %10175 = vmatprep.subr.mxu1 %v11041_v2 }
 0x396   :  { %10141 = vmatpush3.msra.mxu0 %v10889_v18  ;;  %10176 = vmatpush3.msra.mxu1 %v10890_v53  ;;  %v10899_v18 = vld [vmem:[#allocation7 + $0x150] sm:$0xff] }
 0x397   :  { %10142 = vmatprep.subr.mxu0 %v11041_v2  ;;  %10177 = vmatprep.subr.mxu1 %v11041_v2  ;;  %v10900_v53 = vld [vmem:[#allocation7 + $0x1d0] sm:$0xff] }
 0x398   :  { %10143 = vmatpush3.msra.mxu0 %v10891_v17  ;;  %10178 = vmatpush3.msra.mxu1 %v10892_v12  ;;  %v10901_v12 = vld [vmem:[#allocation7 + $0x148] sm:$0xff] }
 0x399   :  { %10144 = vmatprep.subr.mxu0 %v11041_v2  ;;  %10179 = vmatprep.subr.mxu1 %v11041_v2 }
 0x39a   :  { %10145 = vmatpush3.msra.mxu0 %v10893_v29  ;;  %10180 = vmatpush3.msra.mxu1 %v10894_v21  ;;  %v10902_v29 = vld [vmem:[#allocation7 + $0x1c8] sm:$0xff] }
 0x39b   :  { %10146 = vmatprep.subr.mxu0 %v11041_v2  ;;  %10181 = vmatprep.subr.mxu1 %v11041_v2 }
 0x39c   :  { %10147 = vmatpush3.msra.mxu0 %v10895_v51  ;;  %10182 = vmatpush3.msra.mxu1 %v10896_v59 }
 0x39d   :  { %10148 = vmatprep.subr.mxu0 %v11041_v2  ;;  %10183 = vmatprep.subr.mxu1 %v11041_v2 }
 0x39e   :  { %10149 = vmatpush3.msra.mxu0 %v10897_v62  ;;  %10184 = vmatpush3.msra.mxu1 %v10898_v23  ;;  %v13974_v62 = vld [vmem:[#allocation46_spill] sm:$0xff]  ;;  %v13975_v23 = vld [vmem:[#allocation47_spill] sm:$0xff] }
 0x39f   :  { %10150 = vmatprep.subr.mxu0 %v11041_v2  ;;  %10185 = vmatprep.subr.mxu1 %v11041_v2 }
 0x3a0   :  { %v10752_v63 = vpop.eup %10751  ;;  %10151 = vmatpush3.msra.mxu0 %v10899_v18  ;;  %10186 = vmatpush3.msra.mxu1 %v10900_v53  ;;  %v13977_v18 = vld [vmem:[#allocation49_spill] sm:$0xff]  ;;  %v13980_v53 = vld [vmem:[#allocation52_spill] sm:$0xff] }
 0x3a1   :  { %v5132_v17 = vadd.f32 1.0, %v10752_v63  ;;  %10152 = vmatprep.subr.mxu0 %v11041_v2  ;;  %10187 = vmatprep.subr.mxu1 %v11041_v2  ;;  %v13976_v63 = vld [vmem:[#allocation48_spill] sm:$0xff] }
 0x3a2   :  { %10153 = vmatpush3.msra.mxu0 %v10901_v12  ;;  %10188 = vmatpush3.msra.mxu1 %v10902_v29  ;;  %v10904_v12 = vld [vmem:[#allocation2 + $0x13] ss:$2 sm:$0x1f] }
 0x3a3   :  { %10753 = vrcp.f32 %v5132_v17  ;;  %10154 = vmatprep.subr.mxu0 %v11041_v2  ;;  %10189 = vmatprep.subr.mxu1 %v11041_v2  ;;  %v13981_v17 = vld [vmem:[#allocation53_spill] sm:$0xff]  ;;  %v13982_v29 = vld [vmem:[#allocation55_spill] sm:$0xff] }
 0x3a4   :  { %10155 = vmatpush3.msra.mxu0 %v12696_v25  ;;  %10190 = vmatpush3.msra.mxu1 %v12698_v28 }
 0x3a5   :  { %10156 = vmatprep.subr.mxu0 %v11041_v2  ;;  %10191 = vmatprep.subr.mxu1 %v11041_v2 }
 0x3a6   :  { %10157 = vmatpush3.msra.mxu0 %v12702_v5  ;;  %10192 = vmatpush3.msra.mxu1 %v12704_v32 }
 0x3a7   :  { %10158 = vmatprep.subr.mxu0 %v11041_v2  ;;  %10193 = vmatprep.subr.mxu1 %v11041_v2 }
 0x3a8   :  { %10159 = vmatpush3.msra.mxu0 %v12710_v33  ;;  %10194 = vmatpush3.msra.mxu1 %v12712_v34 }
 0x3a9   :  { %10160 = vmatprep.subr.mxu0 %v11041_v2  ;;  %10195 = vmatprep.subr.mxu1 %v11041_v2 }
 0x3aa   :  { %10161 = vmatpush3.msra.mxu0 %v12718_v40  ;;  %10196 = vmatpush3.msra.mxu1 %v12720_v41  ;;  %v5239_v25 = vpop.f32.mrf.mxu0  ;;  %v5309_v28 = vpop.f32.mrf.mxu1 }
 0x3ab   :  { %10162 = vmatprep.subr.mxu0 %v11041_v2  ;;  %10197 = vmatprep.subr.mxu1 %v11041_v2  ;;  %v13284_v5 = vadd.f32 %v5309_v28, %v5239_v25  ;;  %v13983_v25 = vld [vmem:[#allocation56_spill] sm:$0xff]  ;;  %v13984_v28 = vld [vmem:[#allocation57_spill] sm:$0xff] }
 0x3ac   :  { %10163 = vmatpush3.msra.mxu0 %v12726_v45  ;;  %10198 = vmatpush3.msra.mxu1 %v12728_v31  ;;  %v9754_v32 = vpop.f32.mrf.mxu0  ;;  %v9789_v33 = vpop.f32.mrf.mxu1 }
 0x3ad   :  { %10164 = vmatprep.subr.mxu0 %v11041_v2  ;;  %10199 = vmatprep.subr.mxu1 %v11041_v2  ;;  %v13987_v32 = vld [vmem:[#allocation60_spill] sm:$0xff]  ;;  %v13988_v33 = vld [vmem:[#allocation61_spill] sm:$0xff] }
 0x3ae   :  { %10165 = vmatpush3.msra.mxu0 %v12734_v56  ;;  %10200 = vmatpush3.msra.mxu1 %v12736_v60 }
 0x3af   :  { %10166 = vmatprep.subr.mxu0 %v11041_v2  ;;  %10201 = vmatprep.subr.mxu1 %v11041_v2 }
 0x3b0   :  { %v10754_v34 = vpop.eup %10753  ;;  %10167 = vmatpush3.msra.mxu0 %v12744_v7  ;;  %10202 = vmatpush3.msra.mxu1 %v12746_v11  ;;  %v13945_v11 = vld [vmem:[#allocation18_spill] sm:$0xff] }
 0x3b1   :  { %v5135_v40 = vmax.f32 %v13178_v4, %v10754_v34  ;;  %10168 = vmatprep.subr.mxu0 %v11041_v2  ;;  %10203 = vmatprep.subr.mxu1 %v11041_v2  ;;  %v13989_v34 = vld [vmem:[#allocation62_spill] sm:$0xff] }
 0x3b2   :  { %10169 = vmatpush3.msra.mxu0 %v12754_v16  ;;  %10204 = vmatpush3.msra.mxu1 %v12756_v19  ;;  %v13946_v16 = vld [vmem:[#allocation19_spill] sm:$0xff]  ;;  %v13947_v19 = vld [vmem:[#allocation20_spill] sm:$0xff] }
 0x3b3   :  { %5136 = vst [vmem:[#allocation3] sm:$0x1f] %v5135_v40  ;;  %10170 = vmatprep.subr.mxu0 %v11041_v2  ;;  %10205 = vmatprep.subr.mxu1 %v11041_v2  ;;  %v13990_v40 = vld [vmem:[#allocation63_spill] sm:$0xff] }
 0x3b4   :  { %10171 = vmatpush3.msra.mxu0 %v12766_v22  ;;  %10172 = vmatprep.mubr.msk.f32.mxu0 %vm11042_vm1, %v11041_v2  ;;  %v13948_v22 = vld [vmem:[#allocation21_spill] sm:$0xff] }
 0x3b5   :  { %10206 = vmatpush3.msra.mxu1 %v12770_v27  ;;  %10207 = vmatprep.mubr.msk.f32.mxu1 %vm11042_vm1, %v11041_v2  ;;  %v13949_v27 = vld [vmem:[#allocation54_spill] sm:$0xff] }
 0x3b6   :  { %10173 = vmatmul.mubr.f32.vlgmr.msra.gmra.mxu0 %v12782_v35  ;;  %10208 = vmatmul.mubr.f32.vlgmr.msra.gmra.mxu1 %v12921_v61  ;;  %v13950_v35 = vld [vmem:[#allocation22_spill] sm:$0xff] }
 0x3b7   :  { %10210 = vmatprep.subr.mxu0 %v11041_v2  ;;  %10245 = vmatprep.subr.mxu1 %v11041_v2 }
 0x3b8   :  { %10211 = vmatpush3.msra.mxu0 %v12784_v36  ;;  %10246 = vmatpush3.msra.mxu1 %v12786_v30  ;;  %v13951_v36 = vld [vmem:[#allocation23_spill] sm:$0xff] }
 0x3b9   :  { %10212 = vmatprep.subr.mxu0 %v11041_v2  ;;  %10247 = vmatprep.subr.mxu1 %v11041_v2  ;;  %v13382_v30 = vld [vmem:[#allocation2 + $0x15] ss:$2 sm:$0x1f] }
 0x3ba   :  { %10213 = vmatpush3.msra.mxu0 %v12792_v37  ;;  %10248 = vmatpush3.msra.mxu1 %v12794_v43  ;;  %v10903_v37 = vld [vmem:[#allocation2 + $0x12] ss:$2 sm:$0x1f]  ;;  %v13952_v43 = vld [vmem:[#allocation24_spill] sm:$0xff] }
 0x3bb   :  { %10214 = vmatprep.subr.mxu0 %v11041_v2  ;;  %10249 = vmatprep.subr.mxu1 %v11041_v2 }
 0x3bc   :  { %10215 = vmatpush3.msra.mxu0 %v12800_v50  ;;  %10250 = vmatpush3.msra.mxu1 %v12802_v48  ;;  %v13953_v50 = vld [vmem:[#allocation25_spill] sm:$0xff]  ;;  %v13954_v48 = vld [vmem:[#allocation26_spill] sm:$0xff] }
 0x3bd   :  { %10216 = vmatprep.subr.mxu0 %v11041_v2  ;;  %10251 = vmatprep.subr.mxu1 %v11041_v2 }
 0x3be   :  { %10217 = vmatpush3.msra.mxu0 %v12808_v52  ;;  %10252 = vmatpush3.msra.mxu1 %v12810_v57  ;;  %v13955_v52 = vld [vmem:[#allocation27_spill] sm:$0xff]  ;;  %v13956_v57 = vld [vmem:[#allocation28_spill] sm:$0xff] }
 0x3bf   :  { %10218 = vmatprep.subr.mxu0 %v11041_v2  ;;  %10253 = vmatprep.subr.mxu1 %v11041_v2 }
 0x3c0   :  { %10219 = vmatpush3.msra.mxu0 %v12816_v39  ;;  %10254 = vmatpush3.msra.mxu1 %v12818_v44  ;;  %v13957_v39 = vld [vmem:[#allocation29_spill] sm:$0xff]  ;;  %v13958_v44 = vld [vmem:[#allocation30_spill] sm:$0xff] }
 0x3c1   :  { %10220 = vmatprep.subr.mxu0 %v11041_v2  ;;  %10255 = vmatprep.subr.mxu1 %v11041_v2 }
 0x3c2   :  { %10221 = vmatpush3.msra.mxu0 %v12824_v0  ;;  %10256 = vmatpush3.msra.mxu1 %v12826_v8  ;;  %v13959_v0 = vld [vmem:[#allocation31_spill] sm:$0xff]  ;;  %v13960_v8 = vld [vmem:[#allocation32_spill] sm:$0xff] }
 0x3c3   :  { %10222 = vmatprep.subr.mxu0 %v11041_v2  ;;  %10257 = vmatprep.subr.mxu1 %v11041_v2 }
 0x3c4   :  { %10223 = vmatpush3.msra.mxu0 %v12832_v9  ;;  %10258 = vmatpush3.msra.mxu1 %v12834_v13  ;;  %v13961_v9 = vld [vmem:[#allocation33_spill] sm:$0xff]  ;;  %v13962_v13 = vld [vmem:[#allocation34_spill] sm:$0xff] }
 0x3c5   :  { %10224 = vmatprep.subr.mxu0 %v11041_v2  ;;  %10259 = vmatprep.subr.mxu1 %v11041_v2 }
 0x3c6   :  { %10225 = vmatpush3.msra.mxu0 %v12840_v20  ;;  %10260 = vmatpush3.msra.mxu1 %v12842_v24  ;;  %v13963_v20 = vld [vmem:[#allocation35_spill] sm:$0xff]  ;;  %v13964_v24 = vld [vmem:[#allocation36_spill] sm:$0xff] }
 0x3c7   :  { %10226 = vmatprep.subr.mxu0 %v11041_v2  ;;  %10261 = vmatprep.subr.mxu1 %v11041_v2 }
 0x3c8   :  { %10227 = vmatpush3.msra.mxu0 %v12848_v26  ;;  %10262 = vmatpush3.msra.mxu1 %v12850_v42  ;;  %v13965_v26 = vld [vmem:[#allocation37_spill] sm:$0xff]  ;;  %v13966_v42 = vld [vmem:[#allocation38_spill] sm:$0xff] }
 0x3c9   :  { %10228 = vmatprep.subr.mxu0 %v11041_v2  ;;  %10263 = vmatprep.subr.mxu1 %v11041_v2 }
 0x3ca   :  { %10229 = vmatpush3.msra.mxu0 %v12856_v46  ;;  %10264 = vmatpush3.msra.mxu1 %v12858_v54  ;;  %v13967_v46 = vld [vmem:[#allocation39_spill] sm:$0xff]  ;;  %v13968_v54 = vld [vmem:[#allocation40_spill] sm:$0xff] }
 0x3cb   :  { %10230 = vmatprep.subr.mxu0 %v11041_v2  ;;  %10265 = vmatprep.subr.mxu1 %v11041_v2 }
 0x3cc   :  { %10231 = vmatpush3.msra.mxu0 %v12864_v58  ;;  %10266 = vmatpush3.msra.mxu1 %v12866_v1  ;;  %v5397_v41 = vpop.f32.mrf.mxu0  ;;  %v5486_v45 = vpop.f32.mrf.mxu1  ;;  %v13969_v58 = vld [vmem:[#allocation41_spill] sm:$0xff]  ;;  %v13970_v1 = vld [vmem:[#allocation42_spill] sm:$0xff] }
 0x3cd   :  { %10232 = vmatprep.subr.mxu0 %v11041_v2  ;;  %10267 = vmatprep.subr.mxu1 %v11041_v2  ;;  %v5401_v31 = vadd.f32 %v5397_v41, %v13284_v5  ;;  %v13985_v5 = vld [vmem:[#allocation58_spill] sm:$0xff]  ;;  %v13991_v41 = vld [vmem:[#allocation64_spill] sm:$0xff] }
 0x3ce   :  { %10233 = vmatpush3.msra.mxu0 %v12872_v3  ;;  %10268 = vmatpush3.msra.mxu1 %v12874_v10  ;;  %v9824_v56 = vpop.f32.mrf.mxu0  ;;  %v9859_v60 = vpop.f32.mrf.mxu1  ;;  %v13971_v3 = vld [vmem:[#allocation43_spill] sm:$0xff]  ;;  %v13972_v10 = vld [vmem:[#allocation44_spill] sm:$0xff] }
 0x3cf   :  { %10234 = vmatprep.subr.mxu0 %v11041_v2  ;;  %10269 = vmatprep.subr.mxu1 %v11041_v2  ;;  %v13362_v7 = vadd.f32 %v5486_v45, %v5401_v31  ;;  %v13992_v45 = vld [vmem:[#allocation65_spill] sm:$0xff]  ;;  %v13993_v31 = vld [vmem:[#allocation66_spill] sm:$0xff]  ;;  %v13994_v56 = vld [vmem:[#allocation67_spill] sm:$0xff] }
 0x3d0   :  { %10235 = vmatpush3.msra.mxu0 %v12880_v15  ;;  %10270 = vmatpush3.msra.mxu1 %v13945_v11  ;;  %v13973_v15 = vld [vmem:[#allocation45_spill] sm:$0xff]  ;;  %v13995_v60 = vld [vmem:[#allocation68_spill] sm:$0xff]  ;;  %v13997_v11 = vld [vmem:[#allocation70_spill] sm:$0xff] }
 0x3d1   :  { %10236 = vmatprep.subr.mxu0 %v11041_v2  ;;  %10271 = vmatprep.subr.mxu1 %v11041_v2 }
 0x3d2   :  { %10237 = vmatpush3.msra.mxu0 %v13946_v16  ;;  %10272 = vmatpush3.msra.mxu1 %v13947_v19  ;;  %v13998_v16 = vld [vmem:[#allocation71_spill] sm:$0xff]  ;;  %v13999_v19 = vld [vmem:[#allocation72_spill] sm:$0xff] }
 0x3d3   :  { %10238 = vmatprep.subr.mxu0 %v11041_v2  ;;  %10273 = vmatprep.subr.mxu1 %v11041_v2 }
 0x3d4   :  { %10239 = vmatpush3.msra.mxu0 %v13948_v22  ;;  %10274 = vmatpush3.msra.mxu1 %v13949_v27  ;;  %v14000_v22 = vld [vmem:[#allocation73_spill] sm:$0xff]  ;;  %v14001_v27 = vld [vmem:[#allocation74_spill] sm:$0xff] }
 0x3d5   :  { %10240 = vmatprep.subr.mxu0 %v11041_v2  ;;  %10275 = vmatprep.subr.mxu1 %v11041_v2 }
 0x3d6   :  { %10241 = vmatpush3.msra.mxu0 %v13950_v35  ;;  %10242 = vmatprep.mubr.msk.f32.mxu0 %vm11042_vm1, %v11041_v2  ;;  %v14002_v35 = vld [vmem:[#allocation75_spill] sm:$0xff] }
 0x3d7   :  { %10276 = vmatpush3.msra.mxu1 %v13951_v36  ;;  %10277 = vmatprep.mubr.msk.f32.mxu1 %vm11042_vm1, %v11041_v2  ;;  %v14003_v36 = vld [vmem:[#allocation76_spill] sm:$0xff] }
 0x3d8   :  { %10243 = vmatmul.mubr.f32.vlgmr.msra.gmra.mxu0 %v13382_v30  ;;  %10278 = vmatmul.mubr.f32.vlgmr.msra.gmra.mxu1 %v10903_v37 }
 0x3d9   :  { %10280 = vmatprep.subr.mxu0 %v11041_v2  ;;  %10315 = vmatprep.subr.mxu1 %v11041_v2 }
 0x3da   :  { %10281 = vmatpush3.msra.mxu0 %v13952_v43  ;;  %10316 = vmatpush3.msra.mxu1 %v13953_v50 }
 0x3db   :  { %10282 = vmatprep.subr.mxu0 %v11041_v2  ;;  %10317 = vmatprep.subr.mxu1 %v11041_v2 }
 0x3dc   :  { %10283 = vmatpush3.msra.mxu0 %v13954_v48  ;;  %10318 = vmatpush3.msra.mxu1 %v13955_v52  ;;  %v14004_v48 = vld [vmem:[#allocation77_spill] sm:$0xff] }
 0x3dd   :  { %10284 = vmatprep.subr.mxu0 %v11041_v2  ;;  %10319 = vmatprep.subr.mxu1 %v11041_v2 }
 0x3de   :  { %10285 = vmatpush3.msra.mxu0 %v13956_v57  ;;  %10320 = vmatpush3.msra.mxu1 %v13957_v39 }
 0x3df   :  { %10286 = vmatprep.subr.mxu0 %v11041_v2  ;;  %10321 = vmatprep.subr.mxu1 %v11041_v2 }
 0x3e0   :  { %10287 = vmatpush3.msra.mxu0 %v13958_v44  ;;  %10322 = vmatpush3.msra.mxu1 %v13959_v0  ;;  %v14005_v44 = vld [vmem:[#allocation78_spill] sm:$0xff]  ;;  %v14006_v0 = vld [vmem:[#allocation79_spill] sm:$0xff] }
 0x3e1   :  { %10288 = vmatprep.subr.mxu0 %v11041_v2  ;;  %10323 = vmatprep.subr.mxu1 %v11041_v2 }
 0x3e2   :  { %10289 = vmatpush3.msra.mxu0 %v13960_v8  ;;  %10324 = vmatpush3.msra.mxu1 %v13961_v9  ;;  %v14008_v8 = vld [vmem:[#allocation81_spill] sm:$0xff]  ;;  %v10905_v9 = vld [vmem:[#allocation2 + $0x14] ss:$2 sm:$0x1f] }
 0x3e3   :  { %10290 = vmatprep.subr.mxu0 %v11041_v2  ;;  %10325 = vmatprep.subr.mxu1 %v11041_v2 }
 0x3e4   :  { %10291 = vmatpush3.msra.mxu0 %v13962_v13  ;;  %10326 = vmatpush3.msra.mxu1 %v13963_v20  ;;  %v13538_v13 = vld [vmem:[%s13693_s4] ss:$0 sm:$0xff] }
 0x3e5   :  { %10292 = vmatprep.subr.mxu0 %v11041_v2  ;;  %10327 = vmatprep.subr.mxu1 %v11041_v2 }
 0x3e6   :  { %10293 = vmatpush3.msra.mxu0 %v13964_v24  ;;  %10328 = vmatpush3.msra.mxu1 %v13965_v26 }
 0x3e7   :  { %10294 = vmatprep.subr.mxu0 %v11041_v2  ;;  %10329 = vmatprep.subr.mxu1 %v11041_v2 }
 0x3e8   :  { %10295 = vmatpush3.msra.mxu0 %v13966_v42  ;;  %10330 = vmatpush3.msra.mxu1 %v13967_v46 }
 0x3e9   :  { %10296 = vmatprep.subr.mxu0 %v11041_v2  ;;  %10331 = vmatprep.subr.mxu1 %v11041_v2 }
 0x3ea   :  { %10297 = vmatpush3.msra.mxu0 %v13968_v54  ;;  %10332 = vmatpush3.msra.mxu1 %v13969_v58 }
 0x3eb   :  { %10298 = vmatprep.subr.mxu0 %v11041_v2  ;;  %10333 = vmatprep.subr.mxu1 %v11041_v2 }
 0x3ec   :  { %10299 = vmatpush3.msra.mxu0 %v13970_v1  ;;  %10334 = vmatpush3.msra.mxu1 %v13971_v3 }
 0x3ed   :  { %10300 = vmatprep.subr.mxu0 %v11041_v2  ;;  %10335 = vmatprep.subr.mxu1 %v11041_v2 }
 0x3ee   :  { %10301 = vmatpush3.msra.mxu0 %v13972_v10  ;;  %10336 = vmatpush3.msra.mxu1 %v13973_v15  ;;  %v5575_v4 = vpop.f32.mrf.mxu0  ;;  %v13429_v61 = vpop.f32.mrf.mxu1 }
 0x3ef   :  { %10302 = vmatprep.subr.mxu0 %v11041_v2  ;;  %10337 = vmatprep.subr.mxu1 %v11041_v2  ;;  %v13434_v21 = vadd.f32 %v5575_v4, %v13362_v7  ;;  %v13996_v7 = vld [vmem:[#allocation69_spill] sm:$0xff] }
 0x3f0   :  { %10303 = vmatpush3.msra.mxu0 %v13011_v6  ;;  %10338 = vmatpush3.msra.mxu1 %v13013_v47  ;;  %v9894_v51 = vpop.f32.mrf.mxu0  ;;  %v9929_v59 = vpop.f32.mrf.mxu1  ;;  %v13978_v6 = vld [vmem:[#allocation50_spill] sm:$0xff]  ;;  %v13979_v47 = vld [vmem:[#allocation51_spill] sm:$0xff] }
 0x3f1   :  { %10304 = vmatprep.subr.mxu0 %v11041_v2  ;;  %10339 = vmatprep.subr.mxu1 %v11041_v2  ;;  %v5587_v20 = vadd.f32 %v13538_v13, %v13434_v21 }
 0x3f2   :  { %10305 = vmatpush3.msra.mxu0 %v13974_v62  ;;  %10340 = vmatpush3.msra.mxu1 %v13975_v23 }
 0x3f3   :  { %10306 = vmatprep.subr.mxu0 %v11041_v2  ;;  %10341 = vmatprep.subr.mxu1 %v11041_v2  ;;  %v5588_v24 = vsub.f32 0.0, %v5587_v20 }
 0x3f4   :  { %10307 = vmatpush3.msra.mxu0 %v13976_v63  ;;  %10342 = vmatpush3.msra.mxu1 %v13977_v18 }
 0x3f5   :  { %10308 = vmatprep.subr.mxu0 %v11041_v2  ;;  %10343 = vmatprep.subr.mxu1 %v11041_v2  ;;  %v5589_v46 = vmul.f32 1.442695, %v5588_v24 }
 0x3f6   :  { %10309 = vmatpush3.msra.mxu0 %v13978_v6  ;;  %10344 = vmatpush3.msra.mxu1 %v13979_v47 }
 0x3f7   :  { %10310 = vmatprep.subr.mxu0 %v11041_v2  ;;  %10345 = vmatprep.subr.mxu1 %v11041_v2  ;;  %10755 = vpow2.f32 %v5589_v46 }
 0x3f8   :  { %10311 = vmatpush3.msra.mxu0 %v13980_v53  ;;  %10312 = vmatprep.mubr.msk.f32.mxu0 %vm11042_vm1, %v11041_v2 }
 0x3f9   :  { %10346 = vmatpush3.msra.mxu1 %v13981_v17  ;;  %10347 = vmatprep.mubr.msk.f32.mxu1 %vm11042_vm1, %v11041_v2  ;;  %v6795_v17 = vld [vmem:[#allocation9 + $0xf8] sm:$0xff] }
 0x3fa   :  { %10313 = vmatmul.mubr.f32.vlgmr.msra.gmra.mxu0 %v13249_v14  ;;  %10348 = vmatmul.mubr.f32.vlgmr.msra.gmra.mxu1 %v10904_v12  ;;  %v13986_v14 = vld [vmem:[#allocation59_spill] sm:$0xff]  ;;  %v6776_v12 = vld [vmem:[#allocation9 + $0x78] sm:$0xff] }
 0x3fb   :  { %10350 = vmatprep.subr.mxu0 %v11041_v2  ;;  %10385 = vmatprep.subr.mxu1 %v11041_v2 }
 0x3fc   :  { %10351 = vmatpush3.msra.mxu0 %v13982_v29  ;;  %10386 = vmatpush3.msra.mxu1 %v13983_v25  ;;  %v6794_v29 = vld [vmem:[#allocation9 + $0xf0] sm:$0xff] }
 0x3fd   :  { %10352 = vmatprep.subr.mxu0 %v11041_v2  ;;  %10387 = vmatprep.subr.mxu1 %v11041_v2  ;;  %v6775_v25 = vld [vmem:[#allocation9 + $0x70] sm:$0xff] }
 0x3fe   :  { %10353 = vmatpush3.msra.mxu0 %v13984_v28  ;;  %10388 = vmatpush3.msra.mxu1 %v13985_v5  ;;  %v6793_v28 = vld [vmem:[#allocation9 + $0xe8] sm:$0xff] }
 0x3ff   :  { %10354 = vmatprep.subr.mxu0 %v11041_v2  ;;  %10389 = vmatprep.subr.mxu1 %v11041_v2  ;;  %v6774_v5 = vld [vmem:[#allocation9 + $0x68] sm:$0xff] }
 0x400   :  { %10355 = vmatpush3.msra.mxu0 %v13986_v14  ;;  %10390 = vmatpush3.msra.mxu1 %v13987_v32  ;;  %v6792_v14 = vld [vmem:[#allocation9 + $0xe0] sm:$0xff] }
 0x401   :  { %10356 = vmatprep.subr.mxu0 %v11041_v2  ;;  %10391 = vmatprep.subr.mxu1 %v11041_v2  ;;  %v6773_v32 = vld [vmem:[#allocation9 + $0x60] sm:$0xff] }
 0x402   :  { %10357 = vmatpush3.msra.mxu0 %v13988_v33  ;;  %10392 = vmatpush3.msra.mxu1 %v13989_v34 }
 0x403   :  { %10358 = vmatprep.subr.mxu0 %v11041_v2  ;;  %10393 = vmatprep.subr.mxu1 %v11041_v2 }
 0x404   :  { %10359 = vmatpush3.msra.mxu0 %v13990_v40  ;;  %10394 = vmatpush3.msra.mxu1 %v13991_v41  ;;  %v10756_v4 = vpop.eup %10755  ;;  %v6791_v40 = vld [vmem:[#allocation9 + $0xd8] sm:$0xff] }
 0x405   :  { %10360 = vmatprep.subr.mxu0 %v11041_v2  ;;  %10395 = vmatprep.subr.mxu1 %v11041_v2  ;;  %v6772_v41 = vld [vmem:[#allocation9 + $0x58] sm:$0xff] }
 0x406   :  { %10361 = vmatpush3.msra.mxu0 %v13992_v45  ;;  %10396 = vmatpush3.msra.mxu1 %v13993_v31 }
 0x407   :  { %10362 = vmatprep.subr.mxu0 %v11041_v2  ;;  %10397 = vmatprep.subr.mxu1 %v11041_v2 }
 0x408   :  { %10363 = vmatpush3.msra.mxu0 %v13994_v56  ;;  %10398 = vmatpush3.msra.mxu1 %v13995_v60  ;;  %v6790_v60 = vld [vmem:[#allocation9 + $0xd0] sm:$0xff] }
 0x409   :  { %10364 = vmatprep.subr.mxu0 %v11041_v2  ;;  %10399 = vmatprep.subr.mxu1 %v11041_v2 }
 0x40a   :  { %10365 = vmatpush3.msra.mxu0 %v13996_v7  ;;  %10400 = vmatpush3.msra.mxu1 %v13997_v11  ;;  %v6771_v7 = vld [vmem:[#allocation9 + $0x50] sm:$0xff] }
 0x40b   :  { %10366 = vmatprep.subr.mxu0 %v11041_v2  ;;  %10401 = vmatprep.subr.mxu1 %v11041_v2 }
 0x40c   :  { %10367 = vmatpush3.msra.mxu0 %v13998_v16  ;;  %10402 = vmatpush3.msra.mxu1 %v13999_v19  ;;  %v6789_v16 = vld [vmem:[#allocation9 + $0xc8] sm:$0xff] }
 0x40d   :  { %10368 = vmatprep.subr.mxu0 %v11041_v2  ;;  %10403 = vmatprep.subr.mxu1 %v11041_v2  ;;  %v6770_v19 = vld [vmem:[#allocation9 + $0x48] sm:$0xff] }
 0x40e   :  { %10369 = vmatpush3.msra.mxu0 %v14000_v22  ;;  %10404 = vmatpush3.msra.mxu1 %v14001_v27  ;;  %v6788_v22 = vld [vmem:[#allocation9 + $0xc0] sm:$0xff] }
 0x40f   :  { %10370 = vmatprep.subr.mxu0 %v11041_v2  ;;  %10405 = vmatprep.subr.mxu1 %v11041_v2  ;;  %v6769_v27 = vld [vmem:[#allocation9 + $0x40] sm:$0xff] }
 0x410   :  { %10371 = vmatpush3.msra.mxu0 %v14002_v35  ;;  %10406 = vmatpush3.msra.mxu1 %v14003_v36  ;;  %v5762_v37 = vpop.f32.mrf.mxu0  ;;  %v5848_v43 = vpop.f32.mrf.mxu1  ;;  %v6787_v35 = vld [vmem:[#allocation9 + $0xb8] sm:$0xff] }
 0x411   :  { %10372 = vmatprep.subr.mxu0 %v11041_v2  ;;  %10407 = vmatprep.subr.mxu1 %v11041_v2  ;;  %v5763_v50 = vadd.f32 %v5762_v37, %v13429_v61  ;;  %v5591_v61 = vadd.f32 1.0, %v10756_v4  ;;  %v6768_v36 = vld [vmem:[#allocation9 + $0x38] sm:$0xff]  ;;  %v6786_v37 = vld [vmem:[#allocation9 + $0xb0] sm:$0xff] }
 0x412   :  { %10373 = vmatpush3.msra.mxu0 %v14004_v48  ;;  %10408 = vmatpush3.msra.mxu1 %v13151_v55  ;;  %v9964_v52 = vpop.f32.mrf.mxu0  ;;  %v9999_v57 = vpop.f32.mrf.mxu1  ;;  %v14007_v55 = vld [vmem:[#allocation80_spill] sm:$0xff]  ;;  %v6766_v48 = vld [vmem:[#allocation9 + $0x28] sm:$0xff] }
 0x413   :  { %10374 = vmatprep.subr.mxu0 %v11041_v2  ;;  %10409 = vmatprep.subr.mxu1 %v11041_v2  ;;  %v5852_v39 = vadd.f32 %v5848_v43, %v5763_v50  ;;  %v6767_v43 = vld [vmem:[#allocation9 + $0x30] sm:$0xff]  ;;  %v6785_v50 = vld [vmem:[#allocation9 + $0xa8] sm:$0xff]  ;;  %v6784_v52 = vld [vmem:[#allocation9 + $0xa0] sm:$0xff] }
 0x414   :  { %10375 = vmatpush3.msra.mxu0 %v13161_v49  ;;  %10410 = vmatpush3.msra.mxu1 %v14005_v44  ;;  %v14009_v49 = vld [vmem:[#allocation82_spill] sm:$0xff]  ;;  %v6764_v44 = vld [vmem:[#allocation9 + $0x18] sm:$0xff] }
 0x415   :  { %10376 = vmatprep.subr.mxu0 %v11041_v2  ;;  %10411 = vmatprep.subr.mxu1 %v11041_v2  ;;  %v6765_v57 = vld [vmem:[#allocation9 + $0x20] sm:$0xff] }
 0x416   :  { %10377 = vmatpush3.msra.mxu0 %v13169_v38  ;;  %10412 = vmatpush3.msra.mxu1 %v14006_v0  ;;  %v14010_v38 = vld [vmem:[#allocation83_spill] sm:$0xff] }
 0x417   :  { %10378 = vmatprep.subr.mxu0 %v11041_v2  ;;  %10413 = vmatprep.subr.mxu1 %v11041_v2  ;;  %v6782_v0 = vld [vmem:[#allocation9 + $0x90] sm:$0xff] }
 0x418   :  { %10379 = vmatpush3.msra.mxu0 %v14007_v55  ;;  %10414 = vmatpush3.msra.mxu1 %v14008_v8  ;;  %v6763_v55 = vld [vmem:[#allocation9 + $0x10] sm:$0xff]  ;;  %v6781_v8 = vld [vmem:[#allocation9 + $0x88] sm:$0xff] }
 0x419   :  { %10380 = vmatprep.subr.mxu0 %v11041_v2  ;;  %10415 = vmatprep.subr.mxu1 %v11041_v2 }
 0x41a   :  { %10381 = vmatpush3.msra.mxu0 %v14009_v49  ;;  %10382 = vmatprep.mubr.msk.f32.mxu0 %vm11042_vm1, %v11041_v2  ;;  %v6762_v49 = vld [vmem:[#allocation9 + $0x8] sm:$0xff] }
 0x41b   :  { %10416 = vmatpush3.msra.mxu1 %v14010_v38  ;;  %10417 = vmatprep.mubr.msk.f32.mxu1 %vm11042_vm1, %v11041_v2  ;;  %v6780_v38 = vld [vmem:[#allocation9 + $0x80] sm:$0xff] }
 0x41c   :  { %10383 = vmatmul.mubr.f32.vlgmr.msra.gmra.mxu0 %v10905_v9  ;;  %10418 = vmatmul.mubr.f32.vlgmr.msra.gmra.mxu1 %v13382_v30  ;;  %v6761_v9 = vld [vmem:[#allocation9] sm:$0xff] }
 0x41d   :  { %10420 = vmatprep.subr.mxu0 %v11041_v2  ;;  %10455 = vmatprep.subr.mxu1 %v11041_v2 }
 0x41e   :  { %10452 = vmatprep.mubr.msk.f32.mxu0 %vm11042_vm1, %v11041_v2  ;;  %10487 = vmatprep.mubr.msk.f32.mxu1 %vm11042_vm1, %v11041_v2 }
 0x41f   :  { %10421 = vmatpush3.msra.mxu0 %v6795_v17  ;;  %10456 = vmatpush3.msra.mxu1 %v6776_v12 }
 0x420   :  { %10422 = vmatprep.subr.mxu0 %v11041_v2  ;;  %10457 = vmatprep.subr.mxu1 %v11041_v2 }
 0x421   :  { %10423 = vmatpush3.msra.mxu0 %v6794_v29  ;;  %10458 = vmatpush3.msra.mxu1 %v6775_v25 }
 0x422   :  { %10424 = vmatprep.subr.mxu0 %v11041_v2  ;;  %10459 = vmatprep.subr.mxu1 %v11041_v2 }
 0x423   :  { %10425 = vmatpush3.msra.mxu0 %v6793_v28  ;;  %10460 = vmatpush3.msra.mxu1 %v6774_v5 }
 0x424   :  { %10426 = vmatprep.subr.mxu0 %v11041_v2  ;;  %10461 = vmatprep.subr.mxu1 %v11041_v2 }
 0x425   :  { %10427 = vmatpush3.msra.mxu0 %v6792_v14  ;;  %10462 = vmatpush3.msra.mxu1 %v6773_v32 }
 0x426   :  { %10428 = vmatprep.subr.mxu0 %v11041_v2  ;;  %10463 = vmatprep.subr.mxu1 %v11041_v2 }
 0x427   :  { %10429 = vmatpush3.msra.mxu0 %v6791_v40  ;;  %10464 = vmatpush3.msra.mxu1 %v6772_v41  ;;  %v6953_v41 = vld [vmem:[#allocation9 + $0x170] sm:$0xff] }
 0x428   :  { %10430 = vmatprep.subr.mxu0 %v11041_v2  ;;  %10465 = vmatprep.subr.mxu1 %v11041_v2 }
 0x429   :  { %10431 = vmatpush3.msra.mxu0 %v6790_v60  ;;  %10466 = vmatpush3.msra.mxu1 %v6771_v7  ;;  %v7041_v60 = vld [vmem:[#allocation9 + $0x1e0] sm:$0xff]  ;;  %v6950_v7 = vld [vmem:[#allocation9 + $0x158] sm:$0xff] }
 0x42a   :  { %10432 = vmatprep.subr.mxu0 %v11041_v2  ;;  %10467 = vmatprep.subr.mxu1 %v11041_v2 }
 0x42b   :  { %10433 = vmatpush3.msra.mxu0 %v6789_v16  ;;  %10468 = vmatpush3.msra.mxu1 %v6770_v19  ;;  %v6949_v16 = vld [vmem:[#allocation9 + $0x150] sm:$0xff] }
 0x42c   :  { %10434 = vmatprep.subr.mxu0 %v11041_v2  ;;  %10469 = vmatprep.subr.mxu1 %v11041_v2  ;;  %v7039_v19 = vld [vmem:[#allocation9 + $0x1d0] sm:$0xff] }
 0x42d   :  { %10435 = vmatpush3.msra.mxu0 %v6788_v22  ;;  %10470 = vmatpush3.msra.mxu1 %v6769_v27  ;;  %v6948_v22 = vld [vmem:[#allocation9 + $0x148] sm:$0xff] }
 0x42e   :  { %10436 = vmatprep.subr.mxu0 %v11041_v2  ;;  %10471 = vmatprep.subr.mxu1 %v11041_v2  ;;  %v7038_v27 = vld [vmem:[#allocation9 + $0x1c8] sm:$0xff] }
 0x42f   :  { %10437 = vmatpush3.msra.mxu0 %v6787_v35  ;;  %10472 = vmatpush3.msra.mxu1 %v6768_v36  ;;  %v6947_v35 = vld [vmem:[#allocation9 + $0x140] sm:$0xff] }
 0x430   :  { %10438 = vmatprep.subr.mxu0 %v11041_v2  ;;  %10473 = vmatprep.subr.mxu1 %v11041_v2  ;;  %v7037_v36 = vld [vmem:[#allocation9 + $0x1c0] sm:$0xff] }
 0x431   :  { %10439 = vmatpush3.msra.mxu0 %v6786_v37  ;;  %10474 = vmatpush3.msra.mxu1 %v6767_v43  ;;  %v6946_v37 = vld [vmem:[#allocation9 + $0x138] sm:$0xff] }
 0x432   :  { %v5935_v30 = vpop.f32.mrf.mxu0  ;;  %v6022_v26 = vpop.f32.mrf.mxu1  ;;  %10440 = vmatprep.subr.mxu0 %v11041_v2  ;;  %10475 = vmatprep.subr.mxu1 %v11041_v2  ;;  %v7036_v43 = vld [vmem:[#allocation9 + $0x1b8] sm:$0xff] }
 0x433   :  { %v5939_v42 = vadd.f32 %v5935_v30, %v5852_v39  ;;  %10441 = vmatpush3.msra.mxu0 %v6785_v50  ;;  %10476 = vmatpush3.msra.mxu1 %v6766_v48  ;;  %v6783_v39 = vld [vmem:[#allocation9 + $0x98] sm:$0xff]  ;;  %v6945_v50 = vld [vmem:[#allocation9 + $0x130] sm:$0xff] }
 0x434   :  { %v10034_v54 = vpop.f32.mrf.mxu0  ;;  %v10069_v58 = vpop.f32.mrf.mxu1  ;;  %10442 = vmatprep.subr.mxu0 %v11041_v2  ;;  %10477 = vmatprep.subr.mxu1 %v11041_v2  ;;  %v7035_v48 = vld [vmem:[#allocation9 + $0x1b0] sm:$0xff] }
 0x435   :  { %v6026_v1 = vadd.f32 %v6022_v26, %v5939_v42  ;;  %10443 = vmatpush3.msra.mxu0 %v6784_v52  ;;  %10478 = vmatpush3.msra.mxu1 %v6765_v57  ;;  %v6944_v52 = vld [vmem:[#allocation9 + $0x128] sm:$0xff] }
 0x436   :  { %10444 = vmatprep.subr.mxu0 %v11041_v2  ;;  %10479 = vmatprep.subr.mxu1 %v11041_v2  ;;  %v7034_v57 = vld [vmem:[#allocation9 + $0x1a8] sm:$0xff] }
 0x437   :  { %v6027_v3 = vadd.f32 %v13538_v13, %v6026_v1  ;;  %10445 = vmatpush3.msra.mxu0 %v6783_v39  ;;  %10480 = vmatpush3.msra.mxu1 %v6764_v44  ;;  %v6943_v39 = vld [vmem:[#allocation9 + $0x120] sm:$0xff] }
 0x438   :  { %10446 = vmatprep.subr.mxu0 %v11041_v2  ;;  %10481 = vmatprep.subr.mxu1 %v11041_v2  ;;  %v7033_v44 = vld [vmem:[#allocation9 + $0x1a0] sm:$0xff] }
 0x439   :  { %v6028_v10 = vsub.f32 0.0, %v6027_v3  ;;  %10447 = vmatpush3.msra.mxu0 %v6782_v0  ;;  %10482 = vmatpush3.msra.mxu1 %v6763_v55  ;;  %v6942_v0 = vld [vmem:[#allocation9 + $0x118] sm:$0xff] }
 0x43a   :  { %10448 = vmatprep.subr.mxu0 %v11041_v2  ;;  %10483 = vmatprep.subr.mxu1 %v11041_v2  ;;  %v7032_v55 = vld [vmem:[#allocation9 + $0x198] sm:$0xff] }
 0x43b   :  { %v6029_v15 = vmul.f32 1.442695, %v6028_v10  ;;  %10449 = vmatpush3.msra.mxu0 %v6781_v8  ;;  %10484 = vmatpush3.msra.mxu1 %v6762_v49  ;;  %v6941_v8 = vld [vmem:[#allocation9 + $0x110] sm:$0xff] }
 0x43c   :  { %10450 = vmatprep.subr.mxu0 %v11041_v2  ;;  %10485 = vmatprep.subr.mxu1 %v11041_v2  ;;  %v7031_v49 = vld [vmem:[#allocation9 + $0x190] sm:$0xff] }
 0x43d   :  { %10757 = vpow2.f32 %v6029_v15  ;;  %10451 = vmatpush3.msra.mxu0 %v6780_v38  ;;  %10486 = vmatpush3.msra.mxu1 %v6761_v9  ;;  %v6940_v38 = vld [vmem:[#allocation9 + $0x108] sm:$0xff] }
 0x43e   :  { %10759 = vrcp.f32 %v5591_v61  ;;  %10490 = vmatprep.subr.mxu0 %v11041_v2  ;;  %10525 = vmatprep.subr.mxu1 %v11041_v2  ;;  %v7030_v9 = vld [vmem:[#allocation9 + $0x188] sm:$0xff] }
 0x44a   :  { %v10758_v51 = vpop.eup %10757 }
 0x44b   :  { %v6031_v59 = vadd.f32 1.0, %v10758_v51  ;;  %v13543_v6 = vpop.eup %10759 }
 0x44d   :  { %10761 = vrcp.f32 %v6031_v59 }
 0x454   :  { %v6101_v21 = vpop.f32.mrf.mxu0  ;;  %v6171_v62 = vpop.f32.mrf.mxu1 }
 0x455   :  { %v6172_v23 = vadd.f32 %v6171_v62, %v6101_v21 }
 0x456   :  { %v10104_v63 = vpop.f32.mrf.mxu0  ;;  %v10139_v18 = vpop.f32.mrf.mxu1 }
 0x45a   :  { %v13545_v47 = vpop.eup %10761 }
 0x45b   :  { %v6034_v53 = vmax.f32 %v13543_v6, %v13545_v47  ;;  %v6954_v6 = vld [vmem:[#allocation9 + $0x178] sm:$0xff] }
 0x45c   :  { %v7044_v47 = vld [vmem:[#allocation9 + $0x1f8] sm:$0xff] }
 0x476   :  { %v6241_v33 = vpop.f32.mrf.mxu0  ;;  %v6312_v34 = vpop.f32.mrf.mxu1 }
 0x477   :  { %v6245_v45 = vadd.f32 %v6241_v33, %v6172_v23 }
 0x478   :  { %v10174_v31 = vpop.f32.mrf.mxu0  ;;  %v10209_v56 = vpop.f32.mrf.mxu1 }
 0x479   :  { %v13559_v11 = vadd.f32 %v6312_v34, %v6245_v45  ;;  %v7043_v45 = vld [vmem:[#allocation9 + $0x1f0] sm:$0xff]  ;;  %v7042_v31 = vld [vmem:[#allocation9 + $0x1e8] sm:$0xff]  ;;  %v6951_v56 = vld [vmem:[#allocation9 + $0x160] sm:$0xff] }
 0x498   :  { %v6385_v20 = vpop.f32.mrf.mxu0  ;;  %v6464_v24 = vpop.f32.mrf.mxu1 }
 0x499   :  { %v6389_v30 = vadd.f32 %v6385_v20, %v13559_v11  ;;  %v7040_v11 = vld [vmem:[#allocation9 + $0x1d8] sm:$0xff]  ;;  %v6939_v20 = vld [vmem:[#allocation9 + $0x100] sm:$0xff] }
 0x49a   :  { %v10244_v26 = vpop.f32.mrf.mxu0  ;;  %v10279_v42 = vpop.f32.mrf.mxu1 }
 0x49b   :  { %v6390_v46 = vadd.f32 %v13538_v13, %v6389_v30  ;;  %v7134_v30 = vld [vmem:[#allocation9 + $0x278] sm:$0xff] }
 0x49d   :  { %v6391_v54 = vsub.f32 0.0, %v6390_v46  ;;  %v7133_v46 = vld [vmem:[#allocation9 + $0x270] sm:$0xff] }
 0x49f   :  { %v6392_v58 = vmul.f32 1.442695, %v6391_v54  ;;  %v7132_v54 = vld [vmem:[#allocation9 + $0x268] sm:$0xff] }
 0x4a1   :  { %10763 = vpow2.f32 %v6392_v58  ;;  %v7131_v58 = vld [vmem:[#allocation9 + $0x260] sm:$0xff] }
 0x4ae   :  { %v10764_v1 = vpop.eup %10763 }
 0x4af   :  { %v6394_v3 = vadd.f32 1.0, %v10764_v1  ;;  %v7130_v1 = vld [vmem:[#allocation9 + $0x258] sm:$0xff] }
 0x4b1   :  { %10765 = vrcp.f32 %v6394_v3  ;;  %v7129_v3 = vld [vmem:[#allocation9 + $0x250] sm:$0xff] }
 0x4ba   :  { %v6534_v10 = vpop.f32.mrf.mxu0  ;;  %v6604_v15 = vpop.f32.mrf.mxu1 }
 0x4bb   :  { %v6535_v21 = vadd.f32 %v6534_v10, %v6464_v24  ;;  %v7029_v24 = vld [vmem:[#allocation9 + $0x180] sm:$0xff]  ;;  %v7128_v10 = vld [vmem:[#allocation9 + $0x248] sm:$0xff] }
 0x4bc   :  { %v10314_v4 = vpop.f32.mrf.mxu0  ;;  %v10349_v61 = vpop.f32.mrf.mxu1 }
 0x4bd   :  { %v6608_v62 = vadd.f32 %v6604_v15, %v6535_v21  ;;  %v7127_v15 = vld [vmem:[#allocation9 + $0x240] sm:$0xff]  ;;  %v7126_v4 = vld [vmem:[#allocation9 + $0x238] sm:$0xff]  ;;  %v7125_v61 = vld [vmem:[#allocation9 + $0x230] sm:$0xff] }
 0x4be   :  { %v10766_v51 = vpop.eup %10765  ;;  %v7122_v21 = vld [vmem:[#allocation9 + $0x218] sm:$0xff] }
 0x4bf   :  { %v6397_v59 = vmax.f32 %v6034_v53, %v10766_v51  ;;  %v7124_v51 = vld [vmem:[#allocation9 + $0x228] sm:$0xff] }
 0x4dc   :  { %v6675_v23 = vpop.f32.mrf.mxu0  ;;  %v6746_v63 = vpop.f32.mrf.mxu1 }
 0x4dd   :  { %v6679_v18 = vadd.f32 %v6675_v23, %v6608_v62  ;;  %v7121_v62 = vld [vmem:[#allocation9 + $0x210] sm:$0xff]  ;;  %v7120_v23 = vld [vmem:[#allocation9 + $0x208] sm:$0xff] }
 0x4de   :  { %v10384_v17 = vpop.f32.mrf.mxu0  ;;  %v10419_v12 = vpop.f32.mrf.mxu1 }
 0x4df   :  { %v6750_v29 = vadd.f32 %v6746_v63, %v6679_v18  ;;  %v7119_v63 = vld [vmem:[#allocation9 + $0x200] sm:$0xff]  ;;  %v7235_v17 = vld [vmem:[#allocation10 + $0x78] sm:$0xff]  ;;  %v7234_v12 = vld [vmem:[#allocation10 + $0x70] sm:$0xff] }
 0x4e1   :  { %v6751_v25 = vadd.f32 %v13538_v13, %v6750_v29  ;;  %v6952_v13 = vld [vmem:[#allocation9 + $0x168] sm:$0xff] }
 0x4e2   :  { %v7233_v29 = vld [vmem:[#allocation10 + $0x68] sm:$0xff] }
 0x4e3   :  { %v6752_v28 = vsub.f32 0.0, %v6751_v25  ;;  %v7232_v25 = vld [vmem:[#allocation10 + $0x60] sm:$0xff] }
 0x4e5   :  { %v6753_v5 = vmul.f32 1.442695, %v6752_v28  ;;  %v7231_v28 = vld [vmem:[#allocation10 + $0x58] sm:$0xff] }
 0x4e7   :  { %10767 = vpow2.f32 %v6753_v5  ;;  %v7230_v5 = vld [vmem:[#allocation10 + $0x50] sm:$0xff] }
 0x4f4   :  { %v10768_v14 = vpop.eup %10767 }
 0x4f5   :  { %v6755_v32 = vadd.f32 1.0, %v10768_v14  ;;  %v7229_v14 = vld [vmem:[#allocation10 + $0x48] sm:$0xff] }
 0x4f7   :  { %10769 = vrcp.f32 %v6755_v32  ;;  %v7228_v32 = vld [vmem:[#allocation10 + $0x40] sm:$0xff] }
 0x504   :  { %v10770_v33 = vpop.eup %10769 }
 0x505   :  { %v6758_v34 = vmax.f32 %v6397_v59, %v10770_v33  ;;  %v7123_v59 = vld [vmem:[#allocation9 + $0x220] sm:$0xff]  ;;  %v7227_v33 = vld [vmem:[#allocation10 + $0x38] sm:$0xff] }
 0x507   :  { %6759 = vst [vmem:[#allocation3 + $0x8] sm:$0x1f] %v6758_v34  ;;  %v7226_v34 = vld [vmem:[#allocation10 + $0x30] sm:$0xff] }
 0x50e   :  { %v6778_v53 = vld [vmem:[#allocation3 + $0x1] ss:$8 sm:$0x3]  ;;  %v6760_v40 = vld [vmem:[#allocation3] ss:$8 sm:$0x3] }
 0x50f   :  { %10453 = vmatmul.mubr.f32.vlgmr.msra.gmra.mxu0 %v6778_v53  ;;  %10488 = vmatmul.mubr.f32.vlgmr.msra.gmra.mxu1 %v6760_v40  ;;  %v6937_v26 = vld [vmem:[#allocation3 + $0x2] ss:$8 sm:$0x3]  ;;  %v7027_v42 = vld [vmem:[#allocation3 + $0x3] ss:$8 sm:$0x3] }
 0x510   :  { %10491 = vmatpush3.msra.mxu0 %v6954_v6  ;;  %10526 = vmatpush3.msra.mxu1 %v7044_v47  ;;  %v7117_v18 = vld [vmem:[#allocation3 + $0x4] ss:$8 sm:$0x3]  ;;  %v7225_v6 = vld [vmem:[#allocation10 + $0x28] sm:$0xff]  ;;  %v7224_v47 = vld [vmem:[#allocation10 + $0x20] sm:$0xff] }
 0x511   :  { %10492 = vmatprep.subr.mxu0 %v11041_v2  ;;  %10527 = vmatprep.subr.mxu1 %v11041_v2  ;;  %v7223_v53 = vld [vmem:[#allocation10 + $0x18] sm:$0xff]  ;;  %v7222_v40 = vld [vmem:[#allocation10 + $0x10] sm:$0xff] }
 0x512   :  { %10493 = vmatpush3.msra.mxu0 %v6953_v41  ;;  %10528 = vmatpush3.msra.mxu1 %v7043_v45  ;;  %v7221_v41 = vld [vmem:[#allocation10 + $0x8] sm:$0xff]  ;;  %v7220_v45 = vld [vmem:[#allocation10] sm:$0xff] }
 0x513   :  { %10494 = vmatprep.subr.mxu0 %v11041_v2  ;;  %10529 = vmatprep.subr.mxu1 %v11041_v2 }
 0x514   :  { %10495 = vmatpush3.msra.mxu0 %v6952_v13  ;;  %10530 = vmatpush3.msra.mxu1 %v7042_v31 }
 0x515   :  { %10496 = vmatprep.subr.mxu0 %v11041_v2  ;;  %10531 = vmatprep.subr.mxu1 %v11041_v2 }
 0x516   :  { %10497 = vmatpush3.msra.mxu0 %v6951_v56  ;;  %10532 = vmatpush3.msra.mxu1 %v7041_v60 }
 0x517   :  { %10498 = vmatprep.subr.mxu0 %v11041_v2  ;;  %10533 = vmatprep.subr.mxu1 %v11041_v2 }
 0x518   :  { %10499 = vmatpush3.msra.mxu0 %v6950_v7  ;;  %10534 = vmatpush3.msra.mxu1 %v7040_v11 }
 0x519   :  { %10500 = vmatprep.subr.mxu0 %v11041_v2  ;;  %10535 = vmatprep.subr.mxu1 %v11041_v2 }
 0x51a   :  { %10501 = vmatpush3.msra.mxu0 %v6949_v16  ;;  %10536 = vmatpush3.msra.mxu1 %v7039_v19 }
 0x51b   :  { %10502 = vmatprep.subr.mxu0 %v11041_v2  ;;  %10537 = vmatprep.subr.mxu1 %v11041_v2 }
 0x51c   :  { %10503 = vmatpush3.msra.mxu0 %v6948_v22  ;;  %10538 = vmatpush3.msra.mxu1 %v7038_v27 }
 0x51d   :  { %10504 = vmatprep.subr.mxu0 %v11041_v2  ;;  %10539 = vmatprep.subr.mxu1 %v11041_v2 }
 0x51e   :  { %10505 = vmatpush3.msra.mxu0 %v6947_v35  ;;  %10540 = vmatpush3.msra.mxu1 %v7037_v36 }
 0x51f   :  { %10506 = vmatprep.subr.mxu0 %v11041_v2  ;;  %10541 = vmatprep.subr.mxu1 %v11041_v2 }
 0x520   :  { %10507 = vmatpush3.msra.mxu0 %v6946_v37  ;;  %10542 = vmatpush3.msra.mxu1 %v7036_v43  ;;  %v7538_v37 = vld [vmem:[%s13695_s6] ss:$0 sm:$0xff] }
 0x521   :  { %10508 = vmatprep.subr.mxu0 %v11041_v2  ;;  %10543 = vmatprep.subr.mxu1 %v11041_v2 }
 0x522   :  { %10509 = vmatpush3.msra.mxu0 %v6945_v50  ;;  %10544 = vmatpush3.msra.mxu1 %v7035_v48 }
 0x523   :  { %10510 = vmatprep.subr.mxu0 %v11041_v2  ;;  %10545 = vmatprep.subr.mxu1 %v11041_v2 }
 0x524   :  { %10511 = vmatpush3.msra.mxu0 %v6944_v52  ;;  %10546 = vmatpush3.msra.mxu1 %v7034_v57 }
 0x525   :  { %10512 = vmatprep.subr.mxu0 %v11041_v2  ;;  %10547 = vmatprep.subr.mxu1 %v11041_v2 }
 0x526   :  { %10513 = vmatpush3.msra.mxu0 %v6943_v39  ;;  %10548 = vmatpush3.msra.mxu1 %v7033_v44 }
 0x527   :  { %10514 = vmatprep.subr.mxu0 %v11041_v2  ;;  %10549 = vmatprep.subr.mxu1 %v11041_v2 }
 0x528   :  { %10515 = vmatpush3.msra.mxu0 %v6942_v0  ;;  %10550 = vmatpush3.msra.mxu1 %v7032_v55  ;;  %v7334_v55 = vld [vmem:[#allocation12 + $0x78] sm:$0xff] }
 0x529   :  { %10516 = vmatprep.subr.mxu0 %v11041_v2  ;;  %10551 = vmatprep.subr.mxu1 %v11041_v2 }
 0x52a   :  { %10517 = vmatpush3.msra.mxu0 %v6941_v8  ;;  %10552 = vmatpush3.msra.mxu1 %v7031_v49  ;;  %v7333_v8 = vld [vmem:[#allocation12 + $0x70] sm:$0xff]  ;;  %v7332_v49 = vld [vmem:[#allocation12 + $0x68] sm:$0xff] }
 0x52b   :  { %10518 = vmatprep.subr.mxu0 %v11041_v2  ;;  %10553 = vmatprep.subr.mxu1 %v11041_v2 }
 0x52c   :  { %10519 = vmatpush3.msra.mxu0 %v6940_v38  ;;  %10554 = vmatpush3.msra.mxu1 %v7030_v9  ;;  %v7331_v38 = vld [vmem:[#allocation12 + $0x60] sm:$0xff]  ;;  %v7330_v9 = vld [vmem:[#allocation12 + $0x58] sm:$0xff] }
 0x52d   :  { %10520 = vmatprep.subr.mxu0 %v11041_v2  ;;  %10555 = vmatprep.subr.mxu1 %v11041_v2 }
 0x52e   :  { %10521 = vmatpush3.msra.mxu0 %v6939_v20  ;;  %10522 = vmatprep.mubr.msk.f32.mxu0 %vm11042_vm1, %v11041_v2  ;;  %v7329_v20 = vld [vmem:[#allocation12 + $0x50] sm:$0xff] }
 0x52f   :  { %10556 = vmatpush3.msra.mxu1 %v7029_v24  ;;  %10557 = vmatprep.mubr.msk.f32.mxu1 %vm11042_vm1, %v11041_v2  ;;  %v7328_v24 = vld [vmem:[#allocation12 + $0x48] sm:$0xff] }
 0x530   :  { %10523 = vmatmul.mubr.f32.vlgmr.msra.gmra.mxu0 %v6937_v26  ;;  %10558 = vmatmul.mubr.f32.vlgmr.msra.gmra.mxu1 %v7027_v42  ;;  %v7326_v26 = vld [vmem:[#allocation12 + $0x38] sm:$0xff]  ;;  %v7325_v42 = vld [vmem:[#allocation12 + $0x30] sm:$0xff] }
 0x531   :  { %10560 = vmatprep.subr.mxu0 %v11041_v2  ;;  %10592 = vmatprep.mubr.msk.f32.mxu0 %vm11042_vm1, %v11041_v2 }
 0x532   :  { %10561 = vmatpush3.msra.mxu0 %v7134_v30  ;;  %10595 = vmatprep.subr.mxu1 %v11041_v2  ;;  %v7327_v30 = vld [vmem:[#allocation12 + $0x40] sm:$0xff] }
 0x533   :  { %10562 = vmatprep.subr.mxu0 %v11041_v2  ;;  %10627 = vmatprep.mubr.msk.f32.mxu1 %vm11042_vm1, %v11041_v2 }
 0x534   :  { %10563 = vmatpush3.msra.mxu0 %v7133_v46  ;;  %10596 = vmatpush3.msra.mxu1 %v7235_v17  ;;  %v7324_v46 = vld [vmem:[#allocation12 + $0x28] sm:$0xff] }
 0x535   :  { %10564 = vmatprep.subr.mxu0 %v11041_v2  ;;  %10597 = vmatprep.subr.mxu1 %v11041_v2 }
 0x536   :  { %10565 = vmatpush3.msra.mxu0 %v7132_v54  ;;  %10598 = vmatpush3.msra.mxu1 %v7234_v12  ;;  %v7323_v54 = vld [vmem:[#allocation12 + $0x20] sm:$0xff] }
 0x537   :  { %10566 = vmatprep.subr.mxu0 %v11041_v2  ;;  %10599 = vmatprep.subr.mxu1 %v11041_v2 }
 0x538   :  { %10567 = vmatpush3.msra.mxu0 %v7131_v58  ;;  %10600 = vmatpush3.msra.mxu1 %v7233_v29  ;;  %v7322_v58 = vld [vmem:[#allocation12 + $0x18] sm:$0xff] }
 0x539   :  { %10568 = vmatprep.subr.mxu0 %v11041_v2  ;;  %10601 = vmatprep.subr.mxu1 %v11041_v2 }
 0x53a   :  { %10569 = vmatpush3.msra.mxu0 %v7130_v1  ;;  %10602 = vmatpush3.msra.mxu1 %v7232_v25  ;;  %v7321_v1 = vld [vmem:[#allocation12 + $0x10] sm:$0xff] }
 0x53b   :  { %10570 = vmatprep.subr.mxu0 %v11041_v2  ;;  %10603 = vmatprep.subr.mxu1 %v11041_v2 }
 0x53c   :  { %10571 = vmatpush3.msra.mxu0 %v7129_v3  ;;  %10604 = vmatpush3.msra.mxu1 %v7231_v28  ;;  %v7320_v3 = vld [vmem:[#allocation12 + $0x8] sm:$0xff] }
 0x53d   :  { %10572 = vmatprep.subr.mxu0 %v11041_v2  ;;  %10605 = vmatprep.subr.mxu1 %v11041_v2 }
 0x53e   :  { %10573 = vmatpush3.msra.mxu0 %v7128_v10  ;;  %10606 = vmatpush3.msra.mxu1 %v7230_v5  ;;  %v7319_v10 = vld [vmem:[#allocation12] sm:$0xff] }
 0x53f   :  { %10574 = vmatprep.subr.mxu0 %v11041_v2  ;;  %10607 = vmatprep.subr.mxu1 %v11041_v2 }
 0x540   :  { %10575 = vmatpush3.msra.mxu0 %v7127_v15  ;;  %10608 = vmatpush3.msra.mxu1 %v7229_v14  ;;  %v7539_v15 = vld [vmem:[%s13697_s8] ss:$0 sm:$0xff]  ;;  %s11006_s8 = scalar_lea.vmem %s7421_s12, 32 }
 0x541   :  { %10576 = vmatprep.subr.mxu0 %v11041_v2  ;;  %10609 = vmatprep.subr.mxu1 %v11041_v2  ;;  %p11007_p11 = scmp.ne.s32.totalorder %s7421_s12, %s11006_s8  ;;  %p11012_p13 = scmp.lt.s32.totalorder %s11006_s8, %s11006_s8 }
 0x542   :  { %10577 = vmatpush3.msra.mxu0 %v7126_v4  ;;  %10610 = vmatpush3.msra.mxu1 %v7228_v32 }
 0x543   :  { %10578 = vmatprep.subr.mxu0 %v11041_v2  ;;  %10611 = vmatprep.subr.mxu1 %v11041_v2  ;;  %p11013_p0 = por %p11012_p13, %p11011_p12 }
 0x544   :  { %10579 = vmatpush3.msra.mxu0 %v7125_v61  ;;  %10612 = vmatpush3.msra.mxu1 %v7227_v33 }
 0x545   :  { %10580 = vmatprep.subr.mxu0 %v11041_v2  ;;  %10613 = vmatprep.subr.mxu1 %v11041_v2  ;;  %p11014_p1 = pnand %p11013_p0, %p11007_p11 }
 0x546   :  { %10581 = vmatpush3.msra.mxu0 %v7124_v51  ;;  %10614 = vmatpush3.msra.mxu1 %v7226_v34 }
 0x547   :  { %10582 = vmatprep.subr.mxu0 %v11041_v2  ;;  %10615 = vmatprep.subr.mxu1 %v11041_v2 }
 0x548   :  { %10583 = vmatpush3.msra.mxu0 %v7123_v59  ;;  %10616 = vmatpush3.msra.mxu1 %v7225_v6 }
 0x549   :  { %10584 = vmatprep.subr.mxu0 %v11041_v2  ;;  %10617 = vmatprep.subr.mxu1 %v11041_v2 }
 0x54a   :  { %10585 = vmatpush3.msra.mxu0 %v7122_v21  ;;  %10618 = vmatpush3.msra.mxu1 %v7224_v47 }
 0x54b   :  { %10586 = vmatprep.subr.mxu0 %v11041_v2  ;;  %10619 = vmatprep.subr.mxu1 %v11041_v2 }
 0x54c   :  { %10587 = vmatpush3.msra.mxu0 %v7121_v62  ;;  %10620 = vmatpush3.msra.mxu1 %v7223_v53 }
 0x54d   :  { %10588 = vmatprep.subr.mxu0 %v11041_v2  ;;  %10621 = vmatprep.subr.mxu1 %v11041_v2 }
 0x54e   :  { %10589 = vmatpush3.msra.mxu0 %v7120_v23  ;;  %10622 = vmatpush3.msra.mxu1 %v7222_v40 }
 0x54f   :  { %10590 = vmatprep.subr.mxu0 %v11041_v2  ;;  %10623 = vmatprep.subr.mxu1 %v11041_v2 }
 0x550   :  { %10591 = vmatpush3.msra.mxu0 %v7119_v63  ;;  %10624 = vmatpush3.msra.mxu1 %v7221_v41 }
 0x551   :  { %10593 = vmatmul.mubr.f32.vlgmr.msra.gmra.mxu0 %v7117_v18  ;;  %10630 = vmatprep.subr.mxu0 %v11041_v2 }
 0x552   :  { %10662 = vmatprep.mubr.msk.f32.mxu0 %vm11042_vm1, %v11041_v2  ;;  %10625 = vmatprep.subr.mxu1 %v11041_v2 }
 0x553   :  { %10626 = vmatpush3.msra.mxu1 %v7220_v45  ;;  %10631 = vmatpush3.msra.mxu0 %v7334_v55 }
 0x554   :  { %10632 = vmatprep.subr.mxu0 %v11041_v2 }
 0x555   :  { %10633 = vmatpush3.msra.mxu0 %v7333_v8 }
 0x556   :  { %10634 = vmatprep.subr.mxu0 %v11041_v2 }
 0x557   :  { %10635 = vmatpush3.msra.mxu0 %v7332_v49 }
 0x558   :  { %10636 = vmatprep.subr.mxu0 %v11041_v2 }
 0x559   :  { %10637 = vmatpush3.msra.mxu0 %v7331_v38 }
 0x55a   :  { %10638 = vmatprep.subr.mxu0 %v11041_v2 }
 0x55b   :  { %10639 = vmatpush3.msra.mxu0 %v7330_v9 }
 0x55c   :  { %10640 = vmatprep.subr.mxu0 %v11041_v2 }
 0x55d   :  { %10641 = vmatpush3.msra.mxu0 %v7329_v20 }
 0x55e   :  { %10642 = vmatprep.subr.mxu0 %v11041_v2 }
 0x55f   :  { %10643 = vmatpush3.msra.mxu0 %v7328_v24 }
 0x560   :  { %10644 = vmatprep.subr.mxu0 %v11041_v2 }
 0x561   :  { %10645 = vmatpush3.msra.mxu0 %v7327_v30 }
 0x562   :  { %10646 = vmatprep.subr.mxu0 %v11041_v2 }
 0x563   :  { %10647 = vmatpush3.msra.mxu0 %v7326_v26 }
 0x564   :  { %10648 = vmatprep.subr.mxu0 %v11041_v2 }
 0x565   :  { %10649 = vmatpush3.msra.mxu0 %v7325_v42 }
 0x566   :  { %10650 = vmatprep.subr.mxu0 %v11041_v2 }
 0x567   :  { %10651 = vmatpush3.msra.mxu0 %v7324_v46 }
 0x568   :  { %10652 = vmatprep.subr.mxu0 %v11041_v2 }
 0x569   :  { %10653 = vmatpush3.msra.mxu0 %v7323_v54 }
 0x56a   :  { %10654 = vmatprep.subr.mxu0 %v11041_v2 }
 0x56b   :  { %10655 = vmatpush3.msra.mxu0 %v7322_v58 }
 0x56c   :  { %10656 = vmatprep.subr.mxu0 %v11041_v2 }
 0x56d   :  { %10657 = vmatpush3.msra.mxu0 %v7321_v1 }
 0x56e   :  { %10658 = vmatprep.subr.mxu0 %v11041_v2 }
 0x56f   :  { %10659 = vmatpush3.msra.mxu0 %v7320_v3 }
 0x570   :  { %10660 = vmatprep.subr.mxu0 %v11041_v2  ;;  %v7540_v2 = vld [vmem:[%s13699_s10] ss:$0 sm:$0xff] }
 0x571   :  { %10661 = vmatpush3.msra.mxu0 %v7319_v10 }
 0x5cf   :  { %v6862_v13 = vpop.f32.mrf.mxu0  ;;  %v6932_v31 = vpop.f32.mrf.mxu1 }
 0x5d0   :  { %v6933_v22 = vadd.f32 %v6932_v31, %v6862_v13 }
 0x5d1   :  { %v10454_v56 = vpop.f32.mrf.mxu0  ;;  %v10489_v60 = vpop.f32.mrf.mxu1 }
 0x5f0   :  { %v7021_v7 = vpop.f32.mrf.mxu0  ;;  %v7111_v11 = vpop.f32.mrf.mxu1 }
 0x5f1   :  { %v7025_v27 = vadd.f32 %v7021_v7, %v6933_v22 }
 0x5f2   :  { %v10524_v16 = vpop.f32.mrf.mxu0  ;;  %v10559_v19 = vpop.f32.mrf.mxu1 }
 0x5f3   :  { %v7115_v35 = vadd.f32 %v7111_v11, %v7025_v27 }
 0x611   :  { %v7201_v36 = vpop.f32.mrf.mxu0 }
 0x612   :  { %v7205_v43 = vadd.f32 %v7201_v36, %v7115_v35 }
 0x613   :  { %v10594_v50 = vpop.f32.mrf.mxu0 }
 0x614   :  { %v7213_v48 = vadd.f32 %v7538_v37, %v7205_v43 }
 0x616   :  { %v7214_v52 = vsub.f32 0.0, %v7213_v48 }
 0x618   :  { %v7215_v57 = vmul.f32 1.442695, %v7214_v52 }
 0x61a   :  { %10771 = vpow2.f32 %v7215_v57 }
 0x627   :  { %v10772_v39 = vpop.eup %10771 }
 0x628   :  { %v7217_v44 = vadd.f32 1.0, %v10772_v39 }
 0x62a   :  { %10773 = vrcp.f32 %v7217_v44 }
 0x637   :  { %v10774_v0 = vpop.eup %10773 }
 0x638   :  { %10628 = vmatmul.mubr.f32.vlgmr.msra.gmra.mxu1 %v10774_v0 }
 0x6f8   :  { %v7309_v4 = vpop.f32.mrf.mxu1 }
 0x6f9   :  { %v7310_v61 = vadd.f32 %v7539_v15, %v7309_v4 }
 0x6fa   :  { %v10629_v51 = vpop.f32.mrf.mxu1 }
 0x6fb   :  { %v7313_v59 = vsub.f32 0.0, %v7310_v61 }
 0x6fd   :  { %v7314_v21 = vmul.f32 1.442695, %v7313_v59 }
 0x6ff   :  { %10775 = vpow2.f32 %v7314_v21 }
 0x70c   :  { %v10776_v62 = vpop.eup %10775 }
 0x70d   :  { %v7316_v23 = vadd.f32 1.0, %v10776_v62 }
 0x70f   :  { %10777 = vrcp.f32 %v7316_v23 }
 0x71c   :  { %v10778_v63 = vpop.eup %10777 }
 0x71d   :  { %10663 = vmatmul.mubr.f32.vlgmr.msra.gmra.mxu0 %v10778_v63 }
 0x7dd   :  { %v7408_v18 = vpop.f32.mrf.mxu0 }
 0x7de   :  { %v7409_v17 = vadd.f32 %v7540_v2, %v7408_v18 }
 0x7df   :  { %v10664_v12 = vpop.f32.mrf.mxu0 }
 0x7e0   :  { %7413 = vst.msk [vmem:[#allocation13] sm:$0x3] %vm7412_vm2, %v7409_v17 }
 0x7e1   :  { %11017 = shalt.err (!%p11014_p1)
}
 0x7e2   :  { %7423 = dma.vmem_to_hbm [thread:$0]  %s7421_s12, 32, %s13700_s11, [#allocation6]  }
 0x7e3   :  { %11032 = dma.done.wait [#allocation6], 32  }
 0x7e4   :  { %11033 = vsyncadd [#allocation6], 4294967264 }
 0x7e5   :  { %7427 = vsyncpa [#allocation5], 1 }
 0x7e6   :  { %7428 = vsyncpa [#allocation8], 1 }
 0x7e7   :  { %7429 = vsyncpa [#allocation11], 1 }
 0x7e8   :  { %7430 = vsyncpa [#allocation6], 1 }

</bundles_post_ra>
